<compile_context>
chip_gen: v5e
topology: v5e:2x2
jax: 0.10.0
libtpu: 0.0.40
codegen_flags: <defaults>
</compile_context>

<pallas_src>
import jax
import jax.numpy as jnp
from jax.experimental import pallas as pl
from jax.experimental.pallas import tpu as pltpu

LN_EPS = 1e-5  # PyTorch nn.LayerNorm default eps


def ffn_kernel(x_ref, w1_ref, b1_ref, w2_ref, b2_ref, gamma_ref, beta_ref, o_ref):
    # x_ref: (TM, C) f32   w1_ref: (C, 4C) bf16   b1_ref: (1, 4C) f32
    # w2_ref: (4C, C) bf16 b2_ref: (1, C) f32     gamma/beta: (1, C) f32
    # o_ref: (TM, C) f32

    # Linear(C, 4C) + ReLU  — bf16 MXU operands, f32 accumulate; bias/relu on VPU in f32.
    x_bf = x_ref[...].astype(jnp.bfloat16)
    h = jnp.dot(x_bf, w1_ref[...], preferred_element_type=jnp.float32)
    h = jnp.maximum(h + b1_ref[...], 0.0)

    # Linear(4C, C) — cast activations to bf16 for the MXU, accumulate f32.
    y = jnp.dot(h.astype(jnp.bfloat16), w2_ref[...],
                preferred_element_type=jnp.float32) + b2_ref[...]

    # LayerNorm over the channel dim — one-pass stats, rsqrt on the EUP, f32 math.
    mean = jnp.mean(y, axis=-1, keepdims=True)
    mean_sq = jnp.mean(y * y, axis=-1, keepdims=True)
    var = mean_sq - mean * mean
    y = (y - mean) * jax.lax.rsqrt(var + LN_EPS)
    y = y * gamma_ref[...] + beta_ref[...]

    o_ref[...] = y.astype(o_ref.dtype)


def _choose_block_rows(rows, requested):
    """Pick a sublane-aligned row tile, keeping >= 2 grid steps when possible
    so both v7x TensorCores get work. `rows` need not divide evenly — Pallas
    masks the ragged last block's writes."""
    requested = max(8, (requested // 8) * 8)
    if rows >= 2 * requested:
        return requested
    half = -(-rows // 2)          # ceil(rows / 2)
    half = -(-half // 8) * 8      # round up to a multiple of 8 (sublane)
    return max(8, min(requested, half))


def feed_forward(x, w1, b1, w2, b2, gamma, beta, *, block_rows=512):
    """Forward pass of FeedForward (eval mode).

    x:      (B, T, C) float32
    w1, b1: PyTorch-style Linear(C, 4C) params — w1: (4C, C), b1: (4C,)
    w2, b2: PyTorch-style Linear(4C, C) params — w2: (C, 4C), b2: (C,)
    gamma, beta: LayerNorm(C) affine params — (C,), (C,)
    """
    B, T, C = x.shape
    H = w1.shape[0]  # 4*C

    rows = B * T
    xf = x.reshape(rows, C)          # no padding / extra HBM pass

    block_rows = _choose_block_rows(rows, block_rows)
    grid = (pl.cdiv(rows, block_rows),)

    # Pre-transpose weights once and store them as bf16 (native MXU operand,
    # half the weight DMA). Biases / LayerNorm affines stay f32.
    w1_t = w1.T.astype(jnp.bfloat16)         # (C, 4C)
    w2_t = w2.T.astype(jnp.bfloat16)         # (4C, C)
    b1_2d = b1.reshape(1, H).astype(jnp.float32)
    b2_2d = b2.reshape(1, C).astype(jnp.float32)
    gamma_2d = gamma.reshape(1, C).astype(jnp.float32)
    beta_2d = beta.reshape(1, C).astype(jnp.float32)

    # Constant-index_map operands: single-buffered (no re-fetch across steps).
    def resident_spec(shape):
        return pl.BlockSpec(shape, lambda i: (0, 0), pipeline_mode=pl.Buffered(1))

    # VMEM budget: double-buffered x/out f32 tiles + single-buffered bf16
    # weights + f32/bf16 intermediates + headroom.
    vmem_bytes = (
        2 * 2 * block_rows * C * 4            # x + out tiles, f32, double-buffered
        + 2 * C * H * 2                       # w1^T + w2^T, bf16, single-buffered
        + (H + 3 * C) * 4                     # b1, b2, gamma, beta
        + block_rows * H * (4 + 2)            # h (f32) + bf16 copy
        + block_rows * C * 4                  # y temp
        + (8 << 20)                           # compiler scratch / headroom
    )
    vmem_limit = int(min(vmem_bytes, 56 << 20))

    out = pl.pallas_call(
        ffn_kernel,
        out_shape=jax.ShapeDtypeStruct((rows, C), x.dtype),
        grid_spec=pltpu.PrefetchScalarGridSpec(
            num_scalar_prefetch=0,
            grid=grid,
            in_specs=[
                pl.BlockSpec((block_rows, C), lambda i: (i, 0)),  # x rows
                resident_spec((C, H)),                            # w1^T (bf16)
                resident_spec((1, H)),                            # b1
                resident_spec((H, C)),                            # w2^T (bf16)
                resident_spec((1, C)),                            # b2
                resident_spec((1, C)),                            # gamma
                resident_spec((1, C)),                            # beta
            ],
            out_specs=pl.BlockSpec((block_rows, C), lambda i: (i, 0)),
        ),
        compiler_params=pltpu.CompilerParams(
            dimension_semantics=("parallel",),
            vmem_limit_bytes=vmem_limit,
        ),
    )(xf, w1_t, b1_2d, w2_t, b2_2d, gamma_2d, beta_2d)

    return out.reshape(B, T, C)


def feed_forward_reference(x, w1, b1, w2, b2, gamma, beta):
    """Pure-JAX f32 reference mirroring the PyTorch forward (eval mode)."""
    h = jnp.maximum(x @ w1.T + b1, 0.0)
    y = h @ w2.T + b2
    mean = jnp.mean(y, axis=-1, keepdims=True)
    var = jnp.mean((y - mean) ** 2, axis=-1, keepdims=True)
    y = (y - mean) / jnp.sqrt(var + LN_EPS)
    return y * gamma + beta


if __name__ == "__main__":
    # Shapes consistent with the module: n_embed = 384, hidden = 4 * 384 = 1536.
    # B=2, T=128 -> 256 rows -> two 128-row tiles (>= 2 parallel grid steps).
    B, T, C = 2, 128, 384
    H = 4 * C

    key = jax.random.PRNGKey(0)
    kx, k1, kb1, k2, kb2, kg, kb = jax.random.split(key, 7)

    x = jax.random.normal(kx, (B, T, C), dtype=jnp.float32)

    # nn.Linear default init ranges: U(-1/sqrt(in), 1/sqrt(in))
    s1 = 1.0 / jnp.sqrt(C)
    s2 = 1.0 / jnp.sqrt(H)
    w1 = jax.random.uniform(k1, (H, C), minval=-s1, maxval=s1, dtype=jnp.float32)
    b1 = jax.random.uniform(kb1, (H,), minval=-s1, maxval=s1, dtype=jnp.float32)
    w2 = jax.random.uniform(k2, (C, H), minval=-s2, maxval=s2, dtype=jnp.float32)
    b2 = jax.random.uniform(kb2, (C,), minval=-s2, maxval=s2, dtype=jnp.float32)
    # LayerNorm affine params (perturbed from the default 1/0 init to exercise them)
    gamma = 1.0 + 0.1 * jax.random.normal(kg, (C,), dtype=jnp.float32)
    beta = 0.1 * jax.random.normal(kb, (C,), dtype=jnp.float32)

    out = feed_forward(x, w1, b1, w2, b2, gamma, beta)
    out = jax.block_until_ready(out)

    ref = feed_forward_reference(x, w1, b1, w2, b2, gamma, beta)
    assert out.shape == (B, T, C)
    # bf16 MXU operands -> relaxed tolerance vs the pure-f32 reference
    # (observed error is ~1e-2 class after LayerNorm).
    assert jnp.allclose(out, ref, atol=5e-2, rtol=5e-2), "mismatch vs reference"

    print("KERNEL_OK")
</pallas_src>

<mosaic_0001>
module attributes {stable_mosaic.version = 11 : i64} {
  func.func @ffn_kernel(%arg0: i32, %arg1: memref<128x384xf32, #tpu.memory_space<vmem>>, %arg2: memref<384x1536xbf16, #tpu.memory_space<vmem>>, %arg3: memref<1x1536xf32, #tpu.memory_space<vmem>>, %arg4: memref<1536x384xbf16, #tpu.memory_space<vmem>>, %arg5: memref<1x384xf32, #tpu.memory_space<vmem>>, %arg6: memref<1x384xf32, #tpu.memory_space<vmem>>, %arg7: memref<1x384xf32, #tpu.memory_space<vmem>>, %arg8: memref<128x384xf32, #tpu.memory_space<vmem>>) attributes {dimension_semantics = [#tpu.dimension_semantics<parallel>], iteration_bounds = array<i64: 2>, scalar_prefetch = 0 : i64, scratch_operands = 0 : i64, tpu.core_type = #tpu.core_type<tc>, window_params = [{transform_indices = @transform_0, window_bounds = array<i64: 128, 384>}, {pipeline_mode = #tpu.pipeline_mode<synchronous>, transform_indices = @transform_1, window_bounds = array<i64: 384, 1536>}, {pipeline_mode = #tpu.pipeline_mode<synchronous>, transform_indices = @transform_2, window_bounds = array<i64: 1, 1536>}, {pipeline_mode = #tpu.pipeline_mode<synchronous>, transform_indices = @transform_3, window_bounds = array<i64: 1536, 384>}, {pipeline_mode = #tpu.pipeline_mode<synchronous>, transform_indices = @transform_4, window_bounds = array<i64: 1, 384>}, {pipeline_mode = #tpu.pipeline_mode<synchronous>, transform_indices = @transform_5, window_bounds = array<i64: 1, 384>}, {pipeline_mode = #tpu.pipeline_mode<synchronous>, transform_indices = @transform_6, window_bounds = array<i64: 1, 384>}, {transform_indices = @transform_7, window_bounds = array<i64: 128, 384>}]} {
    %c0 = arith.constant 0 : index
    %c0_0 = arith.constant 0 : index
    %0 = vector.load %arg1[%c0, %c0_0] : memref<128x384xf32, #tpu.memory_space<vmem>>, vector<128x384xf32>
    %1 = arith.truncf %0 : vector<128x384xf32> to vector<128x384xbf16>
    %c0_1 = arith.constant 0 : index
    %c0_2 = arith.constant 0 : index
    %2 = vector.load %arg2[%c0_1, %c0_2] : memref<384x1536xbf16, #tpu.memory_space<vmem>>, vector<384x1536xbf16>
    %cst = arith.constant dense<0.000000e+00> : vector<128x1536xf32>
    %3 = tpu.matmul %1, %2, %cst {dimension_numbers = #tpu.dot_dimension_numbers<[1], [0], [0], [1], [0, 0, 1, 1], [], []>} : vector<128x384xbf16>, vector<384x1536xbf16>, vector<128x1536xf32> -> vector<128x1536xf32>
    %c0_3 = arith.constant 0 : index
    %c0_4 = arith.constant 0 : index
    %4 = vector.load %arg3[%c0_3, %c0_4] : memref<1x1536xf32, #tpu.memory_space<vmem>>, vector<1x1536xf32>
    %5 = vector.broadcast %4 : vector<1x1536xf32> to vector<128x1536xf32>
    %6 = arith.addf %3, %5 : vector<128x1536xf32>
    %cst_5 = arith.constant 0.000000e+00 : f32
    %7 = vector.broadcast %cst_5 : f32 to vector<128x1536xf32>
    %8 = arith.maximumf %6, %7 : vector<128x1536xf32>
    %9 = arith.truncf %8 : vector<128x1536xf32> to vector<128x1536xbf16>
    %c0_6 = arith.constant 0 : index
    %c0_7 = arith.constant 0 : index
    %10 = vector.load %arg4[%c0_6, %c0_7] : memref<1536x384xbf16, #tpu.memory_space<vmem>>, vector<1536x384xbf16>
    %cst_8 = arith.constant dense<0.000000e+00> : vector<128x384xf32>
    %11 = tpu.matmul %9, %10, %cst_8 {dimension_numbers = #tpu.dot_dimension_numbers<[1], [0], [0], [1], [0, 0, 1, 1], [], []>} : vector<128x1536xbf16>, vector<1536x384xbf16>, vector<128x384xf32> -> vector<128x384xf32>
    %c0_9 = arith.constant 0 : index
    %c0_10 = arith.constant 0 : index
    %12 = vector.load %arg5[%c0_9, %c0_10] : memref<1x384xf32, #tpu.memory_space<vmem>>, vector<1x384xf32>
    %13 = vector.broadcast %12 : vector<1x384xf32> to vector<128x384xf32>
    %14 = arith.addf %11, %13 : vector<128x384xf32>
    %cst_11 = arith.constant dense<0.000000e+00> : vector<128xf32>
    %15 = vector.multi_reduction <add>, %14, %cst_11 [1] : vector<128x384xf32> to vector<128xf32>
    %16 = vector.shape_cast %15 : vector<128xf32> to vector<128x1xf32>
    %cst_12 = arith.constant 3.840000e+02 : f32
    %17 = vector.broadcast %cst_12 : f32 to vector<128x1xf32>
    %18 = arith.divf %16, %17 : vector<128x1xf32>
    %19 = arith.mulf %14, %14 : vector<128x384xf32>
    %cst_13 = arith.constant dense<0.000000e+00> : vector<128xf32>
    %20 = vector.multi_reduction <add>, %19, %cst_13 [1] : vector<128x384xf32> to vector<128xf32>
    %21 = vector.shape_cast %20 : vector<128xf32> to vector<128x1xf32>
    %cst_14 = arith.constant 3.840000e+02 : f32
    %22 = vector.broadcast %cst_14 : f32 to vector<128x1xf32>
    %23 = arith.divf %21, %22 : vector<128x1xf32>
    %24 = arith.mulf %18, %18 : vector<128x1xf32>
    %25 = arith.subf %23, %24 : vector<128x1xf32>
    %26 = vector.broadcast %18 : vector<128x1xf32> to vector<128x384xf32>
    %27 = arith.subf %14, %26 : vector<128x384xf32>
    %cst_15 = arith.constant 9.99999974E-6 : f32
    %28 = vector.broadcast %cst_15 : f32 to vector<128x1xf32>
    %29 = arith.addf %25, %28 : vector<128x1xf32>
    %30 = math.rsqrt %29 : vector<128x1xf32>
    %31 = vector.broadcast %30 : vector<128x1xf32> to vector<128x384xf32>
    %32 = arith.mulf %27, %31 : vector<128x384xf32>
    %c0_16 = arith.constant 0 : index
    %c0_17 = arith.constant 0 : index
    %33 = vector.load %arg6[%c0_16, %c0_17] : memref<1x384xf32, #tpu.memory_space<vmem>>, vector<1x384xf32>
    %34 = vector.broadcast %33 : vector<1x384xf32> to vector<128x384xf32>
    %35 = arith.mulf %32, %34 : vector<128x384xf32>
    %c0_18 = arith.constant 0 : index
    %c0_19 = arith.constant 0 : index
    %36 = vector.load %arg7[%c0_18, %c0_19] : memref<1x384xf32, #tpu.memory_space<vmem>>, vector<1x384xf32>
    %37 = vector.broadcast %36 : vector<1x384xf32> to vector<128x384xf32>
    %38 = arith.addf %35, %37 : vector<128x384xf32>
    %c0_20 = arith.constant 0 : index
    %c0_21 = arith.constant 0 : index
    %39 = vector.load %arg8[%c0_20, %c0_21] : memref<128x384xf32, #tpu.memory_space<vmem>>, vector<128x384xf32>
    tpu.vector_store %arg8[%c0_20, %c0_21], %38 {strides = array<i32>} : memref<128x384xf32, #tpu.memory_space<vmem>>, vector<128x384xf32>,
    return
  }
  func.func @transform_0(%arg0: i32) -> (i32, i32) {
    %c0_i32 = arith.constant 0 : i32
    %c0_i32_0 = arith.constant 0 : i32
    return %arg0, %c0_i32 : i32, i32
  }
  func.func @transform_1(%arg0: i32) -> (i32, i32) {
    %c0_i32 = arith.constant 0 : i32
    %c0_i32_0 = arith.constant 0 : i32
    %c0_i32_1 = arith.constant 0 : i32
    return %c0_i32, %c0_i32_0 : i32, i32
  }
  func.func @transform_2(%arg0: i32) -> (i32, i32) {
    %c0_i32 = arith.constant 0 : i32
    %c0_i32_0 = arith.constant 0 : i32
    %c0_i32_1 = arith.constant 0 : i32
    return %c0_i32, %c0_i32_0 : i32, i32
  }
  func.func @transform_3(%arg0: i32) -> (i32, i32) {
    %c0_i32 = arith.constant 0 : i32
    %c0_i32_0 = arith.constant 0 : i32
    %c0_i32_1 = arith.constant 0 : i32
    return %c0_i32, %c0_i32_0 : i32, i32
  }
  func.func @transform_4(%arg0: i32) -> (i32, i32) {
    %c0_i32 = arith.constant 0 : i32
    %c0_i32_0 = arith.constant 0 : i32
    %c0_i32_1 = arith.constant 0 : i32
    return %c0_i32, %c0_i32_0 : i32, i32
  }
  func.func @transform_5(%arg0: i32) -> (i32, i32) {
    %c0_i32 = arith.constant 0 : i32
    %c0_i32_0 = arith.constant 0 : i32
    %c0_i32_1 = arith.constant 0 : i32
    return %c0_i32, %c0_i32_0 : i32, i32
  }
  func.func @transform_6(%arg0: i32) -> (i32, i32) {
    %c0_i32 = arith.constant 0 : i32
    %c0_i32_0 = arith.constant 0 : i32
    %c0_i32_1 = arith.constant 0 : i32
    return %c0_i32, %c0_i32_0 : i32, i32
  }
  func.func @transform_7(%arg0: i32) -> (i32, i32) {
    %c0_i32 = arith.constant 0 : i32
    %c0_i32_0 = arith.constant 0 : i32
    return %arg0, %c0_i32 : i32, i32
  }
}

</mosaic_0001>

<bundles_post_ra>
// kernel: tpu_custom_call.1
= control target key start
LH: loop header
LB: loop body
LE: loop exit
PB: predicated region body
PF: predicated region fallthrough
CT: control target
= control target key end

     0   :  { %s14757_s0 = inlined_call_operand.hbm [shape: f32[256,384], index: 0, kind: input, shape index: {}]   ;;  %s14758_s1 = inlined_call_operand.hbm [shape: bf16[384,1536], index: 1, kind: input, shape index: {}]   ;;  %s14759_s2 = inlined_call_operand.hbm [shape: f32[1,1536], index: 2, kind: input, shape index: {}]   ;;  %s14760_s3 = inlined_call_operand.hbm [shape: bf16[1536,384], index: 3, kind: input, shape index: {}]   ;;  %s14761_s4 = inlined_call_operand.hbm [shape: f32[1,384], index: 4, kind: input, shape index: {}]   ;;  %s14762_s5 = inlined_call_operand.hbm [shape: f32[1,384], index: 5, kind: input, shape index: {}]   ;;  %s14763_s6 = inlined_call_operand.hbm [shape: f32[1,384], index: 6, kind: input, shape index: {}]   ;;  %s14764_s7 = inlined_call_operand.hbm [shape: f32[256,384], index: 7, kind: output, shape index: {}]  }
   0x1   :  { %14892 = sst [smem:[#allocation104_spill]] %s14758_s1 }
   0x2   :  { %14893 = sst [smem:[#allocation105_spill]] %s14759_s2 }
   0x3   :  { %14894 = sst [smem:[#allocation106_spill]] %s14760_s3 }
   0x4   :  { %12 = vsyncpa [#allocation3], 0 }
   0x5   :  { %14 = vsyncpa [#allocation3 + $0x1], 0 }
   0x6   :  { %15 = vsyncpa [#allocation6], 0 }
   0x7   :  { %16 = vsyncpa [#allocation9], 0 }
   0x8   :  { %17 = vsyncpa [#allocation12], 0 }
   0x9   :  { %18 = vsyncpa [#allocation4], 0 }
   0xa   :  { %20 = vsyncpa [#allocation4 + $0x1], 0  ;;  %s12199_s24 = smov 0   ;;  %s12201_s25 = smov 0  }
   0xb   :  { %s12203_s26 = smov 0   ;;  %s12205_s27 = smov 0  }
   0xc LB: > { %s14895_s1 = sld [smem:[#allocation104_spill]]  ;;  %s12223_s8 = sadd.s32 4294967295, %s12142_s27   ;;  %s12142_s27 = sphi %s12205_s27, %s15254_s27   ;;  %s12138_s26 = sphi %s12203_s26, %s15253_s26   ;;  %s12134_s25 = sphi %s12201_s25, %s15252_s25   ;;  %s12130_s24 = sphi %s12199_s24, %s15251_s24  }
   0xd   : > { %p8792_p0 = scmp.ge.s32.totalorder %s12142_s27, 1  ;;  %p47_p1 = scmp.eq.s32.totalorder %s12223_s8, 0 }
   0xe   : > { %p209_p2 = scmp.lt.s32.totalorder %s12142_s27, 3  ;;  %s12144_s10 = smov [#allocation5]  }
   0xf   : > { %s222_s11 = sshll.u32 %s12144_s10, 4  ;;  %s14897_s3 = sld [smem:[#allocation106_spill]]  ;;  %s223_s11 = int_to_ptr.vmem [resolvable:$true] %s222_s11 }
  0x10   : > { %p12228_p3 = pnand %p8792_p0, %p209_p2  ;;  %s12145_s16 = smov [#allocation8]  }
  0x11   : > { %s248_s17 = sshll.u32 %s12145_s16, 4  ;;  %s12146_s18 = smov 768   ;;  %s249_s17 = int_to_ptr.vmem [resolvable:$true] %s248_s17 }
  0x12   : > { %s220_s30 = sshll.u32 %s14895_s1, 4  ;;  %p11727_p4 = pneg %p12228_p3  ;;  %s221_s30 = int_to_ptr.hbm [resolvable:$true] %s220_s30 }
  0x13   : > { %s12147_s19 = smov 48   ;;  %s12148_s20 = smov 192  }
  0x14   : > { %p12240_p6 = pnand %p11727_p4, %p47_p1  ;;  %s12149_s21 = smov 12  }
  0x15   : > { %s246_s14 = sshll.u32 %s14897_s3, 4  ;;  %s273_s28 = sshll.u32 %s14762_s5, 4  ;;  %s247_s14 = int_to_ptr.hbm [resolvable:$true] %s246_s14  ;;  %s274_s28 = int_to_ptr.hbm [resolvable:$true] %s273_s28 }
  0x16   : > { %11730 = dma.hbm_to_vmem [thread:$0]  (!%p12240_p6), %s221_s30, 36864, %s223_s11, [#allocation6], %s12146_s18, %s12146_s18, %s12147_s19  }
  0x17   : > { %11736 = dma.hbm_to_vmem [thread:$0]  (!%p12240_p6), %s247_s14, 36864, %s249_s17, [#allocation9], %s12148_s20, %s12148_s20, %s12149_s21  }
  0x18   : > { %s12150_s29 = smov [#allocation11]   ;;  %s14899_s2 = sld [smem:[#allocation105_spill]] }
  0x19   : > { %s275_s10 = sshll.u32 %s12150_s29, 4  ;;  %s12151_s30 = smov [#allocation7]   ;;  %s276_s10 = int_to_ptr.vmem [resolvable:$true] %s275_s10 }
  0x1a   : > { %11742 = dma.hbm_to_vmem [thread:$0]  (!%p12240_p6), %s274_s28, 48, %s276_s10, [#allocation12]  }
  0x1b   : > { %s237_s11 = sshll.u32 %s12151_s30, 4  ;;  %s261_s18 = sshll.u32 %s14761_s4, 4  ;;  %s238_s11 = int_to_ptr.vmem [resolvable:$true] %s237_s11  ;;  %s262_s18 = int_to_ptr.hbm [resolvable:$true] %s261_s18 }
  0x1c   : > { %s285_s21 = sshll.u32 %s14763_s6, 4  ;;  %s12152_s22 = smov [#allocation10]   ;;  %s286_s21 = int_to_ptr.hbm [resolvable:$true] %s285_s21 }
  0x1d   : > { %s263_s23 = sshll.u32 %s12152_s22, 4  ;;  %s12153_s28 = smov [#allocation13]   ;;  %s264_s23 = int_to_ptr.vmem [resolvable:$true] %s263_s23 }
  0x1e   : > { %s235_s16 = sshll.u32 %s14899_s2, 4  ;;  %s287_s29 = sshll.u32 %s12153_s28, 4  ;;  %s236_s16 = int_to_ptr.hbm [resolvable:$true] %s235_s16  ;;  %s288_s29 = int_to_ptr.vmem [resolvable:$true] %s287_s29 }
  0x1f   : > { %11733 = dma.hbm_to_vmem [thread:$0]  (!%p12240_p6), %s236_s16, 192, %s238_s11, [#allocation6]  }
  0x20   : > { %11739 = dma.hbm_to_vmem [thread:$0]  (!%p12240_p6), %s262_s18, 48, %s264_s23, [#allocation9]  }
  0x21   : > { %11745 = dma.hbm_to_vmem [thread:$0]  (!%p12240_p6), %s286_s21, 48, %s288_s29, [#allocation12]  }
  0x22   : > { %s8791_s10 = sadd.s32 4294967294, %s12142_s27   ;;  %s12270_s12 = sadd.s32 1, %s12142_s27  }
  0x23   : > { %s30_s13 = ssub.s32 %s12142_s27, %s12270_s12  ;;  %s33_s16 = sadd.s32 1, %s12138_s26 }
  0x24   : > { %p31_p7 = scmp.eq.s32.totalorder %s30_s13, 0  ;;  %p40_p8 = scmp.ne.s32.totalorder %s12138_s26, %s12134_s25 }
  0x25   : > { %p41_p9 = scmp.eq.s32.totalorder %s12142_s27, 0  ;;  %p46_p10 = scmp.ne.s32.totalorder %s12134_s25, %s12130_s24 }
  0x26   : > { %s12281_s30 = scalar_select %p31_p7, %s12138_s26, %s33_s16  }
  0x27   : > { %p42_p11 = por %p41_p9, %p40_p8  ;;  %p12285_p12 = por %p47_p1, %p46_p10 }
  0x28   : > { %p196_p13 = scmp.eq.s32.totalorder %s12223_s8, 1  ;;  %p202_p0 = scmp.eq.s32.totalorder %s8791_s10, 1 }
  0x29   : > { %p11760_p2 = scmp.lt.s32.totalorder %s12142_s27, 2  ;;  %s298_s15 = sand.u32 1, %s12138_s26  }
  0x2a   : > { %p12292_p4 = por %p196_p13, %p40_p8  ;;  %p12296_p6 = por %p202_p0, %p46_p10 }
  0x2b   : > { %s11695_s18 = smul.u32 384, %s298_s15  ;;  %p12301_p7 = pnand %p11760_p2, %p42_p11 }
  0x2c   : > { %s11696_s19 = smul.u32 384, %s12142_s27  ;;  %s299_s13 = scalar_lea.sflag [#allocation3], %s298_s15 }
  0x2d   : > { %s302_s28 = scalar_lea.vmem [#allocation2], %s11695_s18  ;;  %p12038_p9 = pneg %p12301_p7 }
  0x2e   : > { %s308_s23 = scalar_lea.hbm %s14757_s0, %s11696_s19  ;;  %s311_s29 = sshll.u32 %s302_s28, 4  ;;  %s312_s29 = int_to_ptr.vmem [resolvable:$true] %s311_s29 }
  0x2f   : > { %s309_s10 = sshll.u32 %s308_s23, 4  ;;  %s12041_s21 = scalar_lea.hbm %s14757_s0, 768  ;;  %s310_s10 = int_to_ptr.hbm [resolvable:$true] %s309_s10 }
  0x30   : > { %s12034_s16 = sshra.s32 %s310_s10, 4  ;;  %s12035_s16 = int_to_ptr.hbm [resolvable:$true] %s12034_s16 }
  0x31   : > { %s12036_s1 = scalar_lea.hbm %s12035_s16, 384  ;;  %p12042_p13 = scmp.lt.s32.totalorder %s12035_s16, %s14757_s0 }
  0x32   : > { %p12037_p8 = scmp.ne.s32.totalorder %s12035_s16, %s12036_s1  ;;  %p12043_p0 = scmp.lt.s32.totalorder %s12041_s21, %s12036_s1 }
  0x34   : > { %p12039_p10 = pnand %p12038_p9, %p12037_p8  ;;  %p12044_p2 = por %p12043_p0, %p12042_p13 }
  0x36   : > { %p12040_p11 = pneg %p12039_p10 }
  0x38   : > { %p12045_p5 = pnand %p12044_p2, %p12040_p11 }
  0x3a   : > { %12048 = shalt.err (!%p12045_p5)
}
  0x3b   : > { %s12154_s15 = smov 384   ;;  %s12155_s18 = smov 24  }
  0x3c   : > { %11749 = dma.hbm_to_vmem [thread:$0]  (!%p12301_p7), %s310_s10, 6144, %s312_s29, %s299_s13, %s12154_s15, %s12154_s15, %s12155_s18  }
  0x3d   : > { %323 = sbr.rel (%p12228_p3) target bundleno = 2707 (0xa93), region = 48 }
  0x42   : > { %s12321_s2 = sand.u32 1, %s12134_s25  }
  0x43   : > { %s11697_s3 = smul.u32 384, %s12321_s2  ;;  %s326_s1 = scalar_lea.sflag [#allocation3], %s12321_s2 }
  0x45   : > { %s12327_s23 = scalar_lea.vmem [#allocation2], %s11697_s3 }
  0x46   : > { %12109 = dma.done.wait (%p12285_p12), %s326_s1, 6144  }
  0x47   : > { %12111 = vsyncadd (%p12285_p12), %s326_s1, 4294961152 }
  0x48   : > { %12113 = dma.done.wait (%p47_p1), [#allocation6], 37056  }
  0x49   : > { %12115 = vsyncadd (%p47_p1), [#allocation6], 4294930240 }
  0x4a   : > { %12117 = dma.done.wait (%p47_p1), [#allocation9], 36912  }
  0x4b   : > { %12119 = vsyncadd (%p47_p1), [#allocation9], 4294930384 }
  0x4c   : > { %12121 = dma.done.wait (%p47_p1), [#allocation12], 96  }
  0x4d   : > { %12123 = vsyncadd (%p47_p1), [#allocation12], 4294967200  ;;  %v9148_v0 = vld [vmem:[#allocation5 + $0x2a0] sm:$0xf]  ;;  %v11209_v1 = vld [vmem:[#allocation5 + $0x2cc] sm:$0xf0] }
  0x4e   : > { %v9532_v2 = vld [vmem:[#allocation5 + $0x5a0] sm:$0xf]  ;;  %v9149_v3 = vor.u32 %v11209_v1, %v9148_v0  ;;  %v11305_v4 = vld [vmem:[#allocation5 + $0x5cc] sm:$0xf0]  ;;  %v11203_v9 = vld [vmem:[#allocation5 + $0x2a4] sm:$0xf] }
  0x4f   : > { %v9916_v5 = vld [vmem:[#allocation5 + $0x8a0] sm:$0xf]  ;;  %v11401_v6 = vld [vmem:[#allocation5 + $0x8cc] sm:$0xf0]  ;;  %v9533_v7 = vor.u32 %v11305_v4, %v9532_v2  ;;  %v9150_v10 = vld [vmem:[#allocation5 + $0x2d0] sm:$0xf0] }
  0x50   : > { %v9917_v8 = vor.u32 %v11401_v6, %v9916_v5  ;;  %v9100_v11 = vld [vmem:[#allocation5 + $0x240] sm:$0xf]  ;;  %2221 = vmatpush.bf16.msra.mxu0 %v9149_v3  ;;  %v9153_v12 = vor.u32 %v11203_v9, %v9150_v10  ;;  %v11197_v13 = vld [vmem:[#allocation5 + $0x26c] sm:$0xf0]  ;;  %v11191_v20 = vld [vmem:[#allocation5 + $0x244] sm:$0xf] }
  0x51   : > { %v9484_v14 = vld [vmem:[#allocation5 + $0x540] sm:$0xf]  ;;  %v11293_v15 = vld [vmem:[#allocation5 + $0x56c] sm:$0xf0]  ;;  %2270 = vmatpush.bf16.msra.mxu1 %v9533_v7  ;;  %v9101_v16 = vor.u32 %v11197_v13, %v9100_v11  ;;  %v9102_v22 = vld [vmem:[#allocation5 + $0x270] sm:$0xf0] }
  0x52   : > { %2319 = vmatpush.bf16.msra.mxu2 %v9917_v8  ;;  %v9485_v17 = vor.u32 %v11293_v15, %v9484_v14  ;;  %v9868_v18 = vld [vmem:[#allocation5 + $0x840] sm:$0xf]  ;;  %v11389_v19 = vld [vmem:[#allocation5 + $0x86c] sm:$0xf0]  ;;  %2368 = vmatpush.bf16.msra.mxu3 %v9153_v12  ;;  %v9105_v25 = vor.u32 %v11191_v20, %v9102_v22  ;;  %v11179_v31 = vld [vmem:[#allocation5 + $0x1e4] sm:$0xf] }
  0x53   : > { %v9869_v21 = vor.u32 %v11389_v19, %v9868_v18  ;;  %v9052_v23 = vld [vmem:[#allocation5 + $0x1e0] sm:$0xf]  ;;  %v11185_v24 = vld [vmem:[#allocation5 + $0x20c] sm:$0xf0]  ;;  %v9054_v32 = vld [vmem:[#allocation5 + $0x210] sm:$0xf0] }
  0x54   : > { %v9436_v26 = vld [vmem:[#allocation5 + $0x4e0] sm:$0xf]  ;;  %v11281_v27 = vld [vmem:[#allocation5 + $0x50c] sm:$0xf0]  ;;  %2222 = vmatpush.bf16.msra.mxu0 %v9101_v16  ;;  %v9053_v29 = vor.u32 %v11185_v24, %v9052_v23  ;;  %v9057_v38 = vor.u32 %v11179_v31, %v9054_v32  ;;  %v11167_v42 = vld [vmem:[#allocation5 + $0x184] sm:$0xf] }
  0x55   : > { %v9820_v28 = vld [vmem:[#allocation5 + $0x7e0] sm:$0xf]  ;;  %v11377_v30 = vld [vmem:[#allocation5 + $0x80c] sm:$0xf0]  ;;  %2271 = vmatpush.bf16.msra.mxu1 %v9485_v17  ;;  %v9437_v33 = vor.u32 %v11281_v27, %v9436_v26  ;;  %v9006_v43 = vld [vmem:[#allocation5 + $0x1b0] sm:$0xf0] }
  0x56   : > { %2320 = vmatpush.bf16.msra.mxu2 %v9869_v21  ;;  %v9821_v34 = vor.u32 %v11377_v30, %v9820_v28  ;;  %v9004_v35 = vld [vmem:[#allocation5 + $0x180] sm:$0xf]  ;;  %v11173_v36 = vld [vmem:[#allocation5 + $0x1ac] sm:$0xf0]  ;;  %2369 = vmatpush.bf16.msra.mxu3 %v9105_v25  ;;  %v9009_v50 = vor.u32 %v11167_v42, %v9006_v43  ;;  %v11155_v54 = vld [vmem:[#allocation5 + $0x124] sm:$0xf] }
  0x57   : > { %v9388_v37 = vld [vmem:[#allocation5 + $0x480] sm:$0xf]  ;;  %v11269_v39 = vld [vmem:[#allocation5 + $0x4ac] sm:$0xf0]  ;;  %v9005_v44 = vor.u32 %v11173_v36, %v9004_v35  ;;  %v8958_v55 = vld [vmem:[#allocation5 + $0x150] sm:$0xf0] }
  0x58   : > { %v9772_v40 = vld [vmem:[#allocation5 + $0x780] sm:$0xf]  ;;  %v11365_v41 = vld [vmem:[#allocation5 + $0x7ac] sm:$0xf0]  ;;  %2223 = vmatpush.bf16.msra.mxu0 %v9053_v29  ;;  %v9389_v45 = vor.u32 %v11269_v39, %v9388_v37  ;;  %v8961_v62 = vor.u32 %v11155_v54, %v8958_v55  ;;  %v11143_v2 = vld [vmem:[#allocation5 + $0xc4] sm:$0xf] }
  0x59   : > { %2272 = vmatpush.bf16.msra.mxu1 %v9437_v33  ;;  %v9773_v46 = vor.u32 %v11365_v41, %v9772_v40  ;;  %v8956_v47 = vld [vmem:[#allocation5 + $0x120] sm:$0xf]  ;;  %v11161_v48 = vld [vmem:[#allocation5 + $0x14c] sm:$0xf0]  ;;  %v8910_v3 = vld [vmem:[#allocation5 + $0xf0] sm:$0xf0] }
  0x5a   : > { %2321 = vmatpush.bf16.msra.mxu2 %v9821_v34  ;;  %v9340_v49 = vld [vmem:[#allocation5 + $0x420] sm:$0xf]  ;;  %2370 = vmatpush.bf16.msra.mxu3 %v9057_v38  ;;  %v11257_v51 = vld [vmem:[#allocation5 + $0x44c] sm:$0xf0]  ;;  %v8957_v56 = vor.u32 %v11161_v48, %v8956_v47  ;;  %v8913_v10 = vor.u32 %v11143_v2, %v8910_v3  ;;  %v11131_v14 = vld [vmem:[#allocation5 + $0x64] sm:$0xf] }
  0x5b   : > { %v9724_v52 = vld [vmem:[#allocation5 + $0x720] sm:$0xf]  ;;  %v11353_v53 = vld [vmem:[#allocation5 + $0x74c] sm:$0xf0]  ;;  %v9341_v57 = vor.u32 %v11257_v51, %v9340_v49  ;;  %v8862_v15 = vld [vmem:[#allocation5 + $0x90] sm:$0xf0] }
  0x5c   : > { %2224 = vmatpush.bf16.msra.mxu0 %v9005_v44  ;;  %v9725_v58 = vor.u32 %v11353_v53, %v9724_v52  ;;  %v8908_v59 = vld [vmem:[#allocation5 + $0xc0] sm:$0xf]  ;;  %v11149_v60 = vld [vmem:[#allocation5 + $0xec] sm:$0xf0]  ;;  %v8865_v25 = vor.u32 %v11131_v14, %v8862_v15  ;;  %v11119_v26 = vld [vmem:[#allocation5 + $0x4] sm:$0xf] }
  0x5d   : > { %2273 = vmatpush.bf16.msra.mxu1 %v9389_v45  ;;  %v9292_v61 = vld [vmem:[#allocation5 + $0x3c0] sm:$0xf]  ;;  %v11245_v63 = vld [vmem:[#allocation5 + $0x3ec] sm:$0xf0]  ;;  %v8909_v4 = vor.u32 %v11149_v60, %v8908_v59  ;;  %v8814_v27 = vld [vmem:[#allocation5 + $0x30] sm:$0xf0] }
  0x5e   : > { %2322 = vmatpush.bf16.msra.mxu2 %v9773_v46  ;;  %2371 = vmatpush.bf16.msra.mxu3 %v9009_v50  ;;  %v9676_v0 = vld [vmem:[#allocation5 + $0x6c0] sm:$0xf]  ;;  %v11341_v1 = vld [vmem:[#allocation5 + $0x6ec] sm:$0xf0]  ;;  %v9293_v5 = vor.u32 %v11245_v63, %v9292_v61  ;;  %v396_v29 = vld [vmem:[%s12327_s23 + $0x18] sm:$0xff]  ;;  %v8817_v41 = vor.u32 %v11119_v26, %v8814_v27  ;;  %s14367_s9 = scalar_lea.vmem [#allocation14], %s11697_s3 }
  0x5f   : > { %v9677_v6 = vor.u32 %v11341_v1, %v9676_v0  ;;  %v8860_v7 = vld [vmem:[#allocation5 + $0x60] sm:$0xf]  ;;  %v11137_v8 = vld [vmem:[#allocation5 + $0x8c] sm:$0xf0]  ;;  %v9156_v30 = vld [vmem:[#allocation5 + $0x2a8] sm:$0xf] }
  0x60   : > { %2225 = vmatpush.bf16.msra.mxu0 %v8957_v56  ;;  %v9244_v9 = vld [vmem:[#allocation5 + $0x360] sm:$0xf]  ;;  %v11233_v11 = vld [vmem:[#allocation5 + $0x38c] sm:$0xf0]  ;;  %v8861_v16 = vor.u32 %v11137_v8, %v8860_v7  ;;  %v11210_v31 = vld [vmem:[#allocation5 + $0x2d4] sm:$0xf0] }
  0x61   : > { %2274 = vmatpush.bf16.msra.mxu1 %v9341_v57  ;;  %v9628_v12 = vld [vmem:[#allocation5 + $0x660] sm:$0xf]  ;;  %v11329_v13 = vld [vmem:[#allocation5 + $0x68c] sm:$0xf0]  ;;  %v9245_v20 = vor.u32 %v11233_v11, %v9244_v9  ;;  %v394_v33 = vld [vmem:[%s12327_s23 + $0x8] sm:$0xff]  ;;  %v9157_v42 = vor.u32 %v11210_v31, %v9156_v30  ;;  %s11698_s11 = smul.u32 384, %s12223_s8 }
  0x62   : > { %2323 = vmatpush.bf16.msra.mxu2 %v9725_v58  ;;  %2372 = vmatpush.bf16.msra.mxu3 %v8961_v62  ;;  %v8812_v17 = vld [vmem:[#allocation5] sm:$0xf]  ;;  %v11125_v18 = vld [vmem:[#allocation5 + $0x2c] sm:$0xf0]  ;;  %v9629_v21 = vor.u32 %v11329_v13, %v9628_v12  ;;  %v9540_v34 = vld [vmem:[#allocation5 + $0x5a8] sm:$0xf] }
  0x63   : > { %v9196_v19 = vld [vmem:[#allocation5 + $0x300] sm:$0xf]  ;;  %v11221_v22 = vld [vmem:[#allocation5 + $0x32c] sm:$0xf0]  ;;  %v8813_v32 = vor.u32 %v11125_v18, %v8812_v17  ;;  %v11306_v35 = vld [vmem:[#allocation5 + $0x5d4] sm:$0xf0]  ;;  %s8657_s28 = scalar_lea.hbm %s14764_s7, %s11698_s11 }
  0x64   : > { %2226 = vmatpush.bf16.msra.mxu0 %v8909_v4  ;;  %v9580_v23 = vld [vmem:[#allocation5 + $0x600] sm:$0xf]  ;;  %v11317_v24 = vld [vmem:[#allocation5 + $0x62c] sm:$0xf0]  ;;  %v9197_v36 = vor.u32 %v11221_v22, %v9196_v19  ;;  %v398_v40 = vld [vmem:[%s12327_s23 + $0x28] sm:$0xff]  ;;  %v9541_v47 = vor.u32 %v11306_v35, %v9540_v34  ;;  %s8658_s29 = sshll.u32 %s14367_s9, 4  ;;  %s8659_s29 = int_to_ptr.vmem [resolvable:$true] %s8658_s29 }
  0x65   : > { %2275 = vmatpush.bf16.msra.mxu1 %v9293_v5  ;;  %v393_v28 = vld [vmem:[%s12327_s23] sm:$0xff]  ;;  %v9581_v37 = vor.u32 %v11317_v24, %v9580_v23  ;;  %v395_v39 = vld [vmem:[%s12327_s23 + $0x10] sm:$0xff]  ;;  %v9108_v49 = vld [vmem:[#allocation5 + $0x248] sm:$0xf]  ;;  %s8660_s10 = sshll.u32 %s8657_s28, 4  ;;  %s8645_s13 = scalar_lea.sflag [#allocation4], %s12321_s2  ;;  %s8661_s10 = int_to_ptr.hbm [resolvable:$true] %s8660_s10 }
  0x66   : > { %2324 = vmatpush.bf16.msra.mxu2 %v9677_v6  ;;  %2373 = vmatpush.bf16.msra.mxu3 %v8913_v10  ;;  %v397_v38 = vld [vmem:[%s12327_s23 + $0x20] sm:$0xff]  ;;  %v9534_v44 = vld [vmem:[#allocation5 + $0x5d0] sm:$0xf0]  ;;  %v12351_v46 = vpack.c.bf16 %v396_v29, %v393_v28  ;;  %v11198_v50 = vld [vmem:[#allocation5 + $0x274] sm:$0xf0]  ;;  %v12355_v52 = vpack.c.bf16 %v398_v40, %v395_v39  ;;  %s12078_s16 = sshra.s32 %s8661_s10, 4  ;;  %s12079_s16 = int_to_ptr.hbm [resolvable:$true] %s12078_s16 }
  0x67   : > { %v11299_v43 = vld [vmem:[#allocation5 + $0x5a4] sm:$0xf]  ;;  %v9918_v48 = vld [vmem:[#allocation5 + $0x8d0] sm:$0xf0]  ;;  %v12353_v51 = vpack.c.bf16 %v397_v38, %v394_v33  ;;  %v9492_v53 = vld [vmem:[#allocation5 + $0x548] sm:$0xf]  ;;  %v9109_v57 = vor.u32 %v11198_v50, %v9108_v49  ;;  %p12085_p12 = scmp.lt.s32.totalorder %s12079_s16, %s14764_s7 }
  0x68   : > { %2227 = vmatpush.bf16.msra.mxu0 %v8861_v16  ;;  %v11395_v45 = vld [vmem:[#allocation5 + $0x8a4] sm:$0xf]  ;;  %v11294_v54 = vld [vmem:[#allocation5 + $0x574] sm:$0xf0]  ;;  %v9537_v55 = vor.u32 %v11299_v43, %v9534_v44  ;;  %v9486_v59 = vld [vmem:[#allocation5 + $0x570] sm:$0xf0] }
  0x69   : > { %2276 = vmatpush.bf16.msra.mxu1 %v9245_v20  ;;  %v9921_v56 = vor.u32 %v11395_v45, %v9918_v48  ;;  %v11287_v58 = vld [vmem:[#allocation5 + $0x544] sm:$0xf]  ;;  %v9493_v60 = vor.u32 %v11294_v54, %v9492_v53  ;;  %v9870_v62 = vld [vmem:[#allocation5 + $0x870] sm:$0xf0]  ;;  %v9060_v0 = vld [vmem:[#allocation5 + $0x1e8] sm:$0xf] }
  0x6a   : > { %2325 = vmatpush.bf16.msra.mxu2 %v9629_v21  ;;  %2374 = vmatpush.bf16.msra.mxu3 %v8865_v25  ;;  %v11383_v61 = vld [vmem:[#allocation5 + $0x844] sm:$0xf]  ;;  %v9489_v63 = vor.u32 %v11287_v58, %v9486_v59  ;;  %v11186_v1 = vld [vmem:[#allocation5 + $0x214] sm:$0xf0]  ;;  %v9438_v5 = vld [vmem:[#allocation5 + $0x510] sm:$0xf0] }
  0x6b   : > { %v11275_v2 = vld [vmem:[#allocation5 + $0x4e4] sm:$0xf]  ;;  %v9873_v3 = vor.u32 %v11383_v61, %v9870_v62  ;;  %v9061_v4 = vor.u32 %v11186_v1, %v9060_v0  ;;  %v9444_v6 = vld [vmem:[#allocation5 + $0x4e8] sm:$0xf]  ;;  %v11282_v7 = vld [vmem:[#allocation5 + $0x514] sm:$0xf0] }
  0x6c   : > { %2228 = vmatpush.bf16.msra.mxu0 %v8813_v32  ;;  %v9445_v8 = vor.u32 %v11282_v7, %v9444_v6  ;;  %v11371_v9 = vld [vmem:[#allocation5 + $0x7e4] sm:$0xf]  ;;  %v9822_v10 = vld [vmem:[#allocation5 + $0x810] sm:$0xf0]  ;;  %v9441_v11 = vor.u32 %v11275_v2, %v9438_v5  ;;  %v402_v14 = vld [vmem:[%s12327_s23 + $0x48] sm:$0xff]  ;;  %s12080_s21 = scalar_lea.hbm %s12079_s16, 384 }
  0x6d   : > { %2277 = vmatpush.bf16.msra.mxu1 %v9197_v36  ;;  %v9825_v12 = vor.u32 %v11371_v9, %v9822_v10  ;;  %v399_v13 = vld [vmem:[%s12327_s23 + $0x30] sm:$0xff]  ;;  %v400_v15 = vld [vmem:[%s12327_s23 + $0x38] sm:$0xff]  ;;  %v401_v17 = vld [vmem:[%s12327_s23 + $0x40] sm:$0xff]  ;;  %p12081_p1 = scmp.ne.s32.totalorder %s12079_s16, %s12080_s21  ;;  %s12084_s15 = scalar_lea.hbm %s14764_s7, 768 }
  0x6e   : > { %2326 = vmatpush.bf16.msra.mxu2 %v9581_v37  ;;  %2375 = vmatpush.bf16.msra.mxu3 %v8817_v41  ;;  %v403_v16 = vld [vmem:[%s12327_s23 + $0x50] sm:$0xff]  ;;  %v404_v18 = vld [vmem:[%s12327_s23 + $0x58] sm:$0xff]  ;;  %v12367_v19 = vpack.c.bf16 %v402_v14, %v399_v13  ;;  %v9012_v22 = vld [vmem:[#allocation5 + $0x188] sm:$0xf]  ;;  %p12086_p7 = scmp.lt.s32.totalorder %s12084_s15, %s12080_s21 }
  0x6f   : > { %2229 = vmatmul.bf16.vlgmr.msra.gmra.mxu0 %v12351_v46  ;;  %v12369_v20 = vpack.c.bf16 %v403_v16, %v400_v15  ;;  %v12371_v21 = vpack.c.bf16 %v404_v18, %v401_v17  ;;  %v11174_v23 = vld [vmem:[#allocation5 + $0x1b4] sm:$0xf0]  ;;  %v11263_v24 = vld [vmem:[#allocation5 + $0x484] sm:$0xf]  ;;  %v9390_v26 = vld [vmem:[#allocation5 + $0x4b0] sm:$0xf0]  ;;  %p12082_p3 = pnand %p12081_p1, %p12292_p4 }
  0x70   : > { %2278 = vmatmul.bf16.vlgmr.msra.gmra.mxu1 %v12353_v51  ;;  %2417 = vmatpush.bf16.msrb.mxu0 %v9537_v55  ;;  %v9013_v25 = vor.u32 %v11174_v23, %v9012_v22  ;;  %v9396_v27 = vld [vmem:[#allocation5 + $0x488] sm:$0xf]  ;;  %v11270_v28 = vld [vmem:[#allocation5 + $0x4b4] sm:$0xf0]  ;;  %v9393_v29 = vor.u32 %v11263_v24, %v9390_v26  ;;  %v11359_v31 = vld [vmem:[#allocation5 + $0x784] sm:$0xf]  ;;  %p12087_p8 = por %p12086_p7, %p12085_p12 }
  0x71   : > { %2327 = vmatmul.bf16.vlgmr.msra.gmra.mxu2 %v12355_v52  ;;  %2376 = vmatmul.bf16.vlgmr.msra.gmra.mxu3 %v12351_v46  ;;  %v9397_v30 = vor.u32 %v11270_v28, %v9396_v27  ;;  %v9774_v32 = vld [vmem:[#allocation5 + $0x7b0] sm:$0xf0]  ;;  %v405_v34 = vld [vmem:[%s12327_s23 + $0x60] sm:$0xff]  ;;  %v408_v35 = vld [vmem:[%s12327_s23 + $0x78] sm:$0xff]  ;;  %p12083_p5 = pneg %p12082_p3 }
  0x72   : > { %2515 = vmatpush.bf16.msrb.mxu2 %v9157_v42  ;;  %2564 = vmatpush.bf16.msrb.mxu3 %v9541_v47  ;;  %v9777_v33 = vor.u32 %v11359_v31, %v9774_v32  ;;  %v406_v36 = vld [vmem:[%s12327_s23 + $0x68] sm:$0xff]  ;;  %v409_v37 = vld [vmem:[%s12327_s23 + $0x80] sm:$0xff]  ;;  %v407_v38 = vld [vmem:[%s12327_s23 + $0x70] sm:$0xff]  ;;  %v12383_v40 = vpack.c.bf16 %v408_v35, %v405_v34 }
  0x73   : > { %2466 = vmatpush.bf16.msrb.mxu1 %v9921_v56  ;;  %v410_v39 = vld [vmem:[%s12327_s23 + $0x88] sm:$0xff]  ;;  %v12385_v41 = vpack.c.bf16 %v409_v37, %v406_v36  ;;  %v11162_v44 = vld [vmem:[#allocation5 + $0x154] sm:$0xf0]  ;;  %v11251_v45 = vld [vmem:[#allocation5 + $0x424] sm:$0xf]  ;;  %p12088_p9 = pnand %p12087_p8, %p12083_p5 }
  0x74   : > { %2418 = vmatpush.bf16.msrb.mxu0 %v9489_v63  ;;  %v12387_v42 = vpack.c.bf16 %v410_v39, %v407_v38  ;;  %v8964_v43 = vld [vmem:[#allocation5 + $0x128] sm:$0xf]  ;;  %v9342_v48 = vld [vmem:[#allocation5 + $0x450] sm:$0xf0]  ;;  %v11258_v50 = vld [vmem:[#allocation5 + $0x454] sm:$0xf0] }
  0x75   : > { %v8965_v47 = vor.u32 %v11162_v44, %v8964_v43  ;;  %v9348_v49 = vld [vmem:[#allocation5 + $0x428] sm:$0xf]  ;;  %v9345_v53 = vor.u32 %v11251_v45, %v9342_v48  ;;  %v11347_v55 = vld [vmem:[#allocation5 + $0x724] sm:$0xf]  ;;  %v9726_v56 = vld [vmem:[#allocation5 + $0x750] sm:$0xf0] }
  0x76   : > { %2516 = vmatpush.bf16.msrb.mxu2 %v9109_v57  ;;  %2565 = vmatpush.bf16.msrb.mxu3 %v9493_v60  ;;  %v9349_v54 = vor.u32 %v11258_v50, %v9348_v49  ;;  %v9729_v57 = vor.u32 %v11347_v55, %v9726_v56  ;;  %v411_v58 = vld [vmem:[%s12327_s23 + $0x90] sm:$0xff]  ;;  %v414_v59 = vld [vmem:[%s12327_s23 + $0xa8] sm:$0xff]  ;;  %v412_v60 = vld [vmem:[%s12327_s23 + $0x98] sm:$0xff] }
  0x77   : > { %2467 = vmatpush.bf16.msrb.mxu1 %v9873_v3  ;;  %v415_v61 = vld [vmem:[%s12327_s23 + $0xb0] sm:$0xff]  ;;  %v413_v62 = vld [vmem:[%s12327_s23 + $0xa0] sm:$0xff]  ;;  %v416_v63 = vld [vmem:[%s12327_s23 + $0xb8] sm:$0xff]  ;;  %v12399_v0 = vpack.c.bf16 %v414_v59, %v411_v58 }
  0x78   : > { %2419 = vmatpush.bf16.msrb.mxu0 %v9441_v11  ;;  %v12401_v1 = vpack.c.bf16 %v415_v61, %v412_v60  ;;  %v12403_v2 = vpack.c.bf16 %v416_v63, %v413_v62  ;;  %v8916_v3 = vld [vmem:[#allocation5 + $0xc8] sm:$0xf]  ;;  %v11239_v5 = vld [vmem:[#allocation5 + $0x3c4] sm:$0xf]  ;;  %v9294_v7 = vld [vmem:[#allocation5 + $0x3f0] sm:$0xf0] }
  0x79   : > { %v11246_v9 = vld [vmem:[#allocation5 + $0x3f4] sm:$0xf0]  ;;  %v9297_v10 = vor.u32 %v11239_v5, %v9294_v7  ;;  %v9678_v13 = vld [vmem:[#allocation5 + $0x6f0] sm:$0xf0]  ;;  %v417_v15 = vld [vmem:[%s12327_s23 + $0xc0] sm:$0xff] }
  0x7a   : > { %2517 = vmatpush.bf16.msrb.mxu2 %v9061_v4  ;;  %2566 = vmatpush.bf16.msrb.mxu3 %v9445_v8  ;;  %v11150_v4 = vld [vmem:[#allocation5 + $0xf4] sm:$0xf0]  ;;  %v9300_v8 = vld [vmem:[#allocation5 + $0x3c8] sm:$0xf]  ;;  %v421_v18 = vld [vmem:[%s12327_s23 + $0xe0] sm:$0xff] }
  0x7b   : > { %2468 = vmatpush.bf16.msrb.mxu1 %v9825_v12  ;;  %v8917_v6 = vor.u32 %v11150_v4, %v8916_v3  ;;  %v9301_v11 = vor.u32 %v11246_v9, %v9300_v8  ;;  %v11335_v12 = vld [vmem:[#allocation5 + $0x6c4] sm:$0xf]  ;;  %v420_v16 = vld [vmem:[%s12327_s23 + $0xd8] sm:$0xff]  ;;  %v418_v17 = vld [vmem:[%s12327_s23 + $0xc8] sm:$0xff] }
  0x7c   : > { %2420 = vmatpush.bf16.msrb.mxu0 %v9393_v29  ;;  %v9681_v14 = vor.u32 %v11335_v12, %v9678_v13  ;;  %v419_v22 = vld [vmem:[%s12327_s23 + $0xd0] sm:$0xff]  ;;  %v422_v23 = vld [vmem:[%s12327_s23 + $0xe8] sm:$0xff]  ;;  %v12415_v24 = vpack.c.bf16 %v420_v16, %v417_v15  ;;  %v11138_v28 = vld [vmem:[#allocation5 + $0x94] sm:$0xf0] }
  0x7d   : > { %v12419_v26 = vpack.c.bf16 %v422_v23, %v419_v22  ;;  %v8868_v27 = vld [vmem:[#allocation5 + $0x68] sm:$0xf]  ;;  %v11227_v29 = vld [vmem:[#allocation5 + $0x364] sm:$0xf]  ;;  %v9246_v31 = vld [vmem:[#allocation5 + $0x390] sm:$0xf0] }
  0x7e   : > { %2518 = vmatpush.bf16.msrb.mxu2 %v9013_v25  ;;  %2567 = vmatpush.bf16.msrb.mxu3 %v9397_v30  ;;  %v12417_v25 = vpack.c.bf16 %v421_v18, %v418_v17  ;;  %v8869_v30 = vor.u32 %v11138_v28, %v8868_v27  ;;  %v9252_v32 = vld [vmem:[#allocation5 + $0x368] sm:$0xf]  ;;  %v9249_v34 = vor.u32 %v11227_v29, %v9246_v31  ;;  %v11323_v36 = vld [vmem:[#allocation5 + $0x664] sm:$0xf]  ;;  %v9630_v37 = vld [vmem:[#allocation5 + $0x690] sm:$0xf0] }
  0x7f   : > { %2234 = vmatmul.bf16.gmra.mxu0 %v12367_v19  ;;  %2469 = vmatpush.bf16.msrb.mxu1 %v9777_v33  ;;  %v11234_v33 = vld [vmem:[#allocation5 + $0x394] sm:$0xf0]  ;;  %v9633_v38 = vor.u32 %v11323_v36, %v9630_v37  ;;  %v423_v39 = vld [vmem:[%s12327_s23 + $0xf0] sm:$0xff]  ;;  %v426_v43 = vld [vmem:[%s12327_s23 + $0x108] sm:$0xff] }
  0x80   : > { %2283 = vmatmul.bf16.gmra.mxu1 %v12369_v20  ;;  %2421 = vmatpush.bf16.msrb.mxu0 %v9345_v53  ;;  %v9253_v35 = vor.u32 %v11234_v33, %v9252_v32  ;;  %v424_v44 = vld [vmem:[%s12327_s23 + $0xf8] sm:$0xff]  ;;  %v427_v45 = vld [vmem:[%s12327_s23 + $0x110] sm:$0xff]  ;;  %v12431_v49 = vpack.c.bf16 %v426_v43, %v423_v39  ;;  %v11215_v56 = vld [vmem:[#allocation5 + $0x304] sm:$0xf] }
  0x81   : > { %2332 = vmatmul.bf16.gmra.mxu2 %v12371_v21  ;;  %2381 = vmatmul.bf16.gmra.mxu3 %v12367_v19  ;;  %v428_v48 = vld [vmem:[%s12327_s23 + $0x118] sm:$0xff]  ;;  %v12433_v50 = vpack.c.bf16 %v427_v45, %v424_v44  ;;  %v9198_v58 = vld [vmem:[#allocation5 + $0x330] sm:$0xf0]  ;;  %v9204_v59 = vld [vmem:[#allocation5 + $0x308] sm:$0xf] }
  0x82   : > { %2519 = vmatpush.bf16.msrb.mxu2 %v8965_v47  ;;  %2568 = vmatpush.bf16.msrb.mxu3 %v9349_v54  ;;  %v425_v47 = vld [vmem:[%s12327_s23 + $0x100] sm:$0xff]  ;;  %v8820_v54 = vld [vmem:[#allocation5 + $0x8] sm:$0xf]  ;;  %v11126_v55 = vld [vmem:[#allocation5 + $0x34] sm:$0xf0]  ;;  %v9201_v61 = vor.u32 %v11215_v56, %v9198_v58 }
  0x83   : > { %2470 = vmatpush.bf16.msrb.mxu1 %v9729_v57  ;;  %v12435_v53 = vpack.c.bf16 %v428_v48, %v425_v47  ;;  %v8821_v57 = vor.u32 %v11126_v55, %v8820_v54  ;;  %v11222_v60 = vld [vmem:[#allocation5 + $0x334] sm:$0xf0]  ;;  %v11311_v63 = vld [vmem:[#allocation5 + $0x604] sm:$0xf]  ;;  %v9582_v3 = vld [vmem:[#allocation5 + $0x630] sm:$0xf0] }
  0x84   : > { %2422 = vmatpush.bf16.msrb.mxu0 %v9297_v10  ;;  %v9205_v62 = vor.u32 %v11222_v60, %v9204_v59  ;;  %v9585_v4 = vor.u32 %v11311_v63, %v9582_v3  ;;  %v429_v5 = vld [vmem:[%s12327_s23 + $0x120] sm:$0xff]  ;;  %v430_v7 = vld [vmem:[%s12327_s23 + $0x128] sm:$0xff]  ;;  %v431_v9 = vld [vmem:[%s12327_s23 + $0x130] sm:$0xff] }
  0x85   : > { %v433_v8 = vld [vmem:[%s12327_s23 + $0x140] sm:$0xff]  ;;  %v434_v10 = vld [vmem:[%s12327_s23 + $0x148] sm:$0xff]  ;;  %v9542_v15 = vld [vmem:[#allocation5 + $0x5d8] sm:$0xf0] }
  0x86   : > { %2520 = vmatpush.bf16.msrb.mxu2 %v8917_v6  ;;  %2569 = vmatpush.bf16.msrb.mxu3 %v9301_v11  ;;  %v432_v6 = vld [vmem:[%s12327_s23 + $0x138] sm:$0xff]  ;;  %v12449_v12 = vpack.c.bf16 %v433_v8, %v430_v7  ;;  %v12451_v13 = vpack.c.bf16 %v434_v10, %v431_v9  ;;  %v9924_v16 = vld [vmem:[#allocation5 + $0x8a8] sm:$0xf]  ;;  %v11396_v22 = vld [vmem:[#allocation5 + $0x8ac] sm:$0xf] }
  0x87   : > { %2471 = vmatpush.bf16.msrb.mxu1 %v9681_v14  ;;  %v12447_v11 = vpack.c.bf16 %v432_v6, %v429_v5  ;;  %v11300_v14 = vld [vmem:[#allocation5 + $0x5ac] sm:$0xf]  ;;  %v11402_v18 = vld [vmem:[#allocation5 + $0x8d4] sm:$0xf0]  ;;  %v9926_v23 = vld [vmem:[#allocation5 + $0x8d8] sm:$0xf0] }
  0x88   : > { %2423 = vmatpush.bf16.msrb.mxu0 %v9249_v34  ;;  %v9545_v17 = vor.u32 %v11300_v14, %v9542_v15  ;;  %v9925_v27 = vor.u32 %v11402_v18, %v9924_v16  ;;  %v9929_v28 = vor.u32 %v11396_v22, %v9926_v23  ;;  %v11204_v29 = vld [vmem:[#allocation5 + $0x2ac] sm:$0xf]  ;;  %v435_v32 = vld [vmem:[%s12327_s23 + $0x150] sm:$0xff]  ;;  %v436_v34 = vld [vmem:[%s12327_s23 + $0x158] sm:$0xff] }
  0x89   : > { %v438_v33 = vld [vmem:[%s12327_s23 + $0x168] sm:$0xff]  ;;  %v437_v36 = vld [vmem:[%s12327_s23 + $0x160] sm:$0xff]  ;;  %v440_v37 = vld [vmem:[%s12327_s23 + $0x178] sm:$0xff] }
  0x8a   : > { %2521 = vmatpush.bf16.msrb.mxu2 %v8869_v30  ;;  %2570 = vmatpush.bf16.msrb.mxu3 %v9253_v35  ;;  %v9158_v30 = vld [vmem:[#allocation5 + $0x2d8] sm:$0xf0]  ;;  %v439_v35 = vld [vmem:[%s12327_s23 + $0x170] sm:$0xff]  ;;  %v12467_v43 = vpack.c.bf16 %v440_v37, %v437_v36  ;;  %v11288_v44 = vld [vmem:[#allocation5 + $0x54c] sm:$0xf] }
  0x8b   : > { %2472 = vmatpush.bf16.msrb.mxu1 %v9633_v38  ;;  %v9161_v31 = vor.u32 %v11204_v29, %v9158_v30  ;;  %v12463_v38 = vpack.c.bf16 %v438_v33, %v435_v32  ;;  %v12465_v39 = vpack.c.bf16 %v439_v35, %v436_v34  ;;  %v9494_v45 = vld [vmem:[#allocation5 + $0x578] sm:$0xf0]  ;;  %v9876_v47 = vld [vmem:[#allocation5 + $0x848] sm:$0xf]  ;;  %v11390_v54 = vld [vmem:[#allocation5 + $0x874] sm:$0xf0] }
  0x8c   : > { %2424 = vmatpush.bf16.msrb.mxu0 %v9201_v61  ;;  %v9497_v48 = vor.u32 %v11288_v44, %v9494_v45  ;;  %v11384_v55 = vld [vmem:[#allocation5 + $0x84c] sm:$0xf]  ;;  %v9878_v56 = vld [vmem:[#allocation5 + $0x878] sm:$0xf0]  ;;  %v12473_v59 = vld [vmem:[#allocation7] sm:$0xff] }
  0x8d   : > { %v9881_v58 = vor.u32 %v11384_v55, %v9878_v56  ;;  %v11192_v60 = vld [vmem:[#allocation5 + $0x24c] sm:$0xf]  ;;  %v9110_v61 = vld [vmem:[#allocation5 + $0x278] sm:$0xf0]  ;;  %v12476_v63 = vperm.slane %v12473_v59, 0 }
  0x8e   : > { %2522 = vmatpush.bf16.msrb.mxu2 %v8821_v57  ;;  %2571 = vmatpush.bf16.msrb.mxu3 %v9205_v62  ;;  %v9877_v57 = vor.u32 %v11390_v54, %v9876_v47  ;;  %v9113_v62 = vor.u32 %v11192_v60, %v9110_v61  ;;  %v11276_v7 = vld [vmem:[#allocation5 + $0x4ec] sm:$0xf]  ;;  %v9446_v8 = vld [vmem:[#allocation5 + $0x518] sm:$0xf0]  ;;  %v9828_v9 = vld [vmem:[#allocation5 + $0x7e8] sm:$0xf] }
  0x8f   : > { %2239 = vmatmul.bf16.gmra.mxu0 %v12383_v40  ;;  %2473 = vmatpush.bf16.msrb.mxu1 %v9585_v4  ;;  %v9449_v10 = vor.u32 %v11276_v7, %v9446_v8  ;;  %v11378_v14 = vld [vmem:[#allocation5 + $0x814] sm:$0xf0]  ;;  %v11372_v15 = vld [vmem:[#allocation5 + $0x7ec] sm:$0xf]  ;;  %v9830_v16 = vld [vmem:[#allocation5 + $0x818] sm:$0xf0] }
  0x90   : > { %2288 = vmatmul.bf16.gmra.mxu1 %v12385_v41  ;;  %2613 = vmatpush.bf16.msra.mxu0 %v9925_v27  ;;  %v9829_v18 = vor.u32 %v11378_v14, %v9828_v9  ;;  %v9833_v22 = vor.u32 %v11372_v15, %v9830_v16  ;;  %v9062_v32 = vld [vmem:[#allocation5 + $0x218] sm:$0xf0]  ;;  %v9780_v60 = vld [vmem:[#allocation5 + $0x788] sm:$0xf]  ;;  %v11168_v16 = vld [vmem:[#allocation5 + $0x18c] sm:$0xf] }
  0x91   : > { %2337 = vmatmul.bf16.gmra.mxu2 %v12387_v42  ;;  %2386 = vmatmul.bf16.gmra.mxu3 %v12383_v40 }
  0x92   : > { %2711 = vmatpush.bf16.msra.mxu2 %v9545_v17  ;;  %2760 = vmatpush.bf16.msra.mxu3 %v9929_v28 }
  0x93   : > { %2662 = vmatpush.bf16.msra.mxu1 %v9161_v31  ;;  %v11180_v31 = vld [vmem:[#allocation5 + $0x1ec] sm:$0xf] }
  0x94   : > { %2614 = vmatpush.bf16.msra.mxu0 %v9877_v57  ;;  %v9065_v34 = vor.u32 %v11180_v31, %v9062_v32  ;;  %v11264_v57 = vld [vmem:[#allocation5 + $0x48c] sm:$0xf] }
  0x96   : > { %2712 = vmatpush.bf16.msra.mxu2 %v9497_v48  ;;  %2761 = vmatpush.bf16.msra.mxu3 %v9881_v58  ;;  %v9398_v58 = vld [vmem:[#allocation5 + $0x4b8] sm:$0xf0] }
  0x97   : > { %2663 = vmatpush.bf16.msra.mxu1 %v9113_v62  ;;  %v9401_v61 = vor.u32 %v11264_v57, %v9398_v58  ;;  %v11366_v62 = vld [vmem:[#allocation5 + $0x7b4] sm:$0xf0]  ;;  %v9734_v57 = vld [vmem:[#allocation5 + $0x758] sm:$0xf0] }
  0x98   : > { %2615 = vmatpush.bf16.msra.mxu0 %v9829_v18 }
  0x9a   : > { %2713 = vmatpush.bf16.msra.mxu2 %v9449_v10  ;;  %2762 = vmatpush.bf16.msra.mxu3 %v9833_v22 }
  0x9b   : > { %2664 = vmatpush.bf16.msra.mxu1 %v9065_v34 }
  0x9e   : > { %2714 = vmatpush.bf16.msra.mxu2 %v9401_v61 }
  0x9f   : > { %2244 = vmatmul.bf16.gmra.mxu0 %v12399_v0 }
  0xa0   : > { %2293 = vmatmul.bf16.gmra.mxu1 %v12401_v1 }
  0xa1   : > { %2342 = vmatmul.bf16.gmra.mxu2 %v12403_v2  ;;  %2391 = vmatmul.bf16.gmra.mxu3 %v12399_v0 }
  0xaf   : > { %2249 = vmatmul.bf16.gmra.mxu0 %v12415_v24 }
  0xb0   : > { %2298 = vmatmul.bf16.gmra.mxu1 %v12417_v25 }
  0xb1   : > { %2347 = vmatmul.bf16.gmra.mxu2 %v12419_v26  ;;  %2396 = vmatmul.bf16.gmra.mxu3 %v12415_v24 }
  0xbf   : > { %2254 = vmatmul.bf16.gmra.mxu0 %v12431_v49 }
  0xc0   : > { %2303 = vmatmul.bf16.gmra.mxu1 %v12433_v50 }
  0xc1   : > { %2352 = vmatmul.bf16.gmra.mxu2 %v12435_v53  ;;  %2401 = vmatmul.bf16.gmra.mxu3 %v12431_v49 }
  0xcf   : > { %2259 = vmatmul.bf16.gmra.mxu0 %v12447_v11 }
  0xd0   : > { %2308 = vmatmul.bf16.gmra.mxu1 %v12449_v12 }
  0xd1   : > { %2357 = vmatmul.bf16.gmra.mxu2 %v12451_v13  ;;  %2406 = vmatmul.bf16.gmra.mxu3 %v12447_v11 }
  0xdf   : > { %2264 = vmatmul.bf16.gmra.mxu0 %v12463_v38 }
  0xe0   : > { %2313 = vmatmul.bf16.gmra.mxu1 %v12465_v39 }
  0xe1   : > { %2362 = vmatmul.bf16.gmra.mxu2 %v12467_v43  ;;  %2411 = vmatmul.bf16.gmra.mxu3 %v12463_v38 }
  0xec   : > { %v2230_v3 = vpop.f32.mrf.mxu0 }
  0xed   : > { %v2231_v4 = vadd.f32 %v2230_v3, %v12476_v63  ;;  %v2279_v5 = vpop.f32.mrf.mxu1  ;;  %v11360_v3 = vld [vmem:[#allocation5 + $0x78c] sm:$0xf] }
  0xef   : > { %v2280_v6 = vadd.f32 %v2279_v5, %v2231_v4  ;;  %2425 = vmatmul.bf16.vlgmr.msrb.gmra.mxu0 %v12353_v51  ;;  %v9782_v4 = vld [vmem:[#allocation5 + $0x7b8] sm:$0xf0] }
  0xf0   : > { %2474 = vmatmul.bf16.vlgmr.msrb.gmra.mxu1 %v12355_v52  ;;  %v9785_v7 = vor.u32 %v11360_v3, %v9782_v4 }
  0xf1   : > { %2523 = vmatmul.bf16.vlgmr.msrb.gmra.mxu2 %v12351_v46  ;;  %2572 = vmatmul.bf16.vlgmr.msrb.gmra.mxu3 %v12353_v51 }
  0xf2   : > { %2763 = vmatpush.bf16.msra.mxu3 %v9785_v7  ;;  %v11156_v7 = vld [vmem:[#allocation5 + $0x12c] sm:$0xf] }
  0xf4   : > { %v2328_v17 = vpop.f32.mrf.mxu2  ;;  %v12483_v27 = vpop.f32.mrf.mxu3 }
  0xf5   : > { %v2329_v23 = vadd.f32 %v2328_v17, %v2280_v6  ;;  %v2232_v28 = vpop.f32.mrf.mxu0  ;;  %v2281_v30 = vpop.f32.mrf.mxu1  ;;  %v9781_v6 = vor.u32 %v11366_v62, %v9780_v60  ;;  %v9014_v17 = vld [vmem:[#allocation5 + $0x1b8] sm:$0xf0] }
  0xf6   : > { %v2233_v29 = vadd.f32 %v2232_v28, %v12476_v63  ;;  %v9017_v22 = vor.u32 %v11168_v16, %v9014_v17 }
  0xf7   : > { %v3985_v48 = vmax.f32 %v2329_v23, 0.0  ;;  %2616 = vmatpush.bf16.msra.mxu0 %v9781_v6 }
  0xf8   : > { %v2282_v33 = vadd.f32 %v2281_v30, %v2233_v29  ;;  %2665 = vmatpush.bf16.msra.mxu1 %v9017_v22 }
  0xfc   : > { %v2330_v35 = vpop.f32.mrf.mxu2  ;;  %v12486_v37 = vpop.f32.mrf.mxu3 }
  0xfd   : > { %v2331_v36 = vadd.f32 %v2330_v35, %v2282_v33  ;;  %v2235_v44 = vpop.f32.mrf.mxu0  ;;  %v2284_v47 = vpop.f32.mrf.mxu1 }
  0xfe   : > { %v2236_v45 = vadd.f32 %v2235_v44, %v12476_v63  ;;  %v11252_v44 = vld [vmem:[#allocation5 + $0x42c] sm:$0xf] }
  0xff   : > { %v3997_v54 = vmax.f32 %v2331_v36, 0.0  ;;  %2430 = vmatmul.bf16.gmra.mxu0 %v12369_v20 }
 0x100   : > { %v2285_v55 = vadd.f32 %v2284_v47, %v2236_v45  ;;  %2479 = vmatmul.bf16.gmra.mxu1 %v12371_v21  ;;  %v9350_v45 = vld [vmem:[#allocation5 + $0x458] sm:$0xf0]  ;;  %v9732_v47 = vld [vmem:[#allocation5 + $0x728] sm:$0xf] }
 0x101   : > { %v12490_v56 = vpack.c.bf16 %v3997_v54, %v3985_v48  ;;  %2528 = vmatmul.bf16.gmra.mxu2 %v12367_v19  ;;  %2577 = vmatmul.bf16.gmra.mxu3 %v12369_v20  ;;  %v9353_v48 = vor.u32 %v11252_v44, %v9350_v45  ;;  %v11354_v54 = vld [vmem:[#allocation5 + $0x754] sm:$0xf0] }
 0x102   : > { %v9733_v60 = vor.u32 %v11354_v54, %v9732_v47  ;;  %v11342_v45 = vld [vmem:[#allocation5 + $0x6f4] sm:$0xf0]  ;;  %v11336_v47 = vld [vmem:[#allocation5 + $0x6cc] sm:$0xf] }
 0x103   : > { %2715 = vmatpush.bf16.msra.mxu2 %v9353_v48  ;;  %v9686_v48 = vld [vmem:[#allocation5 + $0x6f8] sm:$0xf0] }
 0x104   : > { %v2333_v5 = vpop.f32.mrf.mxu2  ;;  %v12495_v9 = vpop.f32.mrf.mxu3  ;;  %2617 = vmatpush.bf16.msra.mxu0 %v9733_v60 }
 0x105   : > { %v2334_v8 = vadd.f32 %v2333_v5, %v2285_v55  ;;  %v2237_v10 = vpop.f32.mrf.mxu0  ;;  %v2286_v15 = vpop.f32.mrf.mxu1  ;;  %v11348_v55 = vld [vmem:[#allocation5 + $0x72c] sm:$0xf] }
 0x106   : > { %v2238_v14 = vadd.f32 %v2237_v10, %v12476_v63  ;;  %v9737_v61 = vor.u32 %v11348_v55, %v9734_v57  ;;  %v9689_v57 = vor.u32 %v11336_v47, %v9686_v48  ;;  %v11324_v47 = vld [vmem:[#allocation5 + $0x66c] sm:$0xf]  ;;  %v9638_v48 = vld [vmem:[#allocation5 + $0x698] sm:$0xf0] }
 0x107   : > { %v4009_v33 = vmax.f32 %v2334_v8, 0.0  ;;  %v8966_v8 = vld [vmem:[#allocation5 + $0x158] sm:$0xf0] }
 0x108   : > { %v2287_v18 = vadd.f32 %v2286_v15, %v2238_v14  ;;  %2764 = vmatpush.bf16.msra.mxu3 %v9737_v61  ;;  %v8969_v14 = vor.u32 %v11156_v7, %v8966_v8 }
 0x10a   : > { %2666 = vmatpush.bf16.msra.mxu1 %v8969_v14 }
 0x10c   : > { %v2335_v23 = vpop.f32.mrf.mxu2  ;;  %v12498_v29 = vpop.f32.mrf.mxu3  ;;  %2765 = vmatpush.bf16.msra.mxu3 %v9689_v57  ;;  %v9641_v57 = vor.u32 %v11324_v47, %v9638_v48  ;;  %v9588_v47 = vld [vmem:[#allocation5 + $0x608] sm:$0xf] }
 0x10d   : > { %v2336_v28 = vadd.f32 %v2335_v23, %v2287_v18  ;;  %v2240_v30 = vpop.f32.mrf.mxu0  ;;  %v2289_v32 = vpop.f32.mrf.mxu1 }
 0x10e   : > { %v2241_v31 = vadd.f32 %v2240_v30, %v12476_v63 }
 0x10f   : > { %v4021_v34 = vmax.f32 %v2336_v28, 0.0  ;;  %2435 = vmatmul.bf16.gmra.mxu0 %v12385_v41 }
 0x110   : > { %v2290_v35 = vadd.f32 %v2289_v32, %v2241_v31  ;;  %2484 = vmatmul.bf16.gmra.mxu1 %v12387_v42  ;;  %2766 = vmatpush.bf16.msra.mxu3 %v9641_v57  ;;  %v9590_v57 = vld [vmem:[#allocation5 + $0x638] sm:$0xf0] }
 0x111   : > { %2533 = vmatmul.bf16.gmra.mxu2 %v12383_v40  ;;  %v12504_v36 = vpack.c.bf16 %v4021_v34, %v4009_v33  ;;  %2582 = vmatmul.bf16.gmra.mxu3 %v12385_v41  ;;  %v11240_v33 = vld [vmem:[#allocation5 + $0x3cc] sm:$0xf]  ;;  %v9302_v34 = vld [vmem:[#allocation5 + $0x3f8] sm:$0xf0] }
 0x112   : > { %v9305_v44 = vor.u32 %v11240_v33, %v9302_v34  ;;  %v11228_v33 = vld [vmem:[#allocation5 + $0x36c] sm:$0xf]  ;;  %v9254_v34 = vld [vmem:[#allocation5 + $0x398] sm:$0xf0] }
 0x113   : > { %14904 = vst [vmem:[#allocation20_spill] sm:$0xff] %v12504_v36 }
 0x114   : > { %v2338_v58 = vpop.f32.mrf.mxu2  ;;  %v12507_v3 = vpop.f32.mrf.mxu3  ;;  %2716 = vmatpush.bf16.msra.mxu2 %v9305_v44  ;;  %v9257_v44 = vor.u32 %v11228_v33, %v9254_v34 }
 0x115   : > { %v2339_v62 = vadd.f32 %v2338_v58, %v2290_v35  ;;  %v2242_v4 = vpop.f32.mrf.mxu0  ;;  %v2291_v6 = vpop.f32.mrf.mxu1  ;;  %v9684_v35 = vld [vmem:[#allocation5 + $0x6c8] sm:$0xf] }
 0x116   : > { %v2243_v5 = vadd.f32 %v2242_v4, %v12476_v63  ;;  %v9685_v55 = vor.u32 %v11342_v45, %v9684_v35  ;;  %v9636_v35 = vld [vmem:[#allocation5 + $0x668] sm:$0xf]  ;;  %v11330_v45 = vld [vmem:[#allocation5 + $0x694] sm:$0xf0] }
 0x117   : > { %v4033_v28 = vmax.f32 %v2339_v62, 0.0 }
 0x118   : > { %v2292_v10 = vadd.f32 %v2291_v6, %v2243_v5  ;;  %2618 = vmatpush.bf16.msra.mxu0 %v9685_v55  ;;  %v11144_v5 = vld [vmem:[#allocation5 + $0xcc] sm:$0xf]  ;;  %v8918_v6 = vld [vmem:[#allocation5 + $0xf8] sm:$0xf0]  ;;  %v9637_v55 = vor.u32 %v11330_v45, %v9636_v35  ;;  %2717 = vmatpush.bf16.msra.mxu2 %v9257_v44 }
 0x119   : > { %v8921_v8 = vor.u32 %v11144_v5, %v8918_v6  ;;  %v11132_v6 = vld [vmem:[#allocation5 + $0x6c] sm:$0xf]  ;;  %v9206_v45 = vld [vmem:[#allocation5 + $0x338] sm:$0xf0] }
 0x11a   : > { %v11216_v44 = vld [vmem:[#allocation5 + $0x30c] sm:$0xf] }
 0x11b   : > { %2667 = vmatpush.bf16.msra.mxu1 %v8921_v8  ;;  %v9209_v48 = vor.u32 %v11216_v44, %v9206_v45 }
 0x11c   : > { %v2340_v15 = vpop.f32.mrf.mxu2  ;;  %v12510_v17 = vpop.f32.mrf.mxu3  ;;  %2619 = vmatpush.bf16.msra.mxu0 %v9637_v55  ;;  %v11312_v55 = vld [vmem:[#allocation5 + $0x60c] sm:$0xf] }
 0x11d   : > { %v2341_v16 = vadd.f32 %v2340_v15, %v2292_v10  ;;  %v2245_v18 = vpop.f32.mrf.mxu0  ;;  %v2294_v23 = vpop.f32.mrf.mxu1  ;;  %2718 = vmatpush.bf16.msra.mxu2 %v9209_v48 }
 0x11e   : > { %v2246_v22 = vadd.f32 %v2245_v18, %v12476_v63 }
 0x11f   : > { %v4045_v30 = vmax.f32 %v2341_v16, 0.0  ;;  %2440 = vmatmul.bf16.gmra.mxu0 %v12401_v1 }
 0x120   : > { %v2295_v31 = vadd.f32 %v2294_v23, %v2246_v22  ;;  %2489 = vmatmul.bf16.gmra.mxu1 %v12403_v2 }
 0x121   : > { %2538 = vmatmul.bf16.gmra.mxu2 %v12399_v0  ;;  %v12516_v32 = vpack.c.bf16 %v4045_v30, %v4033_v28  ;;  %2587 = vmatmul.bf16.gmra.mxu3 %v12401_v1 }
 0x123   : > { %14905 = vst [vmem:[#allocation21_spill] sm:$0xff] %v12516_v32 }
 0x124   : > { %v2343_v54 = vpop.f32.mrf.mxu2  ;;  %v12519_v60 = vpop.f32.mrf.mxu3 }
 0x125   : > { %v2344_v58 = vadd.f32 %v2343_v54, %v2295_v31  ;;  %v2247_v61 = vpop.f32.mrf.mxu0  ;;  %v2296_v4 = vpop.f32.mrf.mxu1 }
 0x126   : > { %v2248_v62 = vadd.f32 %v2247_v61, %v12476_v63 }
 0x127   : > { %v4057_v23 = vmax.f32 %v2344_v58, 0.0 }
 0x128   : > { %v2297_v7 = vadd.f32 %v2296_v4, %v2248_v62 }
 0x12c   : > { %v2345_v10 = vpop.f32.mrf.mxu2  ;;  %v12522_v15 = vpop.f32.mrf.mxu3 }
 0x12d   : > { %v2346_v14 = vadd.f32 %v2345_v10, %v2297_v7  ;;  %v2250_v16 = vpop.f32.mrf.mxu0  ;;  %v2299_v22 = vpop.f32.mrf.mxu1  ;;  %v8870_v7 = vld [vmem:[#allocation5 + $0x98] sm:$0xf0] }
 0x12e   : > { %v2251_v18 = vadd.f32 %v2250_v16, %v12476_v63  ;;  %v8873_v10 = vor.u32 %v11132_v6, %v8870_v7 }
 0x12f   : > { %v4069_v28 = vmax.f32 %v2346_v14, 0.0  ;;  %2445 = vmatmul.bf16.gmra.mxu0 %v12417_v25 }
 0x130   : > { %v2300_v30 = vadd.f32 %v2299_v22, %v2251_v18  ;;  %2494 = vmatmul.bf16.gmra.mxu1 %v12419_v26 }
 0x131   : > { %2543 = vmatmul.bf16.gmra.mxu2 %v12415_v24  ;;  %v12528_v31 = vpack.c.bf16 %v4069_v28, %v4057_v23  ;;  %2592 = vmatmul.bf16.gmra.mxu3 %v12417_v25 }
 0x132   : > { %2668 = vmatpush.bf16.msra.mxu1 %v8873_v10 }
 0x133   : > { %14906 = vst [vmem:[#allocation22_spill] sm:$0xff] %v12528_v31 }
 0x134   : > { %v2348_v54 = vpop.f32.mrf.mxu2  ;;  %v12531_v61 = vpop.f32.mrf.mxu3 }
 0x135   : > { %v2349_v58 = vadd.f32 %v2348_v54, %v2300_v30  ;;  %v2252_v62 = vpop.f32.mrf.mxu0  ;;  %v2301_v5 = vpop.f32.mrf.mxu1  ;;  %v11318_v54 = vld [vmem:[#allocation5 + $0x634] sm:$0xf0] }
 0x136   : > { %v2253_v4 = vadd.f32 %v2252_v62, %v12476_v63  ;;  %v9589_v62 = vor.u32 %v11318_v54, %v9588_v47 }
 0x137   : > { %v4081_v30 = vmax.f32 %v2349_v58, 0.0 }
 0x138   : > { %v2302_v8 = vadd.f32 %v2301_v5, %v2253_v4  ;;  %v9593_v4 = vor.u32 %v11312_v55, %v9590_v57  ;;  %2620 = vmatpush.bf16.msra.mxu0 %v9589_v62  ;;  %v9932_v57 = vld [vmem:[#allocation5 + $0x8b0] sm:$0xf] }
 0x139   : > { %v9164_v62 = vld [vmem:[#allocation5 + $0x2b0] sm:$0xf] }
 0x13a   : > { %2767 = vmatpush.bf16.msra.mxu3 %v9593_v4 }
 0x13c   : > { %v2350_v14 = vpop.f32.mrf.mxu2  ;;  %v12534_v18 = vpop.f32.mrf.mxu3 }
 0x13d   : > { %v2351_v16 = vadd.f32 %v2350_v14, %v2302_v8  ;;  %v2255_v22 = vpop.f32.mrf.mxu0  ;;  %v2304_v28 = vpop.f32.mrf.mxu1  ;;  %v11120_v14 = vld [vmem:[#allocation5 + $0xc] sm:$0xf] }
 0x13e   : > { %v2256_v23 = vadd.f32 %v2255_v22, %v12476_v63 }
 0x13f   : > { %v4093_v33 = vmax.f32 %v2351_v16, 0.0  ;;  %2450 = vmatmul.bf16.gmra.mxu0 %v12433_v50  ;;  %v8822_v16 = vld [vmem:[#allocation5 + $0x38] sm:$0xf0] }
 0x140   : > { %v2305_v34 = vadd.f32 %v2304_v28, %v2256_v23  ;;  %2499 = vmatmul.bf16.gmra.mxu1 %v12435_v53  ;;  %v8825_v23 = vor.u32 %v11120_v14, %v8822_v16 }
 0x141   : > { %2548 = vmatmul.bf16.gmra.mxu2 %v12431_v49  ;;  %v12540_v35 = vpack.c.bf16 %v4093_v33, %v4081_v30  ;;  %2597 = vmatmul.bf16.gmra.mxu3 %v12433_v50 }
 0x142   : > { %2669 = vmatpush.bf16.msra.mxu1 %v8825_v23 }
 0x143   : > { %14907 = vst [vmem:[#allocation23_spill] sm:$0xff] %v12540_v35 }
 0x144   : > { %v2353_v58 = vpop.f32.mrf.mxu2  ;;  %v12543_v6 = vpop.f32.mrf.mxu3 }
 0x145   : > { %v2354_v5 = vadd.f32 %v2353_v58, %v2305_v34  ;;  %v2257_v7 = vpop.f32.mrf.mxu0  ;;  %v2306_v10 = vpop.f32.mrf.mxu1  ;;  %v11403_v58 = vld [vmem:[#allocation5 + $0x8dc] sm:$0xf0] }
 0x146   : > { %v2258_v8 = vadd.f32 %v2257_v7, %v12476_v63  ;;  %v9933_v4 = vor.u32 %v11403_v58, %v9932_v57  ;;  %v11211_v7 = vld [vmem:[#allocation5 + $0x2dc] sm:$0xf0] }
 0x147   : > { %v4105_v47 = vmax.f32 %v2354_v5, 0.0  ;;  %v9165_v14 = vor.u32 %v11211_v7, %v9164_v62 }
 0x148   : > { %v2307_v22 = vadd.f32 %v2306_v10, %v2258_v8  ;;  %v11205_v8 = vld [vmem:[#allocation5 + $0x2b4] sm:$0xf]  ;;  %v9166_v10 = vld [vmem:[#allocation5 + $0x2e0] sm:$0xf0]  ;;  %2907 = vmatpush.bf16.msrb.mxu2 %v9933_v4 }
 0x149   : > { %v9169_v16 = vor.u32 %v11205_v8, %v9166_v10  ;;  %2809 = vmatpush.bf16.msrb.mxu0 %v9165_v14  ;;  %v9884_v14 = vld [vmem:[#allocation5 + $0x850] sm:$0xf] }
 0x14b   : > { %2956 = vmatpush.bf16.msrb.mxu3 %v9169_v16  ;;  %v11391_v16 = vld [vmem:[#allocation5 + $0x87c] sm:$0xf0] }
 0x14c   : > { %v2355_v28 = vpop.f32.mrf.mxu2  ;;  %v12546_v33 = vpop.f32.mrf.mxu3 }
 0x14d   : > { %v2356_v30 = vadd.f32 %v2355_v28, %v2307_v22  ;;  %v2260_v44 = vpop.f32.mrf.mxu0  ;;  %v2309_v45 = vpop.f32.mrf.mxu1 }
 0x14e   : > { %v2261_v34 = vadd.f32 %v2260_v44, %v12476_v63 }
 0x14f   : > { %v4117_v48 = vmax.f32 %v2356_v30, 0.0  ;;  %2455 = vmatmul.bf16.gmra.mxu0 %v12449_v12 }
 0x150   : > { %v2310_v54 = vadd.f32 %v2309_v45, %v2261_v34  ;;  %2504 = vmatmul.bf16.gmra.mxu1 %v12451_v13  ;;  %v9548_v34 = vld [vmem:[#allocation5 + $0x5b0] sm:$0xf]  ;;  %v11307_v45 = vld [vmem:[#allocation5 + $0x5dc] sm:$0xf0] }
 0x151   : > { %2553 = vmatmul.bf16.gmra.mxu2 %v12447_v11  ;;  %v12552_v55 = vpack.c.bf16 %v4117_v48, %v4105_v47  ;;  %2602 = vmatmul.bf16.gmra.mxu3 %v12449_v12  ;;  %v9549_v48 = vor.u32 %v11307_v45, %v9548_v34  ;;  %v11193_v34 = vld [vmem:[#allocation5 + $0x254] sm:$0xf]  ;;  %v9118_v45 = vld [vmem:[#allocation5 + $0x280] sm:$0xf0] }
 0x153   : > { %14908 = vst [vmem:[#allocation24_spill] sm:$0xff] %v12552_v55  ;;  %2858 = vmatpush.bf16.msrb.mxu1 %v9549_v48  ;;  %v9121_v48 = vor.u32 %v11193_v34, %v9118_v45 }
 0x154   : > { %v2358_v5 = vpop.f32.mrf.mxu2  ;;  %v12555_v23 = vpop.f32.mrf.mxu3 }
 0x155   : > { %v2359_v22 = vadd.f32 %v2358_v5, %v2310_v54  ;;  %v2262_v28 = vpop.f32.mrf.mxu0  ;;  %v2311_v44 = vpop.f32.mrf.mxu1  ;;  %2957 = vmatpush.bf16.msrb.mxu3 %v9121_v48 }
 0x156   : > { %v2263_v30 = vadd.f32 %v2262_v28, %v12476_v63  ;;  %v9116_v28 = vld [vmem:[#allocation5 + $0x250] sm:$0xf] }
 0x157   : > { %v4129_v8 = vmax.f32 %v2359_v22, 0.0 }
 0x158   : > { %v2312_v47 = vadd.f32 %v2311_v44, %v2263_v30  ;;  %v9885_v30 = vor.u32 %v11391_v16, %v9884_v14  ;;  %v11199_v44 = vld [vmem:[#allocation5 + $0x27c] sm:$0xf0]  ;;  %v12571_v14 = vperm.slane %v12473_v59, 1 }
 0x15a   : > { %2908 = vmatpush.bf16.msrb.mxu2 %v9885_v30 }
 0x15c   : > { %v2360_v57 = vpop.f32.mrf.mxu2  ;;  %v12558_v55 = vpop.f32.mrf.mxu3 }
 0x15d   : > { %v2361_v58 = vadd.f32 %v2360_v57, %v2312_v47  ;;  %v2265_v62 = vpop.f32.mrf.mxu0  ;;  %v2314_v7 = vpop.f32.mrf.mxu1  ;;  %v9117_v47 = vor.u32 %v11199_v44, %v9116_v28 }
 0x15e   : > { %v2266_v54 = vadd.f32 %v2265_v62, %v12476_v63 }
 0x15f   : > { %v4141_v4 = vmax.f32 %v2361_v58, 0.0  ;;  %2460 = vmatmul.bf16.gmra.mxu0 %v12465_v39 }
 0x160   : > { %v2315_v10 = vadd.f32 %v2314_v7, %v2266_v54  ;;  %2509 = vmatmul.bf16.gmra.mxu1 %v12467_v43  ;;  %2810 = vmatpush.bf16.msrb.mxu0 %v9117_v47 }
 0x161   : > { %2558 = vmatmul.bf16.gmra.mxu2 %v12463_v38  ;;  %v12564_v5 = vpack.c.bf16 %v4141_v4, %v4129_v8  ;;  %2607 = vmatmul.bf16.gmra.mxu3 %v12465_v39  ;;  %v9500_v8 = vld [vmem:[#allocation5 + $0x550] sm:$0xf]  ;;  %v11295_v4 = vld [vmem:[#allocation5 + $0x57c] sm:$0xf0] }
 0x163   : > { %14909 = vst [vmem:[#allocation25_spill] sm:$0xff] %v12564_v5  ;;  %v9501_v5 = vor.u32 %v11295_v4, %v9500_v8  ;;  %v9068_v8 = vld [vmem:[#allocation5 + $0x1f0] sm:$0xf]  ;;  %v11181_v4 = vld [vmem:[#allocation5 + $0x1f4] sm:$0xf] }
 0x164   : > { %v2363_v22 = vpop.f32.mrf.mxu2  ;;  %v12567_v58 = vpop.f32.mrf.mxu3 }
 0x165   : > { %v2364_v57 = vadd.f32 %v2363_v22, %v2315_v10  ;;  %v2267_v62 = vpop.f32.mrf.mxu0  ;;  %v2316_v7 = vpop.f32.mrf.mxu1  ;;  %2859 = vmatpush.bf16.msrb.mxu1 %v9501_v5  ;;  %v2378_v10 = vadd.f32 %v12483_v27, %v12571_v14  ;;  %v12581_v5 = vperm.slane %v12473_v59, 2 }
 0x166   : > { %v2268_v54 = vadd.f32 %v2267_v62, %v12476_v63  ;;  %v9836_v62 = vld [vmem:[#allocation5 + $0x7f0] sm:$0xf] }
 0x167   : > { %v4153_v22 = vmax.f32 %v2364_v57, 0.0  ;;  %v11187_v57 = vld [vmem:[#allocation5 + $0x21c] sm:$0xf0] }
 0x168   : > { %v2317_v16 = vadd.f32 %v2316_v7, %v2268_v54  ;;  %v11379_v54 = vld [vmem:[#allocation5 + $0x81c] sm:$0xf0] }
 0x169   : > { %v9837_v7 = vor.u32 %v11379_v54, %v9836_v62  ;;  %v9452_v62 = vld [vmem:[#allocation5 + $0x4f0] sm:$0xf]  ;;  %v11283_v54 = vld [vmem:[#allocation5 + $0x51c] sm:$0xf0] }
 0x16a   : > { %v9453_v31 = vor.u32 %v11283_v54, %v9452_v62  ;;  %v9022_v62 = vld [vmem:[#allocation5 + $0x1c0] sm:$0xf0] }
 0x16b   : > { %2909 = vmatpush.bf16.msrb.mxu2 %v9837_v7 }
 0x16c   : > { %v2365_v28 = vpop.f32.mrf.mxu2  ;;  %v12575_v34 = vpop.f32.mrf.mxu3  ;;  %2860 = vmatpush.bf16.msrb.mxu1 %v9453_v31 }
 0x16d   : > { %v2366_v44 = vadd.f32 %v2365_v28, %v2317_v16  ;;  %v2426_v30 = vpop.f32.mrf.mxu0  ;;  %v2475_v45 = vpop.f32.mrf.mxu1  ;;  %v2380_v16 = vadd.f32 %v12486_v37, %v12571_v14  ;;  %v9069_v28 = vor.u32 %v11187_v57, %v9068_v8  ;;  %v2383_v8 = vadd.f32 %v12495_v9, %v12571_v14  ;;  %v9788_v9 = vld [vmem:[#allocation5 + $0x790] sm:$0xf] }
 0x16e   : > { %v2427_v63 = vadd.f32 %v2426_v30, %v2378_v10 }
 0x16f   : > { %v4165_v47 = vmax.f32 %v2366_v44, 0.0  ;;  %2621 = vmatmul.bf16.vlgmr.msra.gmra.mxu0 %v12355_v52  ;;  %v9070_v44 = vld [vmem:[#allocation5 + $0x220] sm:$0xf0] }
 0x170   : > { %v2476_v48 = vadd.f32 %v2475_v45, %v2427_v63  ;;  %2670 = vmatmul.bf16.vlgmr.msra.gmra.mxu1 %v12351_v46  ;;  %v9073_v45 = vor.u32 %v11181_v4, %v9070_v44  ;;  %2811 = vmatpush.bf16.msrb.mxu0 %v9069_v28 }
 0x171   : > { %2719 = vmatmul.bf16.vlgmr.msra.gmra.mxu2 %v12353_v51  ;;  %v12583_v27 = vpack.c.bf16 %v4165_v47, %v4153_v22  ;;  %2768 = vmatmul.bf16.vlgmr.msra.gmra.mxu3 %v12355_v52 }
 0x172   : > { %2958 = vmatpush.bf16.msrb.mxu3 %v9073_v45  ;;  %v3986_v37 = vmax.f32 %v2476_v48, 0.0  ;;  %v11175_v48 = vld [vmem:[#allocation5 + $0x1bc] sm:$0xf0]  ;;  %v2385_v45 = vadd.f32 %v12498_v29, %v12571_v14 }
 0x173   : > { %14910 = vst [vmem:[#allocation26_spill] sm:$0xff] %v12583_v27 }
 0x174   : > { %v2524_v10 = vpop.f32.mrf.mxu2  ;;  %v2573_v59 = vpop.f32.mrf.mxu3 }
 0x175   : > { %v2525_v30 = vadd.f32 %v2524_v10, %v12581_v5  ;;  %v2428_v63 = vpop.f32.mrf.mxu0  ;;  %v2477_v47 = vpop.f32.mrf.mxu1 }
 0x176   : > { %v2429_v22 = vadd.f32 %v2428_v63, %v2380_v16  ;;  %v11169_v63 = vld [vmem:[#allocation5 + $0x194] sm:$0xf] }
 0x177   : > { %v12589_v27 = vadd.f32 %v2573_v59, %v2525_v30 }
 0x178   : > { %v2478_v35 = vadd.f32 %v2477_v47, %v2429_v22 }
 0x17a   : > { %v3998_v32 = vmax.f32 %v2478_v35, 0.0  ;;  %v9020_v35 = vld [vmem:[#allocation5 + $0x190] sm:$0xf] }
 0x17b   : > { %v9021_v47 = vor.u32 %v11175_v48, %v9020_v35  ;;  %v2388_v35 = vadd.f32 %v12507_v3, %v12571_v14  ;;  %v9740_v3 = vld [vmem:[#allocation5 + $0x730] sm:$0xf] }
 0x17c   : > { %v12593_v57 = vpack.c.bf16 %v3998_v32, %v3986_v37  ;;  %v2526_v7 = vpop.f32.mrf.mxu2  ;;  %v2575_v16 = vpop.f32.mrf.mxu3  ;;  %v11367_v32 = vld [vmem:[#allocation5 + $0x7bc] sm:$0xf0] }
 0x17d   : > { %v2527_v4 = vadd.f32 %v2526_v7, %v12581_v5  ;;  %v2431_v10 = vpop.f32.mrf.mxu0  ;;  %v2480_v44 = vpop.f32.mrf.mxu1  ;;  %v9789_v31 = vor.u32 %v11367_v32, %v9788_v9  ;;  %v9025_v7 = vor.u32 %v11169_v63, %v9022_v62  ;;  %2812 = vmatpush.bf16.msrb.mxu0 %v9021_v47 }
 0x17e   : > { %14911 = vst [vmem:[#allocation27_spill] sm:$0xff] %v12593_v57  ;;  %v2432_v28 = vadd.f32 %v2431_v10, %v2383_v8 }
 0x17f   : > { %v12596_v30 = vadd.f32 %v2575_v16, %v2527_v4  ;;  %2626 = vmatmul.bf16.gmra.mxu0 %v12371_v21  ;;  %2910 = vmatpush.bf16.msrb.mxu2 %v9789_v31 }
 0x180   : > { %v2481_v59 = vadd.f32 %v2480_v44, %v2432_v28  ;;  %2675 = vmatmul.bf16.gmra.mxu1 %v12367_v19  ;;  %2959 = vmatpush.bf16.msrb.mxu3 %v9025_v7  ;;  %v9404_v28 = vld [vmem:[#allocation5 + $0x490] sm:$0xf]  ;;  %v11271_v44 = vld [vmem:[#allocation5 + $0x4bc] sm:$0xf0] }
 0x181   : > { %2724 = vmatmul.bf16.gmra.mxu2 %v12369_v20  ;;  %2773 = vmatmul.bf16.gmra.mxu3 %v12371_v21  ;;  %v9405_v32 = vor.u32 %v11271_v44, %v9404_v28  ;;  %v11163_v7 = vld [vmem:[#allocation5 + $0x15c] sm:$0xf0] }
 0x182   : > { %v4010_v29 = vmax.f32 %v2481_v59, 0.0 }
 0x183   : > { %2861 = vmatpush.bf16.msrb.mxu1 %v9405_v32 }
 0x184   : > { %v2529_v22 = vpop.f32.mrf.mxu2  ;;  %v2578_v37 = vpop.f32.mrf.mxu3 }
 0x185   : > { %v2530_v54 = vadd.f32 %v2529_v22, %v12581_v5  ;;  %v2433_v8 = vpop.f32.mrf.mxu0  ;;  %v2482_v16 = vpop.f32.mrf.mxu1 }
 0x186   : > { %v2434_v4 = vadd.f32 %v2433_v8, %v2385_v45  ;;  %v8972_v8 = vld [vmem:[#allocation5 + $0x130] sm:$0xf] }
 0x187   : > { %v12605_v10 = vadd.f32 %v2578_v37, %v2530_v54  ;;  %v8973_v44 = vor.u32 %v11163_v7, %v8972_v8  ;;  %v2393_v8 = vadd.f32 %v12519_v60, %v12571_v14  ;;  %v9692_v60 = vld [vmem:[#allocation5 + $0x6d0] sm:$0xf] }
 0x188   : > { %v2483_v9 = vadd.f32 %v2482_v16, %v2434_v4  ;;  %v11157_v4 = vld [vmem:[#allocation5 + $0x134] sm:$0xf]  ;;  %v2390_v16 = vadd.f32 %v12510_v17, %v12571_v14 }
 0x189   : > { %2813 = vmatpush.bf16.msrb.mxu0 %v8973_v44 }
 0x18a   : > { %v4022_v36 = vmax.f32 %v2483_v9, 0.0  ;;  %v8974_v9 = vld [vmem:[#allocation5 + $0x160] sm:$0xf0] }
 0x18c   : > { %v2531_v48 = vpop.f32.mrf.mxu2  ;;  %v12609_v22 = vpack.c.bf16 %v4022_v36, %v4010_v29  ;;  %v2580_v63 = vpop.f32.mrf.mxu3  ;;  %v11355_v36 = vld [vmem:[#allocation5 + $0x75c] sm:$0xf0] }
 0x18d   : > { %v2532_v31 = vadd.f32 %v2531_v48, %v12581_v5  ;;  %v2436_v45 = vpop.f32.mrf.mxu0  ;;  %v2485_v62 = vpop.f32.mrf.mxu1  ;;  %v9741_v59 = vor.u32 %v11355_v36, %v9740_v3  ;;  %v8977_v48 = vor.u32 %v11157_v4, %v8974_v9 }
 0x18e   : > { %14912 = vst [vmem:[#allocation28_spill] sm:$0xff] %v12609_v22  ;;  %v2437_v47 = vadd.f32 %v2436_v45, %v2388_v35 }
 0x18f   : > { %v12612_v54 = vadd.f32 %v2580_v63, %v2532_v31  ;;  %2631 = vmatmul.bf16.gmra.mxu0 %v12387_v42  ;;  %2911 = vmatpush.bf16.msrb.mxu2 %v9741_v59 }
 0x190   : > { %v2486_v37 = vadd.f32 %v2485_v62, %v2437_v47  ;;  %2680 = vmatmul.bf16.gmra.mxu1 %v12383_v40  ;;  %2960 = vmatpush.bf16.msrb.mxu3 %v8977_v48  ;;  %v9356_v47 = vld [vmem:[#allocation5 + $0x430] sm:$0xf]  ;;  %v11259_v62 = vld [vmem:[#allocation5 + $0x45c] sm:$0xf0] }
 0x191   : > { %2729 = vmatmul.bf16.gmra.mxu2 %v12385_v41  ;;  %2778 = vmatmul.bf16.gmra.mxu3 %v12387_v42  ;;  %v9357_v36 = vor.u32 %v11259_v62, %v9356_v47  ;;  %v11151_v48 = vld [vmem:[#allocation5 + $0xfc] sm:$0xf0] }
 0x192   : > { %v4034_v17 = vmax.f32 %v2486_v37, 0.0 }
 0x193   : > { %2862 = vmatpush.bf16.msrb.mxu1 %v9357_v36 }
 0x194   : > { %v2534_v28 = vpop.f32.mrf.mxu2  ;;  %v2583_v29 = vpop.f32.mrf.mxu3 }
 0x195   : > { %v2535_v32 = vadd.f32 %v2534_v28, %v12581_v5  ;;  %v2438_v35 = vpop.f32.mrf.mxu0  ;;  %v2487_v63 = vpop.f32.mrf.mxu1 }
 0x196   : > { %v2439_v31 = vadd.f32 %v2438_v35, %v2390_v16  ;;  %v8924_v35 = vld [vmem:[#allocation5 + $0xd0] sm:$0xf] }
 0x197   : > { %v12621_v45 = vadd.f32 %v2583_v29, %v2535_v32  ;;  %v8925_v62 = vor.u32 %v11151_v48, %v8924_v35  ;;  %v2398_v35 = vadd.f32 %v12531_v61, %v12571_v14  ;;  %v9644_v61 = vld [vmem:[#allocation5 + $0x670] sm:$0xf] }
 0x198   : > { %v2488_v3 = vadd.f32 %v2487_v63, %v2439_v31  ;;  %v11145_v31 = vld [vmem:[#allocation5 + $0xd4] sm:$0xf]  ;;  %v2395_v63 = vadd.f32 %v12522_v15, %v12571_v14 }
 0x199   : > { %2814 = vmatpush.bf16.msrb.mxu0 %v8925_v62 }
 0x19a   : > { %v4046_v22 = vmax.f32 %v2488_v3, 0.0  ;;  %v8926_v3 = vld [vmem:[#allocation5 + $0x100] sm:$0xf0] }
 0x19c   : > { %v2536_v7 = vpop.f32.mrf.mxu2  ;;  %v12625_v28 = vpack.c.bf16 %v4046_v22, %v4034_v17  ;;  %v2585_v4 = vpop.f32.mrf.mxu3  ;;  %v11343_v22 = vld [vmem:[#allocation5 + $0x6fc] sm:$0xf0] }
 0x19d   : > { %v2537_v59 = vadd.f32 %v2536_v7, %v12581_v5  ;;  %v2441_v16 = vpop.f32.mrf.mxu0  ;;  %v2490_v9 = vpop.f32.mrf.mxu1  ;;  %v9693_v37 = vor.u32 %v11343_v22, %v9692_v60  ;;  %v8929_v7 = vor.u32 %v11145_v31, %v8926_v3 }
 0x19e   : > { %14913 = vst [vmem:[#allocation29_spill] sm:$0xff] %v12625_v28  ;;  %v2442_v44 = vadd.f32 %v2441_v16, %v2393_v8 }
 0x19f   : > { %v12628_v32 = vadd.f32 %v2585_v4, %v2537_v59  ;;  %2636 = vmatmul.bf16.gmra.mxu0 %v12403_v2  ;;  %2912 = vmatpush.bf16.msrb.mxu2 %v9693_v37 }
 0x1a0   : > { %v2491_v29 = vadd.f32 %v2490_v9, %v2442_v44  ;;  %2685 = vmatmul.bf16.gmra.mxu1 %v12399_v0  ;;  %2961 = vmatpush.bf16.msrb.mxu3 %v8929_v7  ;;  %v9308_v44 = vld [vmem:[#allocation5 + $0x3d0] sm:$0xf]  ;;  %v11247_v9 = vld [vmem:[#allocation5 + $0x3fc] sm:$0xf0] }
 0x1a1   : > { %2734 = vmatmul.bf16.gmra.mxu2 %v12401_v1  ;;  %2783 = vmatmul.bf16.gmra.mxu3 %v12403_v2  ;;  %v9309_v22 = vor.u32 %v11247_v9, %v9308_v44  ;;  %v11139_v7 = vld [vmem:[#allocation5 + $0x9c] sm:$0xf0] }
 0x1a2   : > { %v4058_v15 = vmax.f32 %v2491_v29, 0.0 }
 0x1a3   : > { %2863 = vmatpush.bf16.msrb.mxu1 %v9309_v22 }
 0x1a4   : > { %v2539_v47 = vpop.f32.mrf.mxu2  ;;  %v2588_v17 = vpop.f32.mrf.mxu3 }
 0x1a5   : > { %v2540_v36 = vadd.f32 %v2539_v47, %v12581_v5  ;;  %v2443_v8 = vpop.f32.mrf.mxu0  ;;  %v2492_v4 = vpop.f32.mrf.mxu1 }
 0x1a6   : > { %v2444_v59 = vadd.f32 %v2443_v8, %v2395_v63  ;;  %v8876_v8 = vld [vmem:[#allocation5 + $0x70] sm:$0xf] }
 0x1a7   : > { %v12637_v16 = vadd.f32 %v2588_v17, %v2540_v36  ;;  %v8877_v9 = vor.u32 %v11139_v7, %v8876_v8  ;;  %v2403_v8 = vadd.f32 %v12543_v6, %v12571_v14  ;;  %v9596_v6 = vld [vmem:[#allocation5 + $0x610] sm:$0xf] }
 0x1a8   : > { %v2493_v60 = vadd.f32 %v2492_v4, %v2444_v59  ;;  %v11133_v59 = vld [vmem:[#allocation5 + $0x74] sm:$0xf]  ;;  %v2400_v4 = vadd.f32 %v12534_v18, %v12571_v14 }
 0x1a9   : > { %2815 = vmatpush.bf16.msrb.mxu0 %v8877_v9 }
 0x1aa   : > { %v4070_v28 = vmax.f32 %v2493_v60, 0.0  ;;  %v8878_v60 = vld [vmem:[#allocation5 + $0xa0] sm:$0xf0] }
 0x1ac   : > { %v2541_v48 = vpop.f32.mrf.mxu2  ;;  %v12641_v47 = vpack.c.bf16 %v4070_v28, %v4058_v15  ;;  %v2590_v31 = vpop.f32.mrf.mxu3  ;;  %v11331_v28 = vld [vmem:[#allocation5 + $0x69c] sm:$0xf0] }
 0x1ad   : > { %v2542_v37 = vadd.f32 %v2541_v48, %v12581_v5  ;;  %v2446_v63 = vpop.f32.mrf.mxu0  ;;  %v2495_v3 = vpop.f32.mrf.mxu1  ;;  %v9645_v29 = vor.u32 %v11331_v28, %v9644_v61  ;;  %v8881_v48 = vor.u32 %v11133_v59, %v8878_v60 }
 0x1ae   : > { %14914 = vst [vmem:[#allocation30_spill] sm:$0xff] %v12641_v47  ;;  %v2447_v62 = vadd.f32 %v2446_v63, %v2398_v35 }
 0x1af   : > { %v12644_v36 = vadd.f32 %v2590_v31, %v2542_v37  ;;  %2641 = vmatmul.bf16.gmra.mxu0 %v12419_v26  ;;  %2913 = vmatpush.bf16.msrb.mxu2 %v9645_v29 }
 0x1b0   : > { %v2496_v17 = vadd.f32 %v2495_v3, %v2447_v62  ;;  %2690 = vmatmul.bf16.gmra.mxu1 %v12415_v24  ;;  %2962 = vmatpush.bf16.msrb.mxu3 %v8881_v48  ;;  %v9260_v62 = vld [vmem:[#allocation5 + $0x370] sm:$0xf]  ;;  %v11235_v3 = vld [vmem:[#allocation5 + $0x39c] sm:$0xf0] }
 0x1b1   : > { %2739 = vmatmul.bf16.gmra.mxu2 %v12417_v25  ;;  %2788 = vmatmul.bf16.gmra.mxu3 %v12419_v26  ;;  %v9261_v28 = vor.u32 %v11235_v3, %v9260_v62  ;;  %v11127_v48 = vld [vmem:[#allocation5 + $0x3c] sm:$0xf0] }
 0x1b2   : > { %v4082_v18 = vmax.f32 %v2496_v17, 0.0 }
 0x1b3   : > { %2864 = vmatpush.bf16.msrb.mxu1 %v9261_v28 }
 0x1b4   : > { %v2544_v44 = vpop.f32.mrf.mxu2  ;;  %v2593_v15 = vpop.f32.mrf.mxu3 }
 0x1b5   : > { %v2545_v22 = vadd.f32 %v2544_v44, %v12581_v5  ;;  %v2448_v35 = vpop.f32.mrf.mxu0  ;;  %v2497_v31 = vpop.f32.mrf.mxu1 }
 0x1b6   : > { %v2449_v37 = vadd.f32 %v2448_v35, %v2400_v4  ;;  %v8828_v35 = vld [vmem:[#allocation5 + $0x10] sm:$0xf] }
 0x1b7   : > { %v12653_v63 = vadd.f32 %v2593_v15, %v2545_v22  ;;  %v8829_v3 = vor.u32 %v11127_v48, %v8828_v35  ;;  %v2408_v35 = vadd.f32 %v12555_v23, %v12571_v14  ;;  %v9172_v23 = vld [vmem:[#allocation5 + $0x2b8] sm:$0xf] }
 0x1b8   : > { %v2498_v61 = vadd.f32 %v2497_v31, %v2449_v37  ;;  %v11121_v37 = vld [vmem:[#allocation5 + $0x14] sm:$0xf]  ;;  %v2405_v31 = vadd.f32 %v12546_v33, %v12571_v14 }
 0x1b9   : > { %2816 = vmatpush.bf16.msrb.mxu0 %v8829_v3 }
 0x1ba   : > { %v4094_v47 = vmax.f32 %v2498_v61, 0.0  ;;  %v8830_v61 = vld [vmem:[#allocation5 + $0x40] sm:$0xf0] }
 0x1bc   : > { %v2546_v7 = vpop.f32.mrf.mxu2  ;;  %v12657_v44 = vpack.c.bf16 %v4094_v47, %v4082_v18  ;;  %v2595_v59 = vpop.f32.mrf.mxu3  ;;  %v11319_v47 = vld [vmem:[#allocation5 + $0x63c] sm:$0xf0] }
 0x1bd   : > { %v2547_v29 = vadd.f32 %v2546_v7, %v12581_v5  ;;  %v2451_v4 = vpop.f32.mrf.mxu0  ;;  %v2500_v60 = vpop.f32.mrf.mxu1  ;;  %v9597_v17 = vor.u32 %v11319_v47, %v9596_v6  ;;  %v8833_v7 = vor.u32 %v11121_v37, %v8830_v61 }
 0x1be   : > { %14915 = vst [vmem:[#allocation31_spill] sm:$0xff] %v12657_v44  ;;  %v2452_v9 = vadd.f32 %v2451_v4, %v2403_v8 }
 0x1bf   : > { %v12660_v22 = vadd.f32 %v2595_v59, %v2547_v29  ;;  %2646 = vmatmul.bf16.gmra.mxu0 %v12435_v53  ;;  %2914 = vmatpush.bf16.msrb.mxu2 %v9597_v17 }
 0x1c0   : > { %v2501_v15 = vadd.f32 %v2500_v60, %v2452_v9  ;;  %2695 = vmatmul.bf16.gmra.mxu1 %v12431_v49  ;;  %2963 = vmatpush.bf16.msrb.mxu3 %v8833_v7  ;;  %v9212_v9 = vld [vmem:[#allocation5 + $0x310] sm:$0xf]  ;;  %v11223_v60 = vld [vmem:[#allocation5 + $0x33c] sm:$0xf0]  ;;  %v9550_v7 = vld [vmem:[#allocation5 + $0x5e0] sm:$0xf0] }
 0x1c1   : > { %2744 = vmatmul.bf16.gmra.mxu2 %v12433_v50  ;;  %2793 = vmatmul.bf16.gmra.mxu3 %v12435_v53  ;;  %v9213_v47 = vor.u32 %v11223_v60, %v9212_v9 }
 0x1c2   : > { %v4106_v33 = vmax.f32 %v2501_v15, 0.0 }
 0x1c3   : > { %2865 = vmatpush.bf16.msrb.mxu1 %v9213_v47 }
 0x1c4   : > { %v2549_v62 = vpop.f32.mrf.mxu2  ;;  %v2598_v18 = vpop.f32.mrf.mxu3 }
 0x1c5   : > { %v2550_v28 = vadd.f32 %v2549_v62, %v12581_v5  ;;  %v2453_v8 = vpop.f32.mrf.mxu0  ;;  %v2502_v59 = vpop.f32.mrf.mxu1 }
 0x1c6   : > { %v2454_v29 = vadd.f32 %v2453_v8, %v2405_v31  ;;  %v11301_v8 = vld [vmem:[#allocation5 + $0x5b4] sm:$0xf] }
 0x1c7   : > { %v12669_v4 = vadd.f32 %v2598_v18, %v2550_v28  ;;  %v9553_v60 = vor.u32 %v11301_v8, %v9550_v7  ;;  %v2413_v8 = vadd.f32 %v12567_v58, %v12571_v14  ;;  %v9124_v58 = vld [vmem:[#allocation5 + $0x258] sm:$0xf] }
 0x1c8   : > { %v2503_v6 = vadd.f32 %v2502_v59, %v2454_v29  ;;  %v9556_v29 = vld [vmem:[#allocation5 + $0x5b8] sm:$0xf]  ;;  %v2410_v59 = vadd.f32 %v12558_v55, %v12571_v14 }
 0x1c9   : > { %3005 = vmatpush.bf16.msra.mxu0 %v9553_v60 }
 0x1ca   : > { %v4118_v44 = vmax.f32 %v2503_v6, 0.0  ;;  %v11308_v6 = vld [vmem:[#allocation5 + $0x5e4] sm:$0xf0] }
 0x1cc   : > { %v2551_v48 = vpop.f32.mrf.mxu2  ;;  %v12673_v62 = vpack.c.bf16 %v4118_v44, %v4106_v33  ;;  %v2600_v37 = vpop.f32.mrf.mxu3  ;;  %v11212_v44 = vld [vmem:[#allocation5 + $0x2e4] sm:$0xf0] }
 0x1cd   : > { %v2552_v17 = vadd.f32 %v2551_v48, %v12581_v5  ;;  %v2456_v31 = vpop.f32.mrf.mxu0  ;;  %v2505_v61 = vpop.f32.mrf.mxu1  ;;  %v9173_v15 = vor.u32 %v11212_v44, %v9172_v23  ;;  %v9557_v48 = vor.u32 %v11308_v6, %v9556_v29  ;;  %v9934_v23 = vld [vmem:[#allocation5 + $0x8e0] sm:$0xf0] }
 0x1ce   : > { %14916 = vst [vmem:[#allocation32_spill] sm:$0xff] %v12673_v62  ;;  %v2457_v3 = vadd.f32 %v2456_v31, %v2408_v35 }
 0x1cf   : > { %v12676_v28 = vadd.f32 %v2600_v37, %v2552_v17  ;;  %2651 = vmatmul.bf16.gmra.mxu0 %v12451_v13  ;;  %3103 = vmatpush.bf16.msra.mxu2 %v9173_v15 }
 0x1d0   : > { %v2506_v18 = vadd.f32 %v2505_v61, %v2457_v3  ;;  %2700 = vmatmul.bf16.gmra.mxu1 %v12447_v11  ;;  %3152 = vmatpush.bf16.msra.mxu3 %v9557_v48  ;;  %v11397_v61 = vld [vmem:[#allocation5 + $0x8b4] sm:$0xf] }
 0x1d1   : > { %2749 = vmatmul.bf16.gmra.mxu2 %v12449_v12  ;;  %2798 = vmatmul.bf16.gmra.mxu3 %v12451_v13  ;;  %v9937_v62 = vor.u32 %v11397_v61, %v9934_v23  ;;  %v11296_v61 = vld [vmem:[#allocation5 + $0x584] sm:$0xf0] }
 0x1d2   : > { %v4130_v44 = vmax.f32 %v2506_v18, 0.0  ;;  %v11289_v18 = vld [vmem:[#allocation5 + $0x554] sm:$0xf] }
 0x1d3   : > { %3054 = vmatpush.bf16.msra.mxu1 %v9937_v62  ;;  %v11200_v62 = vld [vmem:[#allocation5 + $0x284] sm:$0xf0] }
 0x1d4   : > { %v2554_v9 = vpop.f32.mrf.mxu2  ;;  %v2603_v33 = vpop.f32.mrf.mxu3 }
 0x1d5   : > { %v2555_v47 = vadd.f32 %v2554_v9, %v12581_v5  ;;  %v2458_v35 = vpop.f32.mrf.mxu0  ;;  %v2507_v37 = vpop.f32.mrf.mxu1 }
 0x1d6   : > { %v2459_v17 = vadd.f32 %v2458_v35, %v2410_v59  ;;  %v2415_v35 = vadd.f32 %v12575_v34, %v12571_v14  ;;  %v11385_v14 = vld [vmem:[#allocation5 + $0x854] sm:$0xf]  ;;  %v9886_v34 = vld [vmem:[#allocation5 + $0x880] sm:$0xf0] }
 0x1d7   : > { %v12685_v31 = vadd.f32 %v2603_v33, %v2555_v47 }
 0x1d8   : > { %v2508_v3 = vadd.f32 %v2507_v37, %v2459_v17  ;;  %v9125_v17 = vor.u32 %v11200_v62, %v9124_v58  ;;  %v9502_v37 = vld [vmem:[#allocation5 + $0x580] sm:$0xf0]  ;;  %v9889_v62 = vor.u32 %v11385_v14, %v9886_v34 }
 0x1da   : > { %v4142_v55 = vmax.f32 %v2508_v3, 0.0  ;;  %v9508_v3 = vld [vmem:[#allocation5 + $0x558] sm:$0xf]  ;;  %3104 = vmatpush.bf16.msra.mxu2 %v9125_v17  ;;  %3055 = vmatpush.bf16.msra.mxu1 %v9889_v62 }
 0x1dc   : > { %v2556_v7 = vpop.f32.mrf.mxu2  ;;  %v12689_v9 = vpack.c.bf16 %v4142_v55, %v4130_v44  ;;  %v2605_v29 = vpop.f32.mrf.mxu3 }
 0x1dd   : > { %v2557_v15 = vadd.f32 %v2556_v7, %v12581_v5  ;;  %v2461_v59 = vpop.f32.mrf.mxu0  ;;  %v2510_v6 = vpop.f32.mrf.mxu1  ;;  %v9509_v7 = vor.u32 %v11296_v61, %v9508_v3  ;;  %v12706_v3 = vld [vmem:[#allocation7] sm:$0xff] }
 0x1de   : > { %14917 = vst [vmem:[#allocation33_spill] sm:$0xff] %v12689_v9  ;;  %v2462_v60 = vadd.f32 %v2461_v59, %v2413_v8  ;;  %v9505_v8 = vor.u32 %v11289_v18, %v9502_v37  ;;  %v12709_v17 = vperm.slane %v12706_v3, 3 }
 0x1df   : > { %v12692_v47 = vadd.f32 %v2605_v29, %v2557_v15  ;;  %2656 = vmatmul.bf16.gmra.mxu0 %v12467_v43  ;;  %3153 = vmatpush.bf16.msra.mxu3 %v9509_v7  ;;  %v9454_v7 = vld [vmem:[#allocation5 + $0x520] sm:$0xf0] }
 0x1e0   : > { %v2511_v33 = vadd.f32 %v2510_v6, %v2462_v60  ;;  %2705 = vmatmul.bf16.gmra.mxu1 %v12463_v38  ;;  %3006 = vmatpush.bf16.msra.mxu0 %v9505_v8 }
 0x1e1   : > { %2754 = vmatmul.bf16.gmra.mxu2 %v12465_v39  ;;  %2803 = vmatmul.bf16.gmra.mxu3 %v12467_v43 }
 0x1e2   : > { %v4154_v6 = vmax.f32 %v2511_v33, 0.0 }
 0x1e4   : > { %v2559_v48 = vpop.f32.mrf.mxu2  ;;  %v2608_v44 = vpop.f32.mrf.mxu3 }
 0x1e5   : > { %v2560_v23 = vadd.f32 %v2559_v48, %v12581_v5  ;;  %v2463_v55 = vpop.f32.mrf.mxu0  ;;  %v2512_v29 = vpop.f32.mrf.mxu1 }
 0x1e6   : > { %v2464_v15 = vadd.f32 %v2463_v55, %v2415_v35  ;;  %v11277_v55 = vld [vmem:[#allocation5 + $0x4f4] sm:$0xf] }
 0x1e7   : > { %v12701_v59 = vadd.f32 %v2608_v44, %v2560_v23 }
 0x1e8   : > { %v2513_v60 = vadd.f32 %v2512_v29, %v2464_v15  ;;  %v9460_v15 = vld [vmem:[#allocation5 + $0x4f8] sm:$0xf] }
 0x1ea   : > { %v4166_v58 = vmax.f32 %v2513_v60, 0.0  ;;  %v9457_v60 = vor.u32 %v11277_v55, %v9454_v7 }
 0x1ec   : > { %v2561_v9 = vpop.f32.mrf.mxu2  ;;  %v12703_v48 = vpack.c.bf16 %v4166_v58, %v4154_v6  ;;  %v2610_v37 = vpop.f32.mrf.mxu3  ;;  %3007 = vmatpush.bf16.msra.mxu0 %v9457_v60 }
 0x1ed   : > { %v2562_v18 = vadd.f32 %v2561_v9, %v12581_v5  ;;  %v2622_v35 = vpop.f32.mrf.mxu0  ;;  %v2671_v23 = vpop.f32.mrf.mxu1  ;;  %v9076_v5 = vld [vmem:[#allocation5 + $0x1f8] sm:$0xf]  ;;  %v11188_v9 = vld [vmem:[#allocation5 + $0x224] sm:$0xf0] }
 0x1ee   : > { %14918 = vst [vmem:[#allocation34_spill] sm:$0xff] %v12703_v48  ;;  %v2623_v61 = vadd.f32 %v2622_v35, %v12589_v27  ;;  %v2672_v33 = vadd.f32 %v2671_v23, %v12709_v17  ;;  %v9077_v8 = vor.u32 %v11188_v9, %v9076_v5  ;;  %v11284_v27 = vld [vmem:[#allocation5 + $0x524] sm:$0xf0]  ;;  %v11373_v48 = vld [vmem:[#allocation5 + $0x7f4] sm:$0xf] }
 0x1ef   : > { %v12712_v44 = vadd.f32 %v2610_v37, %v2562_v18  ;;  %2817 = vmatmul.bf16.vlgmr.msrb.gmra.mxu0 %v12351_v46  ;;  %v9461_v14 = vor.u32 %v11284_v27, %v9460_v15  ;;  %v9838_v5 = vld [vmem:[#allocation5 + $0x820] sm:$0xf0] }
 0x1f0   : > { %2866 = vmatmul.bf16.vlgmr.msrb.gmra.mxu1 %v12353_v51  ;;  %3105 = vmatpush.bf16.msra.mxu2 %v9077_v8  ;;  %v3987_v35 = vmax.f32 %v2623_v61, 0.0  ;;  %v9841_v57 = vor.u32 %v11373_v48, %v9838_v5  ;;  %v11176_v48 = vld [vmem:[#allocation5 + $0x1c4] sm:$0xf0] }
 0x1f1   : > { %2915 = vmatmul.bf16.vlgmr.msrb.gmra.mxu2 %v12355_v52  ;;  %2964 = vmatmul.bf16.vlgmr.msrb.gmra.mxu3 %v12351_v46 }
 0x1f2   : > { %3154 = vmatpush.bf16.msra.mxu3 %v9461_v14  ;;  %3056 = vmatpush.bf16.msra.mxu1 %v9841_v57  ;;  %v9028_v57 = vld [vmem:[#allocation5 + $0x198] sm:$0xf] }
 0x1f4   : > { %v2720_v29 = vpop.f32.mrf.mxu2  ;;  %v2769_v6 = vpop.f32.mrf.mxu3 }
 0x1f5   : > { %v2721_v34 = vadd.f32 %v2720_v29, %v2672_v33  ;;  %v2624_v58 = vpop.f32.mrf.mxu0  ;;  %v2673_v18 = vpop.f32.mrf.mxu1 }
 0x1f6   : > { %v2625_v62 = vadd.f32 %v2624_v58, %v12596_v30  ;;  %v2674_v55 = vadd.f32 %v2673_v18, %v12709_v17  ;;  %v9406_v58 = vld [vmem:[#allocation5 + $0x4c0] sm:$0xf0]  ;;  %v11272_v18 = vld [vmem:[#allocation5 + $0x4c4] sm:$0xf0] }
 0x1f7   : > { %v2770_v37 = vadd.f32 %v2769_v6, %v2721_v34  ;;  %v11265_v34 = vld [vmem:[#allocation5 + $0x494] sm:$0xf] }
 0x1f8   : > { %v3999_v23 = vmax.f32 %v2625_v62, 0.0  ;;  %v9412_v62 = vld [vmem:[#allocation5 + $0x498] sm:$0xf] }
 0x1f9   : > { %v3988_v61 = vmax.f32 %v2770_v37, 0.0  ;;  %v9409_v37 = vor.u32 %v11265_v34, %v9406_v58 }
 0x1fa   : > { %v12720_v9 = vpack.c.bf16 %v3999_v23, %v3987_v35  ;;  %v9413_v23 = vor.u32 %v11272_v18, %v9412_v62 }
 0x1fb   : > { %3008 = vmatpush.bf16.msra.mxu0 %v9409_v37 }
 0x1fc   : > { %14919 = vst [vmem:[#allocation35_spill] sm:$0xff] %v12720_v9  ;;  %v2722_v7 = vpop.f32.mrf.mxu2  ;;  %v2771_v15 = vpop.f32.mrf.mxu3  ;;  %3155 = vmatpush.bf16.msra.mxu3 %v9413_v23 }
 0x1fd   : > { %v2723_v33 = vadd.f32 %v2722_v7, %v2674_v55  ;;  %v2627_v8 = vpop.f32.mrf.mxu0  ;;  %v2676_v27 = vpop.f32.mrf.mxu1 }
 0x1fe   : > { %v2628_v30 = vadd.f32 %v2627_v8, %v12605_v10  ;;  %v2677_v14 = vadd.f32 %v2676_v27, %v12709_v17  ;;  %v9029_v10 = vor.u32 %v11176_v48, %v9028_v57 }
 0x1ff   : > { %v2772_v29 = vadd.f32 %v2771_v15, %v2723_v33  ;;  %2822 = vmatmul.bf16.gmra.mxu0 %v12367_v19 }
 0x200   : > { %2871 = vmatmul.bf16.gmra.mxu1 %v12369_v20  ;;  %3106 = vmatpush.bf16.msra.mxu2 %v9029_v10  ;;  %v4011_v27 = vmax.f32 %v2628_v30, 0.0 }
 0x201   : > { %v4000_v60 = vmax.f32 %v2772_v29, 0.0  ;;  %2920 = vmatmul.bf16.gmra.mxu2 %v12371_v21  ;;  %2969 = vmatmul.bf16.gmra.mxu3 %v12367_v19 }
 0x203   : > { %v12729_v6 = vpack.c.bf16 %v4000_v60, %v3988_v61  ;;  %v11361_v61 = vld [vmem:[#allocation5 + $0x794] sm:$0xf]  ;;  %v9790_v60 = vld [vmem:[#allocation5 + $0x7c0] sm:$0xf0] }
 0x204   : > { %v2725_v35 = vpop.f32.mrf.mxu2  ;;  %v2774_v55 = vpop.f32.mrf.mxu3  ;;  %v9793_v57 = vor.u32 %v11361_v61, %v9790_v60 }
 0x205   : > { %14920 = vst [vmem:[#allocation36_spill] sm:$0xff] %v12729_v6  ;;  %v2726_v5 = vadd.f32 %v2725_v35, %v2677_v14  ;;  %v2629_v7 = vpop.f32.mrf.mxu0  ;;  %v2678_v15 = vpop.f32.mrf.mxu1 }
 0x206   : > { %v2630_v33 = vadd.f32 %v2629_v7, %v12612_v54  ;;  %v2679_v34 = vadd.f32 %v2678_v15, %v12709_v17  ;;  %3057 = vmatpush.bf16.msra.mxu1 %v9793_v57  ;;  %v11253_v7 = vld [vmem:[#allocation5 + $0x434] sm:$0xf]  ;;  %v9358_v15 = vld [vmem:[#allocation5 + $0x460] sm:$0xf0] }
 0x207   : > { %v2775_v8 = vadd.f32 %v2774_v55, %v2726_v5  ;;  %v8980_v5 = vld [vmem:[#allocation5 + $0x138] sm:$0xf]  ;;  %v11164_v55 = vld [vmem:[#allocation5 + $0x164] sm:$0xf0] }
 0x208   : > { %v4023_v29 = vmax.f32 %v2630_v33, 0.0  ;;  %v8981_v33 = vor.u32 %v11164_v55, %v8980_v5  ;;  %v11349_v5 = vld [vmem:[#allocation5 + $0x734] sm:$0xf]  ;;  %v9742_v55 = vld [vmem:[#allocation5 + $0x760] sm:$0xf0] }
 0x209   : > { %v4012_v30 = vmax.f32 %v2775_v8, 0.0  ;;  %v9361_v8 = vor.u32 %v11253_v7, %v9358_v15 }
 0x20a   : > { %v12732_v48 = vpack.c.bf16 %v4023_v29, %v4011_v27  ;;  %v11260_v27 = vld [vmem:[#allocation5 + $0x464] sm:$0xf0]  ;;  %3107 = vmatpush.bf16.msra.mxu2 %v8981_v33 }
 0x20b   : > { %3009 = vmatpush.bf16.msra.mxu0 %v9361_v8 }
 0x20c   : > { %14921 = vst [vmem:[#allocation37_spill] sm:$0xff] %v12732_v48  ;;  %v2727_v58 = vpop.f32.mrf.mxu2  ;;  %v2776_v62 = vpop.f32.mrf.mxu3  ;;  %v9745_v48 = vor.u32 %v11349_v5, %v9742_v55 }
 0x20d   : > { %v2728_v14 = vadd.f32 %v2727_v58, %v2679_v34  ;;  %v2632_v10 = vpop.f32.mrf.mxu0  ;;  %v2681_v18 = vpop.f32.mrf.mxu1 }
 0x20e   : > { %v2633_v54 = vadd.f32 %v2632_v10, %v12621_v45  ;;  %v2682_v23 = vadd.f32 %v2681_v18, %v12709_v17  ;;  %v9364_v45 = vld [vmem:[#allocation5 + $0x438] sm:$0xf]  ;;  %3058 = vmatpush.bf16.msra.mxu1 %v9745_v48 }
 0x20f   : > { %v2777_v35 = vadd.f32 %v2776_v62, %v2728_v14  ;;  %2827 = vmatmul.bf16.gmra.mxu0 %v12383_v40  ;;  %v9365_v60 = vor.u32 %v11260_v27, %v9364_v45  ;;  %v8932_v48 = vld [vmem:[#allocation5 + $0xd8] sm:$0xf] }
 0x210   : > { %2876 = vmatmul.bf16.gmra.mxu1 %v12385_v41  ;;  %v4035_v18 = vmax.f32 %v2633_v54, 0.0 }
 0x211   : > { %v4024_v37 = vmax.f32 %v2777_v35, 0.0  ;;  %2925 = vmatmul.bf16.gmra.mxu2 %v12387_v42  ;;  %2974 = vmatmul.bf16.gmra.mxu3 %v12383_v40 }
 0x212   : > { %3156 = vmatpush.bf16.msra.mxu3 %v9365_v60  ;;  %v11152_v60 = vld [vmem:[#allocation5 + $0x104] sm:$0xf0] }
 0x213   : > { %v12741_v29 = vpack.c.bf16 %v4024_v37, %v4012_v30 }
 0x214   : > { %v2730_v61 = vpop.f32.mrf.mxu2  ;;  %v2779_v34 = vpop.f32.mrf.mxu3 }
 0x215   : > { %14922 = vst [vmem:[#allocation38_spill] sm:$0xff] %v12741_v29  ;;  %v2731_v57 = vadd.f32 %v2730_v61, %v2682_v23  ;;  %v2634_v58 = vpop.f32.mrf.mxu0  ;;  %v2683_v62 = vpop.f32.mrf.mxu1 }
 0x216   : > { %v2635_v14 = vadd.f32 %v2634_v58, %v12628_v32  ;;  %v2684_v37 = vadd.f32 %v2683_v62, %v12709_v17  ;;  %v9310_v58 = vld [vmem:[#allocation5 + $0x400] sm:$0xf0] }
 0x217   : > { %v2780_v10 = vadd.f32 %v2779_v34, %v2731_v57  ;;  %v11241_v57 = vld [vmem:[#allocation5 + $0x3d4] sm:$0xf]  ;;  %v8933_v34 = vor.u32 %v11152_v60, %v8932_v48  ;;  %v9694_v48 = vld [vmem:[#allocation5 + $0x700] sm:$0xf0] }
 0x218   : > { %v4047_v35 = vmax.f32 %v2635_v14, 0.0  ;;  %v11248_v14 = vld [vmem:[#allocation5 + $0x404] sm:$0xf0] }
 0x219   : > { %v4036_v54 = vmax.f32 %v2780_v10, 0.0  ;;  %v9313_v10 = vor.u32 %v11241_v57, %v9310_v58  ;;  %3108 = vmatpush.bf16.msra.mxu2 %v8933_v34 }
 0x21a   : > { %v12744_v30 = vpack.c.bf16 %v4047_v35, %v4035_v18 }
 0x21b   : > { %3010 = vmatpush.bf16.msra.mxu0 %v9313_v10 }
 0x21c   : > { %14923 = vst [vmem:[#allocation39_spill] sm:$0xff] %v12744_v30  ;;  %v2732_v7 = vpop.f32.mrf.mxu2  ;;  %v2781_v15 = vpop.f32.mrf.mxu3 }
 0x21d   : > { %v2733_v23 = vadd.f32 %v2732_v7, %v2684_v37  ;;  %v2637_v33 = vpop.f32.mrf.mxu0  ;;  %v2686_v45 = vpop.f32.mrf.mxu1 }
 0x21e   : > { %v2638_v32 = vadd.f32 %v2637_v33, %v12637_v16  ;;  %v2687_v8 = vadd.f32 %v2686_v45, %v12709_v17  ;;  %v9316_v16 = vld [vmem:[#allocation5 + $0x3d8] sm:$0xf] }
 0x21f   : > { %v2782_v27 = vadd.f32 %v2781_v15, %v2733_v23  ;;  %2832 = vmatmul.bf16.gmra.mxu0 %v12399_v0  ;;  %v9317_v35 = vor.u32 %v11248_v14, %v9316_v16 }
 0x220   : > { %2881 = vmatmul.bf16.gmra.mxu1 %v12401_v1  ;;  %v4059_v33 = vmax.f32 %v2638_v32, 0.0 }
 0x221   : > { %v4048_v61 = vmax.f32 %v2782_v27, 0.0  ;;  %2930 = vmatmul.bf16.gmra.mxu2 %v12403_v2  ;;  %2979 = vmatmul.bf16.gmra.mxu3 %v12399_v0  ;;  %v11337_v27 = vld [vmem:[#allocation5 + $0x6d4] sm:$0xf] }
 0x222   : > { %3157 = vmatpush.bf16.msra.mxu3 %v9317_v35  ;;  %v9697_v60 = vor.u32 %v11337_v27, %v9694_v48  ;;  %v8884_v35 = vld [vmem:[#allocation5 + $0x78] sm:$0xf] }
 0x223   : > { %v12753_v62 = vpack.c.bf16 %v4048_v61, %v4036_v54 }
 0x224   : > { %v2735_v18 = vpop.f32.mrf.mxu2  ;;  %v2784_v55 = vpop.f32.mrf.mxu3  ;;  %3059 = vmatpush.bf16.msra.mxu1 %v9697_v60 }
 0x225   : > { %14924 = vst [vmem:[#allocation40_spill] sm:$0xff] %v12753_v62  ;;  %v2736_v5 = vadd.f32 %v2735_v18, %v2687_v8  ;;  %v2639_v37 = vpop.f32.mrf.mxu0  ;;  %v2688_v23 = vpop.f32.mrf.mxu1 }
 0x226   : > { %v2640_v7 = vadd.f32 %v2639_v37, %v12644_v36  ;;  %v2689_v61 = vadd.f32 %v2688_v23, %v12709_v17  ;;  %v11236_v23 = vld [vmem:[#allocation5 + $0x3a4] sm:$0xf0] }
 0x227   : > { %v2785_v15 = vadd.f32 %v2784_v55, %v2736_v5  ;;  %v11140_v5 = vld [vmem:[#allocation5 + $0xa4] sm:$0xf0]  ;;  %v11229_v55 = vld [vmem:[#allocation5 + $0x374] sm:$0xf] }
 0x228   : > { %v4071_v45 = vmax.f32 %v2640_v7, 0.0  ;;  %v8885_v37 = vor.u32 %v11140_v5, %v8884_v35  ;;  %v9262_v7 = vld [vmem:[#allocation5 + $0x3a0] sm:$0xf0] }
 0x229   : > { %v4060_v32 = vmax.f32 %v2785_v15, 0.0  ;;  %v9265_v15 = vor.u32 %v11229_v55, %v9262_v7  ;;  %v9646_v35 = vld [vmem:[#allocation5 + $0x6a0] sm:$0xf0] }
 0x22a   : > { %v12756_v54 = vpack.c.bf16 %v4071_v45, %v4059_v33  ;;  %3109 = vmatpush.bf16.msra.mxu2 %v8885_v37 }
 0x22b   : > { %3011 = vmatpush.bf16.msra.mxu0 %v9265_v15 }
 0x22c   : > { %14925 = vst [vmem:[#allocation41_spill] sm:$0xff] %v12756_v54  ;;  %v2737_v57 = vpop.f32.mrf.mxu2  ;;  %v2786_v58 = vpop.f32.mrf.mxu3 }
 0x22d   : > { %v2738_v8 = vadd.f32 %v2737_v57, %v2689_v61  ;;  %v2642_v34 = vpop.f32.mrf.mxu0  ;;  %v2691_v16 = vpop.f32.mrf.mxu1 }
 0x22e   : > { %v2643_v36 = vadd.f32 %v2642_v34, %v12653_v63  ;;  %v2692_v10 = vadd.f32 %v2691_v16, %v12709_v17  ;;  %v9268_v63 = vld [vmem:[#allocation5 + $0x378] sm:$0xf] }
 0x22f   : > { %v2787_v14 = vadd.f32 %v2786_v58, %v2738_v8  ;;  %2837 = vmatmul.bf16.gmra.mxu0 %v12415_v24  ;;  %v9269_v27 = vor.u32 %v11236_v23, %v9268_v63 }
 0x230   : > { %2886 = vmatmul.bf16.gmra.mxu1 %v12417_v25  ;;  %v4083_v34 = vmax.f32 %v2643_v36, 0.0 }
 0x231   : > { %v4072_v18 = vmax.f32 %v2787_v14, 0.0  ;;  %2935 = vmatmul.bf16.gmra.mxu2 %v12419_v26  ;;  %2984 = vmatmul.bf16.gmra.mxu3 %v12415_v24  ;;  %v11325_v14 = vld [vmem:[#allocation5 + $0x674] sm:$0xf] }
 0x232   : > { %3158 = vmatpush.bf16.msra.mxu3 %v9269_v27  ;;  %v9649_v5 = vor.u32 %v11325_v14, %v9646_v35  ;;  %v8836_v27 = vld [vmem:[#allocation5 + $0x18] sm:$0xf] }
 0x233   : > { %v12765_v33 = vpack.c.bf16 %v4072_v18, %v4060_v32 }
 0x234   : > { %v2740_v45 = vpop.f32.mrf.mxu2  ;;  %v2789_v60 = vpop.f32.mrf.mxu3  ;;  %3060 = vmatpush.bf16.msra.mxu1 %v9649_v5 }
 0x235   : > { %14926 = vst [vmem:[#allocation42_spill] sm:$0xff] %v12765_v33  ;;  %v2741_v48 = vadd.f32 %v2740_v45, %v2692_v10  ;;  %v2644_v61 = vpop.f32.mrf.mxu0  ;;  %v2693_v8 = vpop.f32.mrf.mxu1 }
 0x236   : > { %v2645_v57 = vadd.f32 %v2644_v61, %v12660_v22  ;;  %v2694_v18 = vadd.f32 %v2693_v8, %v12709_v17  ;;  %v11224_v8 = vld [vmem:[#allocation5 + $0x344] sm:$0xf0] }
 0x237   : > { %v2790_v58 = vadd.f32 %v2789_v60, %v2741_v48  ;;  %v11128_v48 = vld [vmem:[#allocation5 + $0x44] sm:$0xf0]  ;;  %v11217_v60 = vld [vmem:[#allocation5 + $0x314] sm:$0xf] }
 0x238   : > { %v4095_v16 = vmax.f32 %v2645_v57, 0.0  ;;  %v8837_v61 = vor.u32 %v11128_v48, %v8836_v27  ;;  %v9214_v57 = vld [vmem:[#allocation5 + $0x340] sm:$0xf0] }
 0x239   : > { %v4084_v36 = vmax.f32 %v2790_v58, 0.0  ;;  %v9217_v58 = vor.u32 %v11217_v60, %v9214_v57  ;;  %v9598_v27 = vld [vmem:[#allocation5 + $0x640] sm:$0xf0] }
 0x23a   : > { %v12768_v32 = vpack.c.bf16 %v4095_v16, %v4083_v34  ;;  %3110 = vmatpush.bf16.msra.mxu2 %v8837_v61 }
 0x23b   : > { %3012 = vmatpush.bf16.msra.mxu0 %v9217_v58 }
 0x23c   : > { %14927 = vst [vmem:[#allocation43_spill] sm:$0xff] %v12768_v32  ;;  %v2742_v55 = vpop.f32.mrf.mxu2  ;;  %v2791_v7 = vpop.f32.mrf.mxu3 }
 0x23d   : > { %v2743_v10 = vadd.f32 %v2742_v55, %v2694_v18  ;;  %v2647_v37 = vpop.f32.mrf.mxu0  ;;  %v2696_v63 = vpop.f32.mrf.mxu1 }
 0x23e   : > { %v2648_v22 = vadd.f32 %v2647_v37, %v12669_v4  ;;  %v2697_v15 = vadd.f32 %v2696_v63, %v12709_v17  ;;  %v9220_v4 = vld [vmem:[#allocation5 + $0x318] sm:$0xf] }
 0x23f   : > { %v2792_v23 = vadd.f32 %v2791_v7, %v2743_v10  ;;  %2842 = vmatmul.bf16.gmra.mxu0 %v12431_v49  ;;  %v9221_v14 = vor.u32 %v11224_v8, %v9220_v4 }
 0x240   : > { %2891 = vmatmul.bf16.gmra.mxu1 %v12433_v50  ;;  %v4107_v37 = vmax.f32 %v2648_v22, 0.0 }
 0x241   : > { %v4096_v45 = vmax.f32 %v2792_v23, 0.0  ;;  %2940 = vmatmul.bf16.gmra.mxu2 %v12435_v53  ;;  %2989 = vmatmul.bf16.gmra.mxu3 %v12431_v49  ;;  %v11313_v23 = vld [vmem:[#allocation5 + $0x614] sm:$0xf] }
 0x242   : > { %3159 = vmatpush.bf16.msra.mxu3 %v9221_v14  ;;  %v9601_v48 = vor.u32 %v11313_v23, %v9598_v27  ;;  %v11302_v14 = vld [vmem:[#allocation5 + $0x5bc] sm:$0xf] }
 0x243   : > { %v12777_v34 = vpack.c.bf16 %v4096_v45, %v4084_v36 }
 0x244   : > { %v2745_v16 = vpop.f32.mrf.mxu2  ;;  %v2794_v5 = vpop.f32.mrf.mxu3  ;;  %3061 = vmatpush.bf16.msra.mxu1 %v9601_v48 }
 0x245   : > { %14928 = vst [vmem:[#allocation44_spill] sm:$0xff] %v12777_v34  ;;  %v2746_v35 = vadd.f32 %v2745_v16, %v2697_v15  ;;  %v2649_v18 = vpop.f32.mrf.mxu0  ;;  %v2698_v10 = vpop.f32.mrf.mxu1 }
 0x246   : > { %v2650_v55 = vadd.f32 %v2649_v18, %v12676_v28  ;;  %v2699_v45 = vadd.f32 %v2698_v10, %v12709_v17  ;;  %v9942_v10 = vld [vmem:[#allocation5 + $0x8e8] sm:$0xf0] }
 0x247   : > { %v2795_v7 = vadd.f32 %v2794_v5, %v2746_v35  ;;  %v9558_v35 = vld [vmem:[#allocation5 + $0x5e8] sm:$0xf0]  ;;  %v9940_v5 = vld [vmem:[#allocation5 + $0x8b8] sm:$0xf] }
 0x248   : > { %v4119_v63 = vmax.f32 %v2650_v55, 0.0  ;;  %v9561_v18 = vor.u32 %v11302_v14, %v9558_v35  ;;  %v11404_v55 = vld [vmem:[#allocation5 + $0x8e4] sm:$0xf0] }
 0x249   : > { %v4108_v22 = vmax.f32 %v2795_v7, 0.0  ;;  %v9941_v7 = vor.u32 %v11404_v55, %v9940_v5 }
 0x24a   : > { %v12780_v36 = vpack.c.bf16 %v4119_v63, %v4107_v37  ;;  %3299 = vmatpush.bf16.msrb.mxu2 %v9561_v18 }
 0x24b   : > { %3201 = vmatpush.bf16.msrb.mxu0 %v9941_v7 }
 0x24c   : > { %14929 = vst [vmem:[#allocation45_spill] sm:$0xff] %v12780_v36  ;;  %v2747_v60 = vpop.f32.mrf.mxu2  ;;  %v2796_v57 = vpop.f32.mrf.mxu3 }
 0x24d   : > { %v2748_v15 = vadd.f32 %v2747_v60, %v2699_v45  ;;  %v2652_v61 = vpop.f32.mrf.mxu0  ;;  %v2701_v4 = vpop.f32.mrf.mxu1 }
 0x24e   : > { %v2653_v28 = vadd.f32 %v2652_v61, %v12685_v31  ;;  %v2702_v58 = vadd.f32 %v2701_v4, %v12709_v17  ;;  %v11398_v31 = vld [vmem:[#allocation5 + $0x8bc] sm:$0xf]  ;;  %v9174_v4 = vld [vmem:[#allocation5 + $0x2e8] sm:$0xf0] }
 0x24f   : > { %v2797_v8 = vadd.f32 %v2796_v57, %v2748_v15  ;;  %2847 = vmatmul.bf16.gmra.mxu0 %v12447_v11  ;;  %v9945_v23 = vor.u32 %v11398_v31, %v9942_v10  ;;  %v11206_v61 = vld [vmem:[#allocation5 + $0x2bc] sm:$0xf] }
 0x250   : > { %2896 = vmatmul.bf16.gmra.mxu1 %v12449_v12  ;;  %v9177_v35 = vor.u32 %v11206_v61, %v9174_v4 }
 0x251   : > { %v4120_v16 = vmax.f32 %v2797_v8, 0.0  ;;  %2945 = vmatmul.bf16.gmra.mxu2 %v12451_v13  ;;  %2994 = vmatmul.bf16.gmra.mxu3 %v12447_v11  ;;  %v4131_v8 = vmax.f32 %v2653_v28, 0.0 }
 0x252   : > { %3348 = vmatpush.bf16.msrb.mxu3 %v9945_v23  ;;  %3250 = vmatpush.bf16.msrb.mxu1 %v9177_v35  ;;  %v11290_v23 = vld [vmem:[#allocation5 + $0x55c] sm:$0xf] }
 0x253   : > { %v12789_v37 = vpack.c.bf16 %v4120_v16, %v4108_v22 }
 0x254   : > { %v2750_v63 = vpop.f32.mrf.mxu2  ;;  %v2799_v48 = vpop.f32.mrf.mxu3 }
 0x255   : > { %14930 = vst [vmem:[#allocation46_spill] sm:$0xff] %v12789_v37  ;;  %v2751_v27 = vadd.f32 %v2750_v63, %v2702_v58  ;;  %v2654_v45 = vpop.f32.mrf.mxu0  ;;  %v2703_v15 = vpop.f32.mrf.mxu1 }
 0x256   : > { %v2655_v60 = vadd.f32 %v2654_v45, %v12692_v47  ;;  %v2704_v16 = vadd.f32 %v2703_v15, %v12709_v17  ;;  %v9894_v15 = vld [vmem:[#allocation5 + $0x888] sm:$0xf0] }
 0x257   : > { %v2800_v57 = vadd.f32 %v2799_v48, %v2751_v27  ;;  %v9510_v27 = vld [vmem:[#allocation5 + $0x588] sm:$0xf0]  ;;  %v9892_v48 = vld [vmem:[#allocation5 + $0x858] sm:$0xf] }
 0x258   : > { %v4143_v14 = vmax.f32 %v2655_v60, 0.0  ;;  %v9513_v45 = vor.u32 %v11290_v23, %v9510_v27  ;;  %v11392_v60 = vld [vmem:[#allocation5 + $0x884] sm:$0xf0] }
 0x259   : > { %v4132_v63 = vmax.f32 %v2800_v57, 0.0  ;;  %v9893_v57 = vor.u32 %v11392_v60, %v9892_v48 }
 0x25a   : > { %v12792_v22 = vpack.c.bf16 %v4143_v14, %v4131_v8  ;;  %3300 = vmatpush.bf16.msrb.mxu2 %v9513_v45 }
 0x25b   : > { %3202 = vmatpush.bf16.msrb.mxu0 %v9893_v57 }
 0x25c   : > { %14931 = vst [vmem:[#allocation47_spill] sm:$0xff] %v12792_v22  ;;  %v2752_v58 = vpop.f32.mrf.mxu2  ;;  %v2801_v55 = vpop.f32.mrf.mxu3 }
 0x25d   : > { %v2753_v5 = vadd.f32 %v2752_v58, %v2704_v16  ;;  %v2657_v18 = vpop.f32.mrf.mxu0  ;;  %v2706_v31 = vpop.f32.mrf.mxu1 }
 0x25e   : > { %v2658_v47 = vadd.f32 %v2657_v18, %v12701_v59  ;;  %v2707_v28 = vadd.f32 %v2706_v31, %v12709_v17  ;;  %v11386_v59 = vld [vmem:[#allocation5 + $0x85c] sm:$0xf]  ;;  %v9126_v31 = vld [vmem:[#allocation5 + $0x288] sm:$0xf0] }
 0x25f   : > { %v2802_v10 = vadd.f32 %v2801_v55, %v2753_v5  ;;  %2852 = vmatmul.bf16.gmra.mxu0 %v12463_v38  ;;  %v9897_v8 = vor.u32 %v11386_v59, %v9894_v15  ;;  %v11194_v18 = vld [vmem:[#allocation5 + $0x25c] sm:$0xf] }
 0x260   : > { %2901 = vmatmul.bf16.gmra.mxu1 %v12465_v39  ;;  %v9129_v27 = vor.u32 %v11194_v18, %v9126_v31 }
 0x261   : > { %v4144_v7 = vmax.f32 %v2802_v10, 0.0  ;;  %2950 = vmatmul.bf16.gmra.mxu2 %v12467_v43  ;;  %2999 = vmatmul.bf16.gmra.mxu3 %v12463_v38  ;;  %v4155_v10 = vmax.f32 %v2658_v47, 0.0 }
 0x262   : > { %3349 = vmatpush.bf16.msrb.mxu3 %v9897_v8  ;;  %3251 = vmatpush.bf16.msrb.mxu1 %v9129_v27 }
 0x263   : > { %v12801_v61 = vpack.c.bf16 %v4144_v7, %v4132_v63  ;;  %v12805_v63 = vperm.slane %v12706_v3, 4  ;;  %v11278_v3 = vld [vmem:[#allocation5 + $0x4fc] sm:$0xf] }
 0x264   : > { %v2755_v4 = vpop.f32.mrf.mxu2  ;;  %v2804_v35 = vpop.f32.mrf.mxu3 }
 0x265   : > { %14932 = vst [vmem:[#allocation48_spill] sm:$0xff] %v12801_v61  ;;  %v2756_v14 = vadd.f32 %v2755_v4, %v2707_v28  ;;  %v2659_v16 = vpop.f32.mrf.mxu0  ;;  %v2708_v5 = vpop.f32.mrf.mxu1 }
 0x266   : > { %v2660_v58 = vadd.f32 %v2659_v16, %v12712_v44  ;;  %v2709_v28 = vadd.f32 %v2708_v5, %v12709_v17  ;;  %v9462_v17 = vld [vmem:[#allocation5 + $0x528] sm:$0xf0]  ;;  %v11380_v16 = vld [vmem:[#allocation5 + $0x824] sm:$0xf0] }
 0x267   : > { %v2805_v55 = vadd.f32 %v2804_v35, %v2756_v14  ;;  %v9844_v14 = vld [vmem:[#allocation5 + $0x7f8] sm:$0xf]  ;;  %v9465_v35 = vor.u32 %v11278_v3, %v9462_v17  ;;  %v9846_v5 = vld [vmem:[#allocation5 + $0x828] sm:$0xf0] }
 0x268   : > { %v4167_v23 = vmax.f32 %v2660_v58, 0.0  ;;  %v11374_v58 = vld [vmem:[#allocation5 + $0x7fc] sm:$0xf] }
 0x269   : > { %v4156_v47 = vmax.f32 %v2805_v55, 0.0  ;;  %3301 = vmatpush.bf16.msrb.mxu2 %v9465_v35 }
 0x26a   : > { %v12807_v7 = vpack.c.bf16 %v4167_v23, %v4155_v10  ;;  %v9845_v10 = vor.u32 %v11380_v16, %v9844_v14  ;;  %v9849_v23 = vor.u32 %v11374_v58, %v9846_v5  ;;  %v11266_v5 = vld [vmem:[#allocation5 + $0x49c] sm:$0xf] }
 0x26c   : > { %14933 = vst [vmem:[#allocation49_spill] sm:$0xff] %v12807_v7  ;;  %v2757_v48 = vpop.f32.mrf.mxu2  ;;  %v2806_v44 = vpop.f32.mrf.mxu3  ;;  %3203 = vmatpush.bf16.msrb.mxu0 %v9845_v10  ;;  %3350 = vmatpush.bf16.msrb.mxu3 %v9849_v23  ;;  %v9796_v10 = vld [vmem:[#allocation5 + $0x798] sm:$0xf] }
 0x26d   : > { %v2758_v45 = vadd.f32 %v2757_v48, %v2709_v28  ;;  %v2818_v60 = vpop.f32.mrf.mxu0  ;;  %v2867_v15 = vpop.f32.mrf.mxu1 }
 0x26e   : > { %v2819_v59 = vadd.f32 %v2818_v60, %v12805_v63  ;;  %v9078_v60 = vld [vmem:[#allocation5 + $0x228] sm:$0xf0] }
 0x26f   : > { %v2807_v4 = vadd.f32 %v2806_v44, %v2758_v45  ;;  %3013 = vmatmul.bf16.vlgmr.msra.gmra.mxu0 %v12353_v51  ;;  %v11182_v44 = vld [vmem:[#allocation5 + $0x1fc] sm:$0xf] }
 0x270   : > { %v2868_v57 = vadd.f32 %v2867_v15, %v2819_v59  ;;  %3062 = vmatmul.bf16.vlgmr.msra.gmra.mxu1 %v12355_v52  ;;  %v9081_v15 = vor.u32 %v11182_v44, %v9078_v60 }
 0x271   : > { %v4168_v8 = vmax.f32 %v2807_v4, 0.0  ;;  %3111 = vmatmul.bf16.vlgmr.msra.gmra.mxu2 %v12351_v46  ;;  %3160 = vmatmul.bf16.vlgmr.msra.gmra.mxu3 %v12353_v51 }
 0x272   : > { %3252 = vmatpush.bf16.msrb.mxu1 %v9081_v15 }
 0x273   : > { %v12815_v18 = vpack.c.bf16 %v4168_v8, %v4156_v47 }
 0x274   : > { %v2916_v31 = vpop.f32.mrf.mxu2  ;;  %v12817_v27 = vpop.f32.mrf.mxu3 }
 0x275   : > { %14934 = vst [vmem:[#allocation50_spill] sm:$0xff] %v12815_v18  ;;  %v2917_v55 = vadd.f32 %v2916_v31, %v2868_v57  ;;  %v2820_v28 = vpop.f32.mrf.mxu0  ;;  %v2869_v45 = vpop.f32.mrf.mxu1  ;;  %v9414_v31 = vld [vmem:[#allocation5 + $0x4c8] sm:$0xf0] }
 0x276   : > { %v2821_v48 = vadd.f32 %v2820_v28, %v12805_v63  ;;  %v9417_v23 = vor.u32 %v11266_v5, %v9414_v31  ;;  %v11368_v28 = vld [vmem:[#allocation5 + $0x7c4] sm:$0xf0] }
 0x277   : > { %v3989_v14 = vmax.f32 %v2917_v55, 0.0  ;;  %v9797_v44 = vor.u32 %v11368_v28, %v9796_v10 }
 0x278   : > { %v2870_v59 = vadd.f32 %v2869_v45, %v2821_v48  ;;  %v11362_v48 = vld [vmem:[#allocation5 + $0x79c] sm:$0xf]  ;;  %v9798_v45 = vld [vmem:[#allocation5 + $0x7c8] sm:$0xf0]  ;;  %3302 = vmatpush.bf16.msrb.mxu2 %v9417_v23 }
 0x279   : > { %v9801_v60 = vor.u32 %v11362_v48, %v9798_v45  ;;  %3204 = vmatpush.bf16.msrb.mxu0 %v9797_v44  ;;  %v11254_v44 = vld [vmem:[#allocation5 + $0x43c] sm:$0xf] }
 0x27b   : > { %3351 = vmatpush.bf16.msrb.mxu3 %v9801_v60  ;;  %v9366_v60 = vld [vmem:[#allocation5 + $0x468] sm:$0xf0] }
 0x27c   : > { %v2918_v4 = vpop.f32.mrf.mxu2  ;;  %v12820_v8 = vpop.f32.mrf.mxu3 }
 0x27d   : > { %v2919_v47 = vadd.f32 %v2918_v4, %v2870_v59  ;;  %v2823_v3 = vpop.f32.mrf.mxu0  ;;  %v2872_v17 = vpop.f32.mrf.mxu1 }
 0x27e   : > { %v2824_v57 = vadd.f32 %v2823_v3, %v12805_v63 }
 0x27f   : > { %v4001_v35 = vmax.f32 %v2919_v47, 0.0  ;;  %3018 = vmatmul.bf16.gmra.mxu0 %v12369_v20 }
 0x280   : > { %v2873_v16 = vadd.f32 %v2872_v17, %v2824_v57  ;;  %3067 = vmatmul.bf16.gmra.mxu1 %v12371_v21  ;;  %v11170_v57 = vld [vmem:[#allocation5 + $0x19c] sm:$0xf]  ;;  %v9030_v17 = vld [vmem:[#allocation5 + $0x1c8] sm:$0xf0] }
 0x281   : > { %v12824_v58 = vpack.c.bf16 %v4001_v35, %v3989_v14  ;;  %3116 = vmatmul.bf16.gmra.mxu2 %v12367_v19  ;;  %3165 = vmatmul.bf16.gmra.mxu3 %v12369_v20  ;;  %v9033_v35 = vor.u32 %v11170_v57, %v9030_v17  ;;  %v11350_v57 = vld [vmem:[#allocation5 + $0x73c] sm:$0xf]  ;;  %v9750_v17 = vld [vmem:[#allocation5 + $0x768] sm:$0xf0] }
 0x283   : > { %14935 = vst [vmem:[#allocation51_spill] sm:$0xff] %v12824_v58  ;;  %3253 = vmatpush.bf16.msrb.mxu1 %v9033_v35  ;;  %v9753_v35 = vor.u32 %v11350_v57, %v9750_v17 }
 0x284   : > { %v2921_v55 = vpop.f32.mrf.mxu2  ;;  %v12829_v15 = vpop.f32.mrf.mxu3 }
 0x285   : > { %v2922_v59 = vadd.f32 %v2921_v55, %v2873_v16  ;;  %v2825_v4 = vpop.f32.mrf.mxu0  ;;  %v2874_v3 = vpop.f32.mrf.mxu1  ;;  %3352 = vmatpush.bf16.msrb.mxu3 %v9753_v35  ;;  %v9700_v35 = vld [vmem:[#allocation5 + $0x6d8] sm:$0xf] }
 0x286   : > { %v2826_v47 = vadd.f32 %v2825_v4, %v12805_v63  ;;  %v9748_v4 = vld [vmem:[#allocation5 + $0x738] sm:$0xf] }
 0x287   : > { %v4013_v48 = vmax.f32 %v2922_v59, 0.0 }
 0x288   : > { %v2875_v14 = vadd.f32 %v2874_v3, %v2826_v47  ;;  %v9369_v47 = vor.u32 %v11254_v44, %v9366_v60  ;;  %v11356_v3 = vld [vmem:[#allocation5 + $0x764] sm:$0xf0] }
 0x28a   : > { %3303 = vmatpush.bf16.msrb.mxu2 %v9369_v47 }
 0x28c   : > { %v2923_v5 = vpop.f32.mrf.mxu2  ;;  %v12832_v58 = vpop.f32.mrf.mxu3 }
 0x28d   : > { %v2924_v31 = vadd.f32 %v2923_v5, %v2875_v14  ;;  %v2828_v10 = vpop.f32.mrf.mxu0  ;;  %v2877_v28 = vpop.f32.mrf.mxu1  ;;  %v9749_v14 = vor.u32 %v11356_v3, %v9748_v4 }
 0x28e   : > { %v2829_v16 = vadd.f32 %v2828_v10, %v12805_v63 }
 0x28f   : > { %v4025_v23 = vmax.f32 %v2924_v31, 0.0  ;;  %3023 = vmatmul.bf16.gmra.mxu0 %v12385_v41 }
 0x290   : > { %v2878_v45 = vadd.f32 %v2877_v28, %v2829_v16  ;;  %3072 = vmatmul.bf16.gmra.mxu1 %v12387_v42  ;;  %3205 = vmatpush.bf16.msrb.mxu0 %v9749_v14  ;;  %v9318_v14 = vld [vmem:[#allocation5 + $0x408] sm:$0xf0] }
 0x291   : > { %3121 = vmatmul.bf16.gmra.mxu2 %v12383_v40  ;;  %v12838_v55 = vpack.c.bf16 %v4025_v23, %v4013_v48  ;;  %3170 = vmatmul.bf16.gmra.mxu3 %v12385_v41  ;;  %v11158_v48 = vld [vmem:[#allocation5 + $0x13c] sm:$0xf]  ;;  %v8982_v23 = vld [vmem:[#allocation5 + $0x168] sm:$0xf0] }
 0x292   : > { %v8985_v44 = vor.u32 %v11158_v48, %v8982_v23  ;;  %v9702_v48 = vld [vmem:[#allocation5 + $0x708] sm:$0xf0] }
 0x293   : > { %14936 = vst [vmem:[#allocation52_spill] sm:$0xff] %v12838_v55 }
 0x294   : > { %v2926_v59 = vpop.f32.mrf.mxu2  ;;  %v12841_v31 = vpop.f32.mrf.mxu3  ;;  %3254 = vmatpush.bf16.msrb.mxu1 %v8985_v44 }
 0x295   : > { %v2927_v5 = vadd.f32 %v2926_v59, %v2878_v45  ;;  %v2830_v10 = vpop.f32.mrf.mxu0  ;;  %v2879_v28 = vpop.f32.mrf.mxu1 }
 0x296   : > { %v2831_v16 = vadd.f32 %v2830_v10, %v12805_v63 }
 0x297   : > { %v4037_v57 = vmax.f32 %v2927_v5, 0.0 }
 0x298   : > { %v2880_v55 = vadd.f32 %v2879_v28, %v2831_v16  ;;  %v11344_v16 = vld [vmem:[#allocation5 + $0x704] sm:$0xf0]  ;;  %v11338_v28 = vld [vmem:[#allocation5 + $0x6dc] sm:$0xf] }
 0x299   : > { %v9705_v23 = vor.u32 %v11338_v28, %v9702_v48 }
 0x29b   : > { %3353 = vmatpush.bf16.msrb.mxu3 %v9705_v23  ;;  %v9652_v23 = vld [vmem:[#allocation5 + $0x678] sm:$0xf] }
 0x29c   : > { %v2928_v60 = vpop.f32.mrf.mxu2  ;;  %v12844_v7 = vpop.f32.mrf.mxu3 }
 0x29d   : > { %v2929_v18 = vadd.f32 %v2928_v60, %v2880_v55  ;;  %v2833_v4 = vpop.f32.mrf.mxu0  ;;  %v2882_v3 = vpop.f32.mrf.mxu1  ;;  %v11242_v55 = vld [vmem:[#allocation5 + $0x3dc] sm:$0xf] }
 0x29e   : > { %v2834_v45 = vadd.f32 %v2833_v4, %v12805_v63  ;;  %v9321_v10 = vor.u32 %v11242_v55, %v9318_v14 }
 0x29f   : > { %v4049_v47 = vmax.f32 %v2929_v18, 0.0  ;;  %3028 = vmatmul.bf16.gmra.mxu0 %v12401_v1  ;;  %v9701_v18 = vor.u32 %v11344_v16, %v9700_v35 }
 0x2a0   : > { %v2883_v17 = vadd.f32 %v2882_v3, %v2834_v45  ;;  %3077 = vmatmul.bf16.gmra.mxu1 %v12403_v2  ;;  %3304 = vmatpush.bf16.msrb.mxu2 %v9321_v10 }
 0x2a1   : > { %3126 = vmatmul.bf16.gmra.mxu2 %v12399_v0  ;;  %v12850_v59 = vpack.c.bf16 %v4049_v47, %v4037_v57  ;;  %3175 = vmatmul.bf16.gmra.mxu3 %v12401_v1  ;;  %v11146_v57 = vld [vmem:[#allocation5 + $0xdc] sm:$0xf]  ;;  %v8934_v47 = vld [vmem:[#allocation5 + $0x108] sm:$0xf0] }
 0x2a2   : > { %3206 = vmatpush.bf16.msrb.mxu0 %v9701_v18  ;;  %v8937_v55 = vor.u32 %v11146_v57, %v8934_v47  ;;  %v9270_v18 = vld [vmem:[#allocation5 + $0x3a8] sm:$0xf0] }
 0x2a3   : > { %14937 = vst [vmem:[#allocation53_spill] sm:$0xff] %v12850_v59  ;;  %v9654_v57 = vld [vmem:[#allocation5 + $0x6a8] sm:$0xf0] }
 0x2a4   : > { %v2931_v5 = vpop.f32.mrf.mxu2  ;;  %v12853_v60 = vpop.f32.mrf.mxu3  ;;  %3255 = vmatpush.bf16.msrb.mxu1 %v8937_v55 }
 0x2a5   : > { %v2932_v44 = vadd.f32 %v2931_v5, %v2883_v17  ;;  %v2835_v4 = vpop.f32.mrf.mxu0  ;;  %v2884_v3 = vpop.f32.mrf.mxu1 }
 0x2a6   : > { %v2836_v45 = vadd.f32 %v2835_v4, %v12805_v63 }
 0x2a7   : > { %v4061_v28 = vmax.f32 %v2932_v44, 0.0 }
 0x2a8   : > { %v2885_v59 = vadd.f32 %v2884_v3, %v2836_v45  ;;  %v11332_v45 = vld [vmem:[#allocation5 + $0x6a4] sm:$0xf0]  ;;  %v11326_v3 = vld [vmem:[#allocation5 + $0x67c] sm:$0xf] }
 0x2a9   : > { %v9657_v47 = vor.u32 %v11326_v3, %v9654_v57 }
 0x2ab   : > { %3354 = vmatpush.bf16.msrb.mxu3 %v9657_v47  ;;  %v9604_v47 = vld [vmem:[#allocation5 + $0x618] sm:$0xf] }
 0x2ac   : > { %v2933_v14 = vpop.f32.mrf.mxu2  ;;  %v12856_v22 = vpop.f32.mrf.mxu3 }
 0x2ad   : > { %v2934_v61 = vadd.f32 %v2933_v14, %v2885_v59  ;;  %v2838_v35 = vpop.f32.mrf.mxu0  ;;  %v2887_v16 = vpop.f32.mrf.mxu1  ;;  %v11230_v59 = vld [vmem:[#allocation5 + $0x37c] sm:$0xf] }
 0x2ae   : > { %v2839_v17 = vadd.f32 %v2838_v35, %v12805_v63  ;;  %v9273_v4 = vor.u32 %v11230_v59, %v9270_v18 }
 0x2af   : > { %v4073_v10 = vmax.f32 %v2934_v61, 0.0  ;;  %3033 = vmatmul.bf16.gmra.mxu0 %v12417_v25  ;;  %v9653_v61 = vor.u32 %v11332_v45, %v9652_v23 }
 0x2b0   : > { %v2888_v48 = vadd.f32 %v2887_v16, %v2839_v17  ;;  %3082 = vmatmul.bf16.gmra.mxu1 %v12419_v26  ;;  %3305 = vmatpush.bf16.msrb.mxu2 %v9273_v4 }
 0x2b1   : > { %3131 = vmatmul.bf16.gmra.mxu2 %v12415_v24  ;;  %v12862_v5 = vpack.c.bf16 %v4073_v10, %v4061_v28  ;;  %3180 = vmatmul.bf16.gmra.mxu3 %v12417_v25  ;;  %v11134_v28 = vld [vmem:[#allocation5 + $0x7c] sm:$0xf]  ;;  %v8886_v10 = vld [vmem:[#allocation5 + $0xa8] sm:$0xf0] }
 0x2b2   : > { %3207 = vmatpush.bf16.msrb.mxu0 %v9653_v61  ;;  %v8889_v59 = vor.u32 %v11134_v28, %v8886_v10  ;;  %v9222_v61 = vld [vmem:[#allocation5 + $0x348] sm:$0xf0] }
 0x2b3   : > { %14938 = vst [vmem:[#allocation54_spill] sm:$0xff] %v12862_v5  ;;  %v9606_v28 = vld [vmem:[#allocation5 + $0x648] sm:$0xf0] }
 0x2b4   : > { %v2936_v44 = vpop.f32.mrf.mxu2  ;;  %v12865_v14 = vpop.f32.mrf.mxu3  ;;  %3256 = vmatpush.bf16.msrb.mxu1 %v8889_v59 }
 0x2b5   : > { %v2937_v55 = vadd.f32 %v2936_v44, %v2888_v48  ;;  %v2840_v35 = vpop.f32.mrf.mxu0  ;;  %v2889_v16 = vpop.f32.mrf.mxu1 }
 0x2b6   : > { %v2841_v17 = vadd.f32 %v2840_v35, %v12805_v63 }
 0x2b7   : > { %v4085_v3 = vmax.f32 %v2937_v55, 0.0 }
 0x2b8   : > { %v2890_v5 = vadd.f32 %v2889_v16, %v2841_v17  ;;  %v11320_v17 = vld [vmem:[#allocation5 + $0x644] sm:$0xf0]  ;;  %v11314_v16 = vld [vmem:[#allocation5 + $0x61c] sm:$0xf] }
 0x2b9   : > { %v9609_v10 = vor.u32 %v11314_v16, %v9606_v28 }
 0x2bb   : > { %3355 = vmatpush.bf16.msrb.mxu3 %v9609_v10  ;;  %v9180_v10 = vld [vmem:[#allocation5 + $0x2c0] sm:$0xf] }
 0x2bc   : > { %v2938_v18 = vpop.f32.mrf.mxu2  ;;  %v12868_v36 = vpop.f32.mrf.mxu3 }
 0x2bd   : > { %v2939_v37 = vadd.f32 %v2938_v18, %v2890_v5  ;;  %v2843_v23 = vpop.f32.mrf.mxu0  ;;  %v2892_v45 = vpop.f32.mrf.mxu1  ;;  %v11218_v5 = vld [vmem:[#allocation5 + $0x31c] sm:$0xf] }
 0x2be   : > { %v2844_v48 = vadd.f32 %v2843_v23, %v12805_v63  ;;  %v9225_v35 = vor.u32 %v11218_v5, %v9222_v61 }
 0x2bf   : > { %v4097_v4 = vmax.f32 %v2939_v37, 0.0  ;;  %3038 = vmatmul.bf16.gmra.mxu0 %v12433_v50  ;;  %v9605_v37 = vor.u32 %v11320_v17, %v9604_v47 }
 0x2c0   : > { %v2893_v57 = vadd.f32 %v2892_v45, %v2844_v48  ;;  %3087 = vmatmul.bf16.gmra.mxu1 %v12435_v53  ;;  %3306 = vmatpush.bf16.msrb.mxu2 %v9225_v35 }
 0x2c1   : > { %3136 = vmatmul.bf16.gmra.mxu2 %v12431_v49  ;;  %v12874_v44 = vpack.c.bf16 %v4097_v4, %v4085_v3  ;;  %3185 = vmatmul.bf16.gmra.mxu3 %v12433_v50  ;;  %v11122_v3 = vld [vmem:[#allocation5 + $0x1c] sm:$0xf]  ;;  %v8838_v4 = vld [vmem:[#allocation5 + $0x48] sm:$0xf0] }
 0x2c2   : > { %3208 = vmatpush.bf16.msrb.mxu0 %v9605_v37  ;;  %v8841_v5 = vor.u32 %v11122_v3, %v8838_v4  ;;  %v11405_v37 = vld [vmem:[#allocation5 + $0x8ec] sm:$0xf0]  ;;  %v9182_v3 = vld [vmem:[#allocation5 + $0x2f0] sm:$0xf0] }
 0x2c3   : > { %14939 = vst [vmem:[#allocation55_spill] sm:$0xff] %v12874_v44 }
 0x2c4   : > { %v2941_v55 = vpop.f32.mrf.mxu2  ;;  %v12877_v18 = vpop.f32.mrf.mxu3  ;;  %3257 = vmatpush.bf16.msrb.mxu1 %v8841_v5 }
 0x2c5   : > { %v2942_v59 = vadd.f32 %v2941_v55, %v2893_v57  ;;  %v2845_v23 = vpop.f32.mrf.mxu0  ;;  %v2894_v45 = vpop.f32.mrf.mxu1 }
 0x2c6   : > { %v2846_v48 = vadd.f32 %v2845_v23, %v12805_v63 }
 0x2c7   : > { %v4109_v16 = vmax.f32 %v2942_v59, 0.0 }
 0x2c8   : > { %v2895_v44 = vadd.f32 %v2894_v45, %v2846_v48  ;;  %v11213_v48 = vld [vmem:[#allocation5 + $0x2ec] sm:$0xf0]  ;;  %v11207_v45 = vld [vmem:[#allocation5 + $0x2c4] sm:$0xf] }
 0x2c9   : > { %v9185_v4 = vor.u32 %v11207_v45, %v9182_v3 }
 0x2cb   : > { %3544 = vmatpush.bf16.msra.mxu3 %v9185_v4  ;;  %v9132_v4 = vld [vmem:[#allocation5 + $0x260] sm:$0xf] }
 0x2cc   : > { %v2943_v61 = vpop.f32.mrf.mxu2  ;;  %v12880_v32 = vpop.f32.mrf.mxu3 }
 0x2cd   : > { %v2944_v34 = vadd.f32 %v2943_v61, %v2895_v44  ;;  %v2848_v47 = vpop.f32.mrf.mxu0  ;;  %v2897_v17 = vpop.f32.mrf.mxu1  ;;  %v9948_v44 = vld [vmem:[#allocation5 + $0x8c0] sm:$0xf] }
 0x2ce   : > { %v2849_v57 = vadd.f32 %v2848_v47, %v12805_v63  ;;  %v9949_v23 = vor.u32 %v11405_v37, %v9948_v44 }
 0x2cf   : > { %v4121_v35 = vmax.f32 %v2944_v34, 0.0  ;;  %3043 = vmatmul.bf16.gmra.mxu0 %v12449_v12  ;;  %v9181_v34 = vor.u32 %v11213_v48, %v9180_v10 }
 0x2d0   : > { %v2898_v28 = vadd.f32 %v2897_v17, %v2849_v57  ;;  %3092 = vmatmul.bf16.gmra.mxu1 %v12451_v13  ;;  %3495 = vmatpush.bf16.msra.mxu2 %v9949_v23 }
 0x2d1   : > { %3141 = vmatmul.bf16.gmra.mxu2 %v12447_v11  ;;  %v12886_v55 = vpack.c.bf16 %v4121_v35, %v4109_v16  ;;  %3190 = vmatmul.bf16.gmra.mxu3 %v12449_v12  ;;  %v9564_v16 = vld [vmem:[#allocation5 + $0x5c0] sm:$0xf]  ;;  %v11309_v35 = vld [vmem:[#allocation5 + $0x5ec] sm:$0xf0] }
 0x2d2   : > { %3397 = vmatpush.bf16.msra.mxu0 %v9181_v34  ;;  %v9565_v44 = vor.u32 %v11309_v35, %v9564_v16  ;;  %v11393_v34 = vld [vmem:[#allocation5 + $0x88c] sm:$0xf0]  ;;  %v9134_v16 = vld [vmem:[#allocation5 + $0x290] sm:$0xf0] }
 0x2d3   : > { %14940 = vst [vmem:[#allocation56_spill] sm:$0xff] %v12886_v55 }
 0x2d4   : > { %v2946_v59 = vpop.f32.mrf.mxu2  ;;  %v12889_v61 = vpop.f32.mrf.mxu3  ;;  %3446 = vmatpush.bf16.msra.mxu1 %v9565_v44 }
 0x2d5   : > { %v2947_v5 = vadd.f32 %v2946_v59, %v2898_v28  ;;  %v2850_v47 = vpop.f32.mrf.mxu0  ;;  %v2899_v17 = vpop.f32.mrf.mxu1 }
 0x2d6   : > { %v2851_v57 = vadd.f32 %v2850_v47, %v12805_v63 }
 0x2d7   : > { %v4133_v45 = vmax.f32 %v2947_v5, 0.0 }
 0x2d8   : > { %v2900_v55 = vadd.f32 %v2899_v17, %v2851_v57  ;;  %v11201_v57 = vld [vmem:[#allocation5 + $0x28c] sm:$0xf0]  ;;  %v11195_v17 = vld [vmem:[#allocation5 + $0x264] sm:$0xf] }
 0x2d9   : > { %v9137_v35 = vor.u32 %v11195_v17, %v9134_v16 }
 0x2db   : > { %3545 = vmatpush.bf16.msra.mxu3 %v9137_v35 }
 0x2dc   : > { %v2948_v37 = vpop.f32.mrf.mxu2  ;;  %v12892_v54 = vpop.f32.mrf.mxu3 }
 0x2dd   : > { %v2949_v33 = vadd.f32 %v2948_v37, %v2900_v55  ;;  %v2853_v10 = vpop.f32.mrf.mxu0  ;;  %v2902_v48 = vpop.f32.mrf.mxu1  ;;  %v9900_v55 = vld [vmem:[#allocation5 + $0x860] sm:$0xf] }
 0x2de   : > { %v2854_v28 = vadd.f32 %v2853_v10, %v12805_v63  ;;  %v9901_v47 = vor.u32 %v11393_v34, %v9900_v55 }
 0x2df   : > { %v4145_v23 = vmax.f32 %v2949_v33, 0.0  ;;  %3048 = vmatmul.bf16.gmra.mxu0 %v12465_v39  ;;  %v9133_v33 = vor.u32 %v11201_v57, %v9132_v4 }
 0x2e0   : > { %v2903_v3 = vadd.f32 %v2902_v48, %v2854_v28  ;;  %3097 = vmatmul.bf16.gmra.mxu1 %v12467_v43  ;;  %3496 = vmatpush.bf16.msra.mxu2 %v9901_v47 }
 0x2e1   : > { %3146 = vmatmul.bf16.gmra.mxu2 %v12463_v38  ;;  %v12898_v59 = vpack.c.bf16 %v4145_v23, %v4133_v45  ;;  %3195 = vmatmul.bf16.gmra.mxu3 %v12465_v39  ;;  %v9516_v45 = vld [vmem:[#allocation5 + $0x560] sm:$0xf]  ;;  %v11297_v23 = vld [vmem:[#allocation5 + $0x58c] sm:$0xf0] }
 0x2e2   : > { %3398 = vmatpush.bf16.msra.mxu0 %v9133_v33  ;;  %v9517_v4 = vor.u32 %v11297_v23, %v9516_v45  ;;  %v11381_v45 = vld [vmem:[#allocation5 + $0x82c] sm:$0xf0] }
 0x2e3   : > { %14941 = vst [vmem:[#allocation57_spill] sm:$0xff] %v12898_v59  ;;  %v12904_v59 = vld [vmem:[#allocation7] sm:$0xff] }
 0x2e4   : > { %v2951_v5 = vpop.f32.mrf.mxu2  ;;  %v12901_v37 = vpop.f32.mrf.mxu3  ;;  %v12907_v55 = vperm.slane %v12904_v59, 5  ;;  %3447 = vmatpush.bf16.msra.mxu1 %v9517_v4  ;;  %v11183_v4 = vld [vmem:[#allocation5 + $0x204] sm:$0xf] }
 0x2e5   : > { %v2952_v44 = vadd.f32 %v2951_v5, %v2903_v3  ;;  %v2855_v10 = vpop.f32.mrf.mxu0  ;;  %v2904_v48 = vpop.f32.mrf.mxu1 }
 0x2e6   : > { %v2856_v28 = vadd.f32 %v2855_v10, %v12805_v63  ;;  %v2966_v3 = vadd.f32 %v12817_v27, %v12907_v55 }
 0x2e7   : > { %v4157_v33 = vmax.f32 %v2952_v44, 0.0  ;;  %v11189_v44 = vld [vmem:[#allocation5 + $0x22c] sm:$0xf0] }
 0x2e8   : > { %v2905_v34 = vadd.f32 %v2904_v48, %v2856_v28  ;;  %v12917_v28 = vperm.slane %v12904_v59, 6  ;;  %v9852_v48 = vld [vmem:[#allocation5 + $0x800] sm:$0xf] }
 0x2e9   : > { %v9853_v23 = vor.u32 %v11381_v45, %v9852_v48  ;;  %v9468_v48 = vld [vmem:[#allocation5 + $0x500] sm:$0xf]  ;;  %v11285_v45 = vld [vmem:[#allocation5 + $0x52c] sm:$0xf0] }
 0x2ea   : > { %v9469_v6 = vor.u32 %v11285_v45, %v9468_v48  ;;  %v9038_v48 = vld [vmem:[#allocation5 + $0x1d0] sm:$0xf0] }
 0x2eb   : > { %3497 = vmatpush.bf16.msra.mxu2 %v9853_v23 }
 0x2ec   : > { %v2953_v57 = vpop.f32.mrf.mxu2  ;;  %v12911_v17 = vpop.f32.mrf.mxu3  ;;  %3448 = vmatpush.bf16.msra.mxu1 %v9469_v6  ;;  %v11369_v6 = vld [vmem:[#allocation5 + $0x7cc] sm:$0xf0] }
 0x2ed   : > { %v2954_v47 = vadd.f32 %v2953_v57, %v2905_v34  ;;  %v3014_v63 = vpop.f32.mrf.mxu0  ;;  %v3063_v5 = vpop.f32.mrf.mxu1  ;;  %v9084_v34 = vld [vmem:[#allocation5 + $0x200] sm:$0xf] }
 0x2ee   : > { %v3015_v16 = vadd.f32 %v3014_v63, %v2966_v3  ;;  %v2968_v3 = vadd.f32 %v12820_v8, %v12907_v55  ;;  %v9086_v63 = vld [vmem:[#allocation5 + $0x230] sm:$0xf0] }
 0x2ef   : > { %v4169_v35 = vmax.f32 %v2954_v47, 0.0  ;;  %3209 = vmatmul.bf16.vlgmr.msrb.gmra.mxu0 %v12355_v52  ;;  %v9085_v47 = vor.u32 %v11189_v44, %v9084_v34  ;;  %v2971_v34 = vadd.f32 %v12829_v15, %v12907_v55  ;;  %v9036_v15 = vld [vmem:[#allocation5 + $0x1a0] sm:$0xf] }
 0x2f0   : > { %v3064_v10 = vadd.f32 %v3063_v5, %v3015_v16  ;;  %3258 = vmatmul.bf16.vlgmr.msrb.gmra.mxu1 %v12351_v46 }
 0x2f1   : > { %3307 = vmatmul.bf16.vlgmr.msrb.gmra.mxu2 %v12353_v51  ;;  %v12919_v27 = vpack.c.bf16 %v4169_v35, %v4157_v33  ;;  %3356 = vmatmul.bf16.vlgmr.msrb.gmra.mxu3 %v12355_v52  ;;  %v9089_v33 = vor.u32 %v11183_v4, %v9086_v63 }
 0x2f2   : > { %3399 = vmatpush.bf16.msra.mxu0 %v9085_v47  ;;  %v3990_v8 = vmax.f32 %v3064_v10, 0.0  ;;  %v11177_v10 = vld [vmem:[#allocation5 + $0x1cc] sm:$0xf0] }
 0x2f3   : > { %14942 = vst [vmem:[#allocation58_spill] sm:$0xff] %v12919_v27  ;;  %3546 = vmatpush.bf16.msra.mxu3 %v9089_v33 }
 0x2f4   : > { %v3112_v57 = vpop.f32.mrf.mxu2  ;;  %v3161_v5 = vpop.f32.mrf.mxu3 }
 0x2f5   : > { %v3113_v16 = vadd.f32 %v3112_v57, %v12917_v28  ;;  %v3016_v62 = vpop.f32.mrf.mxu0  ;;  %v3065_v27 = vpop.f32.mrf.mxu1 }
 0x2f6   : > { %v3017_v35 = vadd.f32 %v3016_v62, %v2968_v3 }
 0x2f7   : > { %v12925_v30 = vadd.f32 %v3161_v5, %v3113_v16  ;;  %v2973_v5 = vadd.f32 %v12832_v58, %v12907_v55 }
 0x2f8   : > { %v3066_v29 = vadd.f32 %v3065_v27, %v3017_v35  ;;  %v11171_v27 = vld [vmem:[#allocation5 + $0x1a4] sm:$0xf]  ;;  %v9037_v35 = vor.u32 %v11177_v10, %v9036_v15  ;;  %v2976_v15 = vadd.f32 %v12841_v31, %v12907_v55  ;;  %v9756_v31 = vld [vmem:[#allocation5 + $0x740] sm:$0xf] }
 0x2fa   : > { %v4002_v9 = vmax.f32 %v3066_v29, 0.0  ;;  %3400 = vmatpush.bf16.msra.mxu0 %v9037_v35 }
 0x2fc   : > { %v12929_v44 = vpack.c.bf16 %v4002_v9, %v3990_v8  ;;  %v3114_v23 = vpop.f32.mrf.mxu2  ;;  %v3163_v4 = vpop.f32.mrf.mxu3  ;;  %v9804_v9 = vld [vmem:[#allocation5 + $0x7a0] sm:$0xf] }
 0x2fd   : > { %v3115_v62 = vadd.f32 %v3114_v23, %v12917_v28  ;;  %v3019_v3 = vpop.f32.mrf.mxu0  ;;  %v3068_v47 = vpop.f32.mrf.mxu1  ;;  %v9805_v29 = vor.u32 %v11369_v6, %v9804_v9  ;;  %v9041_v23 = vor.u32 %v11171_v27, %v9038_v48 }
 0x2fe   : > { %14943 = vst [vmem:[#allocation59_spill] sm:$0xff] %v12929_v44  ;;  %v3020_v57 = vadd.f32 %v3019_v3, %v2971_v34 }
 0x2ff   : > { %v12932_v63 = vadd.f32 %v3163_v4, %v3115_v62  ;;  %3214 = vmatmul.bf16.gmra.mxu0 %v12371_v21  ;;  %3498 = vmatpush.bf16.msra.mxu2 %v9805_v29 }
 0x300   : > { %v3069_v16 = vadd.f32 %v3068_v47, %v3020_v57  ;;  %3263 = vmatmul.bf16.gmra.mxu1 %v12367_v19  ;;  %3547 = vmatpush.bf16.msra.mxu3 %v9041_v23  ;;  %v9420_v57 = vld [vmem:[#allocation5 + $0x4a0] sm:$0xf]  ;;  %v11273_v47 = vld [vmem:[#allocation5 + $0x4cc] sm:$0xf0] }
 0x301   : > { %3312 = vmatmul.bf16.gmra.mxu2 %v12369_v20  ;;  %3361 = vmatmul.bf16.gmra.mxu3 %v12371_v21  ;;  %v9421_v6 = vor.u32 %v11273_v47, %v9420_v57  ;;  %v11165_v23 = vld [vmem:[#allocation5 + $0x16c] sm:$0xf0] }
 0x302   : > { %v4014_v58 = vmax.f32 %v3069_v16, 0.0 }
 0x303   : > { %3449 = vmatpush.bf16.msra.mxu1 %v9421_v6 }
 0x304   : > { %v3117_v33 = vpop.f32.mrf.mxu2  ;;  %v3166_v8 = vpop.f32.mrf.mxu3 }
 0x305   : > { %v3118_v45 = vadd.f32 %v3117_v33, %v12917_v28  ;;  %v3021_v34 = vpop.f32.mrf.mxu0  ;;  %v3070_v4 = vpop.f32.mrf.mxu1 }
 0x306   : > { %v3022_v62 = vadd.f32 %v3021_v34, %v2973_v5  ;;  %v8988_v34 = vld [vmem:[#allocation5 + $0x140] sm:$0xf] }
 0x307   : > { %v12941_v3 = vadd.f32 %v3166_v8, %v3118_v45  ;;  %v8989_v47 = vor.u32 %v11165_v23, %v8988_v34  ;;  %v2981_v34 = vadd.f32 %v12853_v60, %v12907_v55  ;;  %v9708_v60 = vld [vmem:[#allocation5 + $0x6e0] sm:$0xf] }
 0x308   : > { %v3071_v9 = vadd.f32 %v3070_v4, %v3022_v62  ;;  %v11159_v62 = vld [vmem:[#allocation5 + $0x144] sm:$0xf]  ;;  %v2978_v4 = vadd.f32 %v12844_v7, %v12907_v55 }
 0x309   : > { %3401 = vmatpush.bf16.msra.mxu0 %v8989_v47 }
 0x30a   : > { %v4026_v44 = vmax.f32 %v3071_v9, 0.0  ;;  %v8990_v9 = vld [vmem:[#allocation5 + $0x170] sm:$0xf0] }
 0x30c   : > { %v3119_v10 = vpop.f32.mrf.mxu2  ;;  %v12945_v33 = vpack.c.bf16 %v4026_v44, %v4014_v58  ;;  %v3168_v27 = vpop.f32.mrf.mxu3  ;;  %v11357_v44 = vld [vmem:[#allocation5 + $0x76c] sm:$0xf0] }
 0x30d   : > { %v3120_v29 = vadd.f32 %v3119_v10, %v12917_v28  ;;  %v3024_v5 = vpop.f32.mrf.mxu0  ;;  %v3073_v48 = vpop.f32.mrf.mxu1  ;;  %v9757_v16 = vor.u32 %v11357_v44, %v9756_v31  ;;  %v8993_v10 = vor.u32 %v11159_v62, %v8990_v9 }
 0x30e   : > { %14944 = vst [vmem:[#allocation60_spill] sm:$0xff] %v12945_v33  ;;  %v3025_v35 = vadd.f32 %v3024_v5, %v2976_v15 }
 0x30f   : > { %v12948_v45 = vadd.f32 %v3168_v27, %v3120_v29  ;;  %3219 = vmatmul.bf16.gmra.mxu0 %v12387_v42  ;;  %3499 = vmatpush.bf16.msra.mxu2 %v9757_v16 }
 0x310   : > { %v3074_v8 = vadd.f32 %v3073_v48, %v3025_v35  ;;  %3268 = vmatmul.bf16.gmra.mxu1 %v12383_v40  ;;  %3548 = vmatpush.bf16.msra.mxu3 %v8993_v10  ;;  %v9372_v35 = vld [vmem:[#allocation5 + $0x440] sm:$0xf]  ;;  %v11261_v48 = vld [vmem:[#allocation5 + $0x46c] sm:$0xf0] }
 0x311   : > { %3317 = vmatmul.bf16.gmra.mxu2 %v12385_v41  ;;  %3366 = vmatmul.bf16.gmra.mxu3 %v12387_v42  ;;  %v9373_v44 = vor.u32 %v11261_v48, %v9372_v35  ;;  %v11153_v10 = vld [vmem:[#allocation5 + $0x10c] sm:$0xf0] }
 0x312   : > { %v4038_v7 = vmax.f32 %v3074_v8, 0.0 }
 0x313   : > { %3450 = vmatpush.bf16.msra.mxu1 %v9373_v44 }
 0x314   : > { %v3122_v57 = vpop.f32.mrf.mxu2  ;;  %v3171_v58 = vpop.f32.mrf.mxu3 }
 0x315   : > { %v3123_v6 = vadd.f32 %v3122_v57, %v12917_v28  ;;  %v3026_v15 = vpop.f32.mrf.mxu0  ;;  %v3075_v27 = vpop.f32.mrf.mxu1 }
 0x316   : > { %v3027_v29 = vadd.f32 %v3026_v15, %v2978_v4  ;;  %v8940_v15 = vld [vmem:[#allocation5 + $0xe0] sm:$0xf] }
 0x317   : > { %v12957_v5 = vadd.f32 %v3171_v58, %v3123_v6  ;;  %v8941_v48 = vor.u32 %v11153_v10, %v8940_v15  ;;  %v2986_v15 = vadd.f32 %v12865_v14, %v12907_v55  ;;  %v9660_v14 = vld [vmem:[#allocation5 + $0x680] sm:$0xf] }
 0x318   : > { %v3076_v31 = vadd.f32 %v3075_v27, %v3027_v29  ;;  %v11147_v29 = vld [vmem:[#allocation5 + $0xe4] sm:$0xf]  ;;  %v2983_v27 = vadd.f32 %v12856_v22, %v12907_v55 }
 0x319   : > { %3402 = vmatpush.bf16.msra.mxu0 %v8941_v48 }
 0x31a   : > { %v4050_v33 = vmax.f32 %v3076_v31, 0.0  ;;  %v8942_v31 = vld [vmem:[#allocation5 + $0x110] sm:$0xf0] }
 0x31c   : > { %v3124_v23 = vpop.f32.mrf.mxu2  ;;  %v12961_v57 = vpack.c.bf16 %v4050_v33, %v4038_v7  ;;  %v3173_v62 = vpop.f32.mrf.mxu3  ;;  %v11345_v33 = vld [vmem:[#allocation5 + $0x70c] sm:$0xf0] }
 0x31d   : > { %v3125_v16 = vadd.f32 %v3124_v23, %v12917_v28  ;;  %v3029_v4 = vpop.f32.mrf.mxu0  ;;  %v3078_v9 = vpop.f32.mrf.mxu1  ;;  %v9709_v8 = vor.u32 %v11345_v33, %v9708_v60  ;;  %v8945_v23 = vor.u32 %v11147_v29, %v8942_v31 }
 0x31e   : > { %14945 = vst [vmem:[#allocation61_spill] sm:$0xff] %v12961_v57  ;;  %v3030_v47 = vadd.f32 %v3029_v4, %v2981_v34 }
 0x31f   : > { %v12964_v6 = vadd.f32 %v3173_v62, %v3125_v16  ;;  %3224 = vmatmul.bf16.gmra.mxu0 %v12403_v2  ;;  %3500 = vmatpush.bf16.msra.mxu2 %v9709_v8 }
 0x320   : > { %v3079_v58 = vadd.f32 %v3078_v9, %v3030_v47  ;;  %3273 = vmatmul.bf16.gmra.mxu1 %v12399_v0  ;;  %3549 = vmatpush.bf16.msra.mxu3 %v8945_v23  ;;  %v9324_v47 = vld [vmem:[#allocation5 + $0x3e0] sm:$0xf]  ;;  %v11249_v9 = vld [vmem:[#allocation5 + $0x40c] sm:$0xf0] }
 0x321   : > { %3322 = vmatmul.bf16.gmra.mxu2 %v12401_v1  ;;  %3371 = vmatmul.bf16.gmra.mxu3 %v12403_v2  ;;  %v9325_v33 = vor.u32 %v11249_v9, %v9324_v47  ;;  %v11141_v23 = vld [vmem:[#allocation5 + $0xac] sm:$0xf0] }
 0x322   : > { %v4062_v22 = vmax.f32 %v3079_v58, 0.0 }
 0x323   : > { %3451 = vmatpush.bf16.msra.mxu1 %v9325_v33 }
 0x324   : > { %v3127_v35 = vpop.f32.mrf.mxu2  ;;  %v3176_v7 = vpop.f32.mrf.mxu3 }
 0x325   : > { %v3128_v44 = vadd.f32 %v3127_v35, %v12917_v28  ;;  %v3031_v34 = vpop.f32.mrf.mxu0  ;;  %v3080_v62 = vpop.f32.mrf.mxu1 }
 0x326   : > { %v3032_v16 = vadd.f32 %v3031_v34, %v2983_v27  ;;  %v8892_v34 = vld [vmem:[#allocation5 + $0x80] sm:$0xf] }
 0x327   : > { %v12973_v4 = vadd.f32 %v3176_v7, %v3128_v44  ;;  %v8893_v9 = vor.u32 %v11141_v23, %v8892_v34  ;;  %v2991_v34 = vadd.f32 %v12877_v18, %v12907_v55  ;;  %v9612_v18 = vld [vmem:[#allocation5 + $0x620] sm:$0xf] }
 0x328   : > { %v3081_v60 = vadd.f32 %v3080_v62, %v3032_v16  ;;  %v11135_v16 = vld [vmem:[#allocation5 + $0x84] sm:$0xf]  ;;  %v2988_v62 = vadd.f32 %v12868_v36, %v12907_v55 }
 0x329   : > { %3403 = vmatpush.bf16.msra.mxu0 %v8893_v9 }
 0x32a   : > { %v4074_v57 = vmax.f32 %v3081_v60, 0.0  ;;  %v8894_v60 = vld [vmem:[#allocation5 + $0xb0] sm:$0xf0] }
 0x32c   : > { %v3129_v10 = vpop.f32.mrf.mxu2  ;;  %v12977_v35 = vpack.c.bf16 %v4074_v57, %v4062_v22  ;;  %v3178_v29 = vpop.f32.mrf.mxu3  ;;  %v11333_v57 = vld [vmem:[#allocation5 + $0x6ac] sm:$0xf0] }
 0x32d   : > { %v3130_v8 = vadd.f32 %v3129_v10, %v12917_v28  ;;  %v3034_v27 = vpop.f32.mrf.mxu0  ;;  %v3083_v31 = vpop.f32.mrf.mxu1  ;;  %v9661_v58 = vor.u32 %v11333_v57, %v9660_v14  ;;  %v8897_v10 = vor.u32 %v11135_v16, %v8894_v60 }
 0x32e   : > { %14946 = vst [vmem:[#allocation62_spill] sm:$0xff] %v12977_v35  ;;  %v3035_v48 = vadd.f32 %v3034_v27, %v2986_v15 }
 0x32f   : > { %v12980_v44 = vadd.f32 %v3178_v29, %v3130_v8  ;;  %3229 = vmatmul.bf16.gmra.mxu0 %v12419_v26  ;;  %3501 = vmatpush.bf16.msra.mxu2 %v9661_v58 }
 0x330   : > { %v3084_v7 = vadd.f32 %v3083_v31, %v3035_v48  ;;  %3278 = vmatmul.bf16.gmra.mxu1 %v12415_v24  ;;  %3550 = vmatpush.bf16.msra.mxu3 %v8897_v10  ;;  %v9276_v48 = vld [vmem:[#allocation5 + $0x380] sm:$0xf]  ;;  %v11237_v31 = vld [vmem:[#allocation5 + $0x3ac] sm:$0xf0] }
 0x331   : > { %3327 = vmatmul.bf16.gmra.mxu2 %v12417_v25  ;;  %3376 = vmatmul.bf16.gmra.mxu3 %v12419_v26  ;;  %v9277_v57 = vor.u32 %v11237_v31, %v9276_v48  ;;  %v11129_v10 = vld [vmem:[#allocation5 + $0x4c] sm:$0xf0] }
 0x332   : > { %v4086_v36 = vmax.f32 %v3084_v7, 0.0 }
 0x333   : > { %3452 = vmatpush.bf16.msra.mxu1 %v9277_v57 }
 0x334   : > { %v3132_v47 = vpop.f32.mrf.mxu2  ;;  %v3181_v22 = vpop.f32.mrf.mxu3 }
 0x335   : > { %v3133_v33 = vadd.f32 %v3132_v47, %v12917_v28  ;;  %v3036_v15 = vpop.f32.mrf.mxu0  ;;  %v3085_v29 = vpop.f32.mrf.mxu1 }
 0x336   : > { %v3037_v8 = vadd.f32 %v3036_v15, %v2988_v62  ;;  %v8844_v15 = vld [vmem:[#allocation5 + $0x20] sm:$0xf] }
 0x337   : > { %v12989_v27 = vadd.f32 %v3181_v22, %v3133_v33  ;;  %v8845_v31 = vor.u32 %v11129_v10, %v8844_v15  ;;  %v2996_v15 = vadd.f32 %v12889_v61, %v12907_v55  ;;  %v9188_v61 = vld [vmem:[#allocation5 + $0x2c8] sm:$0xf] }
 0x338   : > { %v3086_v14 = vadd.f32 %v3085_v29, %v3037_v8  ;;  %v11123_v8 = vld [vmem:[#allocation5 + $0x24] sm:$0xf]  ;;  %v2993_v29 = vadd.f32 %v12880_v32, %v12907_v55 }
 0x339   : > { %3404 = vmatpush.bf16.msra.mxu0 %v8845_v31 }
 0x33a   : > { %v4098_v35 = vmax.f32 %v3086_v14, 0.0  ;;  %v8846_v14 = vld [vmem:[#allocation5 + $0x50] sm:$0xf0] }
 0x33c   : > { %v3134_v23 = vpop.f32.mrf.mxu2  ;;  %v12993_v47 = vpack.c.bf16 %v4098_v35, %v4086_v36  ;;  %v3183_v16 = vpop.f32.mrf.mxu3  ;;  %v11321_v35 = vld [vmem:[#allocation5 + $0x64c] sm:$0xf0] }
 0x33d   : > { %v3135_v58 = vadd.f32 %v3134_v23, %v12917_v28  ;;  %v3039_v62 = vpop.f32.mrf.mxu0  ;;  %v3088_v60 = vpop.f32.mrf.mxu1  ;;  %v9613_v7 = vor.u32 %v11321_v35, %v9612_v18  ;;  %v8849_v23 = vor.u32 %v11123_v8, %v8846_v14 }
 0x33e   : > { %14947 = vst [vmem:[#allocation63_spill] sm:$0xff] %v12993_v47  ;;  %v3040_v9 = vadd.f32 %v3039_v62, %v2991_v34 }
 0x33f   : > { %v12996_v33 = vadd.f32 %v3183_v16, %v3135_v58  ;;  %3234 = vmatmul.bf16.gmra.mxu0 %v12435_v53  ;;  %3502 = vmatpush.bf16.msra.mxu2 %v9613_v7 }
 0x340   : > { %v3089_v22 = vadd.f32 %v3088_v60, %v3040_v9  ;;  %3283 = vmatmul.bf16.gmra.mxu1 %v12431_v49  ;;  %3551 = vmatpush.bf16.msra.mxu3 %v8849_v23  ;;  %v9228_v9 = vld [vmem:[#allocation5 + $0x320] sm:$0xf]  ;;  %v11225_v60 = vld [vmem:[#allocation5 + $0x34c] sm:$0xf0]  ;;  %v9566_v23 = vld [vmem:[#allocation5 + $0x5f0] sm:$0xf0] }
 0x341   : > { %3332 = vmatmul.bf16.gmra.mxu2 %v12433_v50  ;;  %3381 = vmatmul.bf16.gmra.mxu3 %v12435_v53  ;;  %v9229_v35 = vor.u32 %v11225_v60, %v9228_v9 }
 0x342   : > { %v4110_v32 = vmax.f32 %v3089_v22, 0.0 }
 0x343   : > { %3453 = vmatpush.bf16.msra.mxu1 %v9229_v35 }
 0x344   : > { %v3137_v48 = vpop.f32.mrf.mxu2  ;;  %v3186_v36 = vpop.f32.mrf.mxu3 }
 0x345   : > { %v3138_v57 = vadd.f32 %v3137_v48, %v12917_v28  ;;  %v3041_v34 = vpop.f32.mrf.mxu0  ;;  %v3090_v16 = vpop.f32.mrf.mxu1 }
 0x346   : > { %v3042_v58 = vadd.f32 %v3041_v34, %v2993_v29  ;;  %v11303_v34 = vld [vmem:[#allocation5 + $0x5c4] sm:$0xf] }
 0x347   : > { %v13005_v62 = vadd.f32 %v3186_v36, %v3138_v57  ;;  %v9569_v60 = vor.u32 %v11303_v34, %v9566_v23  ;;  %v3001_v34 = vadd.f32 %v12901_v37, %v12907_v55  ;;  %v9140_v37 = vld [vmem:[#allocation5 + $0x268] sm:$0xf] }
 0x348   : > { %v3091_v18 = vadd.f32 %v3090_v16, %v3042_v58  ;;  %v9572_v58 = vld [vmem:[#allocation5 + $0x5c8] sm:$0xf]  ;;  %v2998_v16 = vadd.f32 %v12892_v54, %v12907_v55 }
 0x349   : > { %3593 = vmatpush.bf16.msrb.mxu0 %v9569_v60 }
 0x34a   : > { %v4122_v47 = vmax.f32 %v3091_v18, 0.0  ;;  %v11310_v18 = vld [vmem:[#allocation5 + $0x5f4] sm:$0xf0] }
 0x34c   : > { %v3139_v10 = vpop.f32.mrf.mxu2  ;;  %v13009_v48 = vpack.c.bf16 %v4122_v47, %v4110_v32  ;;  %v3188_v8 = vpop.f32.mrf.mxu3  ;;  %v11214_v47 = vld [vmem:[#allocation5 + $0x2f4] sm:$0xf0] }
 0x34d   : > { %v3140_v7 = vadd.f32 %v3139_v10, %v12917_v28  ;;  %v3044_v29 = vpop.f32.mrf.mxu0  ;;  %v3093_v14 = vpop.f32.mrf.mxu1  ;;  %v9189_v22 = vor.u32 %v11214_v47, %v9188_v61  ;;  %v9573_v10 = vor.u32 %v11310_v18, %v9572_v58  ;;  %v9950_v61 = vld [vmem:[#allocation5 + $0x8f0] sm:$0xf0] }
 0x34e   : > { %14948 = vst [vmem:[#allocation64_spill] sm:$0xff] %v13009_v48  ;;  %v3045_v31 = vadd.f32 %v3044_v29, %v2996_v15 }
 0x34f   : > { %v13012_v57 = vadd.f32 %v3188_v8, %v3140_v7  ;;  %3239 = vmatmul.bf16.gmra.mxu0 %v12451_v13  ;;  %3691 = vmatpush.bf16.msrb.mxu2 %v9189_v22 }
 0x350   : > { %v3094_v36 = vadd.f32 %v3093_v14, %v3045_v31  ;;  %3288 = vmatmul.bf16.gmra.mxu1 %v12447_v11  ;;  %3740 = vmatpush.bf16.msrb.mxu3 %v9573_v10  ;;  %v11399_v14 = vld [vmem:[#allocation5 + $0x8c4] sm:$0xf] }
 0x351   : > { %3337 = vmatmul.bf16.gmra.mxu2 %v12449_v12  ;;  %3386 = vmatmul.bf16.gmra.mxu3 %v12451_v13  ;;  %v9953_v48 = vor.u32 %v11399_v14, %v9950_v61  ;;  %v11298_v14 = vld [vmem:[#allocation5 + $0x594] sm:$0xf0] }
 0x352   : > { %v4134_v47 = vmax.f32 %v3094_v36, 0.0  ;;  %v11291_v36 = vld [vmem:[#allocation5 + $0x564] sm:$0xf] }
 0x353   : > { %3642 = vmatpush.bf16.msrb.mxu1 %v9953_v48  ;;  %v11202_v48 = vld [vmem:[#allocation5 + $0x294] sm:$0xf0] }
 0x354   : > { %v3142_v9 = vpop.f32.mrf.mxu2  ;;  %v3191_v32 = vpop.f32.mrf.mxu3 }
 0x355   : > { %v3143_v35 = vadd.f32 %v3142_v9, %v12917_v28  ;;  %v3046_v15 = vpop.f32.mrf.mxu0  ;;  %v3095_v8 = vpop.f32.mrf.mxu1 }
 0x356   : > { %v3047_v7 = vadd.f32 %v3046_v15, %v2998_v16  ;;  %v3003_v15 = vadd.f32 %v12911_v17, %v12907_v55  ;;  %v11387_v55 = vld [vmem:[#allocation5 + $0x864] sm:$0xf]  ;;  %v9902_v17 = vld [vmem:[#allocation5 + $0x890] sm:$0xf0] }
 0x357   : > { %v13021_v29 = vadd.f32 %v3191_v32, %v3143_v35 }
 0x358   : > { %v3096_v31 = vadd.f32 %v3095_v8, %v3047_v7  ;;  %v9141_v7 = vor.u32 %v11202_v48, %v9140_v37  ;;  %v9518_v8 = vld [vmem:[#allocation5 + $0x590] sm:$0xf0]  ;;  %v9905_v48 = vor.u32 %v11387_v55, %v9902_v17 }
 0x35a   : > { %v4146_v54 = vmax.f32 %v3096_v31, 0.0  ;;  %v9524_v31 = vld [vmem:[#allocation5 + $0x568] sm:$0xf]  ;;  %3692 = vmatpush.bf16.msrb.mxu2 %v9141_v7  ;;  %3643 = vmatpush.bf16.msrb.mxu1 %v9905_v48  ;;  %v13043_v7 = vperm.slane %v12904_v59, 7 }
 0x35c   : > { %v3144_v23 = vpop.f32.mrf.mxu2  ;;  %v13025_v9 = vpack.c.bf16 %v4146_v54, %v4134_v47  ;;  %v3193_v58 = vpop.f32.mrf.mxu3 }
 0x35d   : > { %v3145_v22 = vadd.f32 %v3144_v23, %v12917_v28  ;;  %v3049_v16 = vpop.f32.mrf.mxu0  ;;  %v3098_v18 = vpop.f32.mrf.mxu1  ;;  %v9525_v23 = vor.u32 %v11298_v14, %v9524_v31 }
 0x35e   : > { %14949 = vst [vmem:[#allocation65_spill] sm:$0xff] %v13025_v9  ;;  %v3050_v60 = vadd.f32 %v3049_v16, %v3001_v34  ;;  %v9521_v34 = vor.u32 %v11291_v36, %v9518_v8 }
 0x35f   : > { %v13028_v35 = vadd.f32 %v3193_v58, %v3145_v22  ;;  %3244 = vmatmul.bf16.gmra.mxu0 %v12467_v43  ;;  %3741 = vmatpush.bf16.msrb.mxu3 %v9525_v23 }
 0x360   : > { %v3099_v32 = vadd.f32 %v3098_v18, %v3050_v60  ;;  %3293 = vmatmul.bf16.gmra.mxu1 %v12463_v38  ;;  %3594 = vmatpush.bf16.msrb.mxu0 %v9521_v34  ;;  %v9476_v34 = vld [vmem:[#allocation5 + $0x508] sm:$0xf] }
 0x361   : > { %3342 = vmatmul.bf16.gmra.mxu2 %v12465_v39  ;;  %3391 = vmatmul.bf16.gmra.mxu3 %v12467_v43 }
 0x362   : > { %v4158_v18 = vmax.f32 %v3099_v32, 0.0 }
 0x364   : > { %v3147_v10 = vpop.f32.mrf.mxu2  ;;  %v3196_v47 = vpop.f32.mrf.mxu3 }
 0x365   : > { %v3148_v61 = vadd.f32 %v3147_v10, %v12917_v28  ;;  %v3051_v54 = vpop.f32.mrf.mxu0  ;;  %v3100_v58 = vpop.f32.mrf.mxu1 }
 0x366   : > { %v3052_v22 = vadd.f32 %v3051_v54, %v3003_v15  ;;  %v9470_v54 = vld [vmem:[#allocation5 + $0x530] sm:$0xf0] }
 0x367   : > { %v13037_v16 = vadd.f32 %v3196_v47, %v3148_v61  ;;  %v11279_v47 = vld [vmem:[#allocation5 + $0x504] sm:$0xf] }
 0x368   : > { %v3101_v60 = vadd.f32 %v3100_v58, %v3052_v22  ;;  %v9473_v22 = vor.u32 %v11279_v47, %v9470_v54 }
 0x36a   : > { %v4170_v37 = vmax.f32 %v3101_v60, 0.0  ;;  %3595 = vmatpush.bf16.msrb.mxu0 %v9473_v22 }
 0x36c   : > { %v3149_v9 = vpop.f32.mrf.mxu2  ;;  %v13039_v10 = vpack.c.bf16 %v4170_v37, %v4158_v18  ;;  %v3198_v8 = vpop.f32.mrf.mxu3 }
 0x36d   : > { %v3150_v36 = vadd.f32 %v3149_v9, %v12917_v28  ;;  %v3210_v15 = vpop.f32.mrf.mxu0  ;;  %v3259_v14 = vpop.f32.mrf.mxu1  ;;  %v9092_v28 = vld [vmem:[#allocation5 + $0x208] sm:$0xf]  ;;  %v11190_v9 = vld [vmem:[#allocation5 + $0x234] sm:$0xf0] }
 0x36e   : > { %14950 = vst [vmem:[#allocation66_spill] sm:$0xff] %v13039_v10  ;;  %v3211_v31 = vadd.f32 %v3210_v15, %v12925_v30  ;;  %v3260_v32 = vadd.f32 %v3259_v14, %v13043_v7  ;;  %v9093_v59 = vor.u32 %v11190_v9, %v9092_v28  ;;  %v11286_v30 = vld [vmem:[#allocation5 + $0x534] sm:$0xf0]  ;;  %v11375_v15 = vld [vmem:[#allocation5 + $0x804] sm:$0xf] }
 0x36f   : > { %v13046_v61 = vadd.f32 %v3198_v8, %v3150_v36  ;;  %3405 = vmatmul.bf16.vlgmr.msra.gmra.mxu0 %v12351_v46  ;;  %v9477_v58 = vor.u32 %v11286_v30, %v9476_v34  ;;  %v9854_v14 = vld [vmem:[#allocation5 + $0x830] sm:$0xf0] }
 0x370   : > { %3454 = vmatmul.bf16.vlgmr.msra.gmra.mxu1 %v12353_v51  ;;  %3693 = vmatpush.bf16.msrb.mxu2 %v9093_v59  ;;  %v3991_v36 = vmax.f32 %v3211_v31, 0.0  ;;  %v9857_v9 = vor.u32 %v11375_v15, %v9854_v14 }
 0x371   : > { %3503 = vmatmul.bf16.vlgmr.msra.gmra.mxu2 %v12355_v52  ;;  %3552 = vmatmul.bf16.vlgmr.msra.gmra.mxu3 %v12351_v46 }
 0x372   : > { %3742 = vmatpush.bf16.msrb.mxu3 %v9477_v58  ;;  %3644 = vmatpush.bf16.msrb.mxu1 %v9857_v9 }
 0x374   : > { %v3308_v23 = vpop.f32.mrf.mxu2  ;;  %v3357_v55 = vpop.f32.mrf.mxu3 }
 0x375   : > { %v3309_v60 = vadd.f32 %v3308_v23, %v3260_v32  ;;  %v3212_v17 = vpop.f32.mrf.mxu0  ;;  %v3261_v37 = vpop.f32.mrf.mxu1 }
 0x376   : > { %v3213_v18 = vadd.f32 %v3212_v17, %v12932_v63  ;;  %v3262_v47 = vadd.f32 %v3261_v37, %v13043_v7  ;;  %v11267_v17 = vld [vmem:[#allocation5 + $0x4a4] sm:$0xf]  ;;  %v9422_v37 = vld [vmem:[#allocation5 + $0x4d0] sm:$0xf0] }
 0x377   : > { %v3358_v48 = vadd.f32 %v3357_v55, %v3309_v60  ;;  %v9044_v60 = vld [vmem:[#allocation5 + $0x1a8] sm:$0xf]  ;;  %v11178_v55 = vld [vmem:[#allocation5 + $0x1d4] sm:$0xf0] }
 0x378   : > { %v4003_v8 = vmax.f32 %v3213_v18, 0.0 }
 0x379   : > { %v3992_v31 = vmax.f32 %v3358_v48, 0.0  ;;  %v9425_v48 = vor.u32 %v11267_v17, %v9422_v37 }
 0x37a   : > { %v13054_v28 = vpack.c.bf16 %v4003_v8, %v3991_v36  ;;  %v9428_v36 = vld [vmem:[#allocation5 + $0x4a8] sm:$0xf]  ;;  %v11274_v8 = vld [vmem:[#allocation5 + $0x4d4] sm:$0xf0] }
 0x37b   : > { %v9429_v14 = vor.u32 %v11274_v8, %v9428_v36  ;;  %3596 = vmatpush.bf16.msrb.mxu0 %v9425_v48 }
 0x37c   : > { %14951 = vst [vmem:[#allocation67_spill] sm:$0xff] %v13054_v28  ;;  %v3310_v54 = vpop.f32.mrf.mxu2  ;;  %v3359_v34 = vpop.f32.mrf.mxu3 }
 0x37d   : > { %v3311_v32 = vadd.f32 %v3310_v54, %v3262_v47  ;;  %v3215_v59 = vpop.f32.mrf.mxu0  ;;  %v3264_v30 = vpop.f32.mrf.mxu1  ;;  %3743 = vmatpush.bf16.msrb.mxu3 %v9429_v14 }
 0x37e   : > { %v3216_v63 = vadd.f32 %v3215_v59, %v12941_v3  ;;  %v3265_v58 = vadd.f32 %v3264_v30, %v13043_v7  ;;  %v9045_v3 = vor.u32 %v11178_v55, %v9044_v60 }
 0x37f   : > { %v3360_v23 = vadd.f32 %v3359_v34, %v3311_v32  ;;  %3410 = vmatmul.bf16.gmra.mxu0 %v12367_v19 }
 0x380   : > { %3459 = vmatmul.bf16.gmra.mxu1 %v12369_v20  ;;  %3694 = vmatpush.bf16.msrb.mxu2 %v9045_v3  ;;  %v4015_v30 = vmax.f32 %v3216_v63, 0.0 }
 0x381   : > { %v4004_v22 = vmax.f32 %v3360_v23, 0.0  ;;  %3508 = vmatmul.bf16.gmra.mxu2 %v12371_v21  ;;  %3557 = vmatmul.bf16.gmra.mxu3 %v12367_v19 }
 0x383   : > { %v13063_v18 = vpack.c.bf16 %v4004_v22, %v3992_v31  ;;  %v11363_v31 = vld [vmem:[#allocation5 + $0x7a4] sm:$0xf]  ;;  %v9806_v22 = vld [vmem:[#allocation5 + $0x7d0] sm:$0xf0] }
 0x384   : > { %v3313_v15 = vpop.f32.mrf.mxu2  ;;  %v3362_v47 = vpop.f32.mrf.mxu3  ;;  %v9809_v60 = vor.u32 %v11363_v31, %v9806_v22 }
 0x385   : > { %14952 = vst [vmem:[#allocation68_spill] sm:$0xff] %v13063_v18  ;;  %v3314_v9 = vadd.f32 %v3313_v15, %v3265_v58  ;;  %v3217_v54 = vpop.f32.mrf.mxu0  ;;  %v3266_v34 = vpop.f32.mrf.mxu1 }
 0x386   : > { %v3218_v32 = vadd.f32 %v3217_v54, %v12948_v45  ;;  %v3267_v17 = vadd.f32 %v3266_v34, %v13043_v7  ;;  %3645 = vmatpush.bf16.msrb.mxu1 %v9809_v60  ;;  %v11255_v54 = vld [vmem:[#allocation5 + $0x444] sm:$0xf]  ;;  %v9374_v34 = vld [vmem:[#allocation5 + $0x470] sm:$0xf0] }
 0x387   : > { %v3363_v59 = vadd.f32 %v3362_v47, %v3314_v9  ;;  %v8996_v9 = vld [vmem:[#allocation5 + $0x148] sm:$0xf]  ;;  %v11166_v47 = vld [vmem:[#allocation5 + $0x174] sm:$0xf0] }
 0x388   : > { %v4027_v23 = vmax.f32 %v3218_v32, 0.0  ;;  %v8997_v32 = vor.u32 %v11166_v47, %v8996_v9  ;;  %v11351_v9 = vld [vmem:[#allocation5 + $0x744] sm:$0xf]  ;;  %v9758_v47 = vld [vmem:[#allocation5 + $0x770] sm:$0xf0] }
 0x389   : > { %v4016_v63 = vmax.f32 %v3363_v59, 0.0  ;;  %v9377_v59 = vor.u32 %v11255_v54, %v9374_v34  ;;  %v9761_v10 = vor.u32 %v11351_v9, %v9758_v47 }
 0x38a   : > { %v13066_v55 = vpack.c.bf16 %v4027_v23, %v4015_v30  ;;  %v11262_v30 = vld [vmem:[#allocation5 + $0x474] sm:$0xf0]  ;;  %3695 = vmatpush.bf16.msrb.mxu2 %v8997_v32 }
 0x38b   : > { %3597 = vmatpush.bf16.msrb.mxu0 %v9377_v59  ;;  %3646 = vmatpush.bf16.msrb.mxu1 %v9761_v10  ;;  %v8948_v10 = vld [vmem:[#allocation5 + $0xe8] sm:$0xf] }
 0x38c   : > { %14953 = vst [vmem:[#allocation69_spill] sm:$0xff] %v13066_v55  ;;  %v3315_v37 = vpop.f32.mrf.mxu2  ;;  %v3364_v36 = vpop.f32.mrf.mxu3 }
 0x38d   : > { %v3316_v58 = vadd.f32 %v3315_v37, %v3267_v17  ;;  %v3220_v3 = vpop.f32.mrf.mxu0  ;;  %v3269_v8 = vpop.f32.mrf.mxu1 }
 0x38e   : > { %v3221_v45 = vadd.f32 %v3220_v3, %v12957_v5  ;;  %v3270_v14 = vadd.f32 %v3269_v8, %v13043_v7  ;;  %v9380_v5 = vld [vmem:[#allocation5 + $0x448] sm:$0xf] }
 0x38f   : > { %v3365_v15 = vadd.f32 %v3364_v36, %v3316_v58  ;;  %3415 = vmatmul.bf16.gmra.mxu0 %v12383_v40  ;;  %v9381_v22 = vor.u32 %v11262_v30, %v9380_v5 }
 0x390   : > { %3464 = vmatmul.bf16.gmra.mxu1 %v12385_v41  ;;  %v4039_v8 = vmax.f32 %v3221_v45, 0.0 }
 0x391   : > { %v4028_v48 = vmax.f32 %v3365_v15, 0.0  ;;  %3513 = vmatmul.bf16.gmra.mxu2 %v12387_v42  ;;  %3562 = vmatmul.bf16.gmra.mxu3 %v12383_v40 }
 0x392   : > { %3744 = vmatpush.bf16.msrb.mxu3 %v9381_v22  ;;  %v11154_v22 = vld [vmem:[#allocation5 + $0x114] sm:$0xf0] }
 0x393   : > { %v13075_v23 = vpack.c.bf16 %v4028_v48, %v4016_v63 }
 0x394   : > { %v3318_v31 = vpop.f32.mrf.mxu2  ;;  %v3367_v17 = vpop.f32.mrf.mxu3 }
 0x395   : > { %14954 = vst [vmem:[#allocation70_spill] sm:$0xff] %v13075_v23  ;;  %v3319_v60 = vadd.f32 %v3318_v31, %v3270_v14  ;;  %v3222_v37 = vpop.f32.mrf.mxu0  ;;  %v3271_v36 = vpop.f32.mrf.mxu1 }
 0x396   : > { %v3223_v58 = vadd.f32 %v3222_v37, %v12964_v6  ;;  %v3272_v48 = vadd.f32 %v3271_v36, %v13043_v7  ;;  %v9326_v37 = vld [vmem:[#allocation5 + $0x410] sm:$0xf0] }
 0x397   : > { %v3368_v3 = vadd.f32 %v3367_v17, %v3319_v60  ;;  %v11243_v60 = vld [vmem:[#allocation5 + $0x3e4] sm:$0xf]  ;;  %v8949_v17 = vor.u32 %v11154_v22, %v8948_v10  ;;  %v9710_v10 = vld [vmem:[#allocation5 + $0x710] sm:$0xf0] }
 0x398   : > { %v4051_v15 = vmax.f32 %v3223_v58, 0.0  ;;  %v11250_v58 = vld [vmem:[#allocation5 + $0x414] sm:$0xf0] }
 0x399   : > { %v4040_v45 = vmax.f32 %v3368_v3, 0.0  ;;  %v9329_v3 = vor.u32 %v11243_v60, %v9326_v37  ;;  %3696 = vmatpush.bf16.msrb.mxu2 %v8949_v17 }
 0x39a   : > { %v13078_v63 = vpack.c.bf16 %v4051_v15, %v4039_v8 }
 0x39b   : > { %3598 = vmatpush.bf16.msrb.mxu0 %v9329_v3 }
 0x39c   : > { %14955 = vst [vmem:[#allocation71_spill] sm:$0xff] %v13078_v63  ;;  %v3320_v54 = vpop.f32.mrf.mxu2  ;;  %v3369_v34 = vpop.f32.mrf.mxu3 }
 0x39d   : > { %v3321_v14 = vadd.f32 %v3320_v54, %v3272_v48  ;;  %v3225_v32 = vpop.f32.mrf.mxu0  ;;  %v3274_v5 = vpop.f32.mrf.mxu1 }
 0x39e   : > { %v3226_v6 = vadd.f32 %v3225_v32, %v12973_v4  ;;  %v3275_v59 = vadd.f32 %v3274_v5, %v13043_v7  ;;  %v9332_v4 = vld [vmem:[#allocation5 + $0x3e8] sm:$0xf] }
 0x39f   : > { %v3370_v30 = vadd.f32 %v3369_v34, %v3321_v14  ;;  %3420 = vmatmul.bf16.gmra.mxu0 %v12399_v0  ;;  %v9333_v15 = vor.u32 %v11250_v58, %v9332_v4 }
 0x3a0   : > { %3469 = vmatmul.bf16.gmra.mxu1 %v12401_v1  ;;  %v4063_v32 = vmax.f32 %v3226_v6, 0.0 }
 0x3a1   : > { %v4052_v31 = vmax.f32 %v3370_v30, 0.0  ;;  %3518 = vmatmul.bf16.gmra.mxu2 %v12403_v2  ;;  %3567 = vmatmul.bf16.gmra.mxu3 %v12399_v0  ;;  %v11339_v30 = vld [vmem:[#allocation5 + $0x6e4] sm:$0xf] }
 0x3a2   : > { %3745 = vmatpush.bf16.msrb.mxu3 %v9333_v15  ;;  %v9713_v22 = vor.u32 %v11339_v30, %v9710_v10  ;;  %v8900_v15 = vld [vmem:[#allocation5 + $0x88] sm:$0xf] }
 0x3a3   : > { %v13087_v36 = vpack.c.bf16 %v4052_v31, %v4040_v45 }
 0x3a4   : > { %v3323_v8 = vpop.f32.mrf.mxu2  ;;  %v3372_v47 = vpop.f32.mrf.mxu3  ;;  %3647 = vmatpush.bf16.msrb.mxu1 %v9713_v22 }
 0x3a5   : > { %14956 = vst [vmem:[#allocation72_spill] sm:$0xff] %v13087_v36  ;;  %v3324_v9 = vadd.f32 %v3323_v8, %v3275_v59  ;;  %v3227_v48 = vpop.f32.mrf.mxu0  ;;  %v3276_v14 = vpop.f32.mrf.mxu1 }
 0x3a6   : > { %v3228_v54 = vadd.f32 %v3227_v48, %v12980_v44  ;;  %v3277_v31 = vadd.f32 %v3276_v14, %v13043_v7  ;;  %v11238_v14 = vld [vmem:[#allocation5 + $0x3b4] sm:$0xf0] }
 0x3a7   : > { %v3373_v34 = vadd.f32 %v3372_v47, %v3324_v9  ;;  %v11142_v9 = vld [vmem:[#allocation5 + $0xb4] sm:$0xf0]  ;;  %v11231_v47 = vld [vmem:[#allocation5 + $0x384] sm:$0xf] }
 0x3a8   : > { %v4075_v5 = vmax.f32 %v3228_v54, 0.0  ;;  %v8901_v48 = vor.u32 %v11142_v9, %v8900_v15  ;;  %v9278_v54 = vld [vmem:[#allocation5 + $0x3b0] sm:$0xf0] }
 0x3a9   : > { %v4064_v6 = vmax.f32 %v3373_v34, 0.0  ;;  %v9281_v34 = vor.u32 %v11231_v47, %v9278_v54  ;;  %v9662_v15 = vld [vmem:[#allocation5 + $0x6b0] sm:$0xf0] }
 0x3aa   : > { %v13090_v45 = vpack.c.bf16 %v4075_v5, %v4063_v32  ;;  %3697 = vmatpush.bf16.msrb.mxu2 %v8901_v48 }
 0x3ab   : > { %3599 = vmatpush.bf16.msrb.mxu0 %v9281_v34 }
 0x3ac   : > { %14957 = vst [vmem:[#allocation73_spill] sm:$0xff] %v13090_v45  ;;  %v3325_v60 = vpop.f32.mrf.mxu2  ;;  %v3374_v37 = vpop.f32.mrf.mxu3 }
 0x3ad   : > { %v3326_v59 = vadd.f32 %v3325_v60, %v3277_v31  ;;  %v3230_v17 = vpop.f32.mrf.mxu0  ;;  %v3279_v4 = vpop.f32.mrf.mxu1 }
 0x3ae   : > { %v3231_v44 = vadd.f32 %v3230_v17, %v12989_v27  ;;  %v3280_v3 = vadd.f32 %v3279_v4, %v13043_v7  ;;  %v9284_v27 = vld [vmem:[#allocation5 + $0x388] sm:$0xf] }
 0x3af   : > { %v3375_v58 = vadd.f32 %v3374_v37, %v3326_v59  ;;  %3425 = vmatmul.bf16.gmra.mxu0 %v12415_v24  ;;  %v9285_v30 = vor.u32 %v11238_v14, %v9284_v27 }
 0x3b0   : > { %3474 = vmatmul.bf16.gmra.mxu1 %v12417_v25  ;;  %v4087_v17 = vmax.f32 %v3231_v44, 0.0 }
 0x3b1   : > { %v4076_v8 = vmax.f32 %v3375_v58, 0.0  ;;  %3523 = vmatmul.bf16.gmra.mxu2 %v12419_v26  ;;  %3572 = vmatmul.bf16.gmra.mxu3 %v12415_v24  ;;  %v11327_v58 = vld [vmem:[#allocation5 + $0x684] sm:$0xf] }
 0x3b2   : > { %3746 = vmatpush.bf16.msrb.mxu3 %v9285_v30  ;;  %v9665_v9 = vor.u32 %v11327_v58, %v9662_v15  ;;  %v8852_v30 = vld [vmem:[#allocation5 + $0x28] sm:$0xf] }
 0x3b3   : > { %v13099_v32 = vpack.c.bf16 %v4076_v8, %v4064_v6 }
 0x3b4   : > { %v3328_v5 = vpop.f32.mrf.mxu2  ;;  %v3377_v22 = vpop.f32.mrf.mxu3  ;;  %3648 = vmatpush.bf16.msrb.mxu1 %v9665_v9 }
 0x3b5   : > { %14958 = vst [vmem:[#allocation74_spill] sm:$0xff] %v13099_v32  ;;  %v3329_v10 = vadd.f32 %v3328_v5, %v3280_v3  ;;  %v3232_v31 = vpop.f32.mrf.mxu0  ;;  %v3281_v59 = vpop.f32.mrf.mxu1 }
 0x3b6   : > { %v3233_v60 = vadd.f32 %v3232_v31, %v12996_v33  ;;  %v3282_v8 = vadd.f32 %v3281_v59, %v13043_v7  ;;  %v11226_v59 = vld [vmem:[#allocation5 + $0x354] sm:$0xf0] }
 0x3b7   : > { %v3378_v37 = vadd.f32 %v3377_v22, %v3329_v10  ;;  %v11130_v10 = vld [vmem:[#allocation5 + $0x54] sm:$0xf0]  ;;  %v11219_v22 = vld [vmem:[#allocation5 + $0x324] sm:$0xf] }
 0x3b8   : > { %v4099_v4 = vmax.f32 %v3233_v60, 0.0  ;;  %v8853_v31 = vor.u32 %v11130_v10, %v8852_v30  ;;  %v9230_v60 = vld [vmem:[#allocation5 + $0x350] sm:$0xf0] }
 0x3b9   : > { %v4088_v44 = vmax.f32 %v3378_v37, 0.0  ;;  %v9233_v37 = vor.u32 %v11219_v22, %v9230_v60  ;;  %v9614_v30 = vld [vmem:[#allocation5 + $0x650] sm:$0xf0] }
 0x3ba   : > { %v13102_v6 = vpack.c.bf16 %v4099_v4, %v4087_v17  ;;  %3698 = vmatpush.bf16.msrb.mxu2 %v8853_v31 }
 0x3bb   : > { %3600 = vmatpush.bf16.msrb.mxu0 %v9233_v37 }
 0x3bc   : > { %14959 = vst [vmem:[#allocation75_spill] sm:$0xff] %v13102_v6  ;;  %v3330_v47 = vpop.f32.mrf.mxu2  ;;  %v3379_v54 = vpop.f32.mrf.mxu3 }
 0x3bd   : > { %v3331_v3 = vadd.f32 %v3330_v47, %v3282_v8  ;;  %v3235_v48 = vpop.f32.mrf.mxu0  ;;  %v3284_v27 = vpop.f32.mrf.mxu1 }
 0x3be   : > { %v3236_v33 = vadd.f32 %v3235_v48, %v13005_v62  ;;  %v3285_v34 = vadd.f32 %v3284_v27, %v13043_v7  ;;  %v9236_v62 = vld [vmem:[#allocation5 + $0x328] sm:$0xf] }
 0x3bf   : > { %v3380_v14 = vadd.f32 %v3379_v54, %v3331_v3  ;;  %3430 = vmatmul.bf16.gmra.mxu0 %v12431_v49  ;;  %v9237_v58 = vor.u32 %v11226_v59, %v9236_v62 }
 0x3c0   : > { %3479 = vmatmul.bf16.gmra.mxu1 %v12433_v50  ;;  %v4111_v48 = vmax.f32 %v3236_v33, 0.0 }
 0x3c1   : > { %v4100_v5 = vmax.f32 %v3380_v14, 0.0  ;;  %3528 = vmatmul.bf16.gmra.mxu2 %v12435_v53  ;;  %3577 = vmatmul.bf16.gmra.mxu3 %v12431_v49  ;;  %v11315_v14 = vld [vmem:[#allocation5 + $0x624] sm:$0xf] }
 0x3c2   : > { %3747 = vmatpush.bf16.msrb.mxu3 %v9237_v58  ;;  %v9617_v10 = vor.u32 %v11315_v14, %v9614_v30  ;;  %v11304_v58 = vld [vmem:[#allocation5 + $0x5cc] sm:$0xf] }
 0x3c3   : > { %v13111_v17 = vpack.c.bf16 %v4100_v5, %v4088_v44 }
 0x3c4   : > { %v3333_v4 = vpop.f32.mrf.mxu2  ;;  %v3382_v9 = vpop.f32.mrf.mxu3  ;;  %3649 = vmatpush.bf16.msrb.mxu1 %v9617_v10 }
 0x3c5   : > { %14960 = vst [vmem:[#allocation76_spill] sm:$0xff] %v13111_v17  ;;  %v3334_v15 = vadd.f32 %v3333_v4, %v3285_v34  ;;  %v3237_v8 = vpop.f32.mrf.mxu0  ;;  %v3286_v3 = vpop.f32.mrf.mxu1 }
 0x3c6   : > { %v3238_v47 = vadd.f32 %v3237_v8, %v13012_v57  ;;  %v3287_v5 = vadd.f32 %v3286_v3, %v13043_v7  ;;  %v9958_v3 = vld [vmem:[#allocation5 + $0x8f8] sm:$0xf0] }
 0x3c7   : > { %v3383_v54 = vadd.f32 %v3382_v9, %v3334_v15  ;;  %v9574_v15 = vld [vmem:[#allocation5 + $0x5f8] sm:$0xf0]  ;;  %v9956_v9 = vld [vmem:[#allocation5 + $0x8c8] sm:$0xf] }
 0x3c8   : > { %v4123_v27 = vmax.f32 %v3238_v47, 0.0  ;;  %v9577_v8 = vor.u32 %v11304_v58, %v9574_v15  ;;  %v11406_v47 = vld [vmem:[#allocation5 + $0x8f4] sm:$0xf0] }
 0x3c9   : > { %v4112_v33 = vmax.f32 %v3383_v54, 0.0  ;;  %v9957_v54 = vor.u32 %v11406_v47, %v9956_v9 }
 0x3ca   : > { %v13114_v44 = vpack.c.bf16 %v4123_v27, %v4111_v48  ;;  %3887 = vmatpush.bf16.msra.mxu2 %v9577_v8 }
 0x3cb   : > { %3789 = vmatpush.bf16.msra.mxu0 %v9957_v54 }
 0x3cc   : > { %14961 = vst [vmem:[#allocation77_spill] sm:$0xff] %v13114_v44  ;;  %v3335_v22 = vpop.f32.mrf.mxu2  ;;  %v3384_v60 = vpop.f32.mrf.mxu3 }
 0x3cd   : > { %v3336_v34 = vadd.f32 %v3335_v22, %v3287_v5  ;;  %v3240_v31 = vpop.f32.mrf.mxu0  ;;  %v3289_v62 = vpop.f32.mrf.mxu1 }
 0x3ce   : > { %v3241_v57 = vadd.f32 %v3240_v31, %v13021_v29  ;;  %v3290_v37 = vadd.f32 %v3289_v62, %v13043_v7  ;;  %v11400_v29 = vld [vmem:[#allocation5 + $0x8cc] sm:$0xf]  ;;  %v9190_v62 = vld [vmem:[#allocation5 + $0x2f8] sm:$0xf0] }
 0x3cf   : > { %v3385_v59 = vadd.f32 %v3384_v60, %v3336_v34  ;;  %3435 = vmatmul.bf16.gmra.mxu0 %v12447_v11  ;;  %v9961_v14 = vor.u32 %v11400_v29, %v9958_v3  ;;  %v11208_v31 = vld [vmem:[#allocation5 + $0x2cc] sm:$0xf] }
 0x3d0   : > { %3484 = vmatmul.bf16.gmra.mxu1 %v12449_v12  ;;  %v9193_v15 = vor.u32 %v11208_v31, %v9190_v62 }
 0x3d1   : > { %v4124_v4 = vmax.f32 %v3385_v59, 0.0  ;;  %3533 = vmatmul.bf16.gmra.mxu2 %v12451_v13  ;;  %3582 = vmatmul.bf16.gmra.mxu3 %v12447_v11  ;;  %v4135_v59 = vmax.f32 %v3241_v57, 0.0 }
 0x3d2   : > { %3936 = vmatpush.bf16.msra.mxu3 %v9961_v14  ;;  %3838 = vmatpush.bf16.msra.mxu1 %v9193_v15  ;;  %v11292_v14 = vld [vmem:[#allocation5 + $0x56c] sm:$0xf] }
 0x3d3   : > { %v13123_v48 = vpack.c.bf16 %v4124_v4, %v4112_v33 }
 0x3d4   : > { %v3338_v27 = vpop.f32.mrf.mxu2  ;;  %v3387_v10 = vpop.f32.mrf.mxu3 }
 0x3d5   : > { %14962 = vst [vmem:[#allocation78_spill] sm:$0xff] %v13123_v48  ;;  %v3339_v30 = vadd.f32 %v3338_v27, %v3290_v37  ;;  %v3242_v5 = vpop.f32.mrf.mxu0  ;;  %v3291_v34 = vpop.f32.mrf.mxu1 }
 0x3d6   : > { %v3243_v22 = vadd.f32 %v3242_v5, %v13028_v35  ;;  %v3292_v4 = vadd.f32 %v3291_v34, %v13043_v7  ;;  %v9910_v34 = vld [vmem:[#allocation5 + $0x898] sm:$0xf0] }
 0x3d7   : > { %v3388_v60 = vadd.f32 %v3387_v10, %v3339_v30  ;;  %v9526_v30 = vld [vmem:[#allocation5 + $0x598] sm:$0xf0]  ;;  %v9908_v10 = vld [vmem:[#allocation5 + $0x868] sm:$0xf] }
 0x3d8   : > { %v4147_v58 = vmax.f32 %v3243_v22, 0.0  ;;  %v9529_v5 = vor.u32 %v11292_v14, %v9526_v30  ;;  %v11394_v22 = vld [vmem:[#allocation5 + $0x894] sm:$0xf0] }
 0x3d9   : > { %v4136_v27 = vmax.f32 %v3388_v60, 0.0  ;;  %v9909_v60 = vor.u32 %v11394_v22, %v9908_v10 }
 0x3da   : > { %v13126_v33 = vpack.c.bf16 %v4147_v58, %v4135_v59  ;;  %3888 = vmatpush.bf16.msra.mxu2 %v9529_v5 }
 0x3db   : > { %3790 = vmatpush.bf16.msra.mxu0 %v9909_v60 }
 0x3dc   : > { %14963 = vst [vmem:[#allocation79_spill] sm:$0xff] %v13126_v33  ;;  %v3340_v37 = vpop.f32.mrf.mxu2  ;;  %v3389_v47 = vpop.f32.mrf.mxu3 }
 0x3dd   : > { %v3341_v9 = vadd.f32 %v3340_v37, %v3292_v4  ;;  %v3245_v8 = vpop.f32.mrf.mxu0  ;;  %v3294_v29 = vpop.f32.mrf.mxu1 }
 0x3de   : > { %v3246_v35 = vadd.f32 %v3245_v8, %v13037_v16  ;;  %v3295_v57 = vadd.f32 %v3294_v29, %v13043_v7  ;;  %v11388_v16 = vld [vmem:[#allocation5 + $0x86c] sm:$0xf]  ;;  %v13138_v8 = vld [vmem:[#allocation7 + $0x8] sm:$0xf] }
 0x3df   : > { %v3390_v3 = vadd.f32 %v3389_v47, %v3341_v9  ;;  %3440 = vmatmul.bf16.gmra.mxu0 %v12463_v38  ;;  %v9913_v59 = vor.u32 %v11388_v16, %v9910_v34  ;;  %v11196_v29 = vld [vmem:[#allocation5 + $0x26c] sm:$0xf]  ;;  %v13141_v30 = vperm.slane %v13138_v8, 0 }
 0x3e0   : > { %3489 = vmatmul.bf16.gmra.mxu1 %v12465_v39  ;;  %v4159_v14 = vmax.f32 %v3246_v35, 0.0 }
 0x3e1   : > { %v4148_v54 = vmax.f32 %v3390_v3, 0.0  ;;  %3538 = vmatmul.bf16.gmra.mxu2 %v12467_v43  ;;  %3587 = vmatmul.bf16.gmra.mxu3 %v12463_v38  ;;  %v9142_v3 = vld [vmem:[#allocation5 + $0x298] sm:$0xf0] }
 0x3e2   : > { %3937 = vmatpush.bf16.msra.mxu3 %v9913_v59 }
 0x3e3   : > { %v13135_v31 = vpack.c.bf16 %v4148_v54, %v4136_v27  ;;  %v9145_v54 = vor.u32 %v11196_v29, %v9142_v3  ;;  %v11376_v29 = vld [vmem:[#allocation5 + $0x80c] sm:$0xf]  ;;  %v9862_v3 = vld [vmem:[#allocation5 + $0x838] sm:$0xf0] }
 0x3e4   : > { %v3343_v62 = vpop.f32.mrf.mxu2  ;;  %v3392_v15 = vpop.f32.mrf.mxu3 }
 0x3e5   : > { %14964 = vst [vmem:[#allocation80_spill] sm:$0xff] %v13135_v31  ;;  %v3344_v58 = vadd.f32 %v3343_v62, %v3295_v57  ;;  %v3247_v4 = vpop.f32.mrf.mxu0  ;;  %v3296_v9 = vpop.f32.mrf.mxu1  ;;  %3839 = vmatpush.bf16.msra.mxu1 %v9145_v54 }
 0x3e6   : > { %v3248_v37 = vadd.f32 %v3247_v4, %v13046_v61  ;;  %v3297_v10 = vadd.f32 %v3296_v9, %v13043_v7  ;;  %v11280_v7 = vld [vmem:[#allocation5 + $0x50c] sm:$0xf]  ;;  %v9860_v4 = vld [vmem:[#allocation5 + $0x808] sm:$0xf]  ;;  %v11382_v9 = vld [vmem:[#allocation5 + $0x834] sm:$0xf0] }
 0x3e7   : > { %v3393_v47 = vadd.f32 %v3392_v15, %v3344_v58  ;;  %v9478_v15 = vld [vmem:[#allocation5 + $0x538] sm:$0xf0]  ;;  %v9861_v54 = vor.u32 %v11382_v9, %v9860_v4 }
 0x3e8   : > { %v4171_v27 = vmax.f32 %v3248_v37, 0.0  ;;  %v9481_v37 = vor.u32 %v11280_v7, %v9478_v15 }
 0x3e9   : > { %v4160_v35 = vmax.f32 %v3393_v47, 0.0  ;;  %3791 = vmatpush.bf16.msra.mxu0 %v9861_v54  ;;  %v11268_v54 = vld [vmem:[#allocation5 + $0x4ac] sm:$0xf] }
 0x3ea   : > { %v13143_v57 = vpack.c.bf16 %v4171_v27, %v4159_v14  ;;  %3889 = vmatpush.bf16.msra.mxu2 %v9481_v37 }
 0x3ec   : > { %14965 = vst [vmem:[#allocation81_spill] sm:$0xff] %v13143_v57  ;;  %v3345_v61 = vpop.f32.mrf.mxu2  ;;  %v3394_v22 = vpop.f32.mrf.mxu3 }
 0x3ed   : > { %v3346_v5 = vadd.f32 %v3345_v61, %v3297_v10  ;;  %v3406_v16 = vpop.f32.mrf.mxu0  ;;  %v3455_v62 = vpop.f32.mrf.mxu1  ;;  %v9865_v10 = vor.u32 %v11376_v29, %v9862_v3 }
 0x3ee   : > { %v3407_v34 = vadd.f32 %v3406_v16, %v13141_v30 }
 0x3ef   : > { %v3395_v60 = vadd.f32 %v3394_v22, %v3346_v5  ;;  %3601 = vmatmul.bf16.vlgmr.msrb.gmra.mxu0 %v12353_v51  ;;  %3938 = vmatpush.bf16.msra.mxu3 %v9865_v10  ;;  %v9430_v10 = vld [vmem:[#allocation5 + $0x4d8] sm:$0xf0] }
 0x3f0   : > { %v3456_v59 = vadd.f32 %v3455_v62, %v3407_v34  ;;  %3650 = vmatmul.bf16.vlgmr.msrb.gmra.mxu1 %v12355_v52  ;;  %v11184_v34 = vld [vmem:[#allocation5 + $0x20c] sm:$0xf]  ;;  %v9094_v62 = vld [vmem:[#allocation5 + $0x238] sm:$0xf0] }
 0x3f1   : > { %v4172_v58 = vmax.f32 %v3395_v60, 0.0  ;;  %3699 = vmatmul.bf16.vlgmr.msrb.gmra.mxu2 %v12351_v46  ;;  %3748 = vmatmul.bf16.vlgmr.msrb.gmra.mxu3 %v12353_v51  ;;  %v9097_v7 = vor.u32 %v11184_v34, %v9094_v62  ;;  %v11364_v34 = vld [vmem:[#allocation5 + $0x7ac] sm:$0xf]  ;;  %v9814_v62 = vld [vmem:[#allocation5 + $0x7d8] sm:$0xf0] }
 0x3f3   : > { %v13151_v14 = vpack.c.bf16 %v4172_v58, %v4160_v35  ;;  %3840 = vmatpush.bf16.msra.mxu1 %v9097_v7  ;;  %v9817_v7 = vor.u32 %v11364_v34, %v9814_v62 }
 0x3f4   : > { %v3504_v27 = vpop.f32.mrf.mxu2  ;;  %v13153_v61 = vpop.f32.mrf.mxu3 }
 0x3f5   : > { %14966 = vst [vmem:[#allocation82_spill] sm:$0xff] %v13151_v14  ;;  %v3505_v47 = vadd.f32 %v3504_v27, %v3456_v59  ;;  %v3408_v5 = vpop.f32.mrf.mxu0  ;;  %v3457_v16 = vpop.f32.mrf.mxu1  ;;  %3939 = vmatpush.bf16.msra.mxu3 %v9817_v7  ;;  %v9764_v7 = vld [vmem:[#allocation5 + $0x748] sm:$0xf] }
 0x3f6   : > { %v3409_v22 = vadd.f32 %v3408_v5, %v13141_v30  ;;  %v9812_v5 = vld [vmem:[#allocation5 + $0x7a8] sm:$0xf] }
 0x3f7   : > { %v3993_v29 = vmax.f32 %v3505_v47, 0.0 }
 0x3f8   : > { %v3458_v60 = vadd.f32 %v3457_v16, %v3409_v22  ;;  %v9433_v22 = vor.u32 %v11268_v54, %v9430_v10  ;;  %v11370_v16 = vld [vmem:[#allocation5 + $0x7d4] sm:$0xf0] }
 0x3fa   : > { %3890 = vmatpush.bf16.msra.mxu2 %v9433_v22 }
 0x3fc   : > { %v3506_v35 = vpop.f32.mrf.mxu2  ;;  %v13156_v15 = vpop.f32.mrf.mxu3 }
 0x3fd   : > { %v3507_v58 = vadd.f32 %v3506_v35, %v3458_v60  ;;  %v3411_v4 = vpop.f32.mrf.mxu0  ;;  %v3460_v9 = vpop.f32.mrf.mxu1  ;;  %v9813_v60 = vor.u32 %v11370_v16, %v9812_v5 }
 0x3fe   : > { %v3412_v59 = vadd.f32 %v3411_v4, %v13141_v30 }
 0x3ff   : > { %v4005_v37 = vmax.f32 %v3507_v58, 0.0  ;;  %3606 = vmatmul.bf16.gmra.mxu0 %v12369_v20 }
 0x400   : > { %v3461_v3 = vadd.f32 %v3460_v9, %v3412_v59  ;;  %3655 = vmatmul.bf16.gmra.mxu1 %v12371_v21  ;;  %3792 = vmatpush.bf16.msra.mxu0 %v9813_v60  ;;  %v9382_v60 = vld [vmem:[#allocation5 + $0x478] sm:$0xf0] }
 0x401   : > { %v13160_v27 = vpack.c.bf16 %v4005_v37, %v3993_v29  ;;  %3704 = vmatmul.bf16.gmra.mxu2 %v12367_v19  ;;  %3753 = vmatmul.bf16.gmra.mxu3 %v12369_v20  ;;  %v11172_v29 = vld [vmem:[#allocation5 + $0x1ac] sm:$0xf]  ;;  %v9046_v37 = vld [vmem:[#allocation5 + $0x1d8] sm:$0xf0] }
 0x402   : > { %v9049_v54 = vor.u32 %v11172_v29, %v9046_v37  ;;  %v9766_v29 = vld [vmem:[#allocation5 + $0x778] sm:$0xf0] }
 0x403   : > { %14967 = vst [vmem:[#allocation83_spill] sm:$0xff] %v13160_v27 }
 0x404   : > { %v3509_v47 = vpop.f32.mrf.mxu2  ;;  %v13165_v58 = vpop.f32.mrf.mxu3  ;;  %3841 = vmatpush.bf16.msra.mxu1 %v9049_v54 }
 0x405   : > { %v3510_v35 = vadd.f32 %v3509_v47, %v3461_v3  ;;  %v3413_v4 = vpop.f32.mrf.mxu0  ;;  %v3462_v9 = vpop.f32.mrf.mxu1 }
 0x406   : > { %v3414_v59 = vadd.f32 %v3413_v4, %v13141_v30 }
 0x407   : > { %v4017_v34 = vmax.f32 %v3510_v35, 0.0 }
 0x408   : > { %v3463_v27 = vadd.f32 %v3462_v9, %v3414_v59  ;;  %v11358_v59 = vld [vmem:[#allocation5 + $0x774] sm:$0xf0]  ;;  %v11352_v9 = vld [vmem:[#allocation5 + $0x74c] sm:$0xf] }
 0x409   : > { %v9769_v37 = vor.u32 %v11352_v9, %v9766_v29 }
 0x40b   : > { %3940 = vmatpush.bf16.msra.mxu3 %v9769_v37  ;;  %v9716_v37 = vld [vmem:[#allocation5 + $0x6e8] sm:$0xf] }
 0x40c   : > { %v3511_v10 = vpop.f32.mrf.mxu2  ;;  %v13168_v57 = vpop.f32.mrf.mxu3 }
 0x40d   : > { %v3512_v14 = vadd.f32 %v3511_v10, %v3463_v27  ;;  %v3416_v5 = vpop.f32.mrf.mxu0  ;;  %v3465_v16 = vpop.f32.mrf.mxu1  ;;  %v11256_v27 = vld [vmem:[#allocation5 + $0x44c] sm:$0xf] }
 0x40e   : > { %v3417_v3 = vadd.f32 %v3416_v5, %v13141_v30  ;;  %v9385_v4 = vor.u32 %v11256_v27, %v9382_v60 }
 0x40f   : > { %v4029_v22 = vmax.f32 %v3512_v14, 0.0  ;;  %3611 = vmatmul.bf16.gmra.mxu0 %v12385_v41  ;;  %v9765_v14 = vor.u32 %v11358_v59, %v9764_v7 }
 0x410   : > { %v3466_v62 = vadd.f32 %v3465_v16, %v3417_v3  ;;  %3660 = vmatmul.bf16.gmra.mxu1 %v12387_v42  ;;  %3891 = vmatpush.bf16.msra.mxu2 %v9385_v4 }
 0x411   : > { %3709 = vmatmul.bf16.gmra.mxu2 %v12383_v40  ;;  %v13174_v47 = vpack.c.bf16 %v4029_v22, %v4017_v34  ;;  %3758 = vmatmul.bf16.gmra.mxu3 %v12385_v41  ;;  %v11160_v34 = vld [vmem:[#allocation5 + $0x14c] sm:$0xf]  ;;  %v8998_v22 = vld [vmem:[#allocation5 + $0x178] sm:$0xf0] }
 0x412   : > { %3793 = vmatpush.bf16.msra.mxu0 %v9765_v14  ;;  %v9001_v27 = vor.u32 %v11160_v34, %v8998_v22  ;;  %v9334_v14 = vld [vmem:[#allocation5 + $0x418] sm:$0xf0] }
 0x413   : > { %14968 = vst [vmem:[#allocation84_spill] sm:$0xff] %v13174_v47  ;;  %v9718_v34 = vld [vmem:[#allocation5 + $0x718] sm:$0xf0] }
 0x414   : > { %v3514_v35 = vpop.f32.mrf.mxu2  ;;  %v13177_v10 = vpop.f32.mrf.mxu3  ;;  %3842 = vmatpush.bf16.msra.mxu1 %v9001_v27 }
 0x415   : > { %v3515_v54 = vadd.f32 %v3514_v35, %v3466_v62  ;;  %v3418_v5 = vpop.f32.mrf.mxu0  ;;  %v3467_v16 = vpop.f32.mrf.mxu1 }
 0x416   : > { %v3419_v3 = vadd.f32 %v3418_v5, %v13141_v30 }
 0x417   : > { %v4041_v9 = vmax.f32 %v3515_v54, 0.0 }
 0x418   : > { %v3468_v47 = vadd.f32 %v3467_v16, %v3419_v3  ;;  %v11346_v3 = vld [vmem:[#allocation5 + $0x714] sm:$0xf0]  ;;  %v11340_v16 = vld [vmem:[#allocation5 + $0x6ec] sm:$0xf] }
 0x419   : > { %v9721_v22 = vor.u32 %v11340_v16, %v9718_v34 }
 0x41b   : > { %3941 = vmatpush.bf16.msra.mxu3 %v9721_v22  ;;  %v9668_v22 = vld [vmem:[#allocation5 + $0x688] sm:$0xf] }
 0x41c   : > { %v3516_v60 = vpop.f32.mrf.mxu2  ;;  %v13180_v33 = vpop.f32.mrf.mxu3 }
 0x41d   : > { %v3517_v31 = vadd.f32 %v3516_v60, %v3468_v47  ;;  %v3421_v7 = vpop.f32.mrf.mxu0  ;;  %v3470_v59 = vpop.f32.mrf.mxu1  ;;  %v11244_v47 = vld [vmem:[#allocation5 + $0x3ec] sm:$0xf] }
 0x41e   : > { %v3422_v62 = vadd.f32 %v3421_v7, %v13141_v30  ;;  %v9337_v5 = vor.u32 %v11244_v47, %v9334_v14 }
 0x41f   : > { %v4053_v4 = vmax.f32 %v3517_v31, 0.0  ;;  %3616 = vmatmul.bf16.gmra.mxu0 %v12401_v1  ;;  %v9717_v31 = vor.u32 %v11346_v3, %v9716_v37 }
 0x420   : > { %v3471_v29 = vadd.f32 %v3470_v59, %v3422_v62  ;;  %3665 = vmatmul.bf16.gmra.mxu1 %v12403_v2  ;;  %3892 = vmatpush.bf16.msra.mxu2 %v9337_v5 }
 0x421   : > { %3714 = vmatmul.bf16.gmra.mxu2 %v12399_v0  ;;  %v13186_v35 = vpack.c.bf16 %v4053_v4, %v4041_v9  ;;  %3763 = vmatmul.bf16.gmra.mxu3 %v12401_v1  ;;  %v11148_v9 = vld [vmem:[#allocation5 + $0xec] sm:$0xf]  ;;  %v8950_v4 = vld [vmem:[#allocation5 + $0x118] sm:$0xf0] }
 0x422   : > { %3794 = vmatpush.bf16.msra.mxu0 %v9717_v31  ;;  %v8953_v47 = vor.u32 %v11148_v9, %v8950_v4  ;;  %v9286_v31 = vld [vmem:[#allocation5 + $0x3b8] sm:$0xf0] }
 0x423   : > { %14969 = vst [vmem:[#allocation85_spill] sm:$0xff] %v13186_v35  ;;  %v9670_v9 = vld [vmem:[#allocation5 + $0x6b8] sm:$0xf0] }
 0x424   : > { %v3519_v54 = vpop.f32.mrf.mxu2  ;;  %v13189_v60 = vpop.f32.mrf.mxu3  ;;  %3843 = vmatpush.bf16.msra.mxu1 %v8953_v47 }
 0x425   : > { %v3520_v27 = vadd.f32 %v3519_v54, %v3471_v29  ;;  %v3423_v7 = vpop.f32.mrf.mxu0  ;;  %v3472_v59 = vpop.f32.mrf.mxu1 }
 0x426   : > { %v3424_v62 = vadd.f32 %v3423_v7, %v13141_v30 }
 0x427   : > { %v4065_v16 = vmax.f32 %v3520_v27, 0.0 }
 0x428   : > { %v3473_v35 = vadd.f32 %v3472_v59, %v3424_v62  ;;  %v11334_v62 = vld [vmem:[#allocation5 + $0x6b4] sm:$0xf0]  ;;  %v11328_v59 = vld [vmem:[#allocation5 + $0x68c] sm:$0xf] }
 0x429   : > { %v9673_v4 = vor.u32 %v11328_v59, %v9670_v9 }
 0x42b   : > { %3942 = vmatpush.bf16.msra.mxu3 %v9673_v4  ;;  %v9620_v4 = vld [vmem:[#allocation5 + $0x628] sm:$0xf] }
 0x42c   : > { %v3521_v14 = vpop.f32.mrf.mxu2  ;;  %v13192_v44 = vpop.f32.mrf.mxu3 }
 0x42d   : > { %v3522_v48 = vadd.f32 %v3521_v14, %v3473_v35  ;;  %v3426_v37 = vpop.f32.mrf.mxu0  ;;  %v3475_v3 = vpop.f32.mrf.mxu1  ;;  %v11232_v35 = vld [vmem:[#allocation5 + $0x38c] sm:$0xf] }
 0x42e   : > { %v3427_v29 = vadd.f32 %v3426_v37, %v13141_v30  ;;  %v9289_v7 = vor.u32 %v11232_v35, %v9286_v31 }
 0x42f   : > { %v4077_v5 = vmax.f32 %v3522_v48, 0.0  ;;  %3621 = vmatmul.bf16.gmra.mxu0 %v12417_v25  ;;  %v9669_v48 = vor.u32 %v11334_v62, %v9668_v22 }
 0x430   : > { %v3476_v34 = vadd.f32 %v3475_v3, %v3427_v29  ;;  %3670 = vmatmul.bf16.gmra.mxu1 %v12419_v26  ;;  %3893 = vmatpush.bf16.msra.mxu2 %v9289_v7 }
 0x431   : > { %3719 = vmatmul.bf16.gmra.mxu2 %v12415_v24  ;;  %v13198_v54 = vpack.c.bf16 %v4077_v5, %v4065_v16  ;;  %3768 = vmatmul.bf16.gmra.mxu3 %v12417_v25  ;;  %v11136_v16 = vld [vmem:[#allocation5 + $0x8c] sm:$0xf]  ;;  %v8902_v5 = vld [vmem:[#allocation5 + $0xb8] sm:$0xf0] }
 0x432   : > { %3795 = vmatpush.bf16.msra.mxu0 %v9669_v48  ;;  %v8905_v35 = vor.u32 %v11136_v16, %v8902_v5  ;;  %v9238_v48 = vld [vmem:[#allocation5 + $0x358] sm:$0xf0] }
 0x433   : > { %14970 = vst [vmem:[#allocation86_spill] sm:$0xff] %v13198_v54  ;;  %v9622_v16 = vld [vmem:[#allocation5 + $0x658] sm:$0xf0] }
 0x434   : > { %v3524_v27 = vpop.f32.mrf.mxu2  ;;  %v13201_v14 = vpop.f32.mrf.mxu3  ;;  %3844 = vmatpush.bf16.msra.mxu1 %v8905_v35 }
 0x435   : > { %v3525_v47 = vadd.f32 %v3524_v27, %v3476_v34  ;;  %v3428_v37 = vpop.f32.mrf.mxu0  ;;  %v3477_v3 = vpop.f32.mrf.mxu1 }
 0x436   : > { %v3429_v29 = vadd.f32 %v3428_v37, %v13141_v30 }
 0x437   : > { %v4089_v59 = vmax.f32 %v3525_v47, 0.0 }
 0x438   : > { %v3478_v54 = vadd.f32 %v3477_v3, %v3429_v29  ;;  %v11322_v29 = vld [vmem:[#allocation5 + $0x654] sm:$0xf0]  ;;  %v11316_v3 = vld [vmem:[#allocation5 + $0x62c] sm:$0xf] }
 0x439   : > { %v9625_v5 = vor.u32 %v11316_v3, %v9622_v16 }
 0x43b   : > { %3943 = vmatpush.bf16.msra.mxu3 %v9625_v5  ;;  %v10048_v5 = vld [vmem:[#allocation8 + $0xa8] sm:$0xf] }
 0x43c   : > { %v3526_v31 = vpop.f32.mrf.mxu2  ;;  %v13204_v6 = vpop.f32.mrf.mxu3 }
 0x43d   : > { %v3527_v17 = vadd.f32 %v3526_v31, %v3478_v54  ;;  %v3431_v22 = vpop.f32.mrf.mxu0  ;;  %v3480_v62 = vpop.f32.mrf.mxu1  ;;  %v11220_v54 = vld [vmem:[#allocation5 + $0x32c] sm:$0xf] }
 0x43e   : > { %v3432_v34 = vadd.f32 %v3431_v22, %v13141_v30  ;;  %v9241_v37 = vor.u32 %v11220_v54, %v9238_v48 }
 0x43f   : > { %v4101_v7 = vmax.f32 %v3527_v17, 0.0  ;;  %3626 = vmatmul.bf16.gmra.mxu0 %v12433_v50  ;;  %v9621_v17 = vor.u32 %v11322_v29, %v9620_v4 }
 0x440   : > { %v3481_v9 = vadd.f32 %v3480_v62, %v3432_v34  ;;  %3675 = vmatmul.bf16.gmra.mxu1 %v12435_v53  ;;  %3894 = vmatpush.bf16.msra.mxu2 %v9241_v37 }
 0x441   : > { %3724 = vmatmul.bf16.gmra.mxu2 %v12431_v49  ;;  %v13210_v27 = vpack.c.bf16 %v4101_v7, %v4089_v59  ;;  %3773 = vmatmul.bf16.gmra.mxu3 %v12433_v50  ;;  %v11124_v59 = vld [vmem:[#allocation5 + $0x2c] sm:$0xf]  ;;  %v8854_v7 = vld [vmem:[#allocation5 + $0x58] sm:$0xf0] }
 0x442   : > { %3796 = vmatpush.bf16.msra.mxu0 %v9621_v17  ;;  %v8857_v54 = vor.u32 %v11124_v59, %v8854_v7  ;;  %v11477_v17 = vld [vmem:[#allocation8 + $0x230] sm:$0xf0] }
 0x443   : > { %14971 = vst [vmem:[#allocation87_spill] sm:$0xff] %v13210_v27  ;;  %v11501_v59 = vld [vmem:[#allocation8 + $0x2f0] sm:$0xf0] }
 0x444   : > { %v3529_v47 = vpop.f32.mrf.mxu2  ;;  %v13213_v31 = vpop.f32.mrf.mxu3  ;;  %3845 = vmatpush.bf16.msra.mxu1 %v8857_v54 }
 0x445   : > { %v3530_v35 = vadd.f32 %v3529_v47, %v3481_v9  ;;  %v3433_v22 = vpop.f32.mrf.mxu0  ;;  %v3482_v62 = vpop.f32.mrf.mxu1 }
 0x446   : > { %v3434_v34 = vadd.f32 %v3433_v22, %v13141_v30 }
 0x447   : > { %v4113_v3 = vmax.f32 %v3530_v35, 0.0 }
 0x448   : > { %v3483_v27 = vadd.f32 %v3482_v62, %v3434_v34  ;;  %v11429_v34 = vld [vmem:[#allocation8 + $0xb0] sm:$0xf0]  ;;  %v10336_v62 = vld [vmem:[#allocation8 + $0x2e8] sm:$0xf] }
 0x449   : > { %v10337_v7 = vor.u32 %v11501_v59, %v10336_v62 }
 0x44b   : > { %6348 = vmatpush.bf16.msrb.mxu3 %v10337_v7  ;;  %v10036_v7 = vld [vmem:[#allocation8 + $0x90] sm:$0xf] }
 0x44c   : > { %v3531_v48 = vpop.f32.mrf.mxu2  ;;  %v13216_v45 = vpop.f32.mrf.mxu3 }
 0x44d   : > { %v3532_v32 = vadd.f32 %v3531_v48, %v3483_v27  ;;  %v3436_v4 = vpop.f32.mrf.mxu0  ;;  %v3485_v29 = vpop.f32.mrf.mxu1  ;;  %v10240_v27 = vld [vmem:[#allocation8 + $0x228] sm:$0xf] }
 0x44e   : > { %v3437_v9 = vadd.f32 %v3436_v4, %v13141_v30  ;;  %v10241_v22 = vor.u32 %v11477_v17, %v10240_v27 }
 0x44f   : > { %v4125_v37 = vmax.f32 %v3532_v32, 0.0  ;;  %3631 = vmatmul.bf16.gmra.mxu0 %v12449_v12  ;;  %v10049_v32 = vor.u32 %v11429_v34, %v10048_v5 }
 0x450   : > { %v3486_v16 = vadd.f32 %v3485_v29, %v3437_v9  ;;  %3680 = vmatmul.bf16.gmra.mxu1 %v12451_v13  ;;  %6299 = vmatpush.bf16.msrb.mxu2 %v10241_v22 }
 0x451   : > { %3729 = vmatmul.bf16.gmra.mxu2 %v12447_v11  ;;  %v13222_v47 = vpack.c.bf16 %v4125_v37, %v4113_v3  ;;  %3778 = vmatmul.bf16.gmra.mxu3 %v12449_v12  ;;  %v10144_v3 = vld [vmem:[#allocation8 + $0x168] sm:$0xf]  ;;  %v11453_v37 = vld [vmem:[#allocation8 + $0x170] sm:$0xf0] }
 0x452   : > { %6201 = vmatpush.bf16.msrb.mxu0 %v10049_v32  ;;  %v10145_v27 = vor.u32 %v11453_v37, %v10144_v3  ;;  %v11474_v32 = vld [vmem:[#allocation8 + $0x218] sm:$0xf0] }
 0x453   : > { %14972 = vst [vmem:[#allocation88_spill] sm:$0xff] %v13222_v47  ;;  %v11498_v3 = vld [vmem:[#allocation8 + $0x2d8] sm:$0xf0] }
 0x454   : > { %v3534_v35 = vpop.f32.mrf.mxu2  ;;  %v13225_v48 = vpop.f32.mrf.mxu3  ;;  %6250 = vmatpush.bf16.msrb.mxu1 %v10145_v27 }
 0x455   : > { %v3535_v54 = vadd.f32 %v3534_v35, %v3486_v16  ;;  %v3438_v4 = vpop.f32.mrf.mxu0  ;;  %v3487_v29 = vpop.f32.mrf.mxu1 }
 0x456   : > { %v3439_v9 = vadd.f32 %v3438_v4, %v13141_v30 }
 0x457   : > { %v4137_v62 = vmax.f32 %v3535_v54, 0.0 }
 0x458   : > { %v3488_v47 = vadd.f32 %v3487_v29, %v3439_v9  ;;  %v11426_v9 = vld [vmem:[#allocation8 + $0x98] sm:$0xf0]  ;;  %v10324_v29 = vld [vmem:[#allocation8 + $0x2d0] sm:$0xf] }
 0x459   : > { %v10325_v37 = vor.u32 %v11498_v3, %v10324_v29 }
 0x45b   : > { %6349 = vmatpush.bf16.msrb.mxu3 %v10325_v37 }
 0x45c   : > { %v3536_v17 = vpop.f32.mrf.mxu2  ;;  %v13228_v63 = vpop.f32.mrf.mxu3 }
 0x45d   : > { %v3537_v36 = vadd.f32 %v3536_v17, %v3488_v47  ;;  %v3441_v5 = vpop.f32.mrf.mxu0  ;;  %v3490_v34 = vpop.f32.mrf.mxu1  ;;  %v10228_v47 = vld [vmem:[#allocation8 + $0x210] sm:$0xf] }
 0x45e   : > { %v3442_v16 = vadd.f32 %v3441_v5, %v13141_v30  ;;  %v10229_v4 = vor.u32 %v11474_v32, %v10228_v47  ;;  %v13241_v47 = vperm.slane %v13138_v8, 1 }
 0x45f   : > { %v4149_v22 = vmax.f32 %v3537_v36, 0.0  ;;  %3636 = vmatmul.bf16.gmra.mxu0 %v12465_v39  ;;  %v10037_v36 = vor.u32 %v11426_v9, %v10036_v7 }
 0x460   : > { %v3491_v59 = vadd.f32 %v3490_v34, %v3442_v16  ;;  %3685 = vmatmul.bf16.gmra.mxu1 %v12467_v43  ;;  %6300 = vmatpush.bf16.msrb.mxu2 %v10229_v4 }
 0x461   : > { %3734 = vmatmul.bf16.gmra.mxu2 %v12463_v38  ;;  %v13234_v35 = vpack.c.bf16 %v4149_v22, %v4137_v62  ;;  %3783 = vmatmul.bf16.gmra.mxu3 %v12465_v39  ;;  %v10132_v62 = vld [vmem:[#allocation8 + $0x150] sm:$0xf]  ;;  %v11450_v22 = vld [vmem:[#allocation8 + $0x158] sm:$0xf0] }
 0x462   : > { %6202 = vmatpush.bf16.msrb.mxu0 %v10037_v36 }
 0x463   : > { %14973 = vst [vmem:[#allocation89_spill] sm:$0xff] %v13234_v35  ;;  %v10133_v35 = vor.u32 %v11450_v22, %v10132_v62  ;;  %v10024_v62 = vld [vmem:[#allocation8 + $0x78] sm:$0xf] }
 0x464   : > { %v3539_v54 = vpop.f32.mrf.mxu2  ;;  %v13237_v17 = vpop.f32.mrf.mxu3  ;;  %v10312_v22 = vld [vmem:[#allocation8 + $0x2b8] sm:$0xf] }
 0x465   : > { %v3540_v27 = vadd.f32 %v3539_v54, %v3491_v59  ;;  %v3443_v5 = vpop.f32.mrf.mxu0  ;;  %v3492_v34 = vpop.f32.mrf.mxu1  ;;  %6251 = vmatpush.bf16.msrb.mxu1 %v10133_v35  ;;  %v3554_v59 = vadd.f32 %v13153_v61, %v13241_v47  ;;  %v13251_v35 = vperm.slane %v13138_v8, 2 }
 0x466   : > { %v3444_v16 = vadd.f32 %v3443_v5, %v13141_v30  ;;  %v10216_v5 = vld [vmem:[#allocation8 + $0x1f8] sm:$0xf] }
 0x467   : > { %v4161_v54 = vmax.f32 %v3540_v27, 0.0  ;;  %v11423_v27 = vld [vmem:[#allocation8 + $0x80] sm:$0xf0] }
 0x468   : > { %v3493_v32 = vadd.f32 %v3492_v34, %v3444_v16  ;;  %v11471_v16 = vld [vmem:[#allocation8 + $0x200] sm:$0xf0] }
 0x469   : > { %v10217_v34 = vor.u32 %v11471_v16, %v10216_v5 }
 0x46b   : > { %6301 = vmatpush.bf16.msrb.mxu2 %v10217_v34 }
 0x46c   : > { %v3541_v7 = vpop.f32.mrf.mxu2  ;;  %v13245_v29 = vpop.f32.mrf.mxu3 }
 0x46d   : > { %v3542_v9 = vadd.f32 %v3541_v7, %v3493_v32  ;;  %v3602_v4 = vpop.f32.mrf.mxu0  ;;  %v3651_v3 = vpop.f32.mrf.mxu1  ;;  %v3556_v32 = vadd.f32 %v13156_v15, %v13241_v47  ;;  %v11495_v7 = vld [vmem:[#allocation8 + $0x2c0] sm:$0xf0] }
 0x46e   : > { %v3603_v30 = vadd.f32 %v3602_v4, %v3554_v59  ;;  %v10313_v4 = vor.u32 %v11495_v7, %v10312_v22 }
 0x46f   : > { %v4173_v36 = vmax.f32 %v3542_v9, 0.0  ;;  %3797 = vmatmul.bf16.vlgmr.msra.gmra.mxu0 %v12355_v52 }
 0x470   : > { %v3652_v37 = vadd.f32 %v3651_v3, %v3603_v30  ;;  %3846 = vmatmul.bf16.vlgmr.msra.gmra.mxu1 %v12351_v46  ;;  %v10025_v46 = vor.u32 %v11423_v27, %v10024_v62  ;;  %6350 = vmatpush.bf16.msrb.mxu3 %v10313_v4  ;;  %v3559_v62 = vadd.f32 %v13165_v58, %v13241_v47  ;;  %v10204_v58 = vld [vmem:[#allocation8 + $0x1e0] sm:$0xf]  ;;  %v11420_v4 = vld [vmem:[#allocation8 + $0x68] sm:$0xf0] }
 0x471   : > { %3895 = vmatmul.bf16.vlgmr.msra.gmra.mxu2 %v12353_v51  ;;  %v13253_v61 = vpack.c.bf16 %v4173_v36, %v4161_v54  ;;  %3944 = vmatmul.bf16.vlgmr.msra.gmra.mxu3 %v12355_v52  ;;  %v10120_v54 = vld [vmem:[#allocation8 + $0x138] sm:$0xf]  ;;  %v11447_v36 = vld [vmem:[#allocation8 + $0x140] sm:$0xf0] }
 0x472   : > { %6203 = vmatpush.bf16.msrb.mxu0 %v10025_v46  ;;  %v10121_v16 = vor.u32 %v11447_v36, %v10120_v54  ;;  %v3994_v15 = vmax.f32 %v3652_v37, 0.0  ;;  %v11468_v37 = vld [vmem:[#allocation8 + $0x1e8] sm:$0xf0] }
 0x473   : > { %14974 = vst [vmem:[#allocation90_spill] sm:$0xff] %v13253_v61 }
 0x474   : > { %v3700_v59 = vpop.f32.mrf.mxu2  ;;  %v3749_v8 = vpop.f32.mrf.mxu3  ;;  %6252 = vmatpush.bf16.msrb.mxu1 %v10121_v16 }
 0x475   : > { %v3701_v51 = vadd.f32 %v3700_v59, %v13251_v35  ;;  %v3604_v9 = vpop.f32.mrf.mxu0  ;;  %v3653_v52 = vpop.f32.mrf.mxu1 }
 0x476   : > { %v3605_v30 = vadd.f32 %v3604_v9, %v3556_v32  ;;  %v10012_v9 = vld [vmem:[#allocation8 + $0x60] sm:$0xf] }
 0x477   : > { %v13259_v3 = vadd.f32 %v3749_v8, %v3701_v51  ;;  %v10013_v36 = vor.u32 %v11420_v4, %v10012_v9 }
 0x478   : > { %v3654_v5 = vadd.f32 %v3653_v52, %v3605_v30  ;;  %v10300_v30 = vld [vmem:[#allocation8 + $0x2a0] sm:$0xf]  ;;  %v3561_v52 = vadd.f32 %v13168_v57, %v13241_v47 }
 0x479   : > { %6204 = vmatpush.bf16.msrb.mxu0 %v10013_v36 }
 0x47a   : > { %v4006_v61 = vmax.f32 %v3654_v5, 0.0  ;;  %v11492_v5 = vld [vmem:[#allocation8 + $0x2a8] sm:$0xf0] }
 0x47c   : > { %v13263_v27 = vpack.c.bf16 %v4006_v61, %v3994_v15  ;;  %v3702_v34 = vpop.f32.mrf.mxu2  ;;  %v3751_v32 = vpop.f32.mrf.mxu3  ;;  %v10205_v61 = vor.u32 %v11468_v37, %v10204_v58  ;;  %v3564_v58 = vadd.f32 %v13177_v10, %v13241_v47  ;;  %v10192_v10 = vld [vmem:[#allocation8 + $0x1c8] sm:$0xf] }
 0x47d   : > { %v3703_v22 = vadd.f32 %v3702_v34, %v13251_v35  ;;  %v3607_v59 = vpop.f32.mrf.mxu0  ;;  %v3656_v7 = vpop.f32.mrf.mxu1 }
 0x47e   : > { %v3608_v46 = vadd.f32 %v3607_v59, %v3559_v62  ;;  %6302 = vmatpush.bf16.msrb.mxu2 %v10205_v61 }
 0x47f   : > { %v13266_v51 = vadd.f32 %v3751_v32, %v3703_v22  ;;  %3802 = vmatmul.bf16.gmra.mxu0 %v12371_v21  ;;  %v10108_v22 = vld [vmem:[#allocation8 + $0x120] sm:$0xf]  ;;  %v11444_v32 = vld [vmem:[#allocation8 + $0x128] sm:$0xf0] }
 0x480   : > { %v3657_v8 = vadd.f32 %v3656_v7, %v3608_v46  ;;  %3851 = vmatmul.bf16.gmra.mxu1 %v12367_v19  ;;  %v10109_v46 = vor.u32 %v11444_v32, %v10108_v22  ;;  %v11489_v32 = vld [vmem:[#allocation8 + $0x290] sm:$0xf0] }
 0x481   : > { %3900 = vmatmul.bf16.gmra.mxu2 %v12369_v20  ;;  %3949 = vmatmul.bf16.gmra.mxu3 %v12371_v21  ;;  %v10301_v20 = vor.u32 %v11492_v5, %v10300_v30 }
 0x482   : > { %v4018_v57 = vmax.f32 %v3657_v8, 0.0  ;;  %6253 = vmatpush.bf16.msrb.mxu1 %v10109_v46  ;;  %v11465_v8 = vld [vmem:[#allocation8 + $0x1d0] sm:$0xf0] }
 0x483   : > { %6351 = vmatpush.bf16.msrb.mxu3 %v10301_v20  ;;  %v10288_v20 = vld [vmem:[#allocation8 + $0x288] sm:$0xf] }
 0x484   : > { %v3705_v54 = vpop.f32.mrf.mxu2  ;;  %v3754_v15 = vpop.f32.mrf.mxu3 }
 0x485   : > { %v3706_v16 = vadd.f32 %v3705_v54, %v13251_v35  ;;  %v3609_v19 = vpop.f32.mrf.mxu0  ;;  %v3658_v21 = vpop.f32.mrf.mxu1 }
 0x486   : > { %v3610_v62 = vadd.f32 %v3609_v19, %v3561_v52  ;;  %v11417_v19 = vld [vmem:[#allocation8 + $0x50] sm:$0xf0] }
 0x487   : > { %v13275_v34 = vadd.f32 %v3754_v15, %v3706_v16  ;;  %v10193_v16 = vor.u32 %v11465_v8, %v10192_v10  ;;  %v10000_v15 = vld [vmem:[#allocation8 + $0x48] sm:$0xf] }
 0x488   : > { %v3659_v59 = vadd.f32 %v3658_v21, %v3610_v62  ;;  %v3566_v62 = vadd.f32 %v13180_v33, %v13241_v47  ;;  %v10001_v22 = vor.u32 %v11417_v19, %v10000_v15 }
 0x489   : > { %6303 = vmatpush.bf16.msrb.mxu2 %v10193_v16 }
 0x48a   : > { %v4030_v7 = vmax.f32 %v3659_v59, 0.0  ;;  %6205 = vmatpush.bf16.msrb.mxu0 %v10001_v22 }
 0x48c   : > { %v3707_v37 = vpop.f32.mrf.mxu2  ;;  %v13279_v9 = vpack.c.bf16 %v4030_v7, %v4018_v57  ;;  %v3756_v4 = vpop.f32.mrf.mxu3 }
 0x48d   : > { %v3708_v61 = vadd.f32 %v3707_v37, %v13251_v35  ;;  %v3612_v30 = vpop.f32.mrf.mxu0  ;;  %v3661_v54 = vpop.f32.mrf.mxu1  ;;  %v11441_v37 = vld [vmem:[#allocation8 + $0x110] sm:$0xf0] }
 0x48e   : > { %v3613_v52 = vadd.f32 %v3612_v30, %v3564_v58  ;;  %v10096_v58 = vld [vmem:[#allocation8 + $0x108] sm:$0xf] }
 0x48f   : > { %v13282_v36 = vadd.f32 %v3756_v4, %v3708_v61  ;;  %3807 = vmatmul.bf16.gmra.mxu0 %v12387_v42  ;;  %v10097_v4 = vor.u32 %v11441_v37, %v10096_v58 }
 0x490   : > { %v3662_v5 = vadd.f32 %v3661_v54, %v3613_v52  ;;  %3856 = vmatmul.bf16.gmra.mxu1 %v12383_v40  ;;  %v3569_v52 = vadd.f32 %v13189_v60, %v13241_v47  ;;  %v10180_v60 = vld [vmem:[#allocation8 + $0x1b0] sm:$0xf] }
 0x491   : > { %3905 = vmatmul.bf16.gmra.mxu2 %v12385_v41  ;;  %3954 = vmatmul.bf16.gmra.mxu3 %v12387_v42  ;;  %v10289_v41 = vor.u32 %v11489_v32, %v10288_v20  ;;  %v9988_v32 = vld [vmem:[#allocation8 + $0x30] sm:$0xf] }
 0x492   : > { %v4042_v33 = vmax.f32 %v3662_v5, 0.0  ;;  %6254 = vmatpush.bf16.msrb.mxu1 %v10097_v4  ;;  %v11462_v5 = vld [vmem:[#allocation8 + $0x1b8] sm:$0xf0] }
 0x493   : > { %6352 = vmatpush.bf16.msrb.mxu3 %v10289_v41  ;;  %v10181_v22 = vor.u32 %v11462_v5, %v10180_v60 }
 0x494   : > { %v3710_v21 = vpop.f32.mrf.mxu2  ;;  %v3759_v46 = vpop.f32.mrf.mxu3 }
 0x495   : > { %v3711_v59 = vadd.f32 %v3710_v21, %v13251_v35  ;;  %v3614_v40 = vpop.f32.mrf.mxu0  ;;  %v3663_v42 = vpop.f32.mrf.mxu1  ;;  %6304 = vmatpush.bf16.msrb.mxu2 %v10181_v22 }
 0x496   : > { %v3615_v57 = vadd.f32 %v3614_v40, %v3566_v62  ;;  %v3571_v40 = vadd.f32 %v13192_v44, %v13241_v47 }
 0x497   : > { %v13291_v7 = vadd.f32 %v3759_v46, %v3711_v59  ;;  %v11414_v59 = vld [vmem:[#allocation8 + $0x38] sm:$0xf0]  ;;  %v10276_v46 = vld [vmem:[#allocation8 + $0x270] sm:$0xf] }
 0x498   : > { %v3664_v61 = vadd.f32 %v3663_v42, %v3615_v57  ;;  %v9989_v57 = vor.u32 %v11414_v59, %v9988_v32  ;;  %v11486_v42 = vld [vmem:[#allocation8 + $0x278] sm:$0xf0] }
 0x49a   : > { %v4054_v30 = vmax.f32 %v3664_v61, 0.0  ;;  %6206 = vmatpush.bf16.msrb.mxu0 %v9989_v57  ;;  %v11411_v57 = vld [vmem:[#allocation8 + $0x20] sm:$0xf0] }
 0x49c   : > { %v3712_v54 = vpop.f32.mrf.mxu2  ;;  %v13295_v10 = vpack.c.bf16 %v4054_v30, %v4042_v33  ;;  %v3761_v16 = vpop.f32.mrf.mxu3  ;;  %v10084_v33 = vld [vmem:[#allocation8 + $0xf0] sm:$0xf]  ;;  %v11438_v30 = vld [vmem:[#allocation8 + $0xf8] sm:$0xf0] }
 0x49d   : > { %v3713_v8 = vadd.f32 %v3712_v54, %v13251_v35  ;;  %v3617_v15 = vpop.f32.mrf.mxu0  ;;  %v3666_v20 = vpop.f32.mrf.mxu1  ;;  %v10085_v54 = vor.u32 %v11438_v30, %v10084_v33 }
 0x49e   : > { %v3618_v19 = vadd.f32 %v3617_v15, %v3569_v52 }
 0x49f   : > { %v13298_v62 = vadd.f32 %v3761_v16, %v3713_v8  ;;  %3812 = vmatmul.bf16.gmra.mxu0 %v12403_v2  ;;  %6255 = vmatpush.bf16.msrb.mxu1 %v10085_v54  ;;  %v3574_v16 = vadd.f32 %v13201_v14, %v13241_v47  ;;  %v10168_v14 = vld [vmem:[#allocation8 + $0x198] sm:$0xf]  ;;  %v11435_v54 = vld [vmem:[#allocation8 + $0xe0] sm:$0xf0] }
 0x4a0   : > { %v3667_v21 = vadd.f32 %v3666_v20, %v3618_v19  ;;  %3861 = vmatmul.bf16.gmra.mxu1 %v12399_v0 }
 0x4a1   : > { %3910 = vmatmul.bf16.gmra.mxu2 %v12401_v1  ;;  %3959 = vmatmul.bf16.gmra.mxu3 %v12403_v2  ;;  %v10277_v1 = vor.u32 %v11486_v42, %v10276_v46  ;;  %v10264_v42 = vld [vmem:[#allocation8 + $0x258] sm:$0xf] }
 0x4a2   : > { %v4066_v44 = vmax.f32 %v3667_v21, 0.0  ;;  %v11459_v21 = vld [vmem:[#allocation8 + $0x1a0] sm:$0xf0] }
 0x4a3   : > { %6353 = vmatpush.bf16.msrb.mxu3 %v10277_v1  ;;  %v11483_v1 = vld [vmem:[#allocation8 + $0x260] sm:$0xf0] }
 0x4a4   : > { %v3715_v41 = vpop.f32.mrf.mxu2  ;;  %v3764_v37 = vpop.f32.mrf.mxu3 }
 0x4a5   : > { %v3716_v58 = vadd.f32 %v3715_v41, %v13251_v35  ;;  %v3619_v0 = vpop.f32.mrf.mxu0  ;;  %v3668_v2 = vpop.f32.mrf.mxu1  ;;  %v9976_v41 = vld [vmem:[#allocation8 + $0x18] sm:$0xf] }
 0x4a6   : > { %v3620_v61 = vadd.f32 %v3619_v0, %v3571_v40  ;;  %v10169_v40 = vor.u32 %v11459_v21, %v10168_v14  ;;  %v9977_v0 = vor.u32 %v11411_v57, %v9976_v41 }
 0x4a7   : > { %v13307_v4 = vadd.f32 %v3764_v37, %v3716_v58  ;;  %v3576_v58 = vadd.f32 %v13204_v6, %v13241_v47 }
 0x4a8   : > { %v3669_v52 = vadd.f32 %v3668_v2, %v3620_v61  ;;  %6305 = vmatpush.bf16.msrb.mxu2 %v10169_v40  ;;  %6207 = vmatpush.bf16.msrb.mxu0 %v9977_v0  ;;  %v3581_v0 = vadd.f32 %v13216_v45, %v13241_v47 }
 0x4aa   : > { %v4078_v8 = vmax.f32 %v3669_v52, 0.0  ;;  %v10072_v52 = vld [vmem:[#allocation8 + $0xd8] sm:$0xf] }
 0x4ac   : > { %v3717_v15 = vpop.f32.mrf.mxu2  ;;  %v13311_v19 = vpack.c.bf16 %v4078_v8, %v4066_v44  ;;  %v3766_v60 = vpop.f32.mrf.mxu3  ;;  %v10073_v8 = vor.u32 %v11435_v54, %v10072_v52  ;;  %v10060_v52 = vld [vmem:[#allocation8 + $0xc0] sm:$0xf]  ;;  %v11432_v54 = vld [vmem:[#allocation8 + $0xc8] sm:$0xf0] }
 0x4ad   : > { %v3718_v20 = vadd.f32 %v3717_v15, %v13251_v35  ;;  %v3622_v5 = vpop.f32.mrf.mxu0  ;;  %v3671_v32 = vpop.f32.mrf.mxu1  ;;  %v3579_v15 = vadd.f32 %v13213_v31, %v13241_v47  ;;  %v10156_v31 = vld [vmem:[#allocation8 + $0x180] sm:$0xf] }
 0x4ae   : > { %v3623_v22 = vadd.f32 %v3622_v5, %v3574_v16  ;;  %6256 = vmatpush.bf16.msrb.mxu1 %v10073_v8  ;;  %v10061_v8 = vor.u32 %v11432_v54, %v10060_v52  ;;  %v11549_v52 = vld [vmem:[#allocation8 + $0x470] sm:$0xf0] }
 0x4af   : > { %v13314_v59 = vadd.f32 %v3766_v60, %v3718_v20  ;;  %3817 = vmatmul.bf16.gmra.mxu0 %v12419_v26 }
 0x4b0   : > { %v3672_v46 = vadd.f32 %v3671_v32, %v3623_v22  ;;  %3866 = vmatmul.bf16.gmra.mxu1 %v12415_v24 }
 0x4b1   : > { %3915 = vmatmul.bf16.gmra.mxu2 %v12417_v25  ;;  %3964 = vmatmul.bf16.gmra.mxu3 %v12419_v26  ;;  %v10265_v25 = vor.u32 %v11483_v1, %v10264_v42  ;;  %v9964_v42 = vld [vmem:[#allocation8] sm:$0xf] }
 0x4b2   : > { %v4090_v6 = vmax.f32 %v3672_v46, 0.0  ;;  %v11456_v46 = vld [vmem:[#allocation8 + $0x188] sm:$0xf0]  ;;  %6257 = vmatpush.bf16.msrb.mxu1 %v10061_v8  ;;  %v3589_v8 = vadd.f32 %v13237_v17, %v13241_v47  ;;  %v10612_v17 = vld [vmem:[#allocation8 + $0x510] sm:$0xf] }
 0x4b3   : > { %6354 = vmatpush.bf16.msrb.mxu3 %v10265_v25  ;;  %v10157_v57 = vor.u32 %v11456_v46, %v10156_v31 }
 0x4b4   : > { %v3720_v37 = vpop.f32.mrf.mxu2  ;;  %v3769_v2 = vpop.f32.mrf.mxu3 }
 0x4b5   : > { %v3721_v61 = vadd.f32 %v3720_v37, %v13251_v35  ;;  %v3624_v24 = vpop.f32.mrf.mxu0  ;;  %v3673_v26 = vpop.f32.mrf.mxu1  ;;  %v10252_v37 = vld [vmem:[#allocation8 + $0x240] sm:$0xf]  ;;  %6306 = vmatpush.bf16.msrb.mxu2 %v10157_v57 }
 0x4b6   : > { %v3625_v33 = vadd.f32 %v3624_v24, %v3576_v58  ;;  %v11408_v58 = vld [vmem:[#allocation8 + $0x8] sm:$0xf0] }
 0x4b7   : > { %v13323_v30 = vadd.f32 %v3769_v2, %v3721_v61  ;;  %v9965_v61 = vor.u32 %v11408_v58, %v9964_v42  ;;  %v11480_v2 = vld [vmem:[#allocation8 + $0x248] sm:$0xf0]  ;;  %v10432_v42 = vld [vmem:[#allocation8 + $0x3a8] sm:$0xf]  ;;  %v11525_v58 = vld [vmem:[#allocation8 + $0x3b0] sm:$0xf0] }
 0x4b8   : > { %v3674_v44 = vadd.f32 %v3673_v26, %v3625_v33 }
 0x4b9   : > { %6208 = vmatpush.bf16.msrb.mxu0 %v9965_v61  ;;  %v10433_v61 = vor.u32 %v11525_v58, %v10432_v42  ;;  %v11522_v58 = vld [vmem:[#allocation8 + $0x398] sm:$0xf0] }
 0x4ba   : > { %v4102_v16 = vmax.f32 %v3674_v44, 0.0 }
 0x4bc   : > { %v3722_v20 = vpop.f32.mrf.mxu2  ;;  %v13327_v60 = vpack.c.bf16 %v4102_v16, %v4090_v6  ;;  %v3771_v22 = vpop.f32.mrf.mxu3  ;;  %v3584_v16 = vadd.f32 %v13225_v48, %v13241_v47  ;;  %v10624_v48 = vld [vmem:[#allocation8 + $0x528] sm:$0xf] }
 0x4bd   : > { %v3723_v5 = vadd.f32 %v3722_v20, %v13251_v35  ;;  %v3627_v32 = vpop.f32.mrf.mxu0  ;;  %v3676_v21 = vpop.f32.mrf.mxu1  ;;  %6397 = vmatpush.bf16.msra.mxu0 %v10433_v61 }
 0x4be   : > { %v3628_v14 = vadd.f32 %v3627_v32, %v3579_v15 }
 0x4bf   : > { %v13330_v40 = vadd.f32 %v3771_v22, %v3723_v5  ;;  %3822 = vmatmul.bf16.gmra.mxu0 %v12435_v53 }
 0x4c0   : > { %v3677_v41 = vadd.f32 %v3676_v21, %v3628_v14  ;;  %3871 = vmatmul.bf16.gmra.mxu1 %v12431_v49 }
 0x4c1   : > { %3920 = vmatmul.bf16.gmra.mxu2 %v12433_v50  ;;  %3969 = vmatmul.bf16.gmra.mxu3 %v12435_v53  ;;  %v10253_v50 = vor.u32 %v11480_v2, %v10252_v37  ;;  %v10720_v37 = vld [vmem:[#allocation8 + $0x5e8] sm:$0xf]  ;;  %v11597_v2 = vld [vmem:[#allocation8 + $0x5f0] sm:$0xf0] }
 0x4c2   : > { %v4114_v45 = vmax.f32 %v3677_v41, 0.0  ;;  %v11573_v41 = vld [vmem:[#allocation8 + $0x530] sm:$0xf0] }
 0x4c3   : > { %6355 = vmatpush.bf16.msrb.mxu3 %v10253_v50  ;;  %v10625_v57 = vor.u32 %v11573_v41, %v10624_v48  ;;  %v10420_v48 = vld [vmem:[#allocation8 + $0x390] sm:$0xf]  ;;  %v3591_v41 = vadd.f32 %v13245_v29, %v13241_v47  ;;  %v11546_v29 = vld [vmem:[#allocation8 + $0x458] sm:$0xf0] }
 0x4c4   : > { %v3725_v1 = vpop.f32.mrf.mxu2  ;;  %v3774_v25 = vpop.f32.mrf.mxu3 }
 0x4c5   : > { %v3726_v24 = vadd.f32 %v3725_v1, %v13251_v35  ;;  %v3629_v49 = vpop.f32.mrf.mxu0  ;;  %v3678_v53 = vpop.f32.mrf.mxu1  ;;  %6495 = vmatpush.bf16.msra.mxu2 %v10625_v57 }
 0x4c6   : > { %v3630_v33 = vadd.f32 %v3629_v49, %v3581_v0  ;;  %v3586_v0 = vadd.f32 %v13228_v63, %v13241_v47  ;;  %v10516_v47 = vld [vmem:[#allocation8 + $0x450] sm:$0xf] }
 0x4c7   : > { %v13339_v26 = vadd.f32 %v3774_v25, %v3726_v24 }
 0x4c8   : > { %v3679_v44 = vadd.f32 %v3678_v53, %v3630_v33  ;;  %v10528_v53 = vld [vmem:[#allocation8 + $0x468] sm:$0xf] }
 0x4ca   : > { %v4126_v6 = vmax.f32 %v3679_v44, 0.0  ;;  %v10529_v44 = vor.u32 %v11549_v52, %v10528_v53 }
 0x4cc   : > { %v3727_v15 = vpop.f32.mrf.mxu2  ;;  %v13343_v20 = vpack.c.bf16 %v4126_v6, %v4114_v45  ;;  %v3776_v22 = vpop.f32.mrf.mxu3  ;;  %6446 = vmatpush.bf16.msra.mxu1 %v10529_v44  ;;  %v11851_v44 = vld [vmem:[#allocation7 + $0x8] sm:$0xf] }
 0x4cd   : > { %v3728_v5 = vadd.f32 %v3727_v15, %v13251_v35  ;;  %v3632_v32 = vpop.f32.mrf.mxu0  ;;  %v3681_v21 = vpop.f32.mrf.mxu1 }
 0x4ce   : > { %v3633_v14 = vadd.f32 %v3632_v32, %v3584_v16 }
 0x4cf   : > { %v13346_v31 = vadd.f32 %v3776_v22, %v3728_v5  ;;  %3827 = vmatmul.bf16.gmra.mxu0 %v12451_v13 }
 0x4d0   : > { %v3682_v46 = vadd.f32 %v3681_v21, %v3633_v14  ;;  %3876 = vmatmul.bf16.gmra.mxu1 %v12447_v11 }
 0x4d1   : > { %3925 = vmatmul.bf16.gmra.mxu2 %v12449_v12  ;;  %3974 = vmatmul.bf16.gmra.mxu3 %v12451_v13  ;;  %v10721_v12 = vor.u32 %v11597_v2, %v10720_v37  ;;  %v10708_v37 = vld [vmem:[#allocation8 + $0x5d0] sm:$0xf] }
 0x4d2   : > { %v4138_v54 = vmax.f32 %v3682_v46, 0.0  ;;  %v11570_v46 = vld [vmem:[#allocation8 + $0x518] sm:$0xf0] }
 0x4d3   : > { %6544 = vmatpush.bf16.msra.mxu3 %v10721_v12  ;;  %v10613_v42 = vor.u32 %v11570_v46, %v10612_v17  ;;  %v11567_v17 = vld [vmem:[#allocation8 + $0x500] sm:$0xf0]  ;;  %v10408_v46 = vld [vmem:[#allocation8 + $0x378] sm:$0xf] }
 0x4d4   : > { %v3730_v1 = vpop.f32.mrf.mxu2  ;;  %v3779_v25 = vpop.f32.mrf.mxu3 }
 0x4d5   : > { %v3731_v24 = vadd.f32 %v3730_v1, %v13251_v35  ;;  %v3634_v11 = vpop.f32.mrf.mxu0  ;;  %v3683_v13 = vpop.f32.mrf.mxu1  ;;  %6496 = vmatpush.bf16.msra.mxu2 %v10613_v42 }
 0x4d6   : > { %v3635_v49 = vadd.f32 %v3634_v11, %v3586_v0  ;;  %v11594_v0 = vld [vmem:[#allocation8 + $0x5d8] sm:$0xf0] }
 0x4d7   : > { %v13355_v50 = vadd.f32 %v3779_v25, %v3731_v24  ;;  %v10709_v24 = vor.u32 %v11594_v0, %v10708_v37 }
 0x4d8   : > { %v3684_v33 = vadd.f32 %v3683_v13, %v3635_v49  ;;  %v10517_v13 = vor.u32 %v11546_v29, %v10516_v47  ;;  %v11543_v47 = vld [vmem:[#allocation8 + $0x440] sm:$0xf0] }
 0x4d9   : > { %6545 = vmatpush.bf16.msra.mxu3 %v10709_v24 }
 0x4da   : > { %v4150_v63 = vmax.f32 %v3684_v33, 0.0  ;;  %6447 = vmatpush.bf16.msra.mxu1 %v10517_v13 }
 0x4dc   : > { %v3732_v45 = vpop.f32.mrf.mxu2  ;;  %v13359_v6 = vpack.c.bf16 %v4150_v63, %v4138_v54  ;;  %v3781_v15 = vpop.f32.mrf.mxu3 }
 0x4dd   : > { %v3733_v16 = vadd.f32 %v3732_v45, %v13251_v35  ;;  %v3637_v5 = vpop.f32.mrf.mxu0  ;;  %v3686_v32 = vpop.f32.mrf.mxu1 }
 0x4de   : > { %v3638_v22 = vadd.f32 %v3637_v5, %v3589_v8  ;;  %v13376_v8 = vperm.slane %v11851_v44, 3 }
 0x4df   : > { %v13362_v14 = vadd.f32 %v3781_v15, %v3733_v16  ;;  %3832 = vmatmul.bf16.gmra.mxu0 %v12467_v43 }
 0x4e0   : > { %v3687_v21 = vadd.f32 %v3686_v32, %v3638_v22  ;;  %3881 = vmatmul.bf16.gmra.mxu1 %v12463_v38  ;;  %v10421_v38 = vor.u32 %v11522_v58, %v10420_v48  ;;  %v14975_v22 = vld [vmem:[#allocation27_spill] sm:$0xff] }
 0x4e1   : > { %3930 = vmatmul.bf16.gmra.mxu2 %v12465_v39  ;;  %3979 = vmatmul.bf16.gmra.mxu3 %v12467_v43  ;;  %v14976_v32 = vld [vmem:[#allocation35_spill] sm:$0xff] }
 0x4e2   : > { %6398 = vmatpush.bf16.msra.mxu0 %v10421_v38  ;;  %v4162_v12 = vmax.f32 %v3687_v21, 0.0  ;;  %v14977_v21 = vld [vmem:[#allocation36_spill] sm:$0xff] }
 0x4e4   : > { %v3735_v57 = vpop.f32.mrf.mxu2  ;;  %v3784_v61 = vpop.f32.mrf.mxu3 }
 0x4e5   : > { %v3736_v1 = vadd.f32 %v3735_v57, %v13251_v35  ;;  %v3639_v2 = vpop.f32.mrf.mxu0  ;;  %v3688_v25 = vpop.f32.mrf.mxu1  ;;  %v10696_v57 = vld [vmem:[#allocation8 + $0x5b8] sm:$0xf] }
 0x4e6   : > { %v3640_v39 = vadd.f32 %v3639_v2, %v3591_v41  ;;  %v11519_v41 = vld [vmem:[#allocation8 + $0x380] sm:$0xf0] }
 0x4e7   : > { %v13371_v43 = vadd.f32 %v3784_v61, %v3736_v1  ;;  %v10409_v58 = vor.u32 %v11519_v41, %v10408_v46  ;;  %v14980_v46 = vld [vmem:[#allocation37_spill] sm:$0xff]  ;;  %v10588_v41 = vld [vmem:[#allocation8 + $0x4e0] sm:$0xf] }
 0x4e8   : > { %v3689_v11 = vadd.f32 %v3688_v25, %v3640_v39 }
 0x4e9   : > { %6399 = vmatpush.bf16.msra.mxu0 %v10409_v58  ;;  %v11516_v58 = vld [vmem:[#allocation8 + $0x368] sm:$0xf0] }
 0x4ea   : > { %v4174_v49 = vmax.f32 %v3689_v11, 0.0  ;;  %v10504_v11 = vld [vmem:[#allocation8 + $0x438] sm:$0xf] }
 0x4ec   : > { %v3737_v33 = vpop.f32.mrf.mxu2  ;;  %v13373_v53 = vpack.c.bf16 %v4174_v49, %v4162_v12  ;;  %v3786_v54 = vpop.f32.mrf.mxu3  ;;  %v10505_v12 = vor.u32 %v11543_v47, %v10504_v11 }
 0x4ed   : > { %v3738_v52 = vadd.f32 %v3737_v33, %v13251_v35  ;;  %v3798_v63 = vpop.f32.mrf.mxu0  ;;  %v3847_v16 = vpop.f32.mrf.mxu1  ;;  %v10600_v35 = vld [vmem:[#allocation8 + $0x4f8] sm:$0xf] }
 0x4ee   : > { %v3799_v45 = vadd.f32 %v3798_v63, %v13259_v3  ;;  %v3848_v5 = vadd.f32 %v3847_v16, %v13376_v8  ;;  %v10601_v48 = vor.u32 %v11567_v17, %v10600_v35  ;;  %v11591_v3 = vld [vmem:[#allocation8 + $0x5c0] sm:$0xf0]  ;;  %6448 = vmatpush.bf16.msra.mxu1 %v10505_v12  ;;  %v14978_v16 = vld [vmem:[#allocation20_spill] sm:$0xff] }
 0x4ef   : > { %v13379_v15 = vadd.f32 %v3786_v54, %v3738_v52  ;;  %6209 = vmatmul.bf16.vlgmr.msrb.gmra.mxu0 %v12490_v56  ;;  %v10697_v37 = vor.u32 %v11591_v3, %v10696_v57  ;;  %v14979_v17 = vld [vmem:[#allocation28_spill] sm:$0xff]  ;;  %v10396_v3 = vld [vmem:[#allocation8 + $0x360] sm:$0xf] }
 0x4f0   : > { %6258 = vmatmul.bf16.vlgmr.msrb.gmra.mxu1 %v14975_v22  ;;  %6497 = vmatpush.bf16.msra.mxu2 %v10601_v48  ;;  %v3995_v39 = vmax.f32 %v3799_v45, 0.0  ;;  %v14981_v48 = vld [vmem:[#allocation38_spill] sm:$0xff]  ;;  %v11564_v57 = vld [vmem:[#allocation8 + $0x4e8] sm:$0xf0] }
 0x4f1   : > { %6307 = vmatmul.bf16.vlgmr.msrb.gmra.mxu2 %v14976_v32  ;;  %6356 = vmatmul.bf16.vlgmr.msrb.gmra.mxu3 %v14977_v21 }
 0x4f2   : > { %6546 = vmatpush.bf16.msra.mxu3 %v10697_v37  ;;  %v10684_v37 = vld [vmem:[#allocation8 + $0x5a0] sm:$0xf] }
 0x4f4   : > { %v3896_v42 = vpop.f32.mrf.mxu2  ;;  %v3945_v1 = vpop.f32.mrf.mxu3 }
 0x4f5   : > { %v3897_v0 = vadd.f32 %v3896_v42, %v3848_v5  ;;  %v3800_v61 = vpop.f32.mrf.mxu0  ;;  %v3849_v38 = vpop.f32.mrf.mxu1 }
 0x4f6   : > { %v3801_v2 = vadd.f32 %v3800_v61, %v13266_v51  ;;  %v3850_v49 = vadd.f32 %v3849_v38, %v13376_v8  ;;  %v10397_v61 = vor.u32 %v11516_v58, %v10396_v3  ;;  %v14983_v3 = vld [vmem:[#allocation21_spill] sm:$0xff] }
 0x4f7   : > { %v3946_v24 = vadd.f32 %v3945_v1, %v3897_v0  ;;  %v11588_v0 = vld [vmem:[#allocation8 + $0x5a8] sm:$0xf0] }
 0x4f8   : > { %v4007_v25 = vmax.f32 %v3801_v2, 0.0  ;;  %v10685_v2 = vor.u32 %v11588_v0, %v10684_v37  ;;  %6400 = vmatpush.bf16.msra.mxu0 %v10397_v61  ;;  %v14984_v37 = vld [vmem:[#allocation29_spill] sm:$0xff]  ;;  %v14985_v0 = vld [vmem:[#allocation39_spill] sm:$0xff] }
 0x4f9   : > { %v3996_v45 = vmax.f32 %v3946_v24, 0.0  ;;  %v10576_v61 = vld [vmem:[#allocation8 + $0x4c8] sm:$0xf] }
 0x4fa   : > { %v13387_v29 = vpack.c.bf16 %v4007_v25, %v3995_v39  ;;  %6547 = vmatpush.bf16.msra.mxu3 %v10685_v2  ;;  %v11561_v2 = vld [vmem:[#allocation8 + $0x4d0] sm:$0xf0] }
 0x4fc   : > { %v3898_v13 = vpop.f32.mrf.mxu2  ;;  %v3947_v52 = vpop.f32.mrf.mxu3 }
 0x4fd   : > { %v3899_v33 = vadd.f32 %v3898_v13, %v3850_v49  ;;  %v3803_v54 = vpop.f32.mrf.mxu0  ;;  %v3852_v63 = vpop.f32.mrf.mxu1  ;;  %v10492_v13 = vld [vmem:[#allocation8 + $0x420] sm:$0xf] }
 0x4fe   : > { %v3804_v51 = vadd.f32 %v3803_v54, %v13275_v34  ;;  %v3853_v35 = vadd.f32 %v3852_v63, %v13376_v8  ;;  %v10589_v34 = vor.u32 %v11564_v57, %v10588_v41 }
 0x4ff   : > { %v3948_v44 = vadd.f32 %v3947_v52, %v3899_v33  ;;  %6214 = vmatmul.bf16.gmra.mxu0 %v14978_v16  ;;  %v11540_v33 = vld [vmem:[#allocation8 + $0x428] sm:$0xf0] }
 0x500   : > { %6263 = vmatmul.bf16.gmra.mxu1 %v14979_v17  ;;  %6498 = vmatpush.bf16.msra.mxu2 %v10589_v34  ;;  %v4019_v12 = vmax.f32 %v3804_v51, 0.0  ;;  %v10493_v52 = vor.u32 %v11540_v33, %v10492_v13 }
 0x501   : > { %v4008_v5 = vmax.f32 %v3948_v44, 0.0  ;;  %6312 = vmatmul.bf16.gmra.mxu2 %v14980_v46  ;;  %6361 = vmatmul.bf16.gmra.mxu3 %v14981_v48 }
 0x502   : > { %6449 = vmatpush.bf16.msra.mxu1 %v10493_v52 }
 0x503   : > { %v13396_v42 = vpack.c.bf16 %v4008_v5, %v3996_v45 }
 0x504   : > { %v3901_v1 = vpop.f32.mrf.mxu2  ;;  %v3950_v24 = vpop.f32.mrf.mxu3 }
 0x505   : > { %14982 = vst [vmem:[#allocation27_spill] sm:$0xff] %v13396_v42  ;;  %v3902_v38 = vadd.f32 %v3901_v1, %v3853_v35  ;;  %v3805_v39 = vpop.f32.mrf.mxu0  ;;  %v3854_v11 = vpop.f32.mrf.mxu1  ;;  %v14986_v1 = vld [vmem:[#allocation40_spill] sm:$0xff] }
 0x506   : > { %v3806_v25 = vadd.f32 %v3805_v39, %v13282_v36  ;;  %v3855_v63 = vadd.f32 %v3854_v11, %v13376_v8  ;;  %v11513_v39 = vld [vmem:[#allocation8 + $0x350] sm:$0xf0] }
 0x507   : > { %v3951_v47 = vadd.f32 %v3950_v24, %v3902_v38  ;;  %v10384_v38 = vld [vmem:[#allocation8 + $0x348] sm:$0xf]  ;;  %v10577_v24 = vor.u32 %v11561_v2, %v10576_v61 }
 0x508   : > { %v4031_v49 = vmax.f32 %v3806_v25, 0.0  ;;  %v11585_v25 = vld [vmem:[#allocation8 + $0x590] sm:$0xf0] }
 0x509   : > { %v4020_v51 = vmax.f32 %v3951_v47, 0.0  ;;  %v10385_v47 = vor.u32 %v11513_v39, %v10384_v38  ;;  %6499 = vmatpush.bf16.msra.mxu2 %v10577_v24 }
 0x50a   : > { %v13399_v54 = vpack.c.bf16 %v4031_v49, %v4019_v12 }
 0x50b   : > { %6401 = vmatpush.bf16.msra.mxu0 %v10385_v47 }
 0x50c   : > { %v3903_v44 = vpop.f32.mrf.mxu2  ;;  %v3952_v5 = vpop.f32.mrf.mxu3 }
 0x50d   : > { %v3904_v45 = vadd.f32 %v3903_v44, %v3855_v63  ;;  %v3808_v35 = vpop.f32.mrf.mxu0  ;;  %v3857_v41 = vpop.f32.mrf.mxu1 }
 0x50e   : > { %v3809_v36 = vadd.f32 %v3808_v35, %v13291_v7  ;;  %v3858_v58 = vadd.f32 %v3857_v41, %v13376_v8  ;;  %v10672_v7 = vld [vmem:[#allocation8 + $0x588] sm:$0xf] }
 0x50f   : > { %v3953_v57 = vadd.f32 %v3952_v5, %v3904_v45  ;;  %6219 = vmatmul.bf16.gmra.mxu0 %v14983_v3  ;;  %v10673_v49 = vor.u32 %v11585_v25, %v10672_v7  ;;  %v10480_v41 = vld [vmem:[#allocation8 + $0x408] sm:$0xf]  ;;  %v14988_v25 = vld [vmem:[#allocation22_spill] sm:$0xff] }
 0x510   : > { %6268 = vmatmul.bf16.gmra.mxu1 %v14984_v37  ;;  %v4043_v5 = vmax.f32 %v3809_v36, 0.0 }
 0x511   : > { %v4032_v34 = vmax.f32 %v3953_v57, 0.0  ;;  %6317 = vmatmul.bf16.gmra.mxu2 %v14985_v0  ;;  %6366 = vmatmul.bf16.gmra.mxu3 %v14986_v1  ;;  %v11537_v57 = vld [vmem:[#allocation8 + $0x410] sm:$0xf0] }
 0x512   : > { %6548 = vmatpush.bf16.msra.mxu3 %v10673_v49  ;;  %v10481_v61 = vor.u32 %v11537_v57, %v10480_v41  ;;  %v14989_v49 = vld [vmem:[#allocation30_spill] sm:$0xff] }
 0x513   : > { %v13408_v11 = vpack.c.bf16 %v4032_v34, %v4020_v51  ;;  %v11582_v41 = vld [vmem:[#allocation8 + $0x578] sm:$0xf0] }
 0x514   : > { %v3906_v12 = vpop.f32.mrf.mxu2  ;;  %v3955_v33 = vpop.f32.mrf.mxu3  ;;  %6450 = vmatpush.bf16.msra.mxu1 %v10481_v61 }
 0x515   : > { %14987 = vst [vmem:[#allocation35_spill] sm:$0xff] %v13408_v11  ;;  %v3907_v13 = vadd.f32 %v3906_v12, %v3858_v58  ;;  %v3810_v52 = vpop.f32.mrf.mxu0  ;;  %v3859_v44 = vpop.f32.mrf.mxu1 }
 0x516   : > { %v3811_v63 = vadd.f32 %v3810_v52, %v13298_v62  ;;  %v3860_v34 = vadd.f32 %v3859_v44, %v13376_v8  ;;  %v10564_v52 = vld [vmem:[#allocation8 + $0x4b0] sm:$0xf] }
 0x517   : > { %v3956_v45 = vadd.f32 %v3955_v33, %v3907_v13  ;;  %v14990_v13 = vld [vmem:[#allocation41_spill] sm:$0xff]  ;;  %v14991_v33 = vld [vmem:[#allocation42_spill] sm:$0xff]  ;;  %v10372_v44 = vld [vmem:[#allocation8 + $0x330] sm:$0xf] }
 0x518   : > { %v4055_v35 = vmax.f32 %v3811_v63, 0.0  ;;  %v11558_v63 = vld [vmem:[#allocation8 + $0x4b8] sm:$0xf0] }
 0x519   : > { %v4044_v36 = vmax.f32 %v3956_v45, 0.0 }
 0x51a   : > { %v13411_v51 = vpack.c.bf16 %v4055_v35, %v4043_v5  ;;  %v10565_v5 = vor.u32 %v11558_v63, %v10564_v52  ;;  %v11510_v35 = vld [vmem:[#allocation8 + $0x338] sm:$0xf0]  ;;  %v10468_v63 = vld [vmem:[#allocation8 + $0x3f0] sm:$0xf] }
 0x51b   : > { %v10373_v45 = vor.u32 %v11510_v35, %v10372_v44 }
 0x51c   : > { %v3908_v2 = vpop.f32.mrf.mxu2  ;;  %v3957_v38 = vpop.f32.mrf.mxu3  ;;  %6500 = vmatpush.bf16.msra.mxu2 %v10565_v5 }
 0x51d   : > { %v3909_v58 = vadd.f32 %v3908_v2, %v3860_v34  ;;  %v3813_v24 = vpop.f32.mrf.mxu0  ;;  %v3862_v39 = vpop.f32.mrf.mxu1  ;;  %6402 = vmatpush.bf16.msra.mxu0 %v10373_v45 }
 0x51e   : > { %v3814_v62 = vadd.f32 %v3813_v24, %v13307_v4  ;;  %v3863_v47 = vadd.f32 %v3862_v39, %v13376_v8  ;;  %v10660_v4 = vld [vmem:[#allocation8 + $0x570] sm:$0xf] }
 0x51f   : > { %v3958_v7 = vadd.f32 %v3957_v38, %v3909_v58  ;;  %6224 = vmatmul.bf16.gmra.mxu0 %v14988_v25  ;;  %v10661_v34 = vor.u32 %v11582_v41, %v10660_v4 }
 0x520   : > { %6273 = vmatmul.bf16.gmra.mxu1 %v14989_v49 }
 0x521   : > { %v4056_v12 = vmax.f32 %v3958_v7, 0.0  ;;  %6322 = vmatmul.bf16.gmra.mxu2 %v14990_v13  ;;  %6371 = vmatmul.bf16.gmra.mxu3 %v14991_v33  ;;  %v4067_v33 = vmax.f32 %v3814_v62, 0.0  ;;  %v11534_v13 = vld [vmem:[#allocation8 + $0x3f8] sm:$0xf0] }
 0x522   : > { %6549 = vmatpush.bf16.msra.mxu3 %v10661_v34  ;;  %v10469_v49 = vor.u32 %v11534_v13, %v10468_v63  ;;  %v14994_v13 = vld [vmem:[#allocation31_spill] sm:$0xff] }
 0x523   : > { %v13420_v57 = vpack.c.bf16 %v4056_v12, %v4044_v36 }
 0x524   : > { %v3911_v61 = vpop.f32.mrf.mxu2  ;;  %v3960_v58 = vpop.f32.mrf.mxu3  ;;  %6451 = vmatpush.bf16.msra.mxu1 %v10469_v49  ;;  %v10552_v49 = vld [vmem:[#allocation8 + $0x498] sm:$0xf] }
 0x525   : > { %14992 = vst [vmem:[#allocation36_spill] sm:$0xff] %v13420_v57  ;;  %v3912_v2 = vadd.f32 %v3911_v61, %v3863_v47  ;;  %v3815_v38 = vpop.f32.mrf.mxu0  ;;  %v3864_v39 = vpop.f32.mrf.mxu1  ;;  %v14993_v61 = vld [vmem:[#allocation23_spill] sm:$0xff] }
 0x526   : > { %v3816_v24 = vadd.f32 %v3815_v38, %v13314_v59  ;;  %v3865_v12 = vadd.f32 %v3864_v39, %v13376_v8  ;;  %v10360_v38 = vld [vmem:[#allocation8 + $0x318] sm:$0xf]  ;;  %v11507_v39 = vld [vmem:[#allocation8 + $0x320] sm:$0xf0] }
 0x527   : > { %v3961_v7 = vadd.f32 %v3960_v58, %v3912_v2  ;;  %v14996_v2 = vld [vmem:[#allocation44_spill] sm:$0xff]  ;;  %v11555_v58 = vld [vmem:[#allocation8 + $0x4a0] sm:$0xf0] }
 0x528   : > { %v4079_v52 = vmax.f32 %v3816_v24, 0.0  ;;  %v10553_v24 = vor.u32 %v11555_v58, %v10552_v49  ;;  %v10456_v58 = vld [vmem:[#allocation8 + $0x3d8] sm:$0xf] }
 0x529   : > { %v4068_v62 = vmax.f32 %v3961_v7, 0.0  ;;  %v10361_v7 = vor.u32 %v11507_v39, %v10360_v38 }
 0x52a   : > { %v13423_v36 = vpack.c.bf16 %v4079_v52, %v4067_v33  ;;  %v14995_v33 = vld [vmem:[#allocation43_spill] sm:$0xff]  ;;  %6501 = vmatpush.bf16.msra.mxu2 %v10553_v24 }
 0x52b   : > { %v11579_v52 = vld [vmem:[#allocation8 + $0x560] sm:$0xf0]  ;;  %6403 = vmatpush.bf16.msra.mxu0 %v10361_v7 }
 0x52c   : > { %v3913_v44 = vpop.f32.mrf.mxu2  ;;  %v3962_v35 = vpop.f32.mrf.mxu3 }
 0x52d   : > { %v3914_v47 = vadd.f32 %v3913_v44, %v3865_v12  ;;  %v3818_v5 = vpop.f32.mrf.mxu0  ;;  %v3867_v4 = vpop.f32.mrf.mxu1 }
 0x52e   : > { %v3819_v59 = vadd.f32 %v3818_v5, %v13323_v30  ;;  %v3868_v34 = vadd.f32 %v3867_v4, %v13376_v8  ;;  %v10648_v30 = vld [vmem:[#allocation8 + $0x558] sm:$0xf] }
 0x52f   : > { %v3963_v41 = vadd.f32 %v3962_v35, %v3914_v47  ;;  %6229 = vmatmul.bf16.gmra.mxu0 %v14993_v61  ;;  %v10649_v44 = vor.u32 %v11579_v52, %v10648_v30 }
 0x530   : > { %6278 = vmatmul.bf16.gmra.mxu1 %v14994_v13  ;;  %v11531_v13 = vld [vmem:[#allocation8 + $0x3e0] sm:$0xf0] }
 0x531   : > { %v4080_v45 = vmax.f32 %v3963_v41, 0.0  ;;  %6327 = vmatmul.bf16.gmra.mxu2 %v14995_v33  ;;  %6376 = vmatmul.bf16.gmra.mxu3 %v14996_v2  ;;  %v4091_v33 = vmax.f32 %v3819_v59, 0.0  ;;  %v10457_v61 = vor.u32 %v11531_v13, %v10456_v58  ;;  %v14999_v13 = vld [vmem:[#allocation32_spill] sm:$0xff] }
 0x532   : > { %6550 = vmatpush.bf16.msra.mxu3 %v10649_v44 }
 0x533   : > { %v13432_v63 = vpack.c.bf16 %v4080_v45, %v4068_v62  ;;  %6452 = vmatpush.bf16.msra.mxu1 %v10457_v61  ;;  %v10540_v61 = vld [vmem:[#allocation8 + $0x480] sm:$0xf] }
 0x534   : > { %v3916_v12 = vpop.f32.mrf.mxu2  ;;  %v3965_v35 = vpop.f32.mrf.mxu3 }
 0x535   : > { %14997 = vst [vmem:[#allocation91_spill] sm:$0xff] %v13432_v63  ;;  %v3917_v47 = vadd.f32 %v3916_v12, %v3868_v34  ;;  %v3820_v5 = vpop.f32.mrf.mxu0  ;;  %v3869_v41 = vpop.f32.mrf.mxu1  ;;  %v14998_v12 = vld [vmem:[#allocation24_spill] sm:$0xff] }
 0x536   : > { %v3821_v4 = vadd.f32 %v3820_v5, %v13330_v40  ;;  %v3870_v45 = vadd.f32 %v3869_v41, %v13376_v8  ;;  %v10348_v5 = vld [vmem:[#allocation8 + $0x300] sm:$0xf]  ;;  %v11504_v41 = vld [vmem:[#allocation8 + $0x308] sm:$0xf0] }
 0x537   : > { %v3966_v2 = vadd.f32 %v3965_v35, %v3917_v47  ;;  %v15001_v47 = vld [vmem:[#allocation46_spill] sm:$0xff]  ;;  %v11552_v35 = vld [vmem:[#allocation8 + $0x488] sm:$0xf0] }
 0x538   : > { %v4103_v49 = vmax.f32 %v3821_v4, 0.0  ;;  %v10541_v4 = vor.u32 %v11552_v35, %v10540_v61  ;;  %v10444_v35 = vld [vmem:[#allocation8 + $0x3c0] sm:$0xf] }
 0x539   : > { %v4092_v59 = vmax.f32 %v3966_v2, 0.0  ;;  %v10349_v2 = vor.u32 %v11504_v41, %v10348_v5 }
 0x53a   : > { %v13435_v62 = vpack.c.bf16 %v4103_v49, %v4091_v33  ;;  %v15000_v33 = vld [vmem:[#allocation45_spill] sm:$0xff]  ;;  %v11576_v49 = vld [vmem:[#allocation8 + $0x548] sm:$0xf0]  ;;  %6502 = vmatpush.bf16.msra.mxu2 %v10541_v4 }
 0x53b   : > { %6404 = vmatpush.bf16.msra.mxu0 %v10349_v2 }
 0x53c   : > { %v3918_v38 = vpop.f32.mrf.mxu2  ;;  %v3967_v39 = vpop.f32.mrf.mxu3 }
 0x53d   : > { %v3919_v34 = vadd.f32 %v3918_v38, %v3870_v45  ;;  %v3823_v24 = vpop.f32.mrf.mxu0  ;;  %v3872_v30 = vpop.f32.mrf.mxu1 }
 0x53e   : > { %v3824_v40 = vadd.f32 %v3823_v24, %v13339_v26  ;;  %v3873_v44 = vadd.f32 %v3872_v30, %v13376_v8  ;;  %v10636_v26 = vld [vmem:[#allocation8 + $0x540] sm:$0xf] }
 0x53f   : > { %v3968_v52 = vadd.f32 %v3967_v39, %v3919_v34  ;;  %6234 = vmatmul.bf16.gmra.mxu0 %v14998_v12  ;;  %v10637_v38 = vor.u32 %v11576_v49, %v10636_v26 }
 0x540   : > { %6283 = vmatmul.bf16.gmra.mxu1 %v14999_v13  ;;  %v11528_v13 = vld [vmem:[#allocation8 + $0x3c8] sm:$0xf0] }
 0x541   : > { %v4104_v7 = vmax.f32 %v3968_v52, 0.0  ;;  %6332 = vmatmul.bf16.gmra.mxu2 %v15000_v33  ;;  %6381 = vmatmul.bf16.gmra.mxu3 %v15001_v47  ;;  %v4115_v33 = vmax.f32 %v3824_v40, 0.0  ;;  %v10445_v12 = vor.u32 %v11528_v13, %v10444_v35  ;;  %v15004_v13 = vld [vmem:[#allocation33_spill] sm:$0xff] }
 0x542   : > { %6551 = vmatpush.bf16.msra.mxu3 %v10637_v38 }
 0x543   : > { %v13444_v58 = vpack.c.bf16 %v4104_v7, %v4092_v59  ;;  %6453 = vmatpush.bf16.msra.mxu1 %v10445_v12  ;;  %v11008_v12 = vld [vmem:[#allocation8 + $0x828] sm:$0xf] }
 0x544   : > { %v3921_v45 = vpop.f32.mrf.mxu2  ;;  %v3970_v39 = vpop.f32.mrf.mxu3 }
 0x545   : > { %15002 = vst [vmem:[#allocation92_spill] sm:$0xff] %v13444_v58  ;;  %v3922_v34 = vadd.f32 %v3921_v45, %v3873_v44  ;;  %v3825_v24 = vpop.f32.mrf.mxu0  ;;  %v3874_v52 = vpop.f32.mrf.mxu1  ;;  %v15003_v45 = vld [vmem:[#allocation25_spill] sm:$0xff] }
 0x546   : > { %v3826_v30 = vadd.f32 %v3825_v24, %v13346_v31  ;;  %v3875_v7 = vadd.f32 %v3874_v52, %v13376_v8  ;;  %v10816_v24 = vld [vmem:[#allocation8 + $0x6a8] sm:$0xf]  ;;  %v11621_v52 = vld [vmem:[#allocation8 + $0x6b0] sm:$0xf0] }
 0x547   : > { %v3971_v47 = vadd.f32 %v3970_v39, %v3922_v34  ;;  %v15006_v34 = vld [vmem:[#allocation48_spill] sm:$0xff]  ;;  %v11669_v39 = vld [vmem:[#allocation8 + $0x830] sm:$0xf0] }
 0x548   : > { %v4127_v61 = vmax.f32 %v3826_v30, 0.0  ;;  %v11009_v30 = vor.u32 %v11669_v39, %v11008_v12  ;;  %v11645_v12 = vld [vmem:[#allocation8 + $0x770] sm:$0xf0] }
 0x549   : > { %v4116_v40 = vmax.f32 %v3971_v47, 0.0  ;;  %v10817_v47 = vor.u32 %v11621_v52, %v10816_v24 }
 0x54a   : > { %v13447_v59 = vpack.c.bf16 %v4127_v61, %v4115_v33  ;;  %v15005_v33 = vld [vmem:[#allocation47_spill] sm:$0xff]  ;;  %v11693_v61 = vld [vmem:[#allocation8 + $0x8f0] sm:$0xf0]  ;;  %6691 = vmatpush.bf16.msrb.mxu2 %v11009_v30 }
 0x54b   : > { %6593 = vmatpush.bf16.msrb.mxu0 %v10817_v47 }
 0x54c   : > { %v3923_v5 = vpop.f32.mrf.mxu2  ;;  %v3972_v41 = vpop.f32.mrf.mxu3 }
 0x54d   : > { %v3924_v44 = vadd.f32 %v3923_v5, %v3875_v7  ;;  %v3828_v4 = vpop.f32.mrf.mxu0  ;;  %v3877_v26 = vpop.f32.mrf.mxu1 }
 0x54e   : > { %v3829_v31 = vadd.f32 %v3828_v4, %v13355_v50  ;;  %v3878_v38 = vadd.f32 %v3877_v26, %v13376_v8  ;;  %v11104_v50 = vld [vmem:[#allocation8 + $0x8e8] sm:$0xf] }
 0x54f   : > { %v3973_v49 = vadd.f32 %v3972_v41, %v3924_v44  ;;  %6239 = vmatmul.bf16.gmra.mxu0 %v15003_v45  ;;  %v11105_v5 = vor.u32 %v11693_v61, %v11104_v50 }
 0x550   : > { %6288 = vmatmul.bf16.gmra.mxu1 %v15004_v13  ;;  %v4139_v39 = vmax.f32 %v3829_v31, 0.0 }
 0x551   : > { %v4128_v2 = vmax.f32 %v3973_v49, 0.0  ;;  %6337 = vmatmul.bf16.gmra.mxu2 %v15005_v33  ;;  %6386 = vmatmul.bf16.gmra.mxu3 %v15006_v34  ;;  %v10912_v33 = vld [vmem:[#allocation8 + $0x768] sm:$0xf] }
 0x552   : > { %6740 = vmatpush.bf16.msrb.mxu3 %v11105_v5  ;;  %v10913_v45 = vor.u32 %v11645_v12, %v10912_v33  ;;  %v15009_v33 = vld [vmem:[#allocation34_spill] sm:$0xff] }
 0x553   : > { %v13456_v35 = vpack.c.bf16 %v4128_v2, %v4116_v40  ;;  %v11690_v12 = vld [vmem:[#allocation8 + $0x8d8] sm:$0xf0] }
 0x554   : > { %v3926_v7 = vpop.f32.mrf.mxu2  ;;  %v3975_v41 = vpop.f32.mrf.mxu3  ;;  %6642 = vmatpush.bf16.msrb.mxu1 %v10913_v45  ;;  %v15010_v45 = vld [vmem:[#allocation49_spill] sm:$0xff] }
 0x555   : > { %15007 = vst [vmem:[#allocation93_spill] sm:$0xff] %v13456_v35  ;;  %v3927_v44 = vadd.f32 %v3926_v7, %v3878_v38  ;;  %v3830_v4 = vpop.f32.mrf.mxu0  ;;  %v3879_v49 = vpop.f32.mrf.mxu1  ;;  %v15008_v7 = vld [vmem:[#allocation26_spill] sm:$0xff] }
 0x556   : > { %v3831_v26 = vadd.f32 %v3830_v4, %v13362_v14  ;;  %v3880_v2 = vadd.f32 %v3879_v49, %v13376_v8  ;;  %v10804_v4 = vld [vmem:[#allocation8 + $0x690] sm:$0xf]  ;;  %v11618_v49 = vld [vmem:[#allocation8 + $0x698] sm:$0xf0] }
 0x557   : > { %v3976_v34 = vadd.f32 %v3975_v41, %v3927_v44  ;;  %v10996_v44 = vld [vmem:[#allocation8 + $0x810] sm:$0xf]  ;;  %v11666_v41 = vld [vmem:[#allocation8 + $0x818] sm:$0xf0] }
 0x558   : > { %v4151_v13 = vmax.f32 %v3831_v26, 0.0  ;;  %v10997_v26 = vor.u32 %v11666_v41, %v10996_v44  ;;  %v10900_v44 = vld [vmem:[#allocation8 + $0x750] sm:$0xf]  ;;  %v11642_v41 = vld [vmem:[#allocation8 + $0x758] sm:$0xf0] }
 0x559   : > { %v4140_v47 = vmax.f32 %v3976_v34, 0.0  ;;  %v10805_v34 = vor.u32 %v11618_v49, %v10804_v4 }
 0x55a   : > { %v13459_v40 = vpack.c.bf16 %v4151_v13, %v4139_v39  ;;  %v15011_v13 = vld [vmem:[#allocation50_spill] sm:$0xff]  ;;  %6692 = vmatpush.bf16.msrb.mxu2 %v10997_v26 }
 0x55b   : > { %6594 = vmatpush.bf16.msrb.mxu0 %v10805_v34 }
 0x55c   : > { %v3928_v38 = vpop.f32.mrf.mxu2  ;;  %v3977_v52 = vpop.f32.mrf.mxu3 }
 0x55d   : > { %v3929_v24 = vadd.f32 %v3928_v38, %v3880_v2  ;;  %v3833_v30 = vpop.f32.mrf.mxu0  ;;  %v3882_v50 = vpop.f32.mrf.mxu1 }
 0x55e   : > { %v3834_v14 = vadd.f32 %v3833_v30, %v13371_v43  ;;  %v3883_v31 = vadd.f32 %v3882_v50, %v13376_v8  ;;  %v11092_v43 = vld [vmem:[#allocation8 + $0x8d0] sm:$0xf] }
 0x55f   : > { %v3978_v61 = vadd.f32 %v3977_v52, %v3929_v24  ;;  %6244 = vmatmul.bf16.gmra.mxu0 %v15008_v7  ;;  %v11093_v38 = vor.u32 %v11690_v12, %v11092_v43 }
 0x560   : > { %6293 = vmatmul.bf16.gmra.mxu1 %v15009_v33  ;;  %v4163_v33 = vmax.f32 %v3834_v14, 0.0 }
 0x561   : > { %v4152_v5 = vmax.f32 %v3978_v61, 0.0  ;;  %6342 = vmatmul.bf16.gmra.mxu2 %v15010_v45  ;;  %6391 = vmatmul.bf16.gmra.mxu3 %v15011_v13  ;;  %v4657_v45 = vld [vmem:[#allocation10] sm:$0x7] }
 0x562   : > { %6741 = vmatpush.bf16.msrb.mxu3 %v11093_v38 }
 0x563   : > { %v13468_v39 = vpack.c.bf16 %v4152_v5, %v4140_v47  ;;  %v10901_v47 = vor.u32 %v11642_v41, %v10900_v44  ;;  %v13471_v5 = vperm.slane %v4657_v45, 0  ;;  %v15014_v45 = vld [vmem:[#allocation59_spill] sm:$0xff] }
 0x564   : > { %v3931_v2 = vpop.f32.mrf.mxu2  ;;  %v3980_v52 = vpop.f32.mrf.mxu3  ;;  %v11687_v44 = vld [vmem:[#allocation8 + $0x8c0] sm:$0xf0] }
 0x565   : > { %15012 = vst [vmem:[#allocation94_spill] sm:$0xff] %v13468_v39  ;;  %v3932_v24 = vadd.f32 %v3931_v2, %v3883_v31  ;;  %v3835_v30 = vpop.f32.mrf.mxu0  ;;  %v3884_v61 = vpop.f32.mrf.mxu1  ;;  %6643 = vmatpush.bf16.msrb.mxu1 %v10901_v47 }
 0x566   : > { %v3836_v50 = vadd.f32 %v3835_v30, %v13379_v15  ;;  %v3885_v31 = vadd.f32 %v3884_v61, %v13376_v8  ;;  %v10984_v8 = vld [vmem:[#allocation8 + $0x7f8] sm:$0xf] }
 0x567   : > { %v3981_v13 = vadd.f32 %v3980_v52, %v3932_v24  ;;  %v15013_v24 = vld [vmem:[#allocation51_spill] sm:$0xff]  ;;  %v11080_v61 = vld [vmem:[#allocation8 + $0x8b8] sm:$0xf] }
 0x568   : > { %v4175_v7 = vmax.f32 %v3836_v50, 0.0  ;;  %v11615_v50 = vld [vmem:[#allocation8 + $0x680] sm:$0xf0] }
 0x569   : > { %v4164_v14 = vmax.f32 %v3981_v13, 0.0 }
 0x56a   : > { %v13473_v4 = vpack.c.bf16 %v4175_v7, %v4163_v33  ;;  %v11663_v7 = vld [vmem:[#allocation8 + $0x800] sm:$0xf0]  ;;  %v10792_v33 = vld [vmem:[#allocation8 + $0x678] sm:$0xf] }
 0x56b   : > { %v10985_v30 = vor.u32 %v11663_v7, %v10984_v8  ;;  %v11639_v8 = vld [vmem:[#allocation8 + $0x740] sm:$0xf0] }
 0x56c   : > { %v3933_v26 = vpop.f32.mrf.mxu2  ;;  %v3982_v15 = vpop.f32.mrf.mxu3 }
 0x56d   : > { %v3934_v49 = vadd.f32 %v3933_v26, %v3885_v31  ;;  %v6210_v43 = vpop.f32.mrf.mxu0  ;;  %v6259_v2 = vpop.f32.mrf.mxu1  ;;  %v10793_v31 = vor.u32 %v11615_v50, %v10792_v33  ;;  %v11081_v26 = vor.u32 %v11687_v44, %v11080_v61  ;;  %6693 = vmatpush.bf16.msrb.mxu2 %v10985_v30 }
 0x56e   : > { %v6211_v12 = vadd.f32 %v6210_v43, %v13471_v5 }
 0x56f   : > { %v3983_v34 = vadd.f32 %v3982_v15, %v3934_v49  ;;  %6405 = vmatmul.bf16.vlgmr.msra.gmra.mxu0 %v15013_v24  ;;  %6742 = vmatpush.bf16.msrb.mxu3 %v11081_v26  ;;  %v10972_v26 = vld [vmem:[#allocation8 + $0x7e0] sm:$0xf] }
 0x570   : > { %v6260_v38 = vadd.f32 %v6259_v2, %v6211_v12  ;;  %6454 = vmatmul.bf16.vlgmr.msra.gmra.mxu1 %v15014_v45  ;;  %6595 = vmatpush.bf16.msrb.mxu0 %v10793_v31  ;;  %v15017_v31 = vld [vmem:[#allocation60_spill] sm:$0xff] }
 0x571   : > { %v4176_v52 = vmax.f32 %v3983_v34, 0.0  ;;  %6503 = vmatmul.bf16.vlgmr.msra.gmra.mxu2 %v13054_v28  ;;  %6552 = vmatmul.bf16.vlgmr.msra.gmra.mxu3 %v13063_v18  ;;  %v10888_v34 = vld [vmem:[#allocation8 + $0x738] sm:$0xf] }
 0x572   : > { %v10889_v18 = vor.u32 %v11639_v8, %v10888_v34 }
 0x573   : > { %v13481_v41 = vpack.c.bf16 %v4176_v52, %v4164_v14 }
 0x574   : > { %v6308_v47 = vpop.f32.mrf.mxu2  ;;  %v6357_v49 = vpop.f32.mrf.mxu3  ;;  %6644 = vmatpush.bf16.msrb.mxu1 %v10889_v18  ;;  %v11660_v18 = vld [vmem:[#allocation8 + $0x7e8] sm:$0xf0] }
 0x575   : > { %15015 = vst [vmem:[#allocation95_spill] sm:$0xff] %v13481_v41  ;;  %v6309_v13 = vadd.f32 %v6308_v47, %v6260_v38  ;;  %v6212_v15 = vpop.f32.mrf.mxu0  ;;  %v6261_v12 = vpop.f32.mrf.mxu1  ;;  %v15016_v47 = vld [vmem:[#allocation52_spill] sm:$0xff] }
 0x576   : > { %v6213_v43 = vadd.f32 %v6212_v15, %v13471_v5  ;;  %v11612_v15 = vld [vmem:[#allocation8 + $0x668] sm:$0xf0] }
 0x577   : > { %v13484_v2 = vadd.f32 %v6357_v49, %v6309_v13  ;;  %v10780_v13 = vld [vmem:[#allocation8 + $0x660] sm:$0xf]  ;;  %v10973_v49 = vor.u32 %v11660_v18, %v10972_v26 }
 0x578   : > { %v6262_v7 = vadd.f32 %v6261_v12, %v6213_v43  ;;  %v11068_v43 = vld [vmem:[#allocation8 + $0x8a0] sm:$0xf]  ;;  %v11684_v12 = vld [vmem:[#allocation8 + $0x8a8] sm:$0xf0]  ;;  %v10781_v8 = vor.u32 %v11612_v15, %v10780_v13 }
 0x579   : > { %6694 = vmatpush.bf16.msrb.mxu2 %v10973_v49 }
 0x57a   : > { %6596 = vmatpush.bf16.msrb.mxu0 %v10781_v8  ;;  %v15019_v8 = vld [vmem:[#allocation61_spill] sm:$0xff] }
 0x57c   : > { %v6310_v14 = vpop.f32.mrf.mxu2  ;;  %v6359_v33 = vpop.f32.mrf.mxu3 }
 0x57d   : > { %v6311_v52 = vadd.f32 %v6310_v14, %v6262_v7  ;;  %v6215_v50 = vpop.f32.mrf.mxu0  ;;  %v6264_v61 = vpop.f32.mrf.mxu1  ;;  %v11069_v7 = vor.u32 %v11684_v12, %v11068_v43 }
 0x57e   : > { %v6216_v38 = vadd.f32 %v6215_v50, %v13471_v5 }
 0x57f   : > { %v13487_v30 = vadd.f32 %v6359_v33, %v6311_v52  ;;  %6410 = vmatmul.bf16.gmra.mxu0 %v15016_v47  ;;  %6743 = vmatpush.bf16.msrb.mxu3 %v11069_v7  ;;  %v15020_v7 = vld [vmem:[#allocation71_spill] sm:$0xff] }
 0x580   : > { %v6265_v44 = vadd.f32 %v6264_v61, %v6216_v38  ;;  %6459 = vmatmul.bf16.gmra.mxu1 %v15017_v31 }
 0x581   : > { %6508 = vmatmul.bf16.gmra.mxu2 %v13066_v55  ;;  %6557 = vmatmul.bf16.gmra.mxu3 %v13075_v23  ;;  %v10876_v23 = vld [vmem:[#allocation8 + $0x720] sm:$0xf]  ;;  %v11636_v55 = vld [vmem:[#allocation8 + $0x728] sm:$0xf0] }
 0x582   : > { %v10877_v18 = vor.u32 %v11636_v55, %v10876_v23  ;;  %v10960_v55 = vld [vmem:[#allocation8 + $0x7c8] sm:$0xf]  ;;  %v11657_v23 = vld [vmem:[#allocation8 + $0x7d0] sm:$0xf0] }
 0x584   : > { %v6313_v34 = vpop.f32.mrf.mxu2  ;;  %v6362_v52 = vpop.f32.mrf.mxu3  ;;  %6645 = vmatpush.bf16.msrb.mxu1 %v10877_v18 }
 0x585   : > { %v6314_v14 = vadd.f32 %v6313_v34, %v6265_v44  ;;  %v6217_v33 = vpop.f32.mrf.mxu0  ;;  %v6266_v38 = vpop.f32.mrf.mxu1  ;;  %v15018_v34 = vld [vmem:[#allocation53_spill] sm:$0xff] }
 0x586   : > { %v6218_v50 = vadd.f32 %v6217_v33, %v13471_v5  ;;  %v11609_v33 = vld [vmem:[#allocation8 + $0x650] sm:$0xf0] }
 0x587   : > { %v13494_v61 = vadd.f32 %v6362_v52, %v6314_v14  ;;  %v15021_v14 = vld [vmem:[#allocation72_spill] sm:$0xff]  ;;  %v10768_v52 = vld [vmem:[#allocation8 + $0x648] sm:$0xf] }
 0x588   : > { %v6267_v26 = vadd.f32 %v6266_v38, %v6218_v50  ;;  %v11056_v50 = vld [vmem:[#allocation8 + $0x888] sm:$0xf]  ;;  %v11681_v38 = vld [vmem:[#allocation8 + $0x890] sm:$0xf0]  ;;  %v10769_v18 = vor.u32 %v11609_v33, %v10768_v52 }
 0x58a   : > { %6597 = vmatpush.bf16.msrb.mxu0 %v10769_v18  ;;  %v15023_v18 = vld [vmem:[#allocation62_spill] sm:$0xff] }
 0x58c   : > { %v6315_v31 = vpop.f32.mrf.mxu2  ;;  %v6364_v13 = vpop.f32.mrf.mxu3 }
 0x58d   : > { %v6316_v47 = vadd.f32 %v6315_v31, %v6267_v26  ;;  %v6220_v15 = vpop.f32.mrf.mxu0  ;;  %v6269_v43 = vpop.f32.mrf.mxu1  ;;  %v10961_v31 = vor.u32 %v11657_v23, %v10960_v55 }
 0x58e   : > { %v6221_v44 = vadd.f32 %v6220_v15, %v13471_v5 }
 0x58f   : > { %v13497_v49 = vadd.f32 %v6364_v13, %v6316_v47  ;;  %6415 = vmatmul.bf16.gmra.mxu0 %v15018_v34  ;;  %v11057_v47 = vor.u32 %v11681_v38, %v11056_v50  ;;  %6695 = vmatpush.bf16.msrb.mxu2 %v10961_v31  ;;  %v11633_v34 = vld [vmem:[#allocation8 + $0x710] sm:$0xf0] }
 0x590   : > { %v6270_v12 = vadd.f32 %v6269_v43, %v6221_v44  ;;  %6464 = vmatmul.bf16.gmra.mxu1 %v15019_v8 }
 0x591   : > { %6513 = vmatmul.bf16.gmra.mxu2 %v15020_v7  ;;  %6562 = vmatmul.bf16.gmra.mxu3 %v15021_v14  ;;  %v10864_v7 = vld [vmem:[#allocation8 + $0x708] sm:$0xf] }
 0x592   : > { %6744 = vmatpush.bf16.msrb.mxu3 %v11057_v47  ;;  %v10865_v23 = vor.u32 %v11633_v34, %v10864_v7  ;;  %v15024_v47 = vld [vmem:[#allocation73_spill] sm:$0xff]  ;;  %v10948_v34 = vld [vmem:[#allocation8 + $0x7b0] sm:$0xf] }
 0x593   : > { %v10756_v7 = vld [vmem:[#allocation8 + $0x630] sm:$0xf] }
 0x594   : > { %v6318_v26 = vpop.f32.mrf.mxu2  ;;  %v6367_v15 = vpop.f32.mrf.mxu3  ;;  %6646 = vmatpush.bf16.msrb.mxu1 %v10865_v23 }
 0x595   : > { %v6319_v13 = vadd.f32 %v6318_v26, %v6270_v12  ;;  %v6222_v44 = vpop.f32.mrf.mxu0  ;;  %v6271_v8 = vpop.f32.mrf.mxu1  ;;  %v15022_v26 = vld [vmem:[#allocation54_spill] sm:$0xff] }
 0x596   : > { %v6223_v43 = vadd.f32 %v6222_v44, %v13471_v5  ;;  %v11044_v44 = vld [vmem:[#allocation8 + $0x870] sm:$0xf] }
 0x597   : > { %v13504_v14 = vadd.f32 %v6367_v15, %v6319_v13  ;;  %v15025_v13 = vld [vmem:[#allocation74_spill] sm:$0xff] }
 0x598   : > { %v6272_v55 = vadd.f32 %v6271_v8, %v6223_v43  ;;  %v11654_v8 = vld [vmem:[#allocation8 + $0x7b8] sm:$0xf0] }
 0x599   : > { %v11606_v15 = vld [vmem:[#allocation8 + $0x638] sm:$0xf0] }
 0x59a   : > { %v11678_v43 = vld [vmem:[#allocation8 + $0x878] sm:$0xf0]  ;;  %v10757_v23 = vor.u32 %v11606_v15, %v10756_v7 }
 0x59c   : > { %v6320_v28 = vpop.f32.mrf.mxu2  ;;  %v6369_v52 = vpop.f32.mrf.mxu3  ;;  %6598 = vmatpush.bf16.msrb.mxu0 %v10757_v23  ;;  %v15027_v23 = vld [vmem:[#allocation63_spill] sm:$0xff] }
 0x59d   : > { %v6321_v45 = vadd.f32 %v6320_v28, %v6272_v55  ;;  %v6225_v33 = vpop.f32.mrf.mxu0  ;;  %v6274_v50 = vpop.f32.mrf.mxu1  ;;  %v10949_v28 = vor.u32 %v11654_v8, %v10948_v34 }
 0x59e   : > { %v6226_v12 = vadd.f32 %v6225_v33, %v13471_v5 }
 0x59f   : > { %v13507_v31 = vadd.f32 %v6369_v52, %v6321_v45  ;;  %6420 = vmatmul.bf16.gmra.mxu0 %v15022_v26  ;;  %v11045_v45 = vor.u32 %v11678_v43, %v11044_v44  ;;  %6696 = vmatpush.bf16.msrb.mxu2 %v10949_v28  ;;  %v11630_v26 = vld [vmem:[#allocation8 + $0x6f8] sm:$0xf0] }
 0x5a0   : > { %v6275_v38 = vadd.f32 %v6274_v50, %v6226_v12  ;;  %6469 = vmatmul.bf16.gmra.mxu1 %v15023_v18 }
 0x5a1   : > { %6518 = vmatmul.bf16.gmra.mxu2 %v15024_v47  ;;  %6567 = vmatmul.bf16.gmra.mxu3 %v15025_v13  ;;  %v10852_v47 = vld [vmem:[#allocation8 + $0x6f0] sm:$0xf] }
 0x5a2   : > { %6745 = vmatpush.bf16.msrb.mxu3 %v11045_v45  ;;  %v10853_v8 = vor.u32 %v11630_v26, %v10852_v47  ;;  %v15028_v45 = vld [vmem:[#allocation75_spill] sm:$0xff]  ;;  %v10936_v26 = vld [vmem:[#allocation8 + $0x798] sm:$0xf] }
 0x5a3   : > { %v10744_v47 = vld [vmem:[#allocation8 + $0x618] sm:$0xf] }
 0x5a4   : > { %v6323_v55 = vpop.f32.mrf.mxu2  ;;  %v6372_v33 = vpop.f32.mrf.mxu3  ;;  %6647 = vmatpush.bf16.msrb.mxu1 %v10853_v8 }
 0x5a5   : > { %v6324_v52 = vadd.f32 %v6323_v55, %v6275_v38  ;;  %v6227_v12 = vpop.f32.mrf.mxu0  ;;  %v6276_v18 = vpop.f32.mrf.mxu1  ;;  %v15026_v55 = vld [vmem:[#allocation55_spill] sm:$0xff] }
 0x5a6   : > { %v6228_v50 = vadd.f32 %v6227_v12, %v13471_v5  ;;  %v11032_v12 = vld [vmem:[#allocation8 + $0x858] sm:$0xf] }
 0x5a7   : > { %v13514_v13 = vadd.f32 %v6372_v33, %v6324_v52  ;;  %v15029_v52 = vld [vmem:[#allocation76_spill] sm:$0xff]  ;;  %v11603_v33 = vld [vmem:[#allocation8 + $0x620] sm:$0xf0] }
 0x5a8   : > { %v6277_v34 = vadd.f32 %v6276_v18, %v6228_v50  ;;  %v11651_v18 = vld [vmem:[#allocation8 + $0x7a0] sm:$0xf0]  ;;  %v10745_v8 = vor.u32 %v11603_v33, %v10744_v47 }
 0x5a9   : > { %v11675_v50 = vld [vmem:[#allocation8 + $0x860] sm:$0xf0] }
 0x5aa   : > { %6599 = vmatpush.bf16.msrb.mxu0 %v10745_v8  ;;  %v15031_v8 = vld [vmem:[#allocation64_spill] sm:$0xff] }
 0x5ac   : > { %v6325_v24 = vpop.f32.mrf.mxu2  ;;  %v6374_v7 = vpop.f32.mrf.mxu3 }
 0x5ad   : > { %v6326_v25 = vadd.f32 %v6325_v24, %v6277_v34  ;;  %v6230_v15 = vpop.f32.mrf.mxu0  ;;  %v6279_v44 = vpop.f32.mrf.mxu1  ;;  %v10937_v24 = vor.u32 %v11651_v18, %v10936_v26 }
 0x5ae   : > { %v6231_v38 = vadd.f32 %v6230_v15, %v13471_v5 }
 0x5af   : > { %v13517_v28 = vadd.f32 %v6374_v7, %v6326_v25  ;;  %6425 = vmatmul.bf16.gmra.mxu0 %v15026_v55  ;;  %v11033_v25 = vor.u32 %v11675_v50, %v11032_v12  ;;  %6697 = vmatpush.bf16.msrb.mxu2 %v10937_v24  ;;  %v11627_v55 = vld [vmem:[#allocation8 + $0x6e0] sm:$0xf0] }
 0x5b0   : > { %v6280_v43 = vadd.f32 %v6279_v44, %v6231_v38  ;;  %6474 = vmatmul.bf16.gmra.mxu1 %v15027_v23 }
 0x5b1   : > { %6523 = vmatmul.bf16.gmra.mxu2 %v15028_v45  ;;  %6572 = vmatmul.bf16.gmra.mxu3 %v15029_v52  ;;  %v10840_v45 = vld [vmem:[#allocation8 + $0x6d8] sm:$0xf] }
 0x5b2   : > { %6746 = vmatpush.bf16.msrb.mxu3 %v11033_v25  ;;  %v10841_v18 = vor.u32 %v11627_v55, %v10840_v45  ;;  %v15032_v25 = vld [vmem:[#allocation77_spill] sm:$0xff]  ;;  %v10924_v55 = vld [vmem:[#allocation8 + $0x780] sm:$0xf] }
 0x5b3   : > { %v10732_v45 = vld [vmem:[#allocation8 + $0x600] sm:$0xf] }
 0x5b4   : > { %v6328_v34 = vpop.f32.mrf.mxu2  ;;  %v6377_v15 = vpop.f32.mrf.mxu3  ;;  %6648 = vmatpush.bf16.msrb.mxu1 %v10841_v18 }
 0x5b5   : > { %v6329_v7 = vadd.f32 %v6328_v34, %v6280_v43  ;;  %v6232_v38 = vpop.f32.mrf.mxu0  ;;  %v6281_v23 = vpop.f32.mrf.mxu1  ;;  %v15030_v34 = vld [vmem:[#allocation56_spill] sm:$0xff] }
 0x5b6   : > { %v6233_v44 = vadd.f32 %v6232_v38, %v13471_v5  ;;  %v11020_v38 = vld [vmem:[#allocation8 + $0x840] sm:$0xf] }
 0x5b7   : > { %v13524_v52 = vadd.f32 %v6377_v15, %v6329_v7  ;;  %v15033_v7 = vld [vmem:[#allocation78_spill] sm:$0xff]  ;;  %v11600_v15 = vld [vmem:[#allocation8 + $0x608] sm:$0xf0] }
 0x5b8   : > { %v6282_v26 = vadd.f32 %v6281_v23, %v6233_v44  ;;  %v11648_v23 = vld [vmem:[#allocation8 + $0x788] sm:$0xf0]  ;;  %v10733_v18 = vor.u32 %v11600_v15, %v10732_v45 }
 0x5b9   : > { %v11672_v44 = vld [vmem:[#allocation8 + $0x848] sm:$0xf0] }
 0x5ba   : > { %6600 = vmatpush.bf16.msrb.mxu0 %v10733_v18  ;;  %v15035_v18 = vld [vmem:[#allocation65_spill] sm:$0xff] }
 0x5bc   : > { %v6330_v1 = vpop.f32.mrf.mxu2  ;;  %v6379_v47 = vpop.f32.mrf.mxu3 }
 0x5bd   : > { %v6331_v0 = vadd.f32 %v6330_v1, %v6282_v26  ;;  %v6235_v33 = vpop.f32.mrf.mxu0  ;;  %v6284_v12 = vpop.f32.mrf.mxu1  ;;  %v10925_v1 = vor.u32 %v11648_v23, %v10924_v55 }
 0x5be   : > { %v6236_v43 = vadd.f32 %v6235_v33, %v13471_v5 }
 0x5bf   : > { %v13527_v24 = vadd.f32 %v6379_v47, %v6331_v0  ;;  %6430 = vmatmul.bf16.gmra.mxu0 %v15030_v34  ;;  %v11021_v0 = vor.u32 %v11672_v44, %v11020_v38  ;;  %6698 = vmatpush.bf16.msrb.mxu2 %v10925_v1  ;;  %v11624_v34 = vld [vmem:[#allocation8 + $0x6c8] sm:$0xf0] }
 0x5c0   : > { %v6285_v50 = vadd.f32 %v6284_v12, %v6236_v43  ;;  %6479 = vmatmul.bf16.gmra.mxu1 %v15031_v8 }
 0x5c1   : > { %6528 = vmatmul.bf16.gmra.mxu2 %v15032_v25  ;;  %6577 = vmatmul.bf16.gmra.mxu3 %v15033_v7  ;;  %v10828_v25 = vld [vmem:[#allocation8 + $0x6c0] sm:$0xf] }
 0x5c2   : > { %6747 = vmatpush.bf16.msrb.mxu3 %v11021_v0  ;;  %v10829_v23 = vor.u32 %v11624_v34, %v10828_v25  ;;  %v15036_v0 = vld [vmem:[#allocation79_spill] sm:$0xff]  ;;  %v11476_v34 = vld [vmem:[#allocation8 + $0x22c] sm:$0xf] }
 0x5c3   : > { %v11428_v25 = vld [vmem:[#allocation8 + $0xac] sm:$0xf] }
 0x5c4   : > { %v6333_v26 = vpop.f32.mrf.mxu2  ;;  %v6382_v33 = vpop.f32.mrf.mxu3  ;;  %6649 = vmatpush.bf16.msrb.mxu1 %v10829_v23 }
 0x5c5   : > { %v6334_v47 = vadd.f32 %v6333_v26, %v6285_v50  ;;  %v6237_v43 = vpop.f32.mrf.mxu0  ;;  %v6286_v8 = vpop.f32.mrf.mxu1  ;;  %v15034_v26 = vld [vmem:[#allocation57_spill] sm:$0xff] }
 0x5c6   : > { %v6238_v12 = vadd.f32 %v6237_v43, %v13471_v5  ;;  %v11500_v43 = vld [vmem:[#allocation8 + $0x2ec] sm:$0xf] }
 0x5c7   : > { %v13534_v7 = vadd.f32 %v6382_v33, %v6334_v47  ;;  %v15037_v47 = vld [vmem:[#allocation80_spill] sm:$0xff]  ;;  %v10050_v33 = vld [vmem:[#allocation8 + $0xb4] sm:$0xf0] }
 0x5c8   : > { %v6287_v55 = vadd.f32 %v6286_v8, %v6238_v12  ;;  %v10242_v8 = vld [vmem:[#allocation8 + $0x234] sm:$0xf0]  ;;  %v10053_v23 = vor.u32 %v11428_v25, %v10050_v33 }
 0x5c9   : > { %v10338_v12 = vld [vmem:[#allocation8 + $0x2f4] sm:$0xf0] }
 0x5ca   : > { %6789 = vmatpush.bf16.msra.mxu0 %v10053_v23  ;;  %v15039_v23 = vld [vmem:[#allocation66_spill] sm:$0xff] }
 0x5cc   : > { %v6335_v37 = vpop.f32.mrf.mxu2  ;;  %v6384_v45 = vpop.f32.mrf.mxu3 }
 0x5cd   : > { %v6336_v3 = vadd.f32 %v6335_v37, %v6287_v55  ;;  %v6240_v15 = vpop.f32.mrf.mxu0  ;;  %v6289_v38 = vpop.f32.mrf.mxu1  ;;  %v10245_v37 = vor.u32 %v11476_v34, %v10242_v8 }
 0x5ce   : > { %v6241_v50 = vadd.f32 %v6240_v15, %v13471_v5 }
 0x5cf   : > { %v13537_v1 = vadd.f32 %v6384_v45, %v6336_v3  ;;  %6435 = vmatmul.bf16.gmra.mxu0 %v15034_v26  ;;  %v10341_v3 = vor.u32 %v11500_v43, %v10338_v12  ;;  %6887 = vmatpush.bf16.msra.mxu2 %v10245_v37  ;;  %v10146_v26 = vld [vmem:[#allocation8 + $0x174] sm:$0xf0] }
 0x5d0   : > { %v6290_v44 = vadd.f32 %v6289_v38, %v6241_v50  ;;  %6484 = vmatmul.bf16.gmra.mxu1 %v15035_v18 }
 0x5d1   : > { %6533 = vmatmul.bf16.gmra.mxu2 %v15036_v0  ;;  %6582 = vmatmul.bf16.gmra.mxu3 %v15037_v47  ;;  %v11452_v0 = vld [vmem:[#allocation8 + $0x16c] sm:$0xf] }
 0x5d2   : > { %6936 = vmatpush.bf16.msra.mxu3 %v10341_v3  ;;  %v10149_v8 = vor.u32 %v11452_v0, %v10146_v26  ;;  %v15040_v3 = vld [vmem:[#allocation81_spill] sm:$0xff] }
 0x5d3   : > { %v11473_v26 = vld [vmem:[#allocation8 + $0x214] sm:$0xf] }
 0x5d4   : > { %v6338_v55 = vpop.f32.mrf.mxu2  ;;  %v6387_v15 = vpop.f32.mrf.mxu3  ;;  %6838 = vmatpush.bf16.msra.mxu1 %v10149_v8  ;;  %v11425_v0 = vld [vmem:[#allocation8 + $0x94] sm:$0xf] }
 0x5d5   : > { %v6339_v45 = vadd.f32 %v6338_v55, %v6290_v44  ;;  %v6242_v50 = vpop.f32.mrf.mxu0  ;;  %v6291_v18 = vpop.f32.mrf.mxu1  ;;  %v15038_v55 = vld [vmem:[#allocation58_spill] sm:$0xff] }
 0x5d6   : > { %v6243_v38 = vadd.f32 %v6242_v50, %v13471_v5  ;;  %v11497_v50 = vld [vmem:[#allocation8 + $0x2d4] sm:$0xf] }
 0x5d7   : > { %v13544_v47 = vadd.f32 %v6387_v15, %v6339_v45  ;;  %v15041_v45 = vld [vmem:[#allocation82_spill] sm:$0xff] }
 0x5d8   : > { %v6292_v34 = vadd.f32 %v6291_v18, %v6243_v38  ;;  %v10230_v18 = vld [vmem:[#allocation8 + $0x21c] sm:$0xf0] }
 0x5d9   : > { %v10038_v15 = vld [vmem:[#allocation8 + $0x9c] sm:$0xf0] }
 0x5da   : > { %v10326_v38 = vld [vmem:[#allocation8 + $0x2dc] sm:$0xf0]  ;;  %v10041_v8 = vor.u32 %v11425_v0, %v10038_v15 }
 0x5dc   : > { %v6340_v48 = vpop.f32.mrf.mxu2  ;;  %v6389_v25 = vpop.f32.mrf.mxu3  ;;  %6790 = vmatpush.bf16.msra.mxu0 %v10041_v8  ;;  %v11494_v8 = vld [vmem:[#allocation8 + $0x2bc] sm:$0xf] }
 0x5dd   : > { %v6341_v46 = vadd.f32 %v6340_v48, %v6292_v34  ;;  %v6245_v33 = vpop.f32.mrf.mxu0  ;;  %v6294_v43 = vpop.f32.mrf.mxu1  ;;  %v10233_v48 = vor.u32 %v11473_v26, %v10230_v18 }
 0x5de   : > { %v6246_v44 = vadd.f32 %v6245_v33, %v13471_v5 }
 0x5df   : > { %v13547_v37 = vadd.f32 %v6389_v25, %v6341_v46  ;;  %6440 = vmatmul.bf16.gmra.mxu0 %v15038_v55  ;;  %v10329_v46 = vor.u32 %v11497_v50, %v10326_v38  ;;  %6888 = vmatpush.bf16.msra.mxu2 %v10233_v48  ;;  %v10134_v55 = vld [vmem:[#allocation8 + $0x15c] sm:$0xf0]  ;;  %v15042_v38 = vld [vmem:[#allocation83_spill] sm:$0xff] }
 0x5e0   : > { %v6295_v12 = vadd.f32 %v6294_v43, %v6246_v44  ;;  %6489 = vmatmul.bf16.gmra.mxu1 %v15039_v23 }
 0x5e1   : > { %6538 = vmatmul.bf16.gmra.mxu2 %v15040_v3  ;;  %6587 = vmatmul.bf16.gmra.mxu3 %v15041_v45  ;;  %v11449_v3 = vld [vmem:[#allocation8 + $0x154] sm:$0xf] }
 0x5e2   : > { %6937 = vmatpush.bf16.msra.mxu3 %v10329_v46  ;;  %v10137_v18 = vor.u32 %v11449_v3, %v10134_v55  ;;  %v11470_v55 = vld [vmem:[#allocation8 + $0x1fc] sm:$0xf]  ;;  %v10314_v46 = vld [vmem:[#allocation8 + $0x2c4] sm:$0xf0] }
 0x5e3   : > { %v11422_v3 = vld [vmem:[#allocation8 + $0x7c] sm:$0xf] }
 0x5e4   : > { %v6343_v34 = vpop.f32.mrf.mxu2  ;;  %v6392_v33 = vpop.f32.mrf.mxu3  ;;  %6839 = vmatpush.bf16.msra.mxu1 %v10137_v18 }
 0x5e5   : > { %v6344_v25 = vadd.f32 %v6343_v34, %v6295_v12  ;;  %v6247_v44 = vpop.f32.mrf.mxu0  ;;  %v6296_v23 = vpop.f32.mrf.mxu1  ;;  %v10026_v34 = vld [vmem:[#allocation8 + $0x84] sm:$0xf0] }
 0x5e6   : > { %v6248_v43 = vadd.f32 %v6247_v44, %v13471_v5 }
 0x5e7   : > { %v13554_v45 = vadd.f32 %v6392_v33, %v6344_v25  ;;  %v10029_v25 = vor.u32 %v11422_v3, %v10026_v34 }
 0x5e8   : > { %v6297_v26 = vadd.f32 %v6296_v23, %v6248_v43  ;;  %v10218_v23 = vld [vmem:[#allocation8 + $0x204] sm:$0xf0] }
 0x5e9   : > { %6791 = vmatpush.bf16.msra.mxu0 %v10029_v25  ;;  %v10206_v25 = vld [vmem:[#allocation8 + $0x1ec] sm:$0xf0] }
 0x5ec   : > { %v6345_v17 = vpop.f32.mrf.mxu2  ;;  %v6394_v0 = vpop.f32.mrf.mxu3 }
 0x5ed   : > { %v6346_v16 = vadd.f32 %v6345_v17, %v6297_v26  ;;  %v6406_v15 = vpop.f32.mrf.mxu0  ;;  %v6455_v50 = vpop.f32.mrf.mxu1  ;;  %v10221_v17 = vor.u32 %v11470_v55, %v10218_v23 }
 0x5ee   : > { %v6407_v12 = vadd.f32 %v6406_v15, %v13484_v2  ;;  %v11446_v15 = vld [vmem:[#allocation8 + $0x13c] sm:$0xf] }
 0x5ef   : > { %v13557_v48 = vadd.f32 %v6394_v0, %v6346_v16  ;;  %6601 = vmatmul.bf16.vlgmr.msrb.gmra.mxu0 %v15042_v38  ;;  %v10317_v16 = vor.u32 %v11494_v8, %v10314_v46  ;;  %6889 = vmatpush.bf16.msra.mxu2 %v10221_v17  ;;  %v15043_v46 = vld [vmem:[#allocation84_spill] sm:$0xff] }
 0x5f0   : > { %v6456_v5 = vadd.f32 %v6455_v50, %v6407_v12  ;;  %6650 = vmatmul.bf16.vlgmr.msrb.gmra.mxu1 %v13263_v27  ;;  %v10122_v12 = vld [vmem:[#allocation8 + $0x144] sm:$0xf0] }
 0x5f1   : > { %6699 = vmatmul.bf16.vlgmr.msrb.gmra.mxu2 %v13387_v29  ;;  %6748 = vmatmul.bf16.vlgmr.msrb.gmra.mxu3 %v13396_v42  ;;  %v10125_v55 = vor.u32 %v11446_v15, %v10122_v12 }
 0x5f2   : > { %6938 = vmatpush.bf16.msra.mxu3 %v10317_v16  ;;  %v11419_v16 = vld [vmem:[#allocation8 + $0x64] sm:$0xf] }
 0x5f3   : > { %6840 = vmatpush.bf16.msra.mxu1 %v10125_v55 }
 0x5f4   : > { %v6504_v2 = vpop.f32.mrf.mxu2  ;;  %v6553_v44 = vpop.f32.mrf.mxu3 }
 0x5f5   : > { %v6505_v33 = vadd.f32 %v6504_v2, %v6456_v5  ;;  %v6408_v43 = vpop.f32.mrf.mxu0  ;;  %v6457_v18 = vpop.f32.mrf.mxu1  ;;  %v11467_v2 = vld [vmem:[#allocation8 + $0x1e4] sm:$0xf] }
 0x5f6   : > { %v6409_v26 = vadd.f32 %v6408_v43, %v13487_v30  ;;  %v11491_v43 = vld [vmem:[#allocation8 + $0x2a4] sm:$0xf] }
 0x5f7   : > { %v13564_v0 = vadd.f32 %v6553_v44, %v6505_v33  ;;  %v10209_v33 = vor.u32 %v11467_v2, %v10206_v25  ;;  %v10014_v44 = vld [vmem:[#allocation8 + $0x6c] sm:$0xf0] }
 0x5f8   : > { %v6458_v50 = vadd.f32 %v6457_v18, %v6409_v26  ;;  %v10302_v26 = vld [vmem:[#allocation8 + $0x2ac] sm:$0xf0]  ;;  %v10017_v18 = vor.u32 %v11419_v16, %v10014_v44 }
 0x5f9   : > { %6890 = vmatpush.bf16.msra.mxu2 %v10209_v33 }
 0x5fa   : > { %6792 = vmatpush.bf16.msra.mxu0 %v10017_v18  ;;  %v10194_v18 = vld [vmem:[#allocation8 + $0x1d4] sm:$0xf0] }
 0x5fc   : > { %v6506_v23 = vpop.f32.mrf.mxu2  ;;  %v6555_v3 = vpop.f32.mrf.mxu3 }
 0x5fd   : > { %v6507_v42 = vadd.f32 %v6506_v23, %v6458_v50  ;;  %v6411_v34 = vpop.f32.mrf.mxu0  ;;  %v6460_v8 = vpop.f32.mrf.mxu1 }
 0x5fe   : > { %v6412_v5 = vadd.f32 %v6411_v34, %v13494_v61  ;;  %v11443_v34 = vld [vmem:[#allocation8 + $0x124] sm:$0xf] }
 0x5ff   : > { %v13567_v17 = vadd.f32 %v6555_v3, %v6507_v42  ;;  %6606 = vmatmul.bf16.gmra.mxu0 %v15043_v46  ;;  %v10305_v42 = vor.u32 %v11491_v43, %v10302_v26  ;;  %v15044_v26 = vld [vmem:[#allocation85_spill] sm:$0xff] }
 0x600   : > { %v6461_v30 = vadd.f32 %v6460_v8, %v6412_v5  ;;  %6655 = vmatmul.bf16.gmra.mxu1 %v13279_v9  ;;  %v10110_v5 = vld [vmem:[#allocation8 + $0x12c] sm:$0xf0] }
 0x601   : > { %6704 = vmatmul.bf16.gmra.mxu2 %v13399_v54  ;;  %6753 = vmatmul.bf16.gmra.mxu3 %v13408_v11  ;;  %v10113_v2 = vor.u32 %v11443_v34, %v10110_v5 }
 0x602   : > { %6939 = vmatpush.bf16.msra.mxu3 %v10305_v42  ;;  %v11416_v42 = vld [vmem:[#allocation8 + $0x4c] sm:$0xf] }
 0x603   : > { %6841 = vmatpush.bf16.msra.mxu1 %v10113_v2 }
 0x604   : > { %v6509_v61 = vpop.f32.mrf.mxu2  ;;  %v6558_v12 = vpop.f32.mrf.mxu3 }
 0x605   : > { %v6510_v15 = vadd.f32 %v6509_v61, %v6461_v30  ;;  %v6413_v50 = vpop.f32.mrf.mxu0  ;;  %v6462_v23 = vpop.f32.mrf.mxu1  ;;  %v11464_v61 = vld [vmem:[#allocation8 + $0x1cc] sm:$0xf] }
 0x606   : > { %v6414_v55 = vadd.f32 %v6413_v50, %v13497_v49  ;;  %v11488_v50 = vld [vmem:[#allocation8 + $0x28c] sm:$0xf] }
 0x607   : > { %v13574_v3 = vadd.f32 %v6558_v12, %v6510_v15  ;;  %v10197_v15 = vor.u32 %v11464_v61, %v10194_v18  ;;  %v10002_v12 = vld [vmem:[#allocation8 + $0x54] sm:$0xf0] }
 0x608   : > { %v6463_v8 = vadd.f32 %v6462_v23, %v6414_v55  ;;  %v10290_v55 = vld [vmem:[#allocation8 + $0x294] sm:$0xf0]  ;;  %v10005_v23 = vor.u32 %v11416_v42, %v10002_v12 }
 0x609   : > { %6891 = vmatpush.bf16.msra.mxu2 %v10197_v15 }
 0x60a   : > { %6793 = vmatpush.bf16.msra.mxu0 %v10005_v23  ;;  %v10182_v23 = vld [vmem:[#allocation8 + $0x1bc] sm:$0xf0] }
 0x60c   : > { %v6511_v25 = vpop.f32.mrf.mxu2  ;;  %v6560_v16 = vpop.f32.mrf.mxu3 }
 0x60d   : > { %v6512_v11 = vadd.f32 %v6511_v25, %v6463_v8  ;;  %v6416_v44 = vpop.f32.mrf.mxu0  ;;  %v6465_v43 = vpop.f32.mrf.mxu1 }
 0x60e   : > { %v6417_v30 = vadd.f32 %v6416_v44, %v13504_v14  ;;  %v11440_v44 = vld [vmem:[#allocation8 + $0x10c] sm:$0xf] }
 0x60f   : > { %v13577_v33 = vadd.f32 %v6560_v16, %v6512_v11  ;;  %6611 = vmatmul.bf16.gmra.mxu0 %v15044_v26  ;;  %v10293_v11 = vor.u32 %v11488_v50, %v10290_v55  ;;  %v15045_v55 = vld [vmem:[#allocation86_spill] sm:$0xff] }
 0x610   : > { %v6466_v49 = vadd.f32 %v6465_v43, %v6417_v30  ;;  %6660 = vmatmul.bf16.gmra.mxu1 %v13295_v10  ;;  %v10098_v30 = vld [vmem:[#allocation8 + $0x114] sm:$0xf0] }
 0x611   : > { %6709 = vmatmul.bf16.gmra.mxu2 %v13411_v51  ;;  %6758 = vmatmul.bf16.gmra.mxu3 %v13420_v57  ;;  %v10101_v61 = vor.u32 %v11440_v44, %v10098_v30 }
 0x612   : > { %6940 = vmatpush.bf16.msra.mxu3 %v10293_v11  ;;  %v11413_v11 = vld [vmem:[#allocation8 + $0x34] sm:$0xf] }
 0x613   : > { %6842 = vmatpush.bf16.msra.mxu1 %v10101_v61 }
 0x614   : > { %v6514_v14 = vpop.f32.mrf.mxu2  ;;  %v6563_v5 = vpop.f32.mrf.mxu3 }
 0x615   : > { %v6515_v34 = vadd.f32 %v6514_v14, %v6466_v49  ;;  %v6418_v8 = vpop.f32.mrf.mxu0  ;;  %v6467_v25 = vpop.f32.mrf.mxu1  ;;  %v11461_v14 = vld [vmem:[#allocation8 + $0x1b4] sm:$0xf] }
 0x616   : > { %v6419_v2 = vadd.f32 %v6418_v8, %v13507_v31  ;;  %v11485_v8 = vld [vmem:[#allocation8 + $0x274] sm:$0xf] }
 0x617   : > { %v13584_v16 = vadd.f32 %v6563_v5, %v6515_v34  ;;  %v10185_v34 = vor.u32 %v11461_v14, %v10182_v23  ;;  %v9990_v5 = vld [vmem:[#allocation8 + $0x3c] sm:$0xf0] }
 0x618   : > { %v6468_v43 = vadd.f32 %v6467_v25, %v6419_v2  ;;  %v10278_v2 = vld [vmem:[#allocation8 + $0x27c] sm:$0xf0]  ;;  %v9993_v25 = vor.u32 %v11413_v11, %v9990_v5 }
 0x619   : > { %6892 = vmatpush.bf16.msra.mxu2 %v10185_v34 }
 0x61a   : > { %6794 = vmatpush.bf16.msra.mxu0 %v9993_v25  ;;  %v10170_v25 = vld [vmem:[#allocation8 + $0x1a4] sm:$0xf0] }
 0x61c   : > { %v6516_v18 = vpop.f32.mrf.mxu2  ;;  %v6565_v42 = vpop.f32.mrf.mxu3 }
 0x61d   : > { %v6517_v57 = vadd.f32 %v6516_v18, %v6468_v43  ;;  %v6421_v12 = vpop.f32.mrf.mxu0  ;;  %v6470_v50 = vpop.f32.mrf.mxu1 }
 0x61e   : > { %v6422_v49 = vadd.f32 %v6421_v12, %v13514_v13  ;;  %v11437_v12 = vld [vmem:[#allocation8 + $0xf4] sm:$0xf] }
 0x61f   : > { %v13587_v15 = vadd.f32 %v6565_v42, %v6517_v57  ;;  %6616 = vmatmul.bf16.gmra.mxu0 %v15045_v55  ;;  %v10281_v57 = vor.u32 %v11485_v8, %v10278_v2  ;;  %v15046_v2 = vld [vmem:[#allocation87_spill] sm:$0xff] }
 0x620   : > { %v6471_v31 = vadd.f32 %v6470_v50, %v6422_v49  ;;  %6665 = vmatmul.bf16.gmra.mxu1 %v13311_v19  ;;  %v10086_v49 = vld [vmem:[#allocation8 + $0xfc] sm:$0xf0] }
 0x621   : > { %6714 = vmatmul.bf16.gmra.mxu2 %v13423_v36  ;;  %6763 = vmatmul.bf16.gmra.mxu3 %v13432_v63  ;;  %v10089_v14 = vor.u32 %v11437_v12, %v10086_v49 }
 0x622   : > { %6941 = vmatpush.bf16.msra.mxu3 %v10281_v57  ;;  %v11410_v57 = vld [vmem:[#allocation8 + $0x1c] sm:$0xf] }
 0x623   : > { %6843 = vmatpush.bf16.msra.mxu1 %v10089_v14 }
 0x624   : > { %v6519_v13 = vpop.f32.mrf.mxu2  ;;  %v6568_v30 = vpop.f32.mrf.mxu3 }
 0x625   : > { %v6520_v44 = vadd.f32 %v6519_v13, %v6471_v31  ;;  %v6423_v43 = vpop.f32.mrf.mxu0  ;;  %v6472_v18 = vpop.f32.mrf.mxu1  ;;  %v11458_v13 = vld [vmem:[#allocation8 + $0x19c] sm:$0xf] }
 0x626   : > { %v6424_v61 = vadd.f32 %v6423_v43, %v13517_v28  ;;  %v11482_v43 = vld [vmem:[#allocation8 + $0x25c] sm:$0xf] }
 0x627   : > { %v13594_v42 = vadd.f32 %v6568_v30, %v6520_v44  ;;  %v10173_v44 = vor.u32 %v11458_v13, %v10170_v25  ;;  %v9978_v30 = vld [vmem:[#allocation8 + $0x24] sm:$0xf0] }
 0x628   : > { %v6473_v50 = vadd.f32 %v6472_v18, %v6424_v61  ;;  %v10266_v61 = vld [vmem:[#allocation8 + $0x264] sm:$0xf0]  ;;  %v9981_v18 = vor.u32 %v11410_v57, %v9978_v30 }
 0x629   : > { %6893 = vmatpush.bf16.msra.mxu2 %v10173_v44 }
 0x62a   : > { %6795 = vmatpush.bf16.msra.mxu0 %v9981_v18  ;;  %v10158_v18 = vld [vmem:[#allocation8 + $0x18c] sm:$0xf0] }
 0x62c   : > { %v6521_v23 = vpop.f32.mrf.mxu2  ;;  %v6570_v11 = vpop.f32.mrf.mxu3 }
 0x62d   : > { %v6522_v63 = vadd.f32 %v6521_v23, %v6473_v50  ;;  %v6426_v5 = vpop.f32.mrf.mxu0  ;;  %v6475_v8 = vpop.f32.mrf.mxu1 }
 0x62e   : > { %v6427_v31 = vadd.f32 %v6426_v5, %v13524_v52  ;;  %v11434_v5 = vld [vmem:[#allocation8 + $0xdc] sm:$0xf] }
 0x62f   : > { %v13597_v34 = vadd.f32 %v6570_v11, %v6522_v63  ;;  %6621 = vmatmul.bf16.gmra.mxu0 %v15046_v2  ;;  %v10269_v63 = vor.u32 %v11482_v43, %v10266_v61  ;;  %v15047_v61 = vld [vmem:[#allocation88_spill] sm:$0xff] }
 0x630   : > { %v6476_v28 = vadd.f32 %v6475_v8, %v6427_v31  ;;  %6670 = vmatmul.bf16.gmra.mxu1 %v13327_v60  ;;  %v10074_v31 = vld [vmem:[#allocation8 + $0xe4] sm:$0xf0] }
 0x631   : > { %6719 = vmatmul.bf16.gmra.mxu2 %v13435_v62  ;;  %6768 = vmatmul.bf16.gmra.mxu3 %v13444_v58  ;;  %v10077_v13 = vor.u32 %v11434_v5, %v10074_v31 }
 0x632   : > { %6942 = vmatpush.bf16.msra.mxu3 %v10269_v63  ;;  %v11407_v63 = vld [vmem:[#allocation8 + $0x4] sm:$0xf] }
 0x633   : > { %6844 = vmatpush.bf16.msra.mxu1 %v10077_v13 }
 0x634   : > { %v6524_v52 = vpop.f32.mrf.mxu2  ;;  %v6573_v49 = vpop.f32.mrf.mxu3 }
 0x635   : > { %v6525_v12 = vadd.f32 %v6524_v52, %v6476_v28  ;;  %v6428_v50 = vpop.f32.mrf.mxu0  ;;  %v6477_v23 = vpop.f32.mrf.mxu1  ;;  %v11455_v52 = vld [vmem:[#allocation8 + $0x184] sm:$0xf] }
 0x636   : > { %v6429_v14 = vadd.f32 %v6428_v50, %v13527_v24  ;;  %v11479_v50 = vld [vmem:[#allocation8 + $0x244] sm:$0xf] }
 0x637   : > { %v13604_v11 = vadd.f32 %v6573_v49, %v6525_v12  ;;  %v10161_v12 = vor.u32 %v11455_v52, %v10158_v18  ;;  %v9966_v49 = vld [vmem:[#allocation8 + $0xc] sm:$0xf0] }
 0x638   : > { %v6478_v8 = vadd.f32 %v6477_v23, %v6429_v14  ;;  %v10254_v14 = vld [vmem:[#allocation8 + $0x24c] sm:$0xf0]  ;;  %v9969_v23 = vor.u32 %v11407_v63, %v9966_v49 }
 0x639   : > { %6894 = vmatpush.bf16.msra.mxu2 %v10161_v12 }
 0x63a   : > { %6796 = vmatpush.bf16.msra.mxu0 %v9969_v23  ;;  %v10626_v23 = vld [vmem:[#allocation8 + $0x534] sm:$0xf0] }
 0x63c   : > { %v6526_v25 = vpop.f32.mrf.mxu2  ;;  %v6575_v57 = vpop.f32.mrf.mxu3 }
 0x63d   : > { %v6527_v58 = vadd.f32 %v6526_v25, %v6478_v8  ;;  %v6431_v30 = vpop.f32.mrf.mxu0  ;;  %v6480_v43 = vpop.f32.mrf.mxu1 }
 0x63e   : > { %v6432_v28 = vadd.f32 %v6431_v30, %v13534_v7  ;;  %v11431_v30 = vld [vmem:[#allocation8 + $0xc4] sm:$0xf] }
 0x63f   : > { %v13607_v44 = vadd.f32 %v6575_v57, %v6527_v58  ;;  %6626 = vmatmul.bf16.gmra.mxu0 %v15047_v61  ;;  %v10257_v58 = vor.u32 %v11479_v50, %v10254_v14  ;;  %v15048_v14 = vld [vmem:[#allocation89_spill] sm:$0xff] }
 0x640   : > { %v6481_v24 = vadd.f32 %v6480_v43, %v6432_v28  ;;  %6675 = vmatmul.bf16.gmra.mxu1 %v13343_v20  ;;  %v10062_v28 = vld [vmem:[#allocation8 + $0xcc] sm:$0xf0] }
 0x641   : > { %6724 = vmatmul.bf16.gmra.mxu2 %v13447_v59  ;;  %6773 = vmatmul.bf16.gmra.mxu3 %v13456_v35  ;;  %v10065_v52 = vor.u32 %v11431_v30, %v10062_v28 }
 0x642   : > { %6943 = vmatpush.bf16.msra.mxu3 %v10257_v58  ;;  %v11524_v58 = vld [vmem:[#allocation8 + $0x3ac] sm:$0xf] }
 0x643   : > { %6845 = vmatpush.bf16.msra.mxu1 %v10065_v52 }
 0x644   : > { %v6529_v7 = vpop.f32.mrf.mxu2  ;;  %v6578_v31 = vpop.f32.mrf.mxu3 }
 0x645   : > { %v6530_v5 = vadd.f32 %v6529_v7, %v6481_v24  ;;  %v6433_v8 = vpop.f32.mrf.mxu0  ;;  %v6482_v25 = vpop.f32.mrf.mxu1  ;;  %v11572_v7 = vld [vmem:[#allocation8 + $0x52c] sm:$0xf] }
 0x646   : > { %v6434_v13 = vadd.f32 %v6433_v8, %v13537_v1  ;;  %v11596_v8 = vld [vmem:[#allocation8 + $0x5ec] sm:$0xf] }
 0x647   : > { %v13614_v57 = vadd.f32 %v6578_v31, %v6530_v5  ;;  %v10629_v5 = vor.u32 %v11572_v7, %v10626_v23  ;;  %v10434_v31 = vld [vmem:[#allocation8 + $0x3b4] sm:$0xf0] }
 0x648   : > { %v6483_v43 = vadd.f32 %v6482_v25, %v6434_v13  ;;  %v10722_v13 = vld [vmem:[#allocation8 + $0x5f4] sm:$0xf0]  ;;  %v10437_v25 = vor.u32 %v11524_v58, %v10434_v31 }
 0x649   : > { %7083 = vmatpush.bf16.msrb.mxu2 %v10629_v5 }
 0x64a   : > { %6985 = vmatpush.bf16.msrb.mxu0 %v10437_v25  ;;  %v10614_v25 = vld [vmem:[#allocation8 + $0x51c] sm:$0xf0] }
 0x64c   : > { %v6531_v18 = vpop.f32.mrf.mxu2  ;;  %v6580_v63 = vpop.f32.mrf.mxu3 }
 0x64d   : > { %v6532_v35 = vadd.f32 %v6531_v18, %v6483_v43  ;;  %v6436_v49 = vpop.f32.mrf.mxu0  ;;  %v6485_v50 = vpop.f32.mrf.mxu1 }
 0x64e   : > { %v6437_v24 = vadd.f32 %v6436_v49, %v13544_v47  ;;  %v11548_v49 = vld [vmem:[#allocation8 + $0x46c] sm:$0xf] }
 0x64f   : > { %v13617_v12 = vadd.f32 %v6580_v63, %v6532_v35  ;;  %6631 = vmatmul.bf16.gmra.mxu0 %v15048_v14  ;;  %v10725_v35 = vor.u32 %v11596_v8, %v10722_v13  ;;  %v15049_v13 = vld [vmem:[#allocation90_spill] sm:$0xff] }
 0x650   : > { %v6486_v1 = vadd.f32 %v6485_v50, %v6437_v24  ;;  %6680 = vmatmul.bf16.gmra.mxu1 %v13359_v6  ;;  %v10530_v24 = vld [vmem:[#allocation8 + $0x474] sm:$0xf0] }
 0x651   : > { %6729 = vmatmul.bf16.gmra.mxu2 %v13459_v40  ;;  %6778 = vmatmul.bf16.gmra.mxu3 %v13468_v39  ;;  %v10533_v7 = vor.u32 %v11548_v49, %v10530_v24 }
 0x652   : > { %7132 = vmatpush.bf16.msrb.mxu3 %v10725_v35  ;;  %v11521_v35 = vld [vmem:[#allocation8 + $0x394] sm:$0xf] }
 0x653   : > { %7034 = vmatpush.bf16.msrb.mxu1 %v10533_v7 }
 0x654   : > { %v6534_v47 = vpop.f32.mrf.mxu2  ;;  %v6583_v28 = vpop.f32.mrf.mxu3 }
 0x655   : > { %v6535_v30 = vadd.f32 %v6534_v47, %v6486_v1  ;;  %v6438_v43 = vpop.f32.mrf.mxu0  ;;  %v6487_v18 = vpop.f32.mrf.mxu1  ;;  %v11569_v47 = vld [vmem:[#allocation8 + $0x514] sm:$0xf] }
 0x656   : > { %v6439_v52 = vadd.f32 %v6438_v43, %v13547_v37  ;;  %v11593_v43 = vld [vmem:[#allocation8 + $0x5d4] sm:$0xf] }
 0x657   : > { %v13624_v63 = vadd.f32 %v6583_v28, %v6535_v30  ;;  %v10617_v30 = vor.u32 %v11569_v47, %v10614_v25  ;;  %v10422_v28 = vld [vmem:[#allocation8 + $0x39c] sm:$0xf0] }
 0x658   : > { %v6488_v50 = vadd.f32 %v6487_v18, %v6439_v52  ;;  %v10710_v52 = vld [vmem:[#allocation8 + $0x5dc] sm:$0xf0]  ;;  %v10425_v18 = vor.u32 %v11521_v35, %v10422_v28 }
 0x659   : > { %7084 = vmatpush.bf16.msrb.mxu2 %v10617_v30 }
 0x65a   : > { %6986 = vmatpush.bf16.msrb.mxu0 %v10425_v18  ;;  %v11518_v18 = vld [vmem:[#allocation8 + $0x37c] sm:$0xf] }
 0x65c   : > { %v6536_v23 = vpop.f32.mrf.mxu2  ;;  %v6585_v58 = vpop.f32.mrf.mxu3 }
 0x65d   : > { %v6537_v39 = vadd.f32 %v6536_v23, %v6488_v50  ;;  %v6441_v31 = vpop.f32.mrf.mxu0  ;;  %v6490_v8 = vpop.f32.mrf.mxu1 }
 0x65e   : > { %v6442_v1 = vadd.f32 %v6441_v31, %v13554_v45 }
 0x65f   : > { %v13627_v5 = vadd.f32 %v6585_v58, %v6537_v39  ;;  %6636 = vmatmul.bf16.gmra.mxu0 %v15049_v13  ;;  %v10713_v39 = vor.u32 %v11593_v43, %v10710_v52  ;;  %v11566_v52 = vld [vmem:[#allocation8 + $0x4fc] sm:$0xf] }
 0x660   : > { %v6491_v37 = vadd.f32 %v6490_v8, %v6442_v1  ;;  %6685 = vmatmul.bf16.gmra.mxu1 %v13373_v53  ;;  %v11545_v1 = vld [vmem:[#allocation8 + $0x454] sm:$0xf]  ;;  %v10518_v8 = vld [vmem:[#allocation8 + $0x45c] sm:$0xf0] }
 0x661   : > { %6734 = vmatmul.bf16.gmra.mxu2 %v13473_v4  ;;  %6783 = vmatmul.bf16.gmra.mxu3 %v13481_v41  ;;  %v10521_v47 = vor.u32 %v11545_v1, %v10518_v8 }
 0x662   : > { %7133 = vmatpush.bf16.msrb.mxu3 %v10713_v39 }
 0x663   : > { %7035 = vmatpush.bf16.msrb.mxu1 %v10521_v47 }
 0x664   : > { %v6539_v45 = vpop.f32.mrf.mxu2  ;;  %v6588_v24 = vpop.f32.mrf.mxu3 }
 0x665   : > { %v6540_v49 = vadd.f32 %v6539_v45, %v6491_v37  ;;  %v6443_v50 = vpop.f32.mrf.mxu0  ;;  %v6492_v23 = vpop.f32.mrf.mxu1  ;;  %v10602_v45 = vld [vmem:[#allocation8 + $0x504] sm:$0xf0] }
 0x666   : > { %v6444_v7 = vadd.f32 %v6443_v50, %v13557_v48  ;;  %v10605_v39 = vor.u32 %v11566_v52, %v10602_v45  ;;  %v10698_v50 = vld [vmem:[#allocation8 + $0x5c4] sm:$0xf0] }
 0x667   : > { %v13634_v58 = vadd.f32 %v6588_v24, %v6540_v49  ;;  %v10410_v49 = vld [vmem:[#allocation8 + $0x384] sm:$0xf0]  ;;  %v11590_v24 = vld [vmem:[#allocation8 + $0x5bc] sm:$0xf] }
 0x668   : > { %v6493_v31 = vadd.f32 %v6492_v23, %v6444_v7  ;;  %v10413_v7 = vor.u32 %v11518_v18, %v10410_v49  ;;  %7085 = vmatpush.bf16.msrb.mxu2 %v10605_v39 }
 0x66a   : > { %6987 = vmatpush.bf16.msrb.mxu0 %v10413_v7  ;;  %v15054_v7 = vld [vmem:[#allocation37_spill] sm:$0xff] }
 0x66c   : > { %v6541_v25 = vpop.f32.mrf.mxu2  ;;  %v6590_v35 = vpop.f32.mrf.mxu3 }
 0x66d   : > { %v6542_v41 = vadd.f32 %v6541_v25, %v6493_v31  ;;  %v6602_v28 = vpop.f32.mrf.mxu0  ;;  %v6651_v43 = vpop.f32.mrf.mxu1 }
 0x66e   : > { %v6603_v37 = vadd.f32 %v6602_v28, %v13564_v0  ;;  %v11542_v28 = vld [vmem:[#allocation8 + $0x43c] sm:$0xf] }
 0x66f   : > { %v13637_v30 = vadd.f32 %v6590_v35, %v6542_v41  ;;  %6797 = vmatmul.bf16.vlgmr.msra.gmra.mxu0 %v12490_v56  ;;  %v10701_v41 = vor.u32 %v11590_v24, %v10698_v50  ;;  %v15052_v50 = vld [vmem:[#allocation20_spill] sm:$0xff] }
 0x670   : > { %v6652_v48 = vadd.f32 %v6651_v43, %v6603_v37  ;;  %6846 = vmatmul.bf16.vlgmr.msra.gmra.mxu1 %v14975_v22  ;;  %v10506_v37 = vld [vmem:[#allocation8 + $0x444] sm:$0xf0] }
 0x671   : > { %6895 = vmatmul.bf16.vlgmr.msra.gmra.mxu2 %v14976_v32  ;;  %6944 = vmatmul.bf16.vlgmr.msra.gmra.mxu3 %v14977_v21  ;;  %v10509_v43 = vor.u32 %v11542_v28, %v10506_v37  ;;  %v10686_v28 = vld [vmem:[#allocation8 + $0x5ac] sm:$0xf0] }
 0x672   : > { %7134 = vmatpush.bf16.msrb.mxu3 %v10701_v41  ;;  %v15055_v41 = vld [vmem:[#allocation38_spill] sm:$0xff] }
 0x673   : > { %7036 = vmatpush.bf16.msrb.mxu1 %v10509_v43 }
 0x674   : > { %v6700_v0 = vpop.f32.mrf.mxu2  ;;  %v6749_v31 = vpop.f32.mrf.mxu3 }
 0x675   : > { %v6701_v23 = vadd.f32 %v6700_v0, %v6652_v48  ;;  %v6604_v1 = vpop.f32.mrf.mxu0  ;;  %v6653_v47 = vpop.f32.mrf.mxu1  ;;  %v15053_v0 = vld [vmem:[#allocation28_spill] sm:$0xff] }
 0x676   : > { %v6605_v8 = vadd.f32 %v6604_v1, %v13567_v17  ;;  %v11515_v1 = vld [vmem:[#allocation8 + $0x364] sm:$0xf] }
 0x677   : > { %v13644_v25 = vadd.f32 %v6749_v31, %v6701_v23  ;;  %v11563_v23 = vld [vmem:[#allocation8 + $0x4e4] sm:$0xf]  ;;  %v10590_v31 = vld [vmem:[#allocation8 + $0x4ec] sm:$0xf0] }
 0x678   : > { %v6654_v35 = vadd.f32 %v6653_v47, %v6605_v8  ;;  %v10593_v8 = vor.u32 %v11563_v23, %v10590_v31  ;;  %v10398_v47 = vld [vmem:[#allocation8 + $0x36c] sm:$0xf0] }
 0x679   : > { %15050 = vst [vmem:[#allocation83_spill] sm:$0xff] %v13644_v25  ;;  %v10401_v37 = vor.u32 %v11515_v1, %v10398_v47  ;;  %v11539_v25 = vld [vmem:[#allocation8 + $0x424] sm:$0xf]  ;;  %v10494_v23 = vld [vmem:[#allocation8 + $0x42c] sm:$0xf0] }
 0x67a   : > { %7086 = vmatpush.bf16.msrb.mxu2 %v10593_v8  ;;  %v10497_v31 = vor.u32 %v11539_v25, %v10494_v23  ;;  %v11560_v25 = vld [vmem:[#allocation8 + $0x4cc] sm:$0xf] }
 0x67b   : > { %6988 = vmatpush.bf16.msrb.mxu0 %v10401_v37  ;;  %v15060_v37 = vld [vmem:[#allocation39_spill] sm:$0xff] }
 0x67c   : > { %v6702_v52 = vpop.f32.mrf.mxu2  ;;  %v6751_v18 = vpop.f32.mrf.mxu3  ;;  %7037 = vmatpush.bf16.msrb.mxu1 %v10497_v31 }
 0x67d   : > { %v6703_v45 = vadd.f32 %v6702_v52, %v6654_v35  ;;  %v6607_v49 = vpop.f32.mrf.mxu0  ;;  %v6656_v24 = vpop.f32.mrf.mxu1  ;;  %v11587_v35 = vld [vmem:[#allocation8 + $0x5a4] sm:$0xf] }
 0x67e   : > { %v6608_v48 = vadd.f32 %v6607_v49, %v13574_v3  ;;  %v10689_v43 = vor.u32 %v11587_v35, %v10686_v28  ;;  %v15058_v28 = vld [vmem:[#allocation21_spill] sm:$0xff] }
 0x67f   : > { %v13647_v39 = vadd.f32 %v6751_v18, %v6703_v45  ;;  %6802 = vmatmul.bf16.gmra.mxu0 %v15052_v50 }
 0x680   : > { %v6657_v17 = vadd.f32 %v6656_v24, %v6608_v48  ;;  %6851 = vmatmul.bf16.gmra.mxu1 %v15053_v0  ;;  %7135 = vmatpush.bf16.msrb.mxu3 %v10689_v43  ;;  %v15061_v43 = vld [vmem:[#allocation40_spill] sm:$0xff] }
 0x681   : > { %15051 = vst [vmem:[#allocation84_spill] sm:$0xff] %v13647_v39  ;;  %6900 = vmatmul.bf16.gmra.mxu2 %v15054_v7  ;;  %6949 = vmatmul.bf16.gmra.mxu3 %v15055_v41 }
 0x684   : > { %v6705_v3 = vpop.f32.mrf.mxu2  ;;  %v6754_v45 = vpop.f32.mrf.mxu3 }
 0x685   : > { %v6706_v52 = vadd.f32 %v6705_v3, %v6657_v17  ;;  %v6609_v18 = vpop.f32.mrf.mxu0  ;;  %v6658_v48 = vpop.f32.mrf.mxu1  ;;  %v15059_v3 = vld [vmem:[#allocation29_spill] sm:$0xff] }
 0x686   : > { %v6610_v49 = vadd.f32 %v6609_v18, %v13577_v33  ;;  %v11584_v18 = vld [vmem:[#allocation8 + $0x58c] sm:$0xf] }
 0x687   : > { %v13654_v24 = vadd.f32 %v6754_v45, %v6706_v52  ;;  %v10578_v52 = vld [vmem:[#allocation8 + $0x4d4] sm:$0xf0]  ;;  %v11512_v45 = vld [vmem:[#allocation8 + $0x34c] sm:$0xf] }
 0x688   : > { %v6659_v39 = vadd.f32 %v6658_v48, %v6610_v49  ;;  %v10674_v49 = vld [vmem:[#allocation8 + $0x594] sm:$0xf0] }
 0x689   : > { %15056 = vst [vmem:[#allocation85_spill] sm:$0xff] %v13654_v24  ;;  %v11536_v24 = vld [vmem:[#allocation8 + $0x40c] sm:$0xf] }
 0x68c   : > { %v6707_v41 = vpop.f32.mrf.mxu2  ;;  %v6756_v1 = vpop.f32.mrf.mxu3 }
 0x68d   : > { %v6708_v7 = vadd.f32 %v6707_v41, %v6659_v39  ;;  %v6612_v47 = vpop.f32.mrf.mxu0  ;;  %v6661_v35 = vpop.f32.mrf.mxu1  ;;  %v10581_v39 = vor.u32 %v11560_v25, %v10578_v52  ;;  %v10386_v41 = vld [vmem:[#allocation8 + $0x354] sm:$0xf0] }
 0x68e   : > { %v6613_v17 = vadd.f32 %v6612_v47, %v13584_v16  ;;  %v10389_v48 = vor.u32 %v11512_v45, %v10386_v41  ;;  %v10482_v25 = vld [vmem:[#allocation8 + $0x414] sm:$0xf0] }
 0x68f   : > { %v13657_v8 = vadd.f32 %v6756_v1, %v6708_v7  ;;  %6807 = vmatmul.bf16.gmra.mxu0 %v15058_v28  ;;  %v10677_v7 = vor.u32 %v11584_v18, %v10674_v49  ;;  %7087 = vmatpush.bf16.msrb.mxu2 %v10581_v39  ;;  %v10485_v52 = vor.u32 %v11536_v24, %v10482_v25  ;;  %v15064_v49 = vld [vmem:[#allocation22_spill] sm:$0xff]  ;;  %v11557_v24 = vld [vmem:[#allocation8 + $0x4b4] sm:$0xf] }
 0x690   : > { %v6662_v33 = vadd.f32 %v6661_v35, %v6613_v17  ;;  %6856 = vmatmul.bf16.gmra.mxu1 %v15059_v3  ;;  %6989 = vmatpush.bf16.msrb.mxu0 %v10389_v48  ;;  %v15066_v48 = vld [vmem:[#allocation41_spill] sm:$0xff] }
 0x691   : > { %15057 = vst [vmem:[#allocation86_spill] sm:$0xff] %v13657_v8  ;;  %6905 = vmatmul.bf16.gmra.mxu2 %v15060_v37  ;;  %6954 = vmatmul.bf16.gmra.mxu3 %v15061_v43 }
 0x692   : > { %7136 = vmatpush.bf16.msrb.mxu3 %v10677_v7  ;;  %7038 = vmatpush.bf16.msrb.mxu1 %v10485_v52  ;;  %v15067_v7 = vld [vmem:[#allocation42_spill] sm:$0xff] }
 0x694   : > { %v6710_v16 = vpop.f32.mrf.mxu2  ;;  %v6759_v31 = vpop.f32.mrf.mxu3 }
 0x695   : > { %v6711_v23 = vadd.f32 %v6710_v16, %v6662_v33  ;;  %v6614_v1 = vpop.f32.mrf.mxu0  ;;  %v6663_v17 = vpop.f32.mrf.mxu1  ;;  %v15065_v16 = vld [vmem:[#allocation30_spill] sm:$0xff] }
 0x696   : > { %v6615_v47 = vadd.f32 %v6614_v1, %v13587_v15  ;;  %v11581_v1 = vld [vmem:[#allocation8 + $0x574] sm:$0xf] }
 0x697   : > { %v13664_v35 = vadd.f32 %v6759_v31, %v6711_v23  ;;  %v10566_v23 = vld [vmem:[#allocation8 + $0x4bc] sm:$0xf0]  ;;  %v11509_v31 = vld [vmem:[#allocation8 + $0x334] sm:$0xf] }
 0x698   : > { %v6664_v8 = vadd.f32 %v6663_v17, %v6615_v47  ;;  %v10662_v47 = vld [vmem:[#allocation8 + $0x57c] sm:$0xf0] }
 0x699   : > { %15062 = vst [vmem:[#allocation87_spill] sm:$0xff] %v13664_v35  ;;  %v11533_v35 = vld [vmem:[#allocation8 + $0x3f4] sm:$0xf] }
 0x69c   : > { %v6712_v43 = vpop.f32.mrf.mxu2  ;;  %v6761_v45 = vpop.f32.mrf.mxu3 }
 0x69d   : > { %v6713_v37 = vadd.f32 %v6712_v43, %v6664_v8  ;;  %v6617_v41 = vpop.f32.mrf.mxu0  ;;  %v6666_v18 = vpop.f32.mrf.mxu1  ;;  %v10569_v8 = vor.u32 %v11557_v24, %v10566_v23  ;;  %v10374_v43 = vld [vmem:[#allocation8 + $0x33c] sm:$0xf0] }
 0x69e   : > { %v6618_v33 = vadd.f32 %v6617_v41, %v13594_v42  ;;  %v10377_v17 = vor.u32 %v11509_v31, %v10374_v43  ;;  %v10470_v24 = vld [vmem:[#allocation8 + $0x3fc] sm:$0xf0] }
 0x69f   : > { %v13667_v39 = vadd.f32 %v6761_v45, %v6713_v37  ;;  %6812 = vmatmul.bf16.gmra.mxu0 %v15064_v49  ;;  %v10665_v37 = vor.u32 %v11581_v1, %v10662_v47  ;;  %7088 = vmatpush.bf16.msrb.mxu2 %v10569_v8  ;;  %v10473_v23 = vor.u32 %v11533_v35, %v10470_v24  ;;  %v15070_v47 = vld [vmem:[#allocation23_spill] sm:$0xff]  ;;  %v11554_v35 = vld [vmem:[#allocation8 + $0x49c] sm:$0xf] }
 0x6a0   : > { %v6667_v15 = vadd.f32 %v6666_v18, %v6618_v33  ;;  %6861 = vmatmul.bf16.gmra.mxu1 %v15065_v16  ;;  %6990 = vmatpush.bf16.msrb.mxu0 %v10377_v17  ;;  %v15072_v17 = vld [vmem:[#allocation43_spill] sm:$0xff] }
 0x6a1   : > { %15063 = vst [vmem:[#allocation88_spill] sm:$0xff] %v13667_v39  ;;  %6910 = vmatmul.bf16.gmra.mxu2 %v15066_v48  ;;  %6959 = vmatmul.bf16.gmra.mxu3 %v15067_v7 }
 0x6a2   : > { %7137 = vmatpush.bf16.msrb.mxu3 %v10665_v37  ;;  %7039 = vmatpush.bf16.msrb.mxu1 %v10473_v23  ;;  %v15073_v37 = vld [vmem:[#allocation44_spill] sm:$0xff] }
 0x6a4   : > { %v6715_v42 = vpop.f32.mrf.mxu2  ;;  %v6764_v52 = vpop.f32.mrf.mxu3 }
 0x6a5   : > { %v6716_v25 = vadd.f32 %v6715_v42, %v6667_v15  ;;  %v6619_v45 = vpop.f32.mrf.mxu0  ;;  %v6668_v33 = vpop.f32.mrf.mxu1  ;;  %v15071_v42 = vld [vmem:[#allocation31_spill] sm:$0xff] }
 0x6a6   : > { %v6620_v41 = vadd.f32 %v6619_v45, %v13597_v34  ;;  %v11578_v45 = vld [vmem:[#allocation8 + $0x55c] sm:$0xf] }
 0x6a7   : > { %v13674_v18 = vadd.f32 %v6764_v52, %v6716_v25  ;;  %v10554_v25 = vld [vmem:[#allocation8 + $0x4a4] sm:$0xf0]  ;;  %v11506_v52 = vld [vmem:[#allocation8 + $0x31c] sm:$0xf] }
 0x6a8   : > { %v6669_v39 = vadd.f32 %v6668_v33, %v6620_v41  ;;  %v10650_v41 = vld [vmem:[#allocation8 + $0x564] sm:$0xf0] }
 0x6a9   : > { %15068 = vst [vmem:[#allocation89_spill] sm:$0xff] %v13674_v18  ;;  %v11530_v18 = vld [vmem:[#allocation8 + $0x3dc] sm:$0xf] }
 0x6ac   : > { %v6717_v7 = vpop.f32.mrf.mxu2  ;;  %v6766_v31 = vpop.f32.mrf.mxu3 }
 0x6ad   : > { %v6718_v48 = vadd.f32 %v6717_v7, %v6669_v39  ;;  %v6622_v43 = vpop.f32.mrf.mxu0  ;;  %v6671_v1 = vpop.f32.mrf.mxu1  ;;  %v10557_v39 = vor.u32 %v11554_v35, %v10554_v25  ;;  %v10362_v7 = vld [vmem:[#allocation8 + $0x324] sm:$0xf0] }
 0x6ae   : > { %v6623_v15 = vadd.f32 %v6622_v43, %v13604_v11  ;;  %v10365_v33 = vor.u32 %v11506_v52, %v10362_v7  ;;  %v10458_v35 = vld [vmem:[#allocation8 + $0x3e4] sm:$0xf0] }
 0x6af   : > { %v13677_v8 = vadd.f32 %v6766_v31, %v6718_v48  ;;  %6817 = vmatmul.bf16.gmra.mxu0 %v15070_v47  ;;  %v10653_v48 = vor.u32 %v11578_v45, %v10650_v41  ;;  %7089 = vmatpush.bf16.msrb.mxu2 %v10557_v39  ;;  %v10461_v25 = vor.u32 %v11530_v18, %v10458_v35  ;;  %v15076_v41 = vld [vmem:[#allocation24_spill] sm:$0xff]  ;;  %v11551_v18 = vld [vmem:[#allocation8 + $0x484] sm:$0xf] }
 0x6b0   : > { %v6672_v34 = vadd.f32 %v6671_v1, %v6623_v15  ;;  %6866 = vmatmul.bf16.gmra.mxu1 %v15071_v42  ;;  %6991 = vmatpush.bf16.msrb.mxu0 %v10365_v33  ;;  %v15078_v33 = vld [vmem:[#allocation45_spill] sm:$0xff] }
 0x6b1   : > { %15069 = vst [vmem:[#allocation90_spill] sm:$0xff] %v13677_v8  ;;  %6915 = vmatmul.bf16.gmra.mxu2 %v15072_v17  ;;  %6964 = vmatmul.bf16.gmra.mxu3 %v15073_v37 }
 0x6b2   : > { %7138 = vmatpush.bf16.msrb.mxu3 %v10653_v48  ;;  %7040 = vmatpush.bf16.msrb.mxu1 %v10461_v25  ;;  %v15079_v48 = vld [vmem:[#allocation46_spill] sm:$0xff] }
 0x6b4   : > { %v6720_v11 = vpop.f32.mrf.mxu2  ;;  %v6769_v23 = vpop.f32.mrf.mxu3 }
 0x6b5   : > { %v6721_v24 = vadd.f32 %v6720_v11, %v6672_v34  ;;  %v6624_v31 = vpop.f32.mrf.mxu0  ;;  %v6673_v15 = vpop.f32.mrf.mxu1  ;;  %v15077_v11 = vld [vmem:[#allocation32_spill] sm:$0xff] }
 0x6b6   : > { %v6625_v43 = vadd.f32 %v6624_v31, %v13607_v44  ;;  %v11575_v31 = vld [vmem:[#allocation8 + $0x544] sm:$0xf] }
 0x6b7   : > { %v13684_v1 = vadd.f32 %v6769_v23, %v6721_v24  ;;  %v10542_v24 = vld [vmem:[#allocation8 + $0x48c] sm:$0xf0]  ;;  %v11503_v23 = vld [vmem:[#allocation8 + $0x304] sm:$0xf] }
 0x6b8   : > { %v6674_v8 = vadd.f32 %v6673_v15, %v6625_v43  ;;  %v10638_v43 = vld [vmem:[#allocation8 + $0x54c] sm:$0xf0] }
 0x6b9   : > { %15074 = vst [vmem:[#allocation96_spill] sm:$0xff] %v13684_v1  ;;  %v11527_v1 = vld [vmem:[#allocation8 + $0x3c4] sm:$0xf] }
 0x6bc   : > { %v6722_v37 = vpop.f32.mrf.mxu2  ;;  %v6771_v52 = vpop.f32.mrf.mxu3 }
 0x6bd   : > { %v6723_v17 = vadd.f32 %v6722_v37, %v6674_v8  ;;  %v6627_v7 = vpop.f32.mrf.mxu0  ;;  %v6676_v45 = vpop.f32.mrf.mxu1  ;;  %v10545_v8 = vor.u32 %v11551_v18, %v10542_v24  ;;  %v10350_v37 = vld [vmem:[#allocation8 + $0x30c] sm:$0xf0] }
 0x6be   : > { %v6628_v34 = vadd.f32 %v6627_v7, %v13614_v57  ;;  %v10353_v15 = vor.u32 %v11503_v23, %v10350_v37  ;;  %v10446_v18 = vld [vmem:[#allocation8 + $0x3cc] sm:$0xf0] }
 0x6bf   : > { %v13687_v39 = vadd.f32 %v6771_v52, %v6723_v17  ;;  %6822 = vmatmul.bf16.gmra.mxu0 %v15076_v41  ;;  %v10641_v17 = vor.u32 %v11575_v31, %v10638_v43  ;;  %7090 = vmatpush.bf16.msrb.mxu2 %v10545_v8  ;;  %v10449_v24 = vor.u32 %v11527_v1, %v10446_v18  ;;  %v15082_v43 = vld [vmem:[#allocation25_spill] sm:$0xff]  ;;  %v11668_v1 = vld [vmem:[#allocation8 + $0x82c] sm:$0xf] }
 0x6c0   : > { %v6677_v44 = vadd.f32 %v6676_v45, %v6628_v34  ;;  %6871 = vmatmul.bf16.gmra.mxu1 %v15077_v11  ;;  %6992 = vmatpush.bf16.msrb.mxu0 %v10353_v15  ;;  %v15084_v15 = vld [vmem:[#allocation47_spill] sm:$0xff] }
 0x6c1   : > { %15075 = vst [vmem:[#allocation97_spill] sm:$0xff] %v13687_v39  ;;  %6920 = vmatmul.bf16.gmra.mxu2 %v15078_v33  ;;  %6969 = vmatmul.bf16.gmra.mxu3 %v15079_v48 }
 0x6c2   : > { %7139 = vmatpush.bf16.msrb.mxu3 %v10641_v17  ;;  %7041 = vmatpush.bf16.msrb.mxu1 %v10449_v24  ;;  %v15085_v17 = vld [vmem:[#allocation48_spill] sm:$0xff] }
 0x6c4   : > { %v6725_v57 = vpop.f32.mrf.mxu2  ;;  %v6774_v25 = vpop.f32.mrf.mxu3 }
 0x6c5   : > { %v6726_v35 = vadd.f32 %v6725_v57, %v6677_v44  ;;  %v6629_v52 = vpop.f32.mrf.mxu0  ;;  %v6678_v34 = vpop.f32.mrf.mxu1  ;;  %v15083_v57 = vld [vmem:[#allocation33_spill] sm:$0xff] }
 0x6c6   : > { %v6630_v7 = vadd.f32 %v6629_v52, %v13617_v12  ;;  %v11692_v52 = vld [vmem:[#allocation8 + $0x8ec] sm:$0xf] }
 0x6c7   : > { %v13694_v45 = vadd.f32 %v6774_v25, %v6726_v35  ;;  %v11010_v35 = vld [vmem:[#allocation8 + $0x834] sm:$0xf0]  ;;  %v11620_v25 = vld [vmem:[#allocation8 + $0x6ac] sm:$0xf] }
 0x6c8   : > { %v6679_v39 = vadd.f32 %v6678_v34, %v6630_v7  ;;  %v11106_v7 = vld [vmem:[#allocation8 + $0x8f4] sm:$0xf0] }
 0x6c9   : > { %15080 = vst [vmem:[#allocation98_spill] sm:$0xff] %v13694_v45  ;;  %v10914_v45 = vld [vmem:[#allocation8 + $0x774] sm:$0xf0] }
 0x6cc   : > { %v6727_v48 = vpop.f32.mrf.mxu2  ;;  %v6776_v23 = vpop.f32.mrf.mxu3 }
 0x6cd   : > { %v6728_v33 = vadd.f32 %v6727_v48, %v6679_v39  ;;  %v6632_v37 = vpop.f32.mrf.mxu0  ;;  %v6681_v31 = vpop.f32.mrf.mxu1  ;;  %v11013_v39 = vor.u32 %v11668_v1, %v11010_v35  ;;  %v10818_v48 = vld [vmem:[#allocation8 + $0x6b4] sm:$0xf0] }
 0x6ce   : > { %v6633_v44 = vadd.f32 %v6632_v37, %v13624_v63  ;;  %v10821_v34 = vor.u32 %v11620_v25, %v10818_v48 }
 0x6cf   : > { %v13697_v8 = vadd.f32 %v6776_v23, %v6728_v33  ;;  %6827 = vmatmul.bf16.gmra.mxu0 %v15082_v43  ;;  %v11109_v33 = vor.u32 %v11692_v52, %v11106_v7  ;;  %7279 = vmatpush.bf16.msra.mxu2 %v11013_v39  ;;  %v15088_v7 = vld [vmem:[#allocation26_spill] sm:$0xff] }
 0x6d0   : > { %v6682_v12 = vadd.f32 %v6681_v31, %v6633_v44  ;;  %6876 = vmatmul.bf16.gmra.mxu1 %v15083_v57  ;;  %7181 = vmatpush.bf16.msra.mxu0 %v10821_v34  ;;  %v15090_v34 = vld [vmem:[#allocation49_spill] sm:$0xff] }
 0x6d1   : > { %15081 = vst [vmem:[#allocation99_spill] sm:$0xff] %v13697_v8  ;;  %6925 = vmatmul.bf16.gmra.mxu2 %v15084_v15  ;;  %6974 = vmatmul.bf16.gmra.mxu3 %v15085_v17  ;;  %v11644_v8 = vld [vmem:[#allocation8 + $0x76c] sm:$0xf] }
 0x6d2   : > { %7328 = vmatpush.bf16.msra.mxu3 %v11109_v33  ;;  %v10917_v35 = vor.u32 %v11644_v8, %v10914_v45  ;;  %v15091_v33 = vld [vmem:[#allocation50_spill] sm:$0xff]  ;;  %v11665_v45 = vld [vmem:[#allocation8 + $0x814] sm:$0xf] }
 0x6d3   : > { %v10998_v8 = vld [vmem:[#allocation8 + $0x81c] sm:$0xf0] }
 0x6d4   : > { %v6730_v63 = vpop.f32.mrf.mxu2  ;;  %v6779_v24 = vpop.f32.mrf.mxu3  ;;  %7230 = vmatpush.bf16.msra.mxu1 %v10917_v35 }
 0x6d5   : > { %v6731_v18 = vadd.f32 %v6730_v63, %v6682_v12  ;;  %v6634_v23 = vpop.f32.mrf.mxu0  ;;  %v6683_v44 = vpop.f32.mrf.mxu1  ;;  %v15089_v63 = vld [vmem:[#allocation34_spill] sm:$0xff] }
 0x6d6   : > { %v6635_v37 = vadd.f32 %v6634_v23, %v13627_v5  ;;  %v11689_v23 = vld [vmem:[#allocation8 + $0x8d4] sm:$0xf] }
 0x6d7   : > { %v13704_v31 = vadd.f32 %v6779_v24, %v6731_v18  ;;  %v11617_v18 = vld [vmem:[#allocation8 + $0x694] sm:$0xf]  ;;  %v10806_v24 = vld [vmem:[#allocation8 + $0x69c] sm:$0xf0] }
 0x6d8   : > { %v6684_v1 = vadd.f32 %v6683_v44, %v6635_v37  ;;  %v11094_v37 = vld [vmem:[#allocation8 + $0x8dc] sm:$0xf0]  ;;  %v10809_v44 = vor.u32 %v11617_v18, %v10806_v24 }
 0x6d9   : > { %15086 = vst [vmem:[#allocation100_spill] sm:$0xff] %v13704_v31  ;;  %v10902_v31 = vld [vmem:[#allocation8 + $0x75c] sm:$0xf0] }
 0x6da   : > { %7182 = vmatpush.bf16.msra.mxu0 %v10809_v44  ;;  %v15094_v44 = vld [vmem:[#allocation51_spill] sm:$0xff] }
 0x6dc   : > { %v6732_v17 = vpop.f32.mrf.mxu2  ;;  %v6781_v25 = vpop.f32.mrf.mxu3 }
 0x6dd   : > { %v6733_v15 = vadd.f32 %v6732_v17, %v6684_v1  ;;  %v6637_v48 = vpop.f32.mrf.mxu0  ;;  %v6686_v52 = vpop.f32.mrf.mxu1  ;;  %v11001_v17 = vor.u32 %v11665_v45, %v10998_v8 }
 0x6de   : > { %v6638_v12 = vadd.f32 %v6637_v48, %v13634_v58 }
 0x6df   : > { %v13707_v39 = vadd.f32 %v6781_v25, %v6733_v15  ;;  %6832 = vmatmul.bf16.gmra.mxu0 %v15088_v7  ;;  %v11097_v15 = vor.u32 %v11689_v23, %v11094_v37  ;;  %7280 = vmatpush.bf16.msra.mxu2 %v11001_v17 }
 0x6e0   : > { %v6687_v5 = vadd.f32 %v6686_v52, %v6638_v12  ;;  %6881 = vmatmul.bf16.gmra.mxu1 %v15089_v63 }
 0x6e1   : > { %15087 = vst [vmem:[#allocation101_spill] sm:$0xff] %v13707_v39  ;;  %6930 = vmatmul.bf16.gmra.mxu2 %v15090_v34  ;;  %6979 = vmatmul.bf16.gmra.mxu3 %v15091_v33  ;;  %v11641_v39 = vld [vmem:[#allocation8 + $0x754] sm:$0xf]  ;;  %v11852_v33 = vld [vmem:[#allocation10] sm:$0x7] }
 0x6e2   : > { %7329 = vmatpush.bf16.msra.mxu3 %v11097_v15  ;;  %v10905_v8 = vor.u32 %v11641_v39, %v10902_v31  ;;  %v13716_v34 = vperm.slane %v11852_v33, 1  ;;  %v15095_v15 = vld [vmem:[#allocation59_spill] sm:$0xff]  ;;  %v15097_v31 = vld [vmem:[#allocation68_spill] sm:$0xff]  ;;  %v11662_v39 = vld [vmem:[#allocation8 + $0x7fc] sm:$0xf] }
 0x6e3   : > { %v10986_v33 = vld [vmem:[#allocation8 + $0x804] sm:$0xf0] }
 0x6e4   : > { %v6735_v58 = vpop.f32.mrf.mxu2  ;;  %v6784_v35 = vpop.f32.mrf.mxu3  ;;  %7231 = vmatpush.bf16.msra.mxu1 %v10905_v8 }
 0x6e5   : > { %v6736_v1 = vadd.f32 %v6735_v58, %v6687_v5  ;;  %v6639_v25 = vpop.f32.mrf.mxu0  ;;  %v6688_v12 = vpop.f32.mrf.mxu1 }
 0x6e6   : > { %v6640_v48 = vadd.f32 %v6639_v25, %v13637_v30  ;;  %v10989_v25 = vor.u32 %v11662_v39, %v10986_v33 }
 0x6e7   : > { %v13714_v52 = vadd.f32 %v6784_v35, %v6736_v1  ;;  %v15096_v1 = vld [vmem:[#allocation67_spill] sm:$0xff]  ;;  %v11614_v35 = vld [vmem:[#allocation8 + $0x67c] sm:$0xf] }
 0x6e8   : > { %v6689_v45 = vadd.f32 %v6688_v12, %v6640_v48  ;;  %v10794_v48 = vld [vmem:[#allocation8 + $0x684] sm:$0xf0]  ;;  %v11686_v12 = vld [vmem:[#allocation8 + $0x8bc] sm:$0xf]  ;;  %7281 = vmatpush.bf16.msra.mxu2 %v10989_v25 }
 0x6e9   : > { %15092 = vst [vmem:[#allocation102_spill] sm:$0xff] %v13714_v52 }
 0x6ec   : > { %v6737_v18 = vpop.f32.mrf.mxu2  ;;  %v6786_v24 = vpop.f32.mrf.mxu3 }
 0x6ed   : > { %v6738_v5 = vadd.f32 %v6737_v18, %v6689_v45  ;;  %v6798_v23 = vpop.f32.mrf.mxu0  ;;  %v6847_v30 = vpop.f32.mrf.mxu1  ;;  %v11082_v45 = vld [vmem:[#allocation8 + $0x8c4] sm:$0xf0]  ;;  %v10797_v18 = vor.u32 %v11614_v35, %v10794_v48 }
 0x6ee   : > { %v6799_v17 = vadd.f32 %v6798_v23, %v13716_v34 }
 0x6ef   : > { %v13719_v37 = vadd.f32 %v6786_v24, %v6738_v5  ;;  %6993 = vmatmul.bf16.vlgmr.msrb.gmra.mxu0 %v15094_v44  ;;  %v11085_v5 = vor.u32 %v11686_v12, %v11082_v45 }
 0x6f0   : > { %v6848_v58 = vadd.f32 %v6847_v30, %v6799_v17  ;;  %7042 = vmatmul.bf16.vlgmr.msrb.gmra.mxu1 %v15095_v15  ;;  %7183 = vmatpush.bf16.msra.mxu0 %v10797_v18  ;;  %v15099_v18 = vld [vmem:[#allocation60_spill] sm:$0xff] }
 0x6f1   : > { %15093 = vst [vmem:[#allocation103_spill] sm:$0xff] %v13719_v37  ;;  %7091 = vmatmul.bf16.vlgmr.msrb.gmra.mxu2 %v15096_v1  ;;  %7140 = vmatmul.bf16.vlgmr.msrb.gmra.mxu3 %v15097_v31  ;;  %v11638_v31 = vld [vmem:[#allocation8 + $0x73c] sm:$0xf]  ;;  %v10890_v1 = vld [vmem:[#allocation8 + $0x744] sm:$0xf0] }
 0x6f2   : > { %7330 = vmatpush.bf16.msra.mxu3 %v11085_v5  ;;  %v10893_v33 = vor.u32 %v11638_v31, %v10890_v1  ;;  %v15100_v5 = vld [vmem:[#allocation69_spill] sm:$0xff]  ;;  %v10974_v1 = vld [vmem:[#allocation8 + $0x7ec] sm:$0xf0]  ;;  %v11611_v31 = vld [vmem:[#allocation8 + $0x664] sm:$0xf] }
 0x6f4   : > { %v6896_v8 = vpop.f32.mrf.mxu2  ;;  %v6945_v23 = vpop.f32.mrf.mxu3  ;;  %7232 = vmatpush.bf16.msra.mxu1 %v10893_v33 }
 0x6f5   : > { %v6897_v24 = vadd.f32 %v6896_v8, %v6848_v58  ;;  %v6800_v17 = vpop.f32.mrf.mxu0  ;;  %v6849_v37 = vpop.f32.mrf.mxu1  ;;  %v15098_v8 = vld [vmem:[#allocation52_spill] sm:$0xff] }
 0x6f6   : > { %v6801_v30 = vadd.f32 %v6800_v17, %v13716_v34  ;;  %v11683_v17 = vld [vmem:[#allocation8 + $0x8a4] sm:$0xf] }
 0x6f7   : > { %v13726_v52 = vadd.f32 %v6945_v23, %v6897_v24  ;;  %v15101_v24 = vld [vmem:[#allocation70_spill] sm:$0xff]  ;;  %v10782_v23 = vld [vmem:[#allocation8 + $0x66c] sm:$0xf0] }
 0x6f8   : > { %v6850_v39 = vadd.f32 %v6849_v37, %v6801_v30  ;;  %v11659_v37 = vld [vmem:[#allocation8 + $0x7e4] sm:$0xf]  ;;  %v11070_v30 = vld [vmem:[#allocation8 + $0x8ac] sm:$0xf0]  ;;  %v10785_v33 = vor.u32 %v11611_v31, %v10782_v23 }
 0x6fa   : > { %7184 = vmatpush.bf16.msra.mxu0 %v10785_v33  ;;  %v15103_v33 = vld [vmem:[#allocation61_spill] sm:$0xff] }
 0x6fc   : > { %v6898_v15 = vpop.f32.mrf.mxu2  ;;  %v6947_v35 = vpop.f32.mrf.mxu3 }
 0x6fd   : > { %v6899_v44 = vadd.f32 %v6898_v15, %v6850_v39  ;;  %v6803_v48 = vpop.f32.mrf.mxu0  ;;  %v6852_v12 = vpop.f32.mrf.mxu1  ;;  %v10977_v15 = vor.u32 %v11659_v37, %v10974_v1 }
 0x6fe   : > { %v6804_v58 = vadd.f32 %v6803_v48, %v13716_v34 }
 0x6ff   : > { %v13729_v25 = vadd.f32 %v6947_v35, %v6899_v44  ;;  %6998 = vmatmul.bf16.gmra.mxu0 %v15098_v8  ;;  %v11073_v44 = vor.u32 %v11683_v17, %v11070_v30  ;;  %7282 = vmatpush.bf16.msra.mxu2 %v10977_v15  ;;  %v10878_v8 = vld [vmem:[#allocation8 + $0x72c] sm:$0xf0] }
 0x700   : > { %v6853_v45 = vadd.f32 %v6852_v12, %v6804_v58  ;;  %7047 = vmatmul.bf16.gmra.mxu1 %v15099_v18 }
 0x701   : > { %7096 = vmatmul.bf16.gmra.mxu2 %v15100_v5  ;;  %7145 = vmatmul.bf16.gmra.mxu3 %v15101_v24  ;;  %v11635_v5 = vld [vmem:[#allocation8 + $0x724] sm:$0xf] }
 0x702   : > { %7331 = vmatpush.bf16.msra.mxu3 %v11073_v44  ;;  %v10881_v1 = vor.u32 %v11635_v5, %v10878_v8  ;;  %v15104_v44 = vld [vmem:[#allocation71_spill] sm:$0xff]  ;;  %v11656_v8 = vld [vmem:[#allocation8 + $0x7cc] sm:$0xf] }
 0x703   : > { %v11608_v5 = vld [vmem:[#allocation8 + $0x64c] sm:$0xf] }
 0x704   : > { %v6901_v39 = vpop.f32.mrf.mxu2  ;;  %v6950_v48 = vpop.f32.mrf.mxu3  ;;  %7233 = vmatpush.bf16.msra.mxu1 %v10881_v1 }
 0x705   : > { %v6902_v35 = vadd.f32 %v6901_v39, %v6853_v45  ;;  %v6805_v58 = vpop.f32.mrf.mxu0  ;;  %v6854_v18 = vpop.f32.mrf.mxu1  ;;  %v15102_v39 = vld [vmem:[#allocation53_spill] sm:$0xff] }
 0x706   : > { %v6806_v12 = vadd.f32 %v6805_v58, %v13716_v34  ;;  %v11680_v58 = vld [vmem:[#allocation8 + $0x88c] sm:$0xf] }
 0x707   : > { %v13736_v24 = vadd.f32 %v6950_v48, %v6902_v35  ;;  %v15105_v35 = vld [vmem:[#allocation72_spill] sm:$0xff]  ;;  %v10770_v48 = vld [vmem:[#allocation8 + $0x654] sm:$0xf0] }
 0x708   : > { %v6855_v37 = vadd.f32 %v6854_v18, %v6806_v12  ;;  %v10962_v18 = vld [vmem:[#allocation8 + $0x7d4] sm:$0xf0]  ;;  %v10773_v1 = vor.u32 %v11608_v5, %v10770_v48 }
 0x709   : > { %v11058_v12 = vld [vmem:[#allocation8 + $0x894] sm:$0xf0] }
 0x70a   : > { %7185 = vmatpush.bf16.msra.mxu0 %v10773_v1  ;;  %v15107_v1 = vld [vmem:[#allocation62_spill] sm:$0xff] }
 0x70c   : > { %v6903_v63 = vpop.f32.mrf.mxu2  ;;  %v6952_v31 = vpop.f32.mrf.mxu3 }
 0x70d   : > { %v6904_v7 = vadd.f32 %v6903_v63, %v6855_v37  ;;  %v6808_v23 = vpop.f32.mrf.mxu0  ;;  %v6857_v17 = vpop.f32.mrf.mxu1  ;;  %v10965_v63 = vor.u32 %v11656_v8, %v10962_v18 }
 0x70e   : > { %v6809_v45 = vadd.f32 %v6808_v23, %v13716_v34 }
 0x70f   : > { %v13739_v15 = vadd.f32 %v6952_v31, %v6904_v7  ;;  %7003 = vmatmul.bf16.gmra.mxu0 %v15102_v39  ;;  %v11061_v7 = vor.u32 %v11680_v58, %v11058_v12  ;;  %7283 = vmatpush.bf16.msra.mxu2 %v10965_v63  ;;  %v10866_v39 = vld [vmem:[#allocation8 + $0x714] sm:$0xf0] }
 0x710   : > { %v6858_v30 = vadd.f32 %v6857_v17, %v6809_v45  ;;  %7052 = vmatmul.bf16.gmra.mxu1 %v15103_v33 }
 0x711   : > { %7101 = vmatmul.bf16.gmra.mxu2 %v15104_v44  ;;  %7150 = vmatmul.bf16.gmra.mxu3 %v15105_v35  ;;  %v11632_v44 = vld [vmem:[#allocation8 + $0x70c] sm:$0xf] }
 0x712   : > { %7332 = vmatpush.bf16.msra.mxu3 %v11061_v7  ;;  %v10869_v18 = vor.u32 %v11632_v44, %v10866_v39  ;;  %v15108_v7 = vld [vmem:[#allocation73_spill] sm:$0xff] }
 0x713   : > { %v11653_v39 = vld [vmem:[#allocation8 + $0x7b4] sm:$0xf] }
 0x714   : > { %v6906_v37 = vpop.f32.mrf.mxu2  ;;  %v6955_v23 = vpop.f32.mrf.mxu3  ;;  %7234 = vmatpush.bf16.msra.mxu1 %v10869_v18  ;;  %v11605_v44 = vld [vmem:[#allocation8 + $0x634] sm:$0xf] }
 0x715   : > { %v6907_v31 = vadd.f32 %v6906_v37, %v6858_v30  ;;  %v6810_v45 = vpop.f32.mrf.mxu0  ;;  %v6859_v33 = vpop.f32.mrf.mxu1  ;;  %v15106_v37 = vld [vmem:[#allocation54_spill] sm:$0xff] }
 0x716   : > { %v6811_v17 = vadd.f32 %v6810_v45, %v13716_v34  ;;  %v11677_v45 = vld [vmem:[#allocation8 + $0x874] sm:$0xf] }
 0x717   : > { %v13746_v35 = vadd.f32 %v6955_v23, %v6907_v31  ;;  %v15109_v31 = vld [vmem:[#allocation74_spill] sm:$0xff] }
 0x718   : > { %v6860_v8 = vadd.f32 %v6859_v33, %v6811_v17  ;;  %v10950_v33 = vld [vmem:[#allocation8 + $0x7bc] sm:$0xf0] }
 0x719   : > { %v10758_v23 = vld [vmem:[#allocation8 + $0x63c] sm:$0xf0] }
 0x71a   : > { %v11046_v17 = vld [vmem:[#allocation8 + $0x87c] sm:$0xf0]  ;;  %v10761_v18 = vor.u32 %v11605_v44, %v10758_v23 }
 0x71c   : > { %v6908_v57 = vpop.f32.mrf.mxu2  ;;  %v6957_v5 = vpop.f32.mrf.mxu3  ;;  %7186 = vmatpush.bf16.msra.mxu0 %v10761_v18  ;;  %v15111_v18 = vld [vmem:[#allocation63_spill] sm:$0xff] }
 0x71d   : > { %v6909_v43 = vadd.f32 %v6908_v57, %v6860_v8  ;;  %v6813_v48 = vpop.f32.mrf.mxu0  ;;  %v6862_v58 = vpop.f32.mrf.mxu1  ;;  %v10953_v57 = vor.u32 %v11653_v39, %v10950_v33 }
 0x71e   : > { %v6814_v30 = vadd.f32 %v6813_v48, %v13716_v34 }
 0x71f   : > { %v13749_v63 = vadd.f32 %v6957_v5, %v6909_v43  ;;  %7008 = vmatmul.bf16.gmra.mxu0 %v15106_v37  ;;  %v11049_v43 = vor.u32 %v11677_v45, %v11046_v17  ;;  %7284 = vmatpush.bf16.msra.mxu2 %v10953_v57  ;;  %v10854_v37 = vld [vmem:[#allocation8 + $0x6fc] sm:$0xf0] }
 0x720   : > { %v6863_v12 = vadd.f32 %v6862_v58, %v6814_v30  ;;  %7057 = vmatmul.bf16.gmra.mxu1 %v15107_v1 }
 0x721   : > { %7106 = vmatmul.bf16.gmra.mxu2 %v15108_v7  ;;  %7155 = vmatmul.bf16.gmra.mxu3 %v15109_v31  ;;  %v11629_v7 = vld [vmem:[#allocation8 + $0x6f4] sm:$0xf] }
 0x722   : > { %7333 = vmatpush.bf16.msra.mxu3 %v11049_v43  ;;  %v10857_v33 = vor.u32 %v11629_v7, %v10854_v37  ;;  %v15112_v43 = vld [vmem:[#allocation75_spill] sm:$0xff]  ;;  %v11650_v37 = vld [vmem:[#allocation8 + $0x79c] sm:$0xf] }
 0x723   : > { %v11602_v7 = vld [vmem:[#allocation8 + $0x61c] sm:$0xf] }
 0x724   : > { %v6911_v8 = vpop.f32.mrf.mxu2  ;;  %v6960_v48 = vpop.f32.mrf.mxu3  ;;  %7235 = vmatpush.bf16.msra.mxu1 %v10857_v33 }
 0x725   : > { %v6912_v5 = vadd.f32 %v6911_v8, %v6863_v12  ;;  %v6815_v30 = vpop.f32.mrf.mxu0  ;;  %v6864_v1 = vpop.f32.mrf.mxu1  ;;  %v15110_v8 = vld [vmem:[#allocation55_spill] sm:$0xff] }
 0x726   : > { %v6816_v58 = vadd.f32 %v6815_v30, %v13716_v34  ;;  %v11674_v30 = vld [vmem:[#allocation8 + $0x85c] sm:$0xf] }
 0x727   : > { %v13756_v31 = vadd.f32 %v6960_v48, %v6912_v5  ;;  %v15113_v5 = vld [vmem:[#allocation76_spill] sm:$0xff]  ;;  %v10746_v48 = vld [vmem:[#allocation8 + $0x624] sm:$0xf0] }
 0x728   : > { %v6865_v39 = vadd.f32 %v6864_v1, %v6816_v58  ;;  %v10938_v1 = vld [vmem:[#allocation8 + $0x7a4] sm:$0xf0]  ;;  %v10749_v33 = vor.u32 %v11602_v7, %v10746_v48 }
 0x729   : > { %v11034_v58 = vld [vmem:[#allocation8 + $0x864] sm:$0xf0] }
 0x72a   : > { %7187 = vmatpush.bf16.msra.mxu0 %v10749_v33  ;;  %v15115_v33 = vld [vmem:[#allocation64_spill] sm:$0xff] }
 0x72c   : > { %v6913_v11 = vpop.f32.mrf.mxu2  ;;  %v6962_v44 = vpop.f32.mrf.mxu3 }
 0x72d   : > { %v6914_v41 = vadd.f32 %v6913_v11, %v6865_v39  ;;  %v6818_v23 = vpop.f32.mrf.mxu0  ;;  %v6867_v45 = vpop.f32.mrf.mxu1  ;;  %v10941_v11 = vor.u32 %v11650_v37, %v10938_v1 }
 0x72e   : > { %v6819_v12 = vadd.f32 %v6818_v23, %v13716_v34 }
 0x72f   : > { %v13759_v57 = vadd.f32 %v6962_v44, %v6914_v41  ;;  %7013 = vmatmul.bf16.gmra.mxu0 %v15110_v8  ;;  %v11037_v41 = vor.u32 %v11674_v30, %v11034_v58  ;;  %7285 = vmatpush.bf16.msra.mxu2 %v10941_v11  ;;  %v10842_v8 = vld [vmem:[#allocation8 + $0x6e4] sm:$0xf0] }
 0x730   : > { %v6868_v17 = vadd.f32 %v6867_v45, %v6819_v12  ;;  %7062 = vmatmul.bf16.gmra.mxu1 %v15111_v18 }
 0x731   : > { %7111 = vmatmul.bf16.gmra.mxu2 %v15112_v43  ;;  %7160 = vmatmul.bf16.gmra.mxu3 %v15113_v5  ;;  %v11626_v43 = vld [vmem:[#allocation8 + $0x6dc] sm:$0xf] }
 0x732   : > { %7334 = vmatpush.bf16.msra.mxu3 %v11037_v41  ;;  %v10845_v1 = vor.u32 %v11626_v43, %v10842_v8  ;;  %v15116_v41 = vld [vmem:[#allocation77_spill] sm:$0xff]  ;;  %v11647_v8 = vld [vmem:[#allocation8 + $0x784] sm:$0xf] }
 0x733   : > { %v11599_v43 = vld [vmem:[#allocation8 + $0x604] sm:$0xf] }
 0x734   : > { %v6916_v39 = vpop.f32.mrf.mxu2  ;;  %v6965_v23 = vpop.f32.mrf.mxu3  ;;  %7236 = vmatpush.bf16.msra.mxu1 %v10845_v1 }
 0x735   : > { %v6917_v44 = vadd.f32 %v6916_v39, %v6868_v17  ;;  %v6820_v12 = vpop.f32.mrf.mxu0  ;;  %v6869_v18 = vpop.f32.mrf.mxu1  ;;  %v15114_v39 = vld [vmem:[#allocation56_spill] sm:$0xff] }
 0x736   : > { %v6821_v45 = vadd.f32 %v6820_v12, %v13716_v34  ;;  %v11671_v12 = vld [vmem:[#allocation8 + $0x844] sm:$0xf] }
 0x737   : > { %v13766_v5 = vadd.f32 %v6965_v23, %v6917_v44  ;;  %v15117_v44 = vld [vmem:[#allocation78_spill] sm:$0xff]  ;;  %v10734_v23 = vld [vmem:[#allocation8 + $0x60c] sm:$0xf0] }
 0x738   : > { %v6870_v37 = vadd.f32 %v6869_v18, %v6821_v45  ;;  %v10926_v18 = vld [vmem:[#allocation8 + $0x78c] sm:$0xf0]  ;;  %v10737_v1 = vor.u32 %v11599_v43, %v10734_v23 }
 0x739   : > { %v11022_v45 = vld [vmem:[#allocation8 + $0x84c] sm:$0xf0] }
 0x73a   : > { %7188 = vmatpush.bf16.msra.mxu0 %v10737_v1  ;;  %v15119_v1 = vld [vmem:[#allocation65_spill] sm:$0xff] }
 0x73c   : > { %v6918_v42 = vpop.f32.mrf.mxu2  ;;  %v6967_v7 = vpop.f32.mrf.mxu3 }
 0x73d   : > { %v6919_v47 = vadd.f32 %v6918_v42, %v6870_v37  ;;  %v6823_v48 = vpop.f32.mrf.mxu0  ;;  %v6872_v30 = vpop.f32.mrf.mxu1  ;;  %v10929_v42 = vor.u32 %v11647_v8, %v10926_v18 }
 0x73e   : > { %v6824_v17 = vadd.f32 %v6823_v48, %v13716_v34 }
 0x73f   : > { %v13769_v11 = vadd.f32 %v6967_v7, %v6919_v47  ;;  %7018 = vmatmul.bf16.gmra.mxu0 %v15114_v39  ;;  %v11025_v47 = vor.u32 %v11671_v12, %v11022_v45  ;;  %7286 = vmatpush.bf16.msra.mxu2 %v10929_v42  ;;  %v10830_v39 = vld [vmem:[#allocation8 + $0x6cc] sm:$0xf0] }
 0x740   : > { %v6873_v58 = vadd.f32 %v6872_v30, %v6824_v17  ;;  %7067 = vmatmul.bf16.gmra.mxu1 %v15115_v33 }
 0x741   : > { %7116 = vmatmul.bf16.gmra.mxu2 %v15116_v41  ;;  %7165 = vmatmul.bf16.gmra.mxu3 %v15117_v44  ;;  %v11623_v41 = vld [vmem:[#allocation8 + $0x6c4] sm:$0xf] }
 0x742   : > { %7335 = vmatpush.bf16.msra.mxu3 %v11025_v47  ;;  %v10833_v18 = vor.u32 %v11623_v41, %v10830_v39  ;;  %v15120_v47 = vld [vmem:[#allocation79_spill] sm:$0xff]  ;;  %v10248_v39 = vld [vmem:[#allocation8 + $0x230] sm:$0xf] }
 0x743   : > { %v10056_v41 = vld [vmem:[#allocation8 + $0xb0] sm:$0xf] }
 0x744   : > { %v6921_v37 = vpop.f32.mrf.mxu2  ;;  %v6970_v48 = vpop.f32.mrf.mxu3  ;;  %7237 = vmatpush.bf16.msra.mxu1 %v10833_v18 }
 0x745   : > { %v6922_v7 = vadd.f32 %v6921_v37, %v6873_v58  ;;  %v6825_v17 = vpop.f32.mrf.mxu0  ;;  %v6874_v33 = vpop.f32.mrf.mxu1  ;;  %v15118_v37 = vld [vmem:[#allocation57_spill] sm:$0xff] }
 0x746   : > { %v6826_v30 = vadd.f32 %v6825_v17, %v13716_v34  ;;  %v10344_v17 = vld [vmem:[#allocation8 + $0x2f0] sm:$0xf] }
 0x747   : > { %v13776_v44 = vadd.f32 %v6970_v48, %v6922_v7  ;;  %v15121_v7 = vld [vmem:[#allocation80_spill] sm:$0xff]  ;;  %v11430_v48 = vld [vmem:[#allocation8 + $0xb8] sm:$0xf0] }
 0x748   : > { %v6875_v8 = vadd.f32 %v6874_v33, %v6826_v30  ;;  %v11478_v33 = vld [vmem:[#allocation8 + $0x238] sm:$0xf0]  ;;  %v10057_v18 = vor.u32 %v11430_v48, %v10056_v41 }
 0x749   : > { %v11502_v30 = vld [vmem:[#allocation8 + $0x2f8] sm:$0xf0] }
 0x74a   : > { %7377 = vmatpush.bf16.msrb.mxu0 %v10057_v18  ;;  %v15123_v18 = vld [vmem:[#allocation66_spill] sm:$0xff] }
 0x74c   : > { %v6923_v16 = vpop.f32.mrf.mxu2  ;;  %v6972_v43 = vpop.f32.mrf.mxu3 }
 0x74d   : > { %v6924_v49 = vadd.f32 %v6923_v16, %v6875_v8  ;;  %v6828_v23 = vpop.f32.mrf.mxu0  ;;  %v6877_v12 = vpop.f32.mrf.mxu1  ;;  %v10249_v16 = vor.u32 %v11478_v33, %v10248_v39 }
 0x74e   : > { %v6829_v58 = vadd.f32 %v6828_v23, %v13716_v34 }
 0x74f   : > { %v13779_v42 = vadd.f32 %v6972_v43, %v6924_v49  ;;  %7023 = vmatmul.bf16.gmra.mxu0 %v15118_v37  ;;  %v10345_v49 = vor.u32 %v11502_v30, %v10344_v17  ;;  %7475 = vmatpush.bf16.msrb.mxu2 %v10249_v16  ;;  %v11454_v37 = vld [vmem:[#allocation8 + $0x178] sm:$0xf0] }
 0x750   : > { %v6878_v45 = vadd.f32 %v6877_v12, %v6829_v58  ;;  %7072 = vmatmul.bf16.gmra.mxu1 %v15119_v1 }
 0x751   : > { %7121 = vmatmul.bf16.gmra.mxu2 %v15120_v47  ;;  %7170 = vmatmul.bf16.gmra.mxu3 %v15121_v7  ;;  %v10152_v47 = vld [vmem:[#allocation8 + $0x170] sm:$0xf] }
 0x752   : > { %7524 = vmatpush.bf16.msrb.mxu3 %v10345_v49  ;;  %v10153_v33 = vor.u32 %v11454_v37, %v10152_v47  ;;  %v15124_v49 = vld [vmem:[#allocation81_spill] sm:$0xff] }
 0x753   : > { %v10236_v37 = vld [vmem:[#allocation8 + $0x218] sm:$0xf] }
 0x754   : > { %v6926_v8 = vpop.f32.mrf.mxu2  ;;  %v6975_v23 = vpop.f32.mrf.mxu3  ;;  %7426 = vmatpush.bf16.msrb.mxu1 %v10153_v33  ;;  %v10044_v47 = vld [vmem:[#allocation8 + $0x98] sm:$0xf] }
 0x755   : > { %v6927_v43 = vadd.f32 %v6926_v8, %v6878_v45  ;;  %v6830_v58 = vpop.f32.mrf.mxu0  ;;  %v6879_v1 = vpop.f32.mrf.mxu1  ;;  %v15122_v8 = vld [vmem:[#allocation58_spill] sm:$0xff] }
 0x756   : > { %v6831_v12 = vadd.f32 %v6830_v58, %v13716_v34  ;;  %v10332_v58 = vld [vmem:[#allocation8 + $0x2d8] sm:$0xf] }
 0x757   : > { %v13786_v7 = vadd.f32 %v6975_v23, %v6927_v43  ;;  %v15125_v43 = vld [vmem:[#allocation82_spill] sm:$0xff]  ;;  %v11427_v23 = vld [vmem:[#allocation8 + $0xa0] sm:$0xf0] }
 0x758   : > { %v6880_v39 = vadd.f32 %v6879_v1, %v6831_v12  ;;  %v11475_v1 = vld [vmem:[#allocation8 + $0x220] sm:$0xf0]  ;;  %v10045_v33 = vor.u32 %v11427_v23, %v10044_v47 }
 0x759   : > { %v11499_v12 = vld [vmem:[#allocation8 + $0x2e0] sm:$0xf0] }
 0x75a   : > { %7378 = vmatpush.bf16.msrb.mxu0 %v10045_v33  ;;  %v10320_v33 = vld [vmem:[#allocation8 + $0x2c0] sm:$0xf] }
 0x75c   : > { %v6928_v3 = vpop.f32.mrf.mxu2  ;;  %v6977_v41 = vpop.f32.mrf.mxu3 }
 0x75d   : > { %v6929_v28 = vadd.f32 %v6928_v3, %v6880_v39  ;;  %v6833_v48 = vpop.f32.mrf.mxu0  ;;  %v6882_v17 = vpop.f32.mrf.mxu1  ;;  %v10237_v3 = vor.u32 %v11475_v1, %v10236_v37 }
 0x75e   : > { %v6834_v45 = vadd.f32 %v6833_v48, %v13716_v34 }
 0x75f   : > { %v13789_v16 = vadd.f32 %v6977_v41, %v6929_v28  ;;  %7028 = vmatmul.bf16.gmra.mxu0 %v15122_v8  ;;  %v10333_v28 = vor.u32 %v11499_v12, %v10332_v58  ;;  %7476 = vmatpush.bf16.msrb.mxu2 %v10237_v3  ;;  %v11451_v8 = vld [vmem:[#allocation8 + $0x160] sm:$0xf0] }
 0x760   : > { %v6883_v30 = vadd.f32 %v6882_v17, %v6834_v45  ;;  %7077 = vmatmul.bf16.gmra.mxu1 %v15123_v18  ;;  %v15126_v12 = vld [vmem:[#allocation27_spill] sm:$0xff] }
 0x761   : > { %7126 = vmatmul.bf16.gmra.mxu2 %v15124_v49  ;;  %7175 = vmatmul.bf16.gmra.mxu3 %v15125_v43  ;;  %v10140_v49 = vld [vmem:[#allocation8 + $0x158] sm:$0xf] }
 0x762   : > { %7525 = vmatpush.bf16.msrb.mxu3 %v10333_v28  ;;  %v10141_v1 = vor.u32 %v11451_v8, %v10140_v49  ;;  %v10224_v8 = vld [vmem:[#allocation8 + $0x200] sm:$0xf]  ;;  %v11496_v28 = vld [vmem:[#allocation8 + $0x2c8] sm:$0xf0] }
 0x763   : > { %v10032_v49 = vld [vmem:[#allocation8 + $0x80] sm:$0xf] }
 0x764   : > { %v6931_v39 = vpop.f32.mrf.mxu2  ;;  %v6980_v48 = vpop.f32.mrf.mxu3  ;;  %7427 = vmatpush.bf16.msrb.mxu1 %v10141_v1 }
 0x765   : > { %v6932_v41 = vadd.f32 %v6931_v39, %v6883_v30  ;;  %v6835_v45 = vpop.f32.mrf.mxu0  ;;  %v6884_v18 = vpop.f32.mrf.mxu1  ;;  %v11424_v39 = vld [vmem:[#allocation8 + $0x88] sm:$0xf0] }
 0x766   : > { %v6836_v17 = vadd.f32 %v6835_v45, %v13716_v34 }
 0x767   : > { %v13796_v43 = vadd.f32 %v6980_v48, %v6932_v41  ;;  %v10033_v41 = vor.u32 %v11424_v39, %v10032_v49 }
 0x768   : > { %v6885_v37 = vadd.f32 %v6884_v18, %v6836_v17  ;;  %v11472_v18 = vld [vmem:[#allocation8 + $0x208] sm:$0xf0] }
 0x769   : > { %7379 = vmatpush.bf16.msrb.mxu0 %v10033_v41  ;;  %v11469_v41 = vld [vmem:[#allocation8 + $0x1f0] sm:$0xf0] }
 0x76c   : > { %v6933_v0 = vpop.f32.mrf.mxu2  ;;  %v6982_v47 = vpop.f32.mrf.mxu3 }
 0x76d   : > { %v6934_v50 = vadd.f32 %v6933_v0, %v6885_v37  ;;  %v6994_v23 = vpop.f32.mrf.mxu0  ;;  %v7043_v58 = vpop.f32.mrf.mxu1  ;;  %v10225_v0 = vor.u32 %v11472_v18, %v10224_v8 }
 0x76e   : > { %v6995_v30 = vadd.f32 %v6994_v23, %v13726_v52  ;;  %v10128_v23 = vld [vmem:[#allocation8 + $0x140] sm:$0xf] }
 0x76f   : > { %v13799_v3 = vadd.f32 %v6982_v47, %v6934_v50  ;;  %7189 = vmatmul.bf16.vlgmr.msra.gmra.mxu0 %v15042_v38  ;;  %v10321_v50 = vor.u32 %v11496_v28, %v10320_v33  ;;  %7477 = vmatpush.bf16.msrb.mxu2 %v10225_v0  ;;  %v15127_v28 = vld [vmem:[#allocation35_spill] sm:$0xff] }
 0x770   : > { %v7044_v34 = vadd.f32 %v7043_v58, %v6995_v30  ;;  %7238 = vmatmul.bf16.vlgmr.msra.gmra.mxu1 %v13263_v27  ;;  %v11448_v30 = vld [vmem:[#allocation8 + $0x148] sm:$0xf0] }
 0x771   : > { %7287 = vmatmul.bf16.vlgmr.msra.gmra.mxu2 %v13387_v29  ;;  %7336 = vmatmul.bf16.vlgmr.msra.gmra.mxu3 %v15126_v12  ;;  %v10129_v8 = vor.u32 %v11448_v30, %v10128_v23 }
 0x772   : > { %7526 = vmatpush.bf16.msrb.mxu3 %v10321_v50  ;;  %v10020_v50 = vld [vmem:[#allocation8 + $0x68] sm:$0xf] }
 0x773   : > { %7428 = vmatpush.bf16.msrb.mxu1 %v10129_v8 }
 0x774   : > { %v7092_v52 = vpop.f32.mrf.mxu2  ;;  %v7141_v45 = vpop.f32.mrf.mxu3 }
 0x775   : > { %v7093_v48 = vadd.f32 %v7092_v52, %v7044_v34  ;;  %v6996_v17 = vpop.f32.mrf.mxu0  ;;  %v7045_v1 = vpop.f32.mrf.mxu1  ;;  %v10212_v52 = vld [vmem:[#allocation8 + $0x1e8] sm:$0xf] }
 0x776   : > { %v6997_v37 = vadd.f32 %v6996_v17, %v13729_v25  ;;  %v10308_v17 = vld [vmem:[#allocation8 + $0x2a8] sm:$0xf] }
 0x777   : > { %v13806_v47 = vadd.f32 %v7141_v45, %v7093_v48  ;;  %v10213_v48 = vor.u32 %v11469_v41, %v10212_v52  ;;  %v11421_v45 = vld [vmem:[#allocation8 + $0x70] sm:$0xf0] }
 0x778   : > { %v7046_v58 = vadd.f32 %v7045_v1, %v6997_v37  ;;  %v11493_v37 = vld [vmem:[#allocation8 + $0x2b0] sm:$0xf0]  ;;  %v10021_v1 = vor.u32 %v11421_v45, %v10020_v50 }
 0x779   : > { %7478 = vmatpush.bf16.msrb.mxu2 %v10213_v48 }
 0x77a   : > { %7380 = vmatpush.bf16.msrb.mxu0 %v10021_v1  ;;  %v11466_v1 = vld [vmem:[#allocation8 + $0x1d8] sm:$0xf0] }
 0x77c   : > { %v7094_v18 = vpop.f32.mrf.mxu2  ;;  %v7143_v49 = vpop.f32.mrf.mxu3 }
 0x77d   : > { %v7095_v12 = vadd.f32 %v7094_v18, %v7046_v58  ;;  %v6999_v39 = vpop.f32.mrf.mxu0  ;;  %v7048_v33 = vpop.f32.mrf.mxu1 }
 0x77e   : > { %v7000_v34 = vadd.f32 %v6999_v39, %v13736_v24  ;;  %v10116_v39 = vld [vmem:[#allocation8 + $0x128] sm:$0xf] }
 0x77f   : > { %v13809_v0 = vadd.f32 %v7143_v49, %v7095_v12  ;;  %7194 = vmatmul.bf16.gmra.mxu0 %v15043_v46  ;;  %v10309_v12 = vor.u32 %v11493_v37, %v10308_v17  ;;  %v15128_v37 = vld [vmem:[#allocation36_spill] sm:$0xff] }
 0x780   : > { %v7049_v25 = vadd.f32 %v7048_v33, %v7000_v34  ;;  %7243 = vmatmul.bf16.gmra.mxu1 %v13279_v9  ;;  %v11445_v34 = vld [vmem:[#allocation8 + $0x130] sm:$0xf0] }
 0x781   : > { %7292 = vmatmul.bf16.gmra.mxu2 %v13399_v54  ;;  %7341 = vmatmul.bf16.gmra.mxu3 %v15127_v28  ;;  %v10117_v52 = vor.u32 %v11445_v34, %v10116_v39 }
 0x782   : > { %7527 = vmatpush.bf16.msrb.mxu3 %v10309_v12  ;;  %v10008_v12 = vld [vmem:[#allocation8 + $0x50] sm:$0xf] }
 0x783   : > { %7429 = vmatpush.bf16.msrb.mxu1 %v10117_v52 }
 0x784   : > { %v7097_v24 = vpop.f32.mrf.mxu2  ;;  %v7146_v30 = vpop.f32.mrf.mxu3 }
 0x785   : > { %v7098_v23 = vadd.f32 %v7097_v24, %v7049_v25  ;;  %v7001_v58 = vpop.f32.mrf.mxu0  ;;  %v7050_v18 = vpop.f32.mrf.mxu1  ;;  %v10200_v24 = vld [vmem:[#allocation8 + $0x1d0] sm:$0xf] }
 0x786   : > { %v7002_v8 = vadd.f32 %v7001_v58, %v13739_v15  ;;  %v10296_v58 = vld [vmem:[#allocation8 + $0x290] sm:$0xf] }
 0x787   : > { %v13816_v49 = vadd.f32 %v7146_v30, %v7098_v23  ;;  %v10201_v23 = vor.u32 %v11466_v1, %v10200_v24  ;;  %v11418_v30 = vld [vmem:[#allocation8 + $0x58] sm:$0xf0] }
 0x788   : > { %v7051_v33 = vadd.f32 %v7050_v18, %v7002_v8  ;;  %v11490_v8 = vld [vmem:[#allocation8 + $0x298] sm:$0xf0]  ;;  %v10009_v18 = vor.u32 %v11418_v30, %v10008_v12 }
 0x789   : > { %7479 = vmatpush.bf16.msrb.mxu2 %v10201_v23 }
 0x78a   : > { %7381 = vmatpush.bf16.msrb.mxu0 %v10009_v18  ;;  %v11463_v18 = vld [vmem:[#allocation8 + $0x1c0] sm:$0xf0] }
 0x78c   : > { %v7099_v41 = vpop.f32.mrf.mxu2  ;;  %v7148_v50 = vpop.f32.mrf.mxu3 }
 0x78d   : > { %v7100_v28 = vadd.f32 %v7099_v41, %v7051_v33  ;;  %v7004_v45 = vpop.f32.mrf.mxu0  ;;  %v7053_v17 = vpop.f32.mrf.mxu1 }
 0x78e   : > { %v7005_v25 = vadd.f32 %v7004_v45, %v13746_v35  ;;  %v10104_v45 = vld [vmem:[#allocation8 + $0x110] sm:$0xf] }
 0x78f   : > { %v13819_v48 = vadd.f32 %v7148_v50, %v7100_v28  ;;  %7199 = vmatmul.bf16.gmra.mxu0 %v15044_v26  ;;  %v10297_v28 = vor.u32 %v11490_v8, %v10296_v58  ;;  %v15129_v8 = vld [vmem:[#allocation91_spill] sm:$0xff] }
 0x790   : > { %v7054_v15 = vadd.f32 %v7053_v17, %v7005_v25  ;;  %7248 = vmatmul.bf16.gmra.mxu1 %v13295_v10  ;;  %v11442_v25 = vld [vmem:[#allocation8 + $0x118] sm:$0xf0] }
 0x791   : > { %7297 = vmatmul.bf16.gmra.mxu2 %v13411_v51  ;;  %7346 = vmatmul.bf16.gmra.mxu3 %v15128_v37  ;;  %v10105_v24 = vor.u32 %v11442_v25, %v10104_v45 }
 0x792   : > { %7528 = vmatpush.bf16.msrb.mxu3 %v10297_v28  ;;  %v9996_v28 = vld [vmem:[#allocation8 + $0x38] sm:$0xf] }
 0x793   : > { %7430 = vmatpush.bf16.msrb.mxu1 %v10105_v24 }
 0x794   : > { %v7102_v35 = vpop.f32.mrf.mxu2  ;;  %v7151_v34 = vpop.f32.mrf.mxu3 }
 0x795   : > { %v7103_v39 = vadd.f32 %v7102_v35, %v7054_v15  ;;  %v7006_v33 = vpop.f32.mrf.mxu0  ;;  %v7055_v41 = vpop.f32.mrf.mxu1  ;;  %v10188_v35 = vld [vmem:[#allocation8 + $0x1b8] sm:$0xf] }
 0x796   : > { %v7007_v52 = vadd.f32 %v7006_v33, %v13749_v63  ;;  %v10284_v33 = vld [vmem:[#allocation8 + $0x278] sm:$0xf] }
 0x797   : > { %v13826_v50 = vadd.f32 %v7151_v34, %v7103_v39  ;;  %v10189_v39 = vor.u32 %v11463_v18, %v10188_v35  ;;  %v11415_v34 = vld [vmem:[#allocation8 + $0x40] sm:$0xf0] }
 0x798   : > { %v7056_v17 = vadd.f32 %v7055_v41, %v7007_v52  ;;  %v11487_v52 = vld [vmem:[#allocation8 + $0x280] sm:$0xf0]  ;;  %v9997_v41 = vor.u32 %v11415_v34, %v9996_v28 }
 0x799   : > { %7480 = vmatpush.bf16.msrb.mxu2 %v10189_v39 }
 0x79a   : > { %7382 = vmatpush.bf16.msrb.mxu0 %v9997_v41  ;;  %v11460_v41 = vld [vmem:[#allocation8 + $0x1a8] sm:$0xf0] }
 0x79c   : > { %v7104_v1 = vpop.f32.mrf.mxu2  ;;  %v7153_v12 = vpop.f32.mrf.mxu3 }
 0x79d   : > { %v7105_v37 = vadd.f32 %v7104_v1, %v7056_v17  ;;  %v7009_v30 = vpop.f32.mrf.mxu0  ;;  %v7058_v58 = vpop.f32.mrf.mxu1 }
 0x79e   : > { %v7010_v15 = vadd.f32 %v7009_v30, %v13756_v31  ;;  %v10092_v30 = vld [vmem:[#allocation8 + $0xf8] sm:$0xf] }
 0x79f   : > { %v13829_v23 = vadd.f32 %v7153_v12, %v7105_v37  ;;  %7204 = vmatmul.bf16.gmra.mxu0 %v15045_v55  ;;  %v10285_v37 = vor.u32 %v11487_v52, %v10284_v33  ;;  %v15130_v52 = vld [vmem:[#allocation92_spill] sm:$0xff] }
 0x7a0   : > { %v7059_v63 = vadd.f32 %v7058_v58, %v7010_v15  ;;  %7253 = vmatmul.bf16.gmra.mxu1 %v13311_v19  ;;  %v11439_v15 = vld [vmem:[#allocation8 + $0x100] sm:$0xf0] }
 0x7a1   : > { %7302 = vmatmul.bf16.gmra.mxu2 %v13423_v36  ;;  %7351 = vmatmul.bf16.gmra.mxu3 %v15129_v8  ;;  %v10093_v35 = vor.u32 %v11439_v15, %v10092_v30 }
 0x7a2   : > { %7529 = vmatpush.bf16.msrb.mxu3 %v10285_v37  ;;  %v9984_v37 = vld [vmem:[#allocation8 + $0x20] sm:$0xf] }
 0x7a3   : > { %7431 = vmatpush.bf16.msrb.mxu1 %v10093_v35 }
 0x7a4   : > { %v7107_v31 = vpop.f32.mrf.mxu2  ;;  %v7156_v25 = vpop.f32.mrf.mxu3 }
 0x7a5   : > { %v7108_v45 = vadd.f32 %v7107_v31, %v7059_v63  ;;  %v7011_v17 = vpop.f32.mrf.mxu0  ;;  %v7060_v1 = vpop.f32.mrf.mxu1  ;;  %v10176_v31 = vld [vmem:[#allocation8 + $0x1a0] sm:$0xf] }
 0x7a6   : > { %v7012_v24 = vadd.f32 %v7011_v17, %v13759_v57  ;;  %v10272_v17 = vld [vmem:[#allocation8 + $0x260] sm:$0xf] }
 0x7a7   : > { %v13836_v12 = vadd.f32 %v7156_v25, %v7108_v45  ;;  %v10177_v45 = vor.u32 %v11460_v41, %v10176_v31  ;;  %v11412_v25 = vld [vmem:[#allocation8 + $0x28] sm:$0xf0] }
 0x7a8   : > { %v7061_v58 = vadd.f32 %v7060_v1, %v7012_v24  ;;  %v11484_v24 = vld [vmem:[#allocation8 + $0x268] sm:$0xf0]  ;;  %v9985_v1 = vor.u32 %v11412_v25, %v9984_v37 }
 0x7a9   : > { %7481 = vmatpush.bf16.msrb.mxu2 %v10177_v45 }
 0x7aa   : > { %7383 = vmatpush.bf16.msrb.mxu0 %v9985_v1  ;;  %v11457_v1 = vld [vmem:[#allocation8 + $0x190] sm:$0xf0] }
 0x7ac   : > { %v7109_v18 = vpop.f32.mrf.mxu2  ;;  %v7158_v28 = vpop.f32.mrf.mxu3 }
 0x7ad   : > { %v7110_v8 = vadd.f32 %v7109_v18, %v7061_v58  ;;  %v7014_v34 = vpop.f32.mrf.mxu0  ;;  %v7063_v33 = vpop.f32.mrf.mxu1 }
 0x7ae   : > { %v7015_v63 = vadd.f32 %v7014_v34, %v13766_v5  ;;  %v10080_v34 = vld [vmem:[#allocation8 + $0xe0] sm:$0xf] }
 0x7af   : > { %v13839_v39 = vadd.f32 %v7158_v28, %v7110_v8  ;;  %7209 = vmatmul.bf16.gmra.mxu0 %v15046_v2  ;;  %v10273_v8 = vor.u32 %v11484_v24, %v10272_v17  ;;  %v15131_v24 = vld [vmem:[#allocation93_spill] sm:$0xff] }
 0x7b0   : > { %v7064_v57 = vadd.f32 %v7063_v33, %v7015_v63  ;;  %7258 = vmatmul.bf16.gmra.mxu1 %v13327_v60  ;;  %v11436_v63 = vld [vmem:[#allocation8 + $0xe8] sm:$0xf0] }
 0x7b1   : > { %7307 = vmatmul.bf16.gmra.mxu2 %v13435_v62  ;;  %7356 = vmatmul.bf16.gmra.mxu3 %v15130_v52  ;;  %v10081_v31 = vor.u32 %v11436_v63, %v10080_v34 }
 0x7b2   : > { %7530 = vmatpush.bf16.msrb.mxu3 %v10273_v8  ;;  %v9972_v8 = vld [vmem:[#allocation8 + $0x8] sm:$0xf] }
 0x7b3   : > { %7432 = vmatpush.bf16.msrb.mxu1 %v10081_v31 }
 0x7b4   : > { %v7112_v5 = vpop.f32.mrf.mxu2  ;;  %v7161_v15 = vpop.f32.mrf.mxu3 }
 0x7b5   : > { %v7113_v30 = vadd.f32 %v7112_v5, %v7064_v57  ;;  %v7016_v58 = vpop.f32.mrf.mxu0  ;;  %v7065_v18 = vpop.f32.mrf.mxu1  ;;  %v10164_v5 = vld [vmem:[#allocation8 + $0x188] sm:$0xf] }
 0x7b6   : > { %v7017_v35 = vadd.f32 %v7016_v58, %v13769_v11  ;;  %v10260_v58 = vld [vmem:[#allocation8 + $0x248] sm:$0xf] }
 0x7b7   : > { %v13846_v28 = vadd.f32 %v7161_v15, %v7113_v30  ;;  %v10165_v30 = vor.u32 %v11457_v1, %v10164_v5  ;;  %v11409_v15 = vld [vmem:[#allocation8 + $0x10] sm:$0xf0] }
 0x7b8   : > { %v7066_v33 = vadd.f32 %v7065_v18, %v7017_v35  ;;  %v11481_v35 = vld [vmem:[#allocation8 + $0x250] sm:$0xf0]  ;;  %v9973_v18 = vor.u32 %v11409_v15, %v9972_v8 }
 0x7b9   : > { %7482 = vmatpush.bf16.msrb.mxu2 %v10165_v30 }
 0x7ba   : > { %7384 = vmatpush.bf16.msrb.mxu0 %v9973_v18  ;;  %v11574_v18 = vld [vmem:[#allocation8 + $0x538] sm:$0xf0] }
 0x7bc   : > { %v7114_v41 = vpop.f32.mrf.mxu2  ;;  %v7163_v37 = vpop.f32.mrf.mxu3 }
 0x7bd   : > { %v7115_v52 = vadd.f32 %v7114_v41, %v7066_v33  ;;  %v7019_v25 = vpop.f32.mrf.mxu0  ;;  %v7068_v17 = vpop.f32.mrf.mxu1 }
 0x7be   : > { %v7020_v57 = vadd.f32 %v7019_v25, %v13776_v44  ;;  %v10068_v25 = vld [vmem:[#allocation8 + $0xc8] sm:$0xf] }
 0x7bf   : > { %v13849_v45 = vadd.f32 %v7163_v37, %v7115_v52  ;;  %7214 = vmatmul.bf16.gmra.mxu0 %v15047_v61  ;;  %v10261_v52 = vor.u32 %v11481_v35, %v10260_v58  ;;  %v15132_v35 = vld [vmem:[#allocation94_spill] sm:$0xff] }
 0x7c0   : > { %v7069_v11 = vadd.f32 %v7068_v17, %v7020_v57  ;;  %7263 = vmatmul.bf16.gmra.mxu1 %v13343_v20  ;;  %v11433_v57 = vld [vmem:[#allocation8 + $0xd0] sm:$0xf0] }
 0x7c1   : > { %7312 = vmatmul.bf16.gmra.mxu2 %v13447_v59  ;;  %7361 = vmatmul.bf16.gmra.mxu3 %v15131_v24  ;;  %v10069_v5 = vor.u32 %v11433_v57, %v10068_v25 }
 0x7c2   : > { %7531 = vmatpush.bf16.msrb.mxu3 %v10261_v52  ;;  %v10440_v52 = vld [vmem:[#allocation8 + $0x3b0] sm:$0xf] }
 0x7c3   : > { %7433 = vmatpush.bf16.msrb.mxu1 %v10069_v5 }
 0x7c4   : > { %v7117_v44 = vpop.f32.mrf.mxu2  ;;  %v7166_v63 = vpop.f32.mrf.mxu3 }
 0x7c5   : > { %v7118_v34 = vadd.f32 %v7117_v44, %v7069_v11  ;;  %v7021_v33 = vpop.f32.mrf.mxu0  ;;  %v7070_v41 = vpop.f32.mrf.mxu1  ;;  %v10632_v44 = vld [vmem:[#allocation8 + $0x530] sm:$0xf] }
 0x7c6   : > { %v7022_v31 = vadd.f32 %v7021_v33, %v13779_v42  ;;  %v10728_v33 = vld [vmem:[#allocation8 + $0x5f0] sm:$0xf] }
 0x7c7   : > { %v13856_v37 = vadd.f32 %v7166_v63, %v7118_v34  ;;  %v10633_v34 = vor.u32 %v11574_v18, %v10632_v44  ;;  %v11526_v63 = vld [vmem:[#allocation8 + $0x3b8] sm:$0xf0] }
 0x7c8   : > { %v7071_v17 = vadd.f32 %v7070_v41, %v7022_v31  ;;  %v11598_v31 = vld [vmem:[#allocation8 + $0x5f8] sm:$0xf0]  ;;  %v10441_v41 = vor.u32 %v11526_v63, %v10440_v52 }
 0x7c9   : > { %7671 = vmatpush.bf16.msra.mxu2 %v10633_v34 }
 0x7ca   : > { %7573 = vmatpush.bf16.msra.mxu0 %v10441_v41  ;;  %v11571_v41 = vld [vmem:[#allocation8 + $0x520] sm:$0xf0] }
 0x7cc   : > { %v7119_v1 = vpop.f32.mrf.mxu2  ;;  %v7168_v8 = vpop.f32.mrf.mxu3 }
 0x7cd   : > { %v7120_v24 = vadd.f32 %v7119_v1, %v7071_v17  ;;  %v7024_v15 = vpop.f32.mrf.mxu0  ;;  %v7073_v58 = vpop.f32.mrf.mxu1 }
 0x7ce   : > { %v7025_v11 = vadd.f32 %v7024_v15, %v13786_v7  ;;  %v10536_v15 = vld [vmem:[#allocation8 + $0x470] sm:$0xf] }
 0x7cf   : > { %v13859_v30 = vadd.f32 %v7168_v8, %v7120_v24  ;;  %7219 = vmatmul.bf16.gmra.mxu0 %v15048_v14  ;;  %v10729_v24 = vor.u32 %v11598_v31, %v10728_v33  ;;  %v15133_v31 = vld [vmem:[#allocation95_spill] sm:$0xff] }
 0x7d0   : > { %v7074_v42 = vadd.f32 %v7073_v58, %v7025_v11  ;;  %7268 = vmatmul.bf16.gmra.mxu1 %v13359_v6  ;;  %v11550_v11 = vld [vmem:[#allocation8 + $0x478] sm:$0xf0] }
 0x7d1   : > { %7317 = vmatmul.bf16.gmra.mxu2 %v13459_v40  ;;  %7366 = vmatmul.bf16.gmra.mxu3 %v15132_v35  ;;  %v10537_v44 = vor.u32 %v11550_v11, %v10536_v15 }
 0x7d2   : > { %7720 = vmatpush.bf16.msra.mxu3 %v10729_v24  ;;  %v10428_v24 = vld [vmem:[#allocation8 + $0x398] sm:$0xf] }
 0x7d3   : > { %7622 = vmatpush.bf16.msra.mxu1 %v10537_v44 }
 0x7d4   : > { %v7122_v7 = vpop.f32.mrf.mxu2  ;;  %v7171_v57 = vpop.f32.mrf.mxu3 }
 0x7d5   : > { %v7123_v25 = vadd.f32 %v7122_v7, %v7074_v42  ;;  %v7026_v17 = vpop.f32.mrf.mxu0  ;;  %v7075_v1 = vpop.f32.mrf.mxu1  ;;  %v10620_v7 = vld [vmem:[#allocation8 + $0x518] sm:$0xf] }
 0x7d6   : > { %v7027_v5 = vadd.f32 %v7026_v17, %v13789_v16  ;;  %v10716_v17 = vld [vmem:[#allocation8 + $0x5d8] sm:$0xf] }
 0x7d7   : > { %v13866_v8 = vadd.f32 %v7171_v57, %v7123_v25  ;;  %v10621_v25 = vor.u32 %v11571_v41, %v10620_v7  ;;  %v11523_v57 = vld [vmem:[#allocation8 + $0x3a0] sm:$0xf0] }
 0x7d8   : > { %v7076_v58 = vadd.f32 %v7075_v1, %v7027_v5  ;;  %v11595_v5 = vld [vmem:[#allocation8 + $0x5e0] sm:$0xf0]  ;;  %v10429_v1 = vor.u32 %v11523_v57, %v10428_v24 }
 0x7d9   : > { %7672 = vmatpush.bf16.msra.mxu2 %v10621_v25 }
 0x7da   : > { %7574 = vmatpush.bf16.msra.mxu0 %v10429_v1  ;;  %v10416_v1 = vld [vmem:[#allocation8 + $0x380] sm:$0xf] }
 0x7dc   : > { %v7124_v18 = vpop.f32.mrf.mxu2  ;;  %v7173_v52 = vpop.f32.mrf.mxu3 }
 0x7dd   : > { %v7125_v35 = vadd.f32 %v7124_v18, %v7076_v58  ;;  %v7029_v63 = vpop.f32.mrf.mxu0  ;;  %v7078_v33 = vpop.f32.mrf.mxu1 }
 0x7de   : > { %v7030_v42 = vadd.f32 %v7029_v63, %v13796_v43 }
 0x7df   : > { %v13869_v34 = vadd.f32 %v7173_v52, %v7125_v35  ;;  %7224 = vmatmul.bf16.gmra.mxu0 %v15049_v13  ;;  %v10717_v35 = vor.u32 %v11595_v5, %v10716_v17  ;;  %v10608_v5 = vld [vmem:[#allocation8 + $0x500] sm:$0xf] }
 0x7e0   : > { %v7079_v16 = vadd.f32 %v7078_v33, %v7030_v42  ;;  %7273 = vmatmul.bf16.gmra.mxu1 %v13373_v53  ;;  %v10524_v42 = vld [vmem:[#allocation8 + $0x458] sm:$0xf]  ;;  %v11547_v33 = vld [vmem:[#allocation8 + $0x460] sm:$0xf0] }
 0x7e1   : > { %7322 = vmatmul.bf16.gmra.mxu2 %v13473_v4  ;;  %7371 = vmatmul.bf16.gmra.mxu3 %v15133_v31  ;;  %v10525_v7 = vor.u32 %v11547_v33, %v10524_v42  ;;  %v10512_v33 = vld [vmem:[#allocation8 + $0x440] sm:$0xf] }
 0x7e2   : > { %7721 = vmatpush.bf16.msra.mxu3 %v10717_v35 }
 0x7e3   : > { %7623 = vmatpush.bf16.msra.mxu1 %v10525_v7  ;;  %v11544_v7 = vld [vmem:[#allocation8 + $0x448] sm:$0xf0] }
 0x7e4   : > { %v7127_v43 = vpop.f32.mrf.mxu2  ;;  %v7176_v11 = vpop.f32.mrf.mxu3 }
 0x7e5   : > { %v7128_v15 = vadd.f32 %v7127_v43, %v7079_v16  ;;  %v7031_v58 = vpop.f32.mrf.mxu0  ;;  %v7080_v18 = vpop.f32.mrf.mxu1  ;;  %v11568_v43 = vld [vmem:[#allocation8 + $0x508] sm:$0xf0] }
 0x7e6   : > { %v7032_v44 = vadd.f32 %v7031_v58, %v13799_v3  ;;  %v10609_v35 = vor.u32 %v11568_v43, %v10608_v5  ;;  %v11592_v58 = vld [vmem:[#allocation8 + $0x5c8] sm:$0xf0] }
 0x7e7   : > { %v13876_v52 = vadd.f32 %v7176_v11, %v7128_v15  ;;  %v11520_v15 = vld [vmem:[#allocation8 + $0x388] sm:$0xf0]  ;;  %v10704_v11 = vld [vmem:[#allocation8 + $0x5c0] sm:$0xf] }
 0x7e8   : > { %v7081_v63 = vadd.f32 %v7080_v18, %v7032_v44  ;;  %v10417_v44 = vor.u32 %v11520_v15, %v10416_v1  ;;  %7673 = vmatpush.bf16.msra.mxu2 %v10609_v35  ;;  %v15134_v1 = vld [vmem:[#allocation20_spill] sm:$0xff]  ;;  %v15136_v15 = vld [vmem:[#allocation37_spill] sm:$0xff] }
 0x7e9   : > { %v15135_v35 = vld [vmem:[#allocation28_spill] sm:$0xff] }
 0x7ea   : > { %7575 = vmatpush.bf16.msra.mxu0 %v10417_v44  ;;  %v10404_v44 = vld [vmem:[#allocation8 + $0x368] sm:$0xf] }
 0x7ec   : > { %v7129_v41 = vpop.f32.mrf.mxu2  ;;  %v7178_v24 = vpop.f32.mrf.mxu3 }
 0x7ed   : > { %v7130_v31 = vadd.f32 %v7129_v41, %v7081_v63  ;;  %v7190_v57 = vpop.f32.mrf.mxu0  ;;  %v7239_v17 = vpop.f32.mrf.mxu1  ;;  %v10513_v41 = vor.u32 %v11544_v7, %v10512_v33 }
 0x7ee   : > { %v7191_v16 = vadd.f32 %v7190_v57, %v13806_v47 }
 0x7ef   : > { %v13879_v25 = vadd.f32 %v7178_v24, %v7130_v31  ;;  %7385 = vmatmul.bf16.vlgmr.msrb.gmra.mxu0 %v12490_v56  ;;  %v10705_v31 = vor.u32 %v11592_v58, %v10704_v11  ;;  %7624 = vmatpush.bf16.msra.mxu1 %v10513_v41  ;;  %v15137_v11 = vld [vmem:[#allocation38_spill] sm:$0xff]  ;;  %v10596_v58 = vld [vmem:[#allocation8 + $0x4e8] sm:$0xf] }
 0x7f0   : > { %v7240_v3 = vadd.f32 %v7239_v17, %v7191_v16  ;;  %7434 = vmatmul.bf16.vlgmr.msrb.gmra.mxu1 %v14975_v22 }
 0x7f1   : > { %7483 = vmatmul.bf16.vlgmr.msrb.gmra.mxu2 %v14976_v32  ;;  %7532 = vmatmul.bf16.vlgmr.msrb.gmra.mxu3 %v14977_v21 }
 0x7f2   : > { %7722 = vmatpush.bf16.msra.mxu3 %v10705_v31 }
 0x7f4   : > { %v7288_v47 = vpop.f32.mrf.mxu2  ;;  %v7337_v63 = vpop.f32.mrf.mxu3 }
 0x7f5   : > { %v7289_v18 = vadd.f32 %v7288_v47, %v7240_v3  ;;  %v7192_v42 = vpop.f32.mrf.mxu0  ;;  %v7241_v22 = vpop.f32.mrf.mxu1  ;;  %v11565_v47 = vld [vmem:[#allocation8 + $0x4f0] sm:$0xf0] }
 0x7f6   : > { %v7193_v56 = vadd.f32 %v7192_v42, %v13809_v0  ;;  %v10597_v31 = vor.u32 %v11565_v47, %v10596_v58  ;;  %v11589_v42 = vld [vmem:[#allocation8 + $0x5b0] sm:$0xf0] }
 0x7f7   : > { %v13886_v32 = vadd.f32 %v7337_v63, %v7289_v18  ;;  %v11517_v18 = vld [vmem:[#allocation8 + $0x370] sm:$0xf0]  ;;  %v10692_v63 = vld [vmem:[#allocation8 + $0x5a8] sm:$0xf] }
 0x7f8   : > { %v7242_v21 = vadd.f32 %v7241_v22, %v7193_v56  ;;  %v10405_v56 = vor.u32 %v11517_v18, %v10404_v44  ;;  %v10693_v22 = vor.u32 %v11589_v42, %v10692_v63  ;;  %7674 = vmatpush.bf16.msra.mxu2 %v10597_v31  ;;  %v15138_v44 = vld [vmem:[#allocation21_spill] sm:$0xff]  ;;  %v15140_v18 = vld [vmem:[#allocation39_spill] sm:$0xff]  ;;  %v15141_v63 = vld [vmem:[#allocation40_spill] sm:$0xff] }
 0x7f9   : > { %v15139_v31 = vld [vmem:[#allocation29_spill] sm:$0xff]  ;;  %v10584_v42 = vld [vmem:[#allocation8 + $0x4d0] sm:$0xf] }
 0x7fa   : > { %7576 = vmatpush.bf16.msra.mxu0 %v10405_v56  ;;  %7723 = vmatpush.bf16.msra.mxu3 %v10693_v22  ;;  %v10392_v56 = vld [vmem:[#allocation8 + $0x350] sm:$0xf] }
 0x7fc   : > { %v7290_v24 = vpop.f32.mrf.mxu2  ;;  %v7339_v16 = vpop.f32.mrf.mxu3 }
 0x7fd   : > { %v7291_v57 = vadd.f32 %v7290_v24, %v7242_v21  ;;  %v7195_v17 = vpop.f32.mrf.mxu0  ;;  %v7244_v5 = vpop.f32.mrf.mxu1 }
 0x7fe   : > { %v7196_v3 = vadd.f32 %v7195_v17, %v13816_v49  ;;  %v10500_v17 = vld [vmem:[#allocation8 + $0x428] sm:$0xf] }
 0x7ff   : > { %v13889_v43 = vadd.f32 %v7339_v16, %v7291_v57  ;;  %7390 = vmatmul.bf16.gmra.mxu0 %v15134_v1 }
 0x800   : > { %v7245_v0 = vadd.f32 %v7244_v5, %v7196_v3  ;;  %7439 = vmatmul.bf16.gmra.mxu1 %v15135_v35  ;;  %v11541_v3 = vld [vmem:[#allocation8 + $0x430] sm:$0xf0] }
 0x801   : > { %7488 = vmatmul.bf16.gmra.mxu2 %v15136_v15  ;;  %7537 = vmatmul.bf16.gmra.mxu3 %v15137_v11  ;;  %v10501_v5 = vor.u32 %v11541_v3, %v10500_v17 }
 0x803   : > { %7625 = vmatpush.bf16.msra.mxu1 %v10501_v5 }
 0x804   : > { %v7293_v49 = vpop.f32.mrf.mxu2  ;;  %v7342_v33 = vpop.f32.mrf.mxu3 }
 0x805   : > { %v7294_v21 = vadd.f32 %v7293_v49, %v7245_v0  ;;  %v7197_v7 = vpop.f32.mrf.mxu0  ;;  %v7246_v24 = vpop.f32.mrf.mxu1  ;;  %v11562_v49 = vld [vmem:[#allocation8 + $0x4d8] sm:$0xf0] }
 0x806   : > { %v7198_v41 = vadd.f32 %v7197_v7, %v13819_v48  ;;  %v10585_v22 = vor.u32 %v11562_v49, %v10584_v42  ;;  %v11586_v7 = vld [vmem:[#allocation8 + $0x598] sm:$0xf0] }
 0x807   : > { %v13896_v57 = vadd.f32 %v7342_v33, %v7294_v21  ;;  %v11514_v21 = vld [vmem:[#allocation8 + $0x358] sm:$0xf0]  ;;  %v10680_v33 = vld [vmem:[#allocation8 + $0x590] sm:$0xf] }
 0x808   : > { %v7247_v16 = vadd.f32 %v7246_v24, %v7198_v41  ;;  %v10393_v41 = vor.u32 %v11514_v21, %v10392_v56  ;;  %v10681_v24 = vor.u32 %v11586_v7, %v10680_v33  ;;  %7675 = vmatpush.bf16.msra.mxu2 %v10585_v22  ;;  %v15142_v56 = vld [vmem:[#allocation22_spill] sm:$0xff]  ;;  %v15144_v21 = vld [vmem:[#allocation41_spill] sm:$0xff] }
 0x809   : > { %v15143_v22 = vld [vmem:[#allocation30_spill] sm:$0xff]  ;;  %v10572_v7 = vld [vmem:[#allocation8 + $0x4b8] sm:$0xf] }
 0x80a   : > { %7577 = vmatpush.bf16.msra.mxu0 %v10393_v41  ;;  %7724 = vmatpush.bf16.msra.mxu3 %v10681_v24  ;;  %v15145_v33 = vld [vmem:[#allocation42_spill] sm:$0xff]  ;;  %v10380_v41 = vld [vmem:[#allocation8 + $0x338] sm:$0xf] }
 0x80c   : > { %v7295_v1 = vpop.f32.mrf.mxu2  ;;  %v7344_v15 = vpop.f32.mrf.mxu3 }
 0x80d   : > { %v7296_v35 = vadd.f32 %v7295_v1, %v7247_v16  ;;  %v7200_v11 = vpop.f32.mrf.mxu0  ;;  %v7249_v58 = vpop.f32.mrf.mxu1 }
 0x80e   : > { %v7201_v0 = vadd.f32 %v7200_v11, %v13826_v50  ;;  %v10488_v11 = vld [vmem:[#allocation8 + $0x410] sm:$0xf] }
 0x80f   : > { %v13899_v47 = vadd.f32 %v7344_v15, %v7296_v35  ;;  %7395 = vmatmul.bf16.gmra.mxu0 %v15138_v44 }
 0x810   : > { %v7250_v48 = vadd.f32 %v7249_v58, %v7201_v0  ;;  %7444 = vmatmul.bf16.gmra.mxu1 %v15139_v31  ;;  %v11538_v0 = vld [vmem:[#allocation8 + $0x418] sm:$0xf0] }
 0x811   : > { %7493 = vmatmul.bf16.gmra.mxu2 %v15140_v18  ;;  %7542 = vmatmul.bf16.gmra.mxu3 %v15141_v63  ;;  %v10489_v58 = vor.u32 %v11538_v0, %v10488_v11 }
 0x813   : > { %7626 = vmatpush.bf16.msra.mxu1 %v10489_v58 }
 0x814   : > { %v7298_v50 = vpop.f32.mrf.mxu2  ;;  %v7347_v17 = vpop.f32.mrf.mxu3 }
 0x815   : > { %v7299_v16 = vadd.f32 %v7298_v50, %v7250_v48  ;;  %v7202_v3 = vpop.f32.mrf.mxu0  ;;  %v7251_v1 = vpop.f32.mrf.mxu1  ;;  %v11559_v50 = vld [vmem:[#allocation8 + $0x4c0] sm:$0xf0] }
 0x816   : > { %v7203_v5 = vadd.f32 %v7202_v3, %v13829_v23  ;;  %v10573_v24 = vor.u32 %v11559_v50, %v10572_v7  ;;  %v11583_v3 = vld [vmem:[#allocation8 + $0x580] sm:$0xf0] }
 0x817   : > { %v13906_v35 = vadd.f32 %v7347_v17, %v7299_v16  ;;  %v11511_v16 = vld [vmem:[#allocation8 + $0x340] sm:$0xf0]  ;;  %v10668_v17 = vld [vmem:[#allocation8 + $0x578] sm:$0xf] }
 0x818   : > { %v7252_v15 = vadd.f32 %v7251_v1, %v7203_v5  ;;  %v10381_v5 = vor.u32 %v11511_v16, %v10380_v41  ;;  %v10669_v1 = vor.u32 %v11583_v3, %v10668_v17  ;;  %7676 = vmatpush.bf16.msra.mxu2 %v10573_v24  ;;  %v15146_v41 = vld [vmem:[#allocation23_spill] sm:$0xff]  ;;  %v15149_v17 = vld [vmem:[#allocation44_spill] sm:$0xff]  ;;  %v10560_v3 = vld [vmem:[#allocation8 + $0x4a0] sm:$0xf] }
 0x819   : > { %v15147_v24 = vld [vmem:[#allocation31_spill] sm:$0xff] }
 0x81a   : > { %7578 = vmatpush.bf16.msra.mxu0 %v10381_v5  ;;  %7725 = vmatpush.bf16.msra.mxu3 %v10669_v1  ;;  %v15148_v16 = vld [vmem:[#allocation43_spill] sm:$0xff]  ;;  %v10368_v5 = vld [vmem:[#allocation8 + $0x320] sm:$0xf] }
 0x81c   : > { %v7300_v44 = vpop.f32.mrf.mxu2  ;;  %v7349_v18 = vpop.f32.mrf.mxu3 }
 0x81d   : > { %v7301_v31 = vadd.f32 %v7300_v44, %v7252_v15  ;;  %v7205_v63 = vpop.f32.mrf.mxu0  ;;  %v7254_v42 = vpop.f32.mrf.mxu1 }
 0x81e   : > { %v7206_v48 = vadd.f32 %v7205_v63, %v13836_v12  ;;  %v10476_v63 = vld [vmem:[#allocation8 + $0x3f8] sm:$0xf] }
 0x81f   : > { %v13909_v49 = vadd.f32 %v7349_v18, %v7301_v31  ;;  %7400 = vmatmul.bf16.gmra.mxu0 %v15142_v56 }
 0x820   : > { %v7255_v23 = vadd.f32 %v7254_v42, %v7206_v48  ;;  %7449 = vmatmul.bf16.gmra.mxu1 %v15143_v22  ;;  %v11535_v48 = vld [vmem:[#allocation8 + $0x400] sm:$0xf0] }
 0x821   : > { %7498 = vmatmul.bf16.gmra.mxu2 %v15144_v21  ;;  %7547 = vmatmul.bf16.gmra.mxu3 %v15145_v33  ;;  %v10477_v42 = vor.u32 %v11535_v48, %v10476_v63 }
 0x823   : > { %7627 = vmatpush.bf16.msra.mxu1 %v10477_v42 }
 0x824   : > { %v7303_v12 = vpop.f32.mrf.mxu2  ;;  %v7352_v11 = vpop.f32.mrf.mxu3 }
 0x825   : > { %v7304_v15 = vadd.f32 %v7303_v12, %v7255_v23  ;;  %v7207_v0 = vpop.f32.mrf.mxu0  ;;  %v7256_v44 = vpop.f32.mrf.mxu1  ;;  %v11556_v12 = vld [vmem:[#allocation8 + $0x4a8] sm:$0xf0] }
 0x826   : > { %v7208_v58 = vadd.f32 %v7207_v0, %v13839_v39  ;;  %v10561_v1 = vor.u32 %v11556_v12, %v10560_v3  ;;  %v11580_v0 = vld [vmem:[#allocation8 + $0x568] sm:$0xf0] }
 0x827   : > { %v13916_v31 = vadd.f32 %v7352_v11, %v7304_v15  ;;  %v11508_v15 = vld [vmem:[#allocation8 + $0x328] sm:$0xf0]  ;;  %v10656_v11 = vld [vmem:[#allocation8 + $0x560] sm:$0xf] }
 0x828   : > { %v7257_v18 = vadd.f32 %v7256_v44, %v7208_v58  ;;  %v10369_v58 = vor.u32 %v11508_v15, %v10368_v5  ;;  %v10657_v44 = vor.u32 %v11580_v0, %v10656_v11  ;;  %7677 = vmatpush.bf16.msra.mxu2 %v10561_v1  ;;  %v15152_v5 = vld [vmem:[#allocation24_spill] sm:$0xff]  ;;  %v15154_v15 = vld [vmem:[#allocation45_spill] sm:$0xff]  ;;  %v15155_v11 = vld [vmem:[#allocation46_spill] sm:$0xff] }
 0x829   : > { %v15153_v1 = vld [vmem:[#allocation32_spill] sm:$0xff]  ;;  %v10548_v0 = vld [vmem:[#allocation8 + $0x488] sm:$0xf] }
 0x82a   : > { %7579 = vmatpush.bf16.msra.mxu0 %v10369_v58  ;;  %7726 = vmatpush.bf16.msra.mxu3 %v10657_v44  ;;  %v10356_v58 = vld [vmem:[#allocation8 + $0x308] sm:$0xf] }
 0x82c   : > { %v7305_v56 = vpop.f32.mrf.mxu2  ;;  %v7354_v21 = vpop.f32.mrf.mxu3 }
 0x82d   : > { %v7306_v22 = vadd.f32 %v7305_v56, %v7257_v18  ;;  %v7210_v33 = vpop.f32.mrf.mxu0  ;;  %v7259_v7 = vpop.f32.mrf.mxu1 }
 0x82e   : > { %v7211_v23 = vadd.f32 %v7210_v33, %v13846_v28  ;;  %v10464_v33 = vld [vmem:[#allocation8 + $0x3e0] sm:$0xf] }
 0x82f   : > { %v13919_v50 = vadd.f32 %v7354_v21, %v7306_v22  ;;  %7405 = vmatmul.bf16.gmra.mxu0 %v15146_v41 }
 0x830   : > { %v7260_v39 = vadd.f32 %v7259_v7, %v7211_v23  ;;  %7454 = vmatmul.bf16.gmra.mxu1 %v15147_v24  ;;  %v11532_v23 = vld [vmem:[#allocation8 + $0x3e8] sm:$0xf0] }
 0x831   : > { %7503 = vmatmul.bf16.gmra.mxu2 %v15148_v16  ;;  %7552 = vmatmul.bf16.gmra.mxu3 %v15149_v17  ;;  %v10465_v7 = vor.u32 %v11532_v23, %v10464_v33 }
 0x833   : > { %7628 = vmatpush.bf16.msra.mxu1 %v10465_v7 }
 0x834   : > { %v7308_v28 = vpop.f32.mrf.mxu2  ;;  %v7357_v63 = vpop.f32.mrf.mxu3 }
 0x835   : > { %v7309_v18 = vadd.f32 %v7308_v28, %v7260_v39  ;;  %v7212_v48 = vpop.f32.mrf.mxu0  ;;  %v7261_v56 = vpop.f32.mrf.mxu1  ;;  %v11553_v28 = vld [vmem:[#allocation8 + $0x490] sm:$0xf0] }
 0x836   : > { %v7213_v42 = vadd.f32 %v7212_v48, %v13849_v45  ;;  %v10549_v44 = vor.u32 %v11553_v28, %v10548_v0  ;;  %v11577_v48 = vld [vmem:[#allocation8 + $0x550] sm:$0xf0] }
 0x837   : > { %v13926_v22 = vadd.f32 %v7357_v63, %v7309_v18  ;;  %v11505_v18 = vld [vmem:[#allocation8 + $0x310] sm:$0xf0]  ;;  %v10644_v63 = vld [vmem:[#allocation8 + $0x548] sm:$0xf] }
 0x838   : > { %v7262_v21 = vadd.f32 %v7261_v56, %v7213_v42  ;;  %v10357_v42 = vor.u32 %v11505_v18, %v10356_v58  ;;  %v10645_v56 = vor.u32 %v11577_v48, %v10644_v63  ;;  %7678 = vmatpush.bf16.msra.mxu2 %v10549_v44  ;;  %v15158_v58 = vld [vmem:[#allocation25_spill] sm:$0xff]  ;;  %v15160_v18 = vld [vmem:[#allocation47_spill] sm:$0xff]  ;;  %v15161_v63 = vld [vmem:[#allocation48_spill] sm:$0xff] }
 0x839   : > { %15150 = vst [vmem:[#allocation20_spill] sm:$0xff] %v13926_v22  ;;  %v15159_v44 = vld [vmem:[#allocation33_spill] sm:$0xff]  ;;  %v11016_v48 = vld [vmem:[#allocation8 + $0x830] sm:$0xf] }
 0x83a   : > { %7580 = vmatpush.bf16.msra.mxu0 %v10357_v42  ;;  %7727 = vmatpush.bf16.msra.mxu3 %v10645_v56  ;;  %v10824_v42 = vld [vmem:[#allocation8 + $0x6b0] sm:$0xf] }
 0x83c   : > { %v7310_v41 = vpop.f32.mrf.mxu2  ;;  %v7359_v16 = vpop.f32.mrf.mxu3 }
 0x83d   : > { %v7311_v24 = vadd.f32 %v7310_v41, %v7262_v21  ;;  %v7215_v17 = vpop.f32.mrf.mxu0  ;;  %v7264_v3 = vpop.f32.mrf.mxu1 }
 0x83e   : > { %v7216_v39 = vadd.f32 %v7215_v17, %v13856_v37  ;;  %v10452_v17 = vld [vmem:[#allocation8 + $0x3c8] sm:$0xf] }
 0x83f   : > { %v13929_v12 = vadd.f32 %v7359_v16, %v7311_v24  ;;  %7410 = vmatmul.bf16.gmra.mxu0 %v15152_v5 }
 0x840   : > { %v7265_v45 = vadd.f32 %v7264_v3, %v7216_v39  ;;  %7459 = vmatmul.bf16.gmra.mxu1 %v15153_v1  ;;  %v11529_v39 = vld [vmem:[#allocation8 + $0x3d0] sm:$0xf0] }
 0x841   : > { %15151 = vst [vmem:[#allocation28_spill] sm:$0xff] %v13929_v12  ;;  %7508 = vmatmul.bf16.gmra.mxu2 %v15154_v15  ;;  %7557 = vmatmul.bf16.gmra.mxu3 %v15155_v11  ;;  %v10453_v3 = vor.u32 %v11529_v39, %v10452_v17 }
 0x843   : > { %7629 = vmatpush.bf16.msra.mxu1 %v10453_v3 }
 0x844   : > { %v7313_v37 = vpop.f32.mrf.mxu2  ;;  %v7362_v33 = vpop.f32.mrf.mxu3 }
 0x845   : > { %v7314_v21 = vadd.f32 %v7313_v37, %v7265_v45  ;;  %v7217_v23 = vpop.f32.mrf.mxu0  ;;  %v7266_v41 = vpop.f32.mrf.mxu1  ;;  %v11670_v37 = vld [vmem:[#allocation8 + $0x838] sm:$0xf0] }
 0x846   : > { %v7218_v7 = vadd.f32 %v7217_v23, %v13859_v30  ;;  %v11017_v56 = vor.u32 %v11670_v37, %v11016_v48  ;;  %v11694_v23 = vld [vmem:[#allocation8 + $0x8f8] sm:$0xf0] }
 0x847   : > { %v13936_v24 = vadd.f32 %v7362_v33, %v7314_v21  ;;  %v11622_v21 = vld [vmem:[#allocation8 + $0x6b8] sm:$0xf0]  ;;  %v11112_v33 = vld [vmem:[#allocation8 + $0x8f0] sm:$0xf] }
 0x848   : > { %v7267_v16 = vadd.f32 %v7266_v41, %v7218_v7  ;;  %v10825_v7 = vor.u32 %v11622_v21, %v10824_v42  ;;  %v11113_v41 = vor.u32 %v11694_v23, %v11112_v33  ;;  %7867 = vmatpush.bf16.msrb.mxu2 %v11017_v56  ;;  %v15164_v42 = vld [vmem:[#allocation26_spill] sm:$0xff]  ;;  %v15166_v21 = vld [vmem:[#allocation49_spill] sm:$0xff] }
 0x849   : > { %15156 = vst [vmem:[#allocation37_spill] sm:$0xff] %v13936_v24  ;;  %v15165_v56 = vld [vmem:[#allocation34_spill] sm:$0xff]  ;;  %v11004_v23 = vld [vmem:[#allocation8 + $0x818] sm:$0xf] }
 0x84a   : > { %7769 = vmatpush.bf16.msrb.mxu0 %v10825_v7  ;;  %7916 = vmatpush.bf16.msrb.mxu3 %v11113_v41  ;;  %v15167_v33 = vld [vmem:[#allocation50_spill] sm:$0xff]  ;;  %v10812_v7 = vld [vmem:[#allocation8 + $0x698] sm:$0xf] }
 0x84c   : > { %v7315_v5 = vpop.f32.mrf.mxu2  ;;  %v7364_v15 = vpop.f32.mrf.mxu3 }
 0x84d   : > { %v7316_v1 = vadd.f32 %v7315_v5, %v7267_v16  ;;  %v7220_v11 = vpop.f32.mrf.mxu0  ;;  %v7269_v0 = vpop.f32.mrf.mxu1 }
 0x84e   : > { %v7221_v45 = vadd.f32 %v7220_v11, %v13866_v8  ;;  %v11646_v11 = vld [vmem:[#allocation8 + $0x778] sm:$0xf0] }
 0x84f   : > { %v13939_v28 = vadd.f32 %v7364_v15, %v7316_v1  ;;  %7415 = vmatmul.bf16.gmra.mxu0 %v15158_v58  ;;  %v10920_v15 = vld [vmem:[#allocation8 + $0x770] sm:$0xf] }
 0x850   : > { %v7270_v30 = vadd.f32 %v7269_v0, %v7221_v45  ;;  %7464 = vmatmul.bf16.gmra.mxu1 %v15159_v44  ;;  %v10921_v0 = vor.u32 %v11646_v11, %v10920_v15 }
 0x851   : > { %15157 = vst [vmem:[#allocation38_spill] sm:$0xff] %v13939_v28  ;;  %7513 = vmatmul.bf16.gmra.mxu2 %v15160_v18  ;;  %7562 = vmatmul.bf16.gmra.mxu3 %v15161_v63 }
 0x852   : > { %7818 = vmatpush.bf16.msrb.mxu1 %v10921_v0 }
 0x854   : > { %v7318_v8 = vpop.f32.mrf.mxu2  ;;  %v7367_v17 = vpop.f32.mrf.mxu3 }
 0x855   : > { %v7319_v16 = vadd.f32 %v7318_v8, %v7270_v30  ;;  %v7222_v39 = vpop.f32.mrf.mxu0  ;;  %v7271_v5 = vpop.f32.mrf.mxu1  ;;  %v11667_v8 = vld [vmem:[#allocation8 + $0x820] sm:$0xf0] }
 0x856   : > { %v7223_v3 = vadd.f32 %v7222_v39, %v13869_v34  ;;  %v11005_v41 = vor.u32 %v11667_v8, %v11004_v23  ;;  %v11691_v39 = vld [vmem:[#allocation8 + $0x8e0] sm:$0xf0] }
 0x857   : > { %v13946_v1 = vadd.f32 %v7367_v17, %v7319_v16  ;;  %v11619_v16 = vld [vmem:[#allocation8 + $0x6a0] sm:$0xf0]  ;;  %v11100_v17 = vld [vmem:[#allocation8 + $0x8d8] sm:$0xf] }
 0x858   : > { %v7272_v45 = vadd.f32 %v7271_v5, %v7223_v3  ;;  %v10813_v3 = vor.u32 %v11619_v16, %v10812_v7  ;;  %v11101_v5 = vor.u32 %v11691_v39, %v11100_v17  ;;  %7868 = vmatpush.bf16.msrb.mxu2 %v11005_v41  ;;  %v15170_v16 = vld [vmem:[#allocation51_spill] sm:$0xff] }
 0x859   : > { %15162 = vst [vmem:[#allocation21_spill] sm:$0xff] %v13946_v1  ;;  %v15171_v17 = vld [vmem:[#allocation59_spill] sm:$0xff] }
 0x85a   : > { %7770 = vmatpush.bf16.msrb.mxu0 %v10813_v3  ;;  %7917 = vmatpush.bf16.msrb.mxu3 %v11101_v5  ;;  %v15172_v39 = vld [vmem:[#allocation67_spill] sm:$0xff]  ;;  %v10992_v3 = vld [vmem:[#allocation8 + $0x800] sm:$0xf]  ;;  %v11664_v5 = vld [vmem:[#allocation8 + $0x808] sm:$0xf0] }
 0x85c   : > { %v7320_v58 = vpop.f32.mrf.mxu2  ;;  %v7369_v18 = vpop.f32.mrf.mxu3 }
 0x85d   : > { %v7321_v44 = vadd.f32 %v7320_v58, %v7272_v45  ;;  %v7225_v63 = vpop.f32.mrf.mxu0  ;;  %v7274_v48 = vpop.f32.mrf.mxu1 }
 0x85e   : > { %v7226_v30 = vadd.f32 %v7225_v63, %v13876_v52  ;;  %v11643_v63 = vld [vmem:[#allocation8 + $0x760] sm:$0xf0] }
 0x85f   : > { %v13949_v37 = vadd.f32 %v7369_v18, %v7321_v44  ;;  %7420 = vmatmul.bf16.gmra.mxu0 %v15164_v42  ;;  %v10908_v18 = vld [vmem:[#allocation8 + $0x758] sm:$0xf]  ;;  %v11853_v42 = vld [vmem:[#allocation10] sm:$0x7] }
 0x860   : > { %v7275_v34 = vadd.f32 %v7274_v48, %v7226_v30  ;;  %7469 = vmatmul.bf16.gmra.mxu1 %v15165_v56  ;;  %v10909_v48 = vor.u32 %v11643_v63, %v10908_v18  ;;  %v13958_v56 = vperm.slane %v11853_v42, 2 }
 0x861   : > { %15163 = vst [vmem:[#allocation29_spill] sm:$0xff] %v13949_v37  ;;  %7518 = vmatmul.bf16.gmra.mxu2 %v15166_v21  ;;  %7567 = vmatmul.bf16.gmra.mxu3 %v15167_v33 }
 0x862   : > { %7819 = vmatpush.bf16.msrb.mxu1 %v10909_v48 }
 0x864   : > { %v7323_v52 = vpop.f32.mrf.mxu2  ;;  %v7372_v11 = vpop.f32.mrf.mxu3 }
 0x865   : > { %v7324_v15 = vadd.f32 %v7323_v52, %v7275_v34  ;;  %v7227_v45 = vpop.f32.mrf.mxu0  ;;  %v7276_v58 = vpop.f32.mrf.mxu1  ;;  %v15173_v52 = vld [vmem:[#allocation68_spill] sm:$0xff] }
 0x866   : > { %v7228_v0 = vadd.f32 %v7227_v45, %v13879_v25  ;;  %v11616_v45 = vld [vmem:[#allocation8 + $0x688] sm:$0xf0] }
 0x867   : > { %v13956_v44 = vadd.f32 %v7372_v11, %v7324_v15  ;;  %v10800_v15 = vld [vmem:[#allocation8 + $0x680] sm:$0xf]  ;;  %v10993_v11 = vor.u32 %v11664_v5, %v10992_v3 }
 0x868   : > { %v7277_v30 = vadd.f32 %v7276_v58, %v7228_v0  ;;  %v11088_v0 = vld [vmem:[#allocation8 + $0x8c0] sm:$0xf]  ;;  %v11688_v58 = vld [vmem:[#allocation8 + $0x8c8] sm:$0xf0]  ;;  %v10801_v63 = vor.u32 %v11616_v45, %v10800_v15 }
 0x869   : > { %15168 = vst [vmem:[#allocation39_spill] sm:$0xff] %v13956_v44  ;;  %7869 = vmatpush.bf16.msrb.mxu2 %v10993_v11 }
 0x86a   : > { %7771 = vmatpush.bf16.msrb.mxu0 %v10801_v63  ;;  %v15177_v63 = vld [vmem:[#allocation70_spill] sm:$0xff] }
 0x86c   : > { %v7325_v21 = vpop.f32.mrf.mxu2  ;;  %v7374_v33 = vpop.f32.mrf.mxu3 }
 0x86d   : > { %v7326_v34 = vadd.f32 %v7325_v21, %v7277_v30  ;;  %v7386_v23 = vpop.f32.mrf.mxu0  ;;  %v7435_v25 = vpop.f32.mrf.mxu1  ;;  %v11089_v30 = vor.u32 %v11688_v58, %v11088_v0  ;;  %v15174_v0 = vld [vmem:[#allocation52_spill] sm:$0xff] }
 0x86e   : > { %v7387_v8 = vadd.f32 %v7386_v23, %v13958_v56  ;;  %v15175_v58 = vld [vmem:[#allocation60_spill] sm:$0xff] }
 0x86f   : > { %v13961_v7 = vadd.f32 %v7374_v33, %v7326_v34  ;;  %7581 = vmatmul.bf16.vlgmr.msra.gmra.mxu0 %v15170_v16  ;;  %7918 = vmatpush.bf16.msrb.mxu3 %v11089_v30  ;;  %v10980_v30 = vld [vmem:[#allocation8 + $0x7e8] sm:$0xf] }
 0x870   : > { %v7436_v41 = vadd.f32 %v7435_v25, %v7387_v8  ;;  %7630 = vmatmul.bf16.vlgmr.msra.gmra.mxu1 %v15171_v17  ;;  %v10896_v8 = vld [vmem:[#allocation8 + $0x740] sm:$0xf]  ;;  %v11640_v25 = vld [vmem:[#allocation8 + $0x748] sm:$0xf0] }
 0x871   : > { %15169 = vst [vmem:[#allocation40_spill] sm:$0xff] %v13961_v7  ;;  %7679 = vmatmul.bf16.vlgmr.msra.gmra.mxu2 %v15172_v39  ;;  %7728 = vmatmul.bf16.vlgmr.msra.gmra.mxu3 %v15173_v52  ;;  %v10897_v17 = vor.u32 %v11640_v25, %v10896_v8  ;;  %v11685_v8 = vld [vmem:[#allocation8 + $0x8b0] sm:$0xf0] }
 0x873   : > { %7820 = vmatpush.bf16.msrb.mxu1 %v10897_v17 }
 0x874   : > { %v7484_v18 = vpop.f32.mrf.mxu2  ;;  %v7533_v42 = vpop.f32.mrf.mxu3 }
 0x875   : > { %v7485_v48 = vadd.f32 %v7484_v18, %v7436_v41  ;;  %v7388_v21 = vpop.f32.mrf.mxu0  ;;  %v7437_v33 = vpop.f32.mrf.mxu1  ;;  %v15176_v18 = vld [vmem:[#allocation69_spill] sm:$0xff] }
 0x876   : > { %v7389_v34 = vadd.f32 %v7388_v21, %v13958_v56 }
 0x877   : > { %v13968_v23 = vadd.f32 %v7533_v42, %v7485_v48  ;;  %v11661_v48 = vld [vmem:[#allocation8 + $0x7f0] sm:$0xf0]  ;;  %v10788_v42 = vld [vmem:[#allocation8 + $0x668] sm:$0xf] }
 0x878   : > { %v7438_v16 = vadd.f32 %v7437_v33, %v7389_v34  ;;  %v10981_v21 = vor.u32 %v11661_v48, %v10980_v30  ;;  %v11613_v34 = vld [vmem:[#allocation8 + $0x670] sm:$0xf0]  ;;  %v11076_v33 = vld [vmem:[#allocation8 + $0x8a8] sm:$0xf] }
 0x879   : > { %v11077_v17 = vor.u32 %v11685_v8, %v11076_v33 }
 0x87a   : > { %7870 = vmatpush.bf16.msrb.mxu2 %v10981_v21 }
 0x87b   : > { %7919 = vmatpush.bf16.msrb.mxu3 %v11077_v17  ;;  %v15180_v17 = vld [vmem:[#allocation71_spill] sm:$0xff] }
 0x87c   : > { %v7486_v39 = vpop.f32.mrf.mxu2  ;;  %v7535_v3 = vpop.f32.mrf.mxu3 }
 0x87d   : > { %v7487_v52 = vadd.f32 %v7486_v39, %v7438_v16  ;;  %v7391_v5 = vpop.f32.mrf.mxu0  ;;  %v7440_v15 = vpop.f32.mrf.mxu1  ;;  %v10789_v16 = vor.u32 %v11613_v34, %v10788_v42 }
 0x87e   : > { %v7392_v41 = vadd.f32 %v7391_v5, %v13958_v56 }
 0x87f   : > { %v13971_v11 = vadd.f32 %v7535_v3, %v7487_v52  ;;  %7586 = vmatmul.bf16.gmra.mxu0 %v15174_v0  ;;  %v10884_v0 = vld [vmem:[#allocation8 + $0x728] sm:$0xf] }
 0x880   : > { %v7441_v45 = vadd.f32 %v7440_v15, %v7392_v41  ;;  %7635 = vmatmul.bf16.gmra.mxu1 %v15175_v58  ;;  %7772 = vmatpush.bf16.msrb.mxu0 %v10789_v16  ;;  %v11637_v58 = vld [vmem:[#allocation8 + $0x730] sm:$0xf0] }
 0x881   : > { %7684 = vmatmul.bf16.gmra.mxu2 %v15176_v18  ;;  %7733 = vmatmul.bf16.gmra.mxu3 %v15177_v63  ;;  %v10885_v63 = vor.u32 %v11637_v58, %v10884_v0  ;;  %v15179_v16 = vld [vmem:[#allocation61_spill] sm:$0xff]  ;;  %v11610_v0 = vld [vmem:[#allocation8 + $0x658] sm:$0xf0]  ;;  %v11064_v58 = vld [vmem:[#allocation8 + $0x890] sm:$0xf] }
 0x883   : > { %7821 = vmatpush.bf16.msrb.mxu1 %v10885_v63 }
 0x884   : > { %v7489_v25 = vpop.f32.mrf.mxu2  ;;  %v7538_v52 = vpop.f32.mrf.mxu3 }
 0x885   : > { %v7490_v39 = vadd.f32 %v7489_v25, %v7441_v45  ;;  %v7393_v3 = vpop.f32.mrf.mxu0  ;;  %v7442_v41 = vpop.f32.mrf.mxu1  ;;  %v15178_v25 = vld [vmem:[#allocation53_spill] sm:$0xff] }
 0x886   : > { %v7394_v5 = vadd.f32 %v7393_v3, %v13958_v56  ;;  %v11658_v3 = vld [vmem:[#allocation8 + $0x7d8] sm:$0xf0] }
 0x887   : > { %v13978_v15 = vadd.f32 %v7538_v52, %v7490_v39  ;;  %v15181_v39 = vld [vmem:[#allocation72_spill] sm:$0xff] }
 0x888   : > { %v7443_v18 = vadd.f32 %v7442_v41, %v7394_v5  ;;  %v10968_v52 = vld [vmem:[#allocation8 + $0x7d0] sm:$0xf] }
 0x889   : > { %v10776_v5 = vld [vmem:[#allocation8 + $0x650] sm:$0xf]  ;;  %v10969_v41 = vor.u32 %v11658_v3, %v10968_v52 }
 0x88b   : > { %7871 = vmatpush.bf16.msrb.mxu2 %v10969_v41 }
 0x88c   : > { %v7491_v30 = vpop.f32.mrf.mxu2  ;;  %v7540_v42 = vpop.f32.mrf.mxu3 }
 0x88d   : > { %v7492_v48 = vadd.f32 %v7491_v30, %v7443_v18  ;;  %v7396_v34 = vpop.f32.mrf.mxu0  ;;  %v7445_v33 = vpop.f32.mrf.mxu1  ;;  %v11682_v18 = vld [vmem:[#allocation8 + $0x898] sm:$0xf0]  ;;  %v10777_v30 = vor.u32 %v11610_v0, %v10776_v5 }
 0x88e   : > { %v7397_v45 = vadd.f32 %v7396_v34, %v13958_v56 }
 0x88f   : > { %v13981_v21 = vadd.f32 %v7540_v42, %v7492_v48  ;;  %7591 = vmatmul.bf16.gmra.mxu0 %v15178_v25  ;;  %v11065_v48 = vor.u32 %v11682_v18, %v11064_v58 }
 0x890   : > { %v7446_v8 = vadd.f32 %v7445_v33, %v7397_v45  ;;  %7640 = vmatmul.bf16.gmra.mxu1 %v15179_v16  ;;  %7773 = vmatpush.bf16.msrb.mxu0 %v10777_v30  ;;  %v15183_v30 = vld [vmem:[#allocation62_spill] sm:$0xff] }
 0x891   : > { %7689 = vmatmul.bf16.gmra.mxu2 %v15180_v17  ;;  %7738 = vmatmul.bf16.gmra.mxu3 %v15181_v39  ;;  %v10872_v17 = vld [vmem:[#allocation8 + $0x710] sm:$0xf]  ;;  %v11634_v39 = vld [vmem:[#allocation8 + $0x718] sm:$0xf0] }
 0x892   : > { %7920 = vmatpush.bf16.msrb.mxu3 %v11065_v48  ;;  %v10873_v3 = vor.u32 %v11634_v39, %v10872_v17  ;;  %v15184_v48 = vld [vmem:[#allocation73_spill] sm:$0xff]  ;;  %v11679_v39 = vld [vmem:[#allocation8 + $0x880] sm:$0xf0] }
 0x893   : > { %v11052_v17 = vld [vmem:[#allocation8 + $0x878] sm:$0xf] }
 0x894   : > { %v7494_v63 = vpop.f32.mrf.mxu2  ;;  %v7543_v34 = vpop.f32.mrf.mxu3  ;;  %7822 = vmatpush.bf16.msrb.mxu1 %v10873_v3 }
 0x895   : > { %v7495_v42 = vadd.f32 %v7494_v63, %v7446_v8  ;;  %v7398_v45 = vpop.f32.mrf.mxu0  ;;  %v7447_v25 = vpop.f32.mrf.mxu1  ;;  %v15182_v63 = vld [vmem:[#allocation54_spill] sm:$0xff] }
 0x896   : > { %v7399_v33 = vadd.f32 %v7398_v45, %v13958_v56  ;;  %v11655_v45 = vld [vmem:[#allocation8 + $0x7c0] sm:$0xf0] }
 0x897   : > { %v13988_v16 = vadd.f32 %v7543_v34, %v7495_v42  ;;  %v15185_v42 = vld [vmem:[#allocation74_spill] sm:$0xff]  ;;  %v10956_v34 = vld [vmem:[#allocation8 + $0x7b8] sm:$0xf] }
 0x898   : > { %v7448_v52 = vadd.f32 %v7447_v25, %v7399_v33  ;;  %v10764_v33 = vld [vmem:[#allocation8 + $0x638] sm:$0xf]  ;;  %v11607_v25 = vld [vmem:[#allocation8 + $0x640] sm:$0xf0] }
 0x899   : > { %v10765_v3 = vor.u32 %v11607_v25, %v10764_v33 }
 0x89b   : > { %7774 = vmatpush.bf16.msrb.mxu0 %v10765_v3  ;;  %v15187_v3 = vld [vmem:[#allocation63_spill] sm:$0xff] }
 0x89c   : > { %v7496_v7 = vpop.f32.mrf.mxu2  ;;  %v7545_v5 = vpop.f32.mrf.mxu3 }
 0x89d   : > { %v7497_v44 = vadd.f32 %v7496_v7, %v7448_v52  ;;  %v7401_v0 = vpop.f32.mrf.mxu0  ;;  %v7450_v58 = vpop.f32.mrf.mxu1  ;;  %v10957_v7 = vor.u32 %v11655_v45, %v10956_v34 }
 0x89e   : > { %v7402_v8 = vadd.f32 %v7401_v0, %v13958_v56 }
 0x89f   : > { %v13991_v41 = vadd.f32 %v7545_v5, %v7497_v44  ;;  %7596 = vmatmul.bf16.gmra.mxu0 %v15182_v63  ;;  %v11053_v44 = vor.u32 %v11679_v39, %v11052_v17  ;;  %7872 = vmatpush.bf16.msrb.mxu2 %v10957_v7 }
 0x8a0   : > { %v7451_v18 = vadd.f32 %v7450_v58, %v7402_v8  ;;  %7645 = vmatmul.bf16.gmra.mxu1 %v15183_v30 }
 0x8a1   : > { %7694 = vmatmul.bf16.gmra.mxu2 %v15184_v48  ;;  %7743 = vmatmul.bf16.gmra.mxu3 %v15185_v42  ;;  %v10860_v48 = vld [vmem:[#allocation8 + $0x6f8] sm:$0xf]  ;;  %v11631_v42 = vld [vmem:[#allocation8 + $0x700] sm:$0xf0] }
 0x8a2   : > { %7921 = vmatpush.bf16.msrb.mxu3 %v11053_v44  ;;  %v10861_v45 = vor.u32 %v11631_v42, %v10860_v48  ;;  %v15188_v44 = vld [vmem:[#allocation75_spill] sm:$0xff]  ;;  %v11040_v48 = vld [vmem:[#allocation8 + $0x860] sm:$0xf]  ;;  %v11676_v42 = vld [vmem:[#allocation8 + $0x868] sm:$0xf0] }
 0x8a4   : > { %v7499_v52 = vpop.f32.mrf.mxu2  ;;  %v7548_v0 = vpop.f32.mrf.mxu3  ;;  %7823 = vmatpush.bf16.msrb.mxu1 %v10861_v45 }
 0x8a5   : > { %v7500_v5 = vadd.f32 %v7499_v52, %v7451_v18  ;;  %v7403_v8 = vpop.f32.mrf.mxu0  ;;  %v7452_v63 = vpop.f32.mrf.mxu1  ;;  %v15186_v52 = vld [vmem:[#allocation55_spill] sm:$0xff] }
 0x8a6   : > { %v7404_v58 = vadd.f32 %v7403_v8, %v13958_v56  ;;  %v11652_v8 = vld [vmem:[#allocation8 + $0x7a8] sm:$0xf0] }
 0x8a7   : > { %v13998_v30 = vadd.f32 %v7548_v0, %v7500_v5  ;;  %v15189_v5 = vld [vmem:[#allocation76_spill] sm:$0xff]  ;;  %v10944_v0 = vld [vmem:[#allocation8 + $0x7a0] sm:$0xf] }
 0x8a8   : > { %v7453_v34 = vadd.f32 %v7452_v63, %v7404_v58  ;;  %v10752_v58 = vld [vmem:[#allocation8 + $0x620] sm:$0xf]  ;;  %v11604_v63 = vld [vmem:[#allocation8 + $0x628] sm:$0xf0] }
 0x8a9   : > { %v10753_v45 = vor.u32 %v11604_v63, %v10752_v58 }
 0x8ab   : > { %7775 = vmatpush.bf16.msrb.mxu0 %v10753_v45  ;;  %v15191_v45 = vld [vmem:[#allocation64_spill] sm:$0xff] }
 0x8ac   : > { %v7501_v37 = vpop.f32.mrf.mxu2  ;;  %v7550_v33 = vpop.f32.mrf.mxu3 }
 0x8ad   : > { %v7502_v1 = vadd.f32 %v7501_v37, %v7453_v34  ;;  %v7406_v25 = vpop.f32.mrf.mxu0  ;;  %v7455_v17 = vpop.f32.mrf.mxu1  ;;  %v10945_v37 = vor.u32 %v11652_v8, %v10944_v0 }
 0x8ae   : > { %v7407_v18 = vadd.f32 %v7406_v25, %v13958_v56 }
 0x8af   : > { %v14001_v7 = vadd.f32 %v7550_v33, %v7502_v1  ;;  %7601 = vmatmul.bf16.gmra.mxu0 %v15186_v52  ;;  %v11041_v1 = vor.u32 %v11676_v42, %v11040_v48  ;;  %7873 = vmatpush.bf16.msrb.mxu2 %v10945_v37 }
 0x8b0   : > { %v7456_v39 = vadd.f32 %v7455_v17, %v7407_v18  ;;  %7650 = vmatmul.bf16.gmra.mxu1 %v15187_v3 }
 0x8b1   : > { %7699 = vmatmul.bf16.gmra.mxu2 %v15188_v44  ;;  %7748 = vmatmul.bf16.gmra.mxu3 %v15189_v5  ;;  %v10848_v44 = vld [vmem:[#allocation8 + $0x6e0] sm:$0xf]  ;;  %v11628_v5 = vld [vmem:[#allocation8 + $0x6e8] sm:$0xf0] }
 0x8b2   : > { %7922 = vmatpush.bf16.msrb.mxu3 %v11041_v1  ;;  %v10849_v8 = vor.u32 %v11628_v5, %v10848_v44  ;;  %v15192_v1 = vld [vmem:[#allocation77_spill] sm:$0xff]  ;;  %v11028_v44 = vld [vmem:[#allocation8 + $0x848] sm:$0xf] }
 0x8b3   : > { %v11673_v5 = vld [vmem:[#allocation8 + $0x850] sm:$0xf0] }
 0x8b4   : > { %v7504_v34 = vpop.f32.mrf.mxu2  ;;  %v7553_v25 = vpop.f32.mrf.mxu3  ;;  %7824 = vmatpush.bf16.msrb.mxu1 %v10849_v8 }
 0x8b5   : > { %v7505_v33 = vadd.f32 %v7504_v34, %v7456_v39  ;;  %v7408_v18 = vpop.f32.mrf.mxu0  ;;  %v7457_v52 = vpop.f32.mrf.mxu1  ;;  %v15190_v34 = vld [vmem:[#allocation56_spill] sm:$0xff] }
 0x8b6   : > { %v7409_v17 = vadd.f32 %v7408_v18, %v13958_v56  ;;  %v11649_v18 = vld [vmem:[#allocation8 + $0x790] sm:$0xf0] }
 0x8b7   : > { %v14008_v3 = vadd.f32 %v7553_v25, %v7505_v33  ;;  %v15193_v33 = vld [vmem:[#allocation78_spill] sm:$0xff]  ;;  %v10932_v25 = vld [vmem:[#allocation8 + $0x788] sm:$0xf] }
 0x8b8   : > { %v7458_v0 = vadd.f32 %v7457_v52, %v7409_v17  ;;  %v10740_v17 = vld [vmem:[#allocation8 + $0x608] sm:$0xf]  ;;  %v11601_v52 = vld [vmem:[#allocation8 + $0x610] sm:$0xf0] }
 0x8b9   : > { %v10741_v8 = vor.u32 %v11601_v52, %v10740_v17 }
 0x8bb   : > { %7776 = vmatpush.bf16.msrb.mxu0 %v10741_v8  ;;  %v15195_v8 = vld [vmem:[#allocation65_spill] sm:$0xff] }
 0x8bc   : > { %v7506_v28 = vpop.f32.mrf.mxu2  ;;  %v7555_v58 = vpop.f32.mrf.mxu3 }
 0x8bd   : > { %v7507_v24 = vadd.f32 %v7506_v28, %v7458_v0  ;;  %v7411_v63 = vpop.f32.mrf.mxu0  ;;  %v7460_v48 = vpop.f32.mrf.mxu1  ;;  %v10933_v28 = vor.u32 %v11649_v18, %v10932_v25 }
 0x8be   : > { %v7412_v39 = vadd.f32 %v7411_v63, %v13958_v56 }
 0x8bf   : > { %v14011_v37 = vadd.f32 %v7555_v58, %v7507_v24  ;;  %7606 = vmatmul.bf16.gmra.mxu0 %v15190_v34  ;;  %v11029_v24 = vor.u32 %v11673_v5, %v11028_v44  ;;  %7874 = vmatpush.bf16.msrb.mxu2 %v10933_v28 }
 0x8c0   : > { %v7461_v42 = vadd.f32 %v7460_v48, %v7412_v39  ;;  %7655 = vmatmul.bf16.gmra.mxu1 %v15191_v45 }
 0x8c1   : > { %7704 = vmatmul.bf16.gmra.mxu2 %v15192_v1  ;;  %7753 = vmatmul.bf16.gmra.mxu3 %v15193_v33  ;;  %v10836_v1 = vld [vmem:[#allocation8 + $0x6c8] sm:$0xf]  ;;  %v11625_v33 = vld [vmem:[#allocation8 + $0x6d0] sm:$0xf0] }
 0x8c2   : > { %7923 = vmatpush.bf16.msrb.mxu3 %v11029_v24  ;;  %v10837_v18 = vor.u32 %v11625_v33, %v10836_v1  ;;  %v15196_v24 = vld [vmem:[#allocation79_spill] sm:$0xff] }
 0x8c4   : > { %v7509_v0 = vpop.f32.mrf.mxu2  ;;  %v7558_v63 = vpop.f32.mrf.mxu3  ;;  %7825 = vmatpush.bf16.msrb.mxu1 %v10837_v18 }
 0x8c5   : > { %v7510_v58 = vadd.f32 %v7509_v0, %v7461_v42  ;;  %v7413_v39 = vpop.f32.mrf.mxu0  ;;  %v7462_v34 = vpop.f32.mrf.mxu1  ;;  %v15194_v0 = vld [vmem:[#allocation57_spill] sm:$0xff] }
 0x8c6   : > { %v7414_v48 = vadd.f32 %v7413_v39, %v13958_v56 }
 0x8c7   : > { %v14018_v45 = vadd.f32 %v7558_v63, %v7510_v58  ;;  %v15197_v58 = vld [vmem:[#allocation80_spill] sm:$0xff] }
 0x8c8   : > { %v7463_v25 = vadd.f32 %v7462_v34, %v7414_v48 }
 0x8cc   : > { %v7511_v12 = vpop.f32.mrf.mxu2  ;;  %v7560_v17 = vpop.f32.mrf.mxu3 }
 0x8cd   : > { %v7512_v22 = vadd.f32 %v7511_v12, %v7463_v25  ;;  %v7416_v52 = vpop.f32.mrf.mxu0  ;;  %v7465_v44 = vpop.f32.mrf.mxu1 }
 0x8ce   : > { %v7417_v42 = vadd.f32 %v7416_v52, %v13958_v56 }
 0x8cf   : > { %v14021_v28 = vadd.f32 %v7560_v17, %v7512_v22  ;;  %7611 = vmatmul.bf16.gmra.mxu0 %v15194_v0 }
 0x8d0   : > { %v7466_v5 = vadd.f32 %v7465_v44, %v7417_v42  ;;  %7660 = vmatmul.bf16.gmra.mxu1 %v15195_v8 }
 0x8d1   : > { %7709 = vmatmul.bf16.gmra.mxu2 %v15196_v24  ;;  %7758 = vmatmul.bf16.gmra.mxu3 %v15197_v58  ;;  %v15198_v24 = vld [vmem:[#allocation58_spill] sm:$0xff]  ;;  %v15200_v58 = vld [vmem:[#allocation81_spill] sm:$0xff] }
 0x8d4   : > { %v7514_v63 = vpop.f32.mrf.mxu2  ;;  %v7563_v48 = vpop.f32.mrf.mxu3 }
 0x8d5   : > { %v7515_v39 = vadd.f32 %v7514_v63, %v7466_v5  ;;  %v7418_v12 = vpop.f32.mrf.mxu0  ;;  %v7467_v1 = vpop.f32.mrf.mxu1  ;;  %v15199_v5 = vld [vmem:[#allocation66_spill] sm:$0xff] }
 0x8d6   : > { %v7419_v34 = vadd.f32 %v7418_v12, %v13958_v56  ;;  %v15201_v63 = vld [vmem:[#allocation82_spill] sm:$0xff] }
 0x8d7   : > { %v14028_v33 = vadd.f32 %v7563_v48, %v7515_v39 }
 0x8d8   : > { %v7468_v22 = vadd.f32 %v7467_v1, %v7419_v34 }
 0x8dc   : > { %v7516_v25 = vpop.f32.mrf.mxu2  ;;  %v7565_v17 = vpop.f32.mrf.mxu3 }
 0x8dd   : > { %v7517_v18 = vadd.f32 %v7516_v25, %v7468_v22  ;;  %v7421_v52 = vpop.f32.mrf.mxu0  ;;  %v7470_v44 = vpop.f32.mrf.mxu1 }
 0x8de   : > { %v7422_v42 = vadd.f32 %v7421_v52, %v13958_v56 }
 0x8df   : > { %v14031_v0 = vadd.f32 %v7565_v17, %v7517_v18  ;;  %7616 = vmatmul.bf16.gmra.mxu0 %v15198_v24 }
 0x8e0   : > { %v7471_v8 = vadd.f32 %v7470_v44, %v7422_v42  ;;  %7665 = vmatmul.bf16.gmra.mxu1 %v15199_v5 }
 0x8e1   : > { %7714 = vmatmul.bf16.gmra.mxu2 %v15200_v58  ;;  %7763 = vmatmul.bf16.gmra.mxu3 %v15201_v63 }
 0x8e4   : > { %v7519_v39 = vpop.f32.mrf.mxu2  ;;  %v7568_v12 = vpop.f32.mrf.mxu3 }
 0x8e5   : > { %v7520_v48 = vadd.f32 %v7519_v39, %v7471_v8  ;;  %v7423_v34 = vpop.f32.mrf.mxu0  ;;  %v7472_v22 = vpop.f32.mrf.mxu1 }
 0x8e6   : > { %v7424_v1 = vadd.f32 %v7423_v34, %v13958_v56  ;;  %v15202_v56 = vld [vmem:[#allocation27_spill] sm:$0xff] }
 0x8e7   : > { %v14038_v25 = vadd.f32 %v7568_v12, %v7520_v48 }
 0x8e8   : > { %v7473_v18 = vadd.f32 %v7472_v22, %v7424_v1 }
 0x8ec   : > { %v7521_v17 = vpop.f32.mrf.mxu2  ;;  %v7570_v42 = vpop.f32.mrf.mxu3 }
 0x8ed   : > { %v7522_v52 = vadd.f32 %v7521_v17, %v7473_v18  ;;  %v7582_v44 = vpop.f32.mrf.mxu0  ;;  %v7631_v5 = vpop.f32.mrf.mxu1 }
 0x8ee   : > { %v7583_v24 = vadd.f32 %v7582_v44, %v13968_v23 }
 0x8ef   : > { %v14041_v58 = vadd.f32 %v7570_v42, %v7522_v52  ;;  %7777 = vmatmul.bf16.vlgmr.msrb.gmra.mxu0 %v15042_v38 }
 0x8f0   : > { %v7632_v63 = vadd.f32 %v7631_v5, %v7583_v24  ;;  %7826 = vmatmul.bf16.vlgmr.msrb.gmra.mxu1 %v13263_v27 }
 0x8f1   : > { %7875 = vmatmul.bf16.vlgmr.msrb.gmra.mxu2 %v13387_v29  ;;  %7924 = vmatmul.bf16.vlgmr.msrb.gmra.mxu3 %v15202_v56 }
 0x8f4   : > { %v7680_v8 = vpop.f32.mrf.mxu2  ;;  %v7729_v48 = vpop.f32.mrf.mxu3 }
 0x8f5   : > { %v7681_v39 = vadd.f32 %v7680_v8, %v7632_v63  ;;  %v7584_v12 = vpop.f32.mrf.mxu0  ;;  %v7633_v1 = vpop.f32.mrf.mxu1 }
 0x8f6   : > { %v7585_v34 = vadd.f32 %v7584_v12, %v13971_v11  ;;  %v15203_v11 = vld [vmem:[#allocation35_spill] sm:$0xff] }
 0x8f7   : > { %v14048_v23 = vadd.f32 %v7729_v48, %v7681_v39 }
 0x8f8   : > { %v7634_v22 = vadd.f32 %v7633_v1, %v7585_v34 }
 0x8fc   : > { %v7682_v18 = vpop.f32.mrf.mxu2  ;;  %v7731_v52 = vpop.f32.mrf.mxu3 }
 0x8fd   : > { %v7683_v17 = vadd.f32 %v7682_v18, %v7634_v22  ;;  %v7587_v38 = vpop.f32.mrf.mxu0  ;;  %v7636_v42 = vpop.f32.mrf.mxu1 }
 0x8fe   : > { %v7588_v27 = vadd.f32 %v7587_v38, %v13978_v15 }
 0x8ff   : > { %v14051_v29 = vadd.f32 %v7731_v52, %v7683_v17  ;;  %7782 = vmatmul.bf16.gmra.mxu0 %v15043_v46 }
 0x900   : > { %v7637_v44 = vadd.f32 %v7636_v42, %v7588_v27  ;;  %7831 = vmatmul.bf16.gmra.mxu1 %v13279_v9 }
 0x901   : > { %7880 = vmatmul.bf16.gmra.mxu2 %v13399_v54  ;;  %7929 = vmatmul.bf16.gmra.mxu3 %v15203_v11 }
 0x904   : > { %v7685_v24 = vpop.f32.mrf.mxu2  ;;  %v7734_v63 = vpop.f32.mrf.mxu3 }
 0x905   : > { %v7686_v5 = vadd.f32 %v7685_v24, %v7637_v44  ;;  %v7589_v56 = vpop.f32.mrf.mxu0  ;;  %v7638_v39 = vpop.f32.mrf.mxu1 }
 0x906   : > { %v7590_v8 = vadd.f32 %v7589_v56, %v13981_v21  ;;  %v15204_v21 = vld [vmem:[#allocation36_spill] sm:$0xff] }
 0x907   : > { %v14058_v15 = vadd.f32 %v7734_v63, %v7686_v5 }
 0x908   : > { %v7639_v48 = vadd.f32 %v7638_v39, %v7590_v8 }
 0x90c   : > { %v7687_v12 = vpop.f32.mrf.mxu2  ;;  %v7736_v1 = vpop.f32.mrf.mxu3 }
 0x90d   : > { %v7688_v34 = vadd.f32 %v7687_v12, %v7639_v48  ;;  %v7592_v46 = vpop.f32.mrf.mxu0  ;;  %v7641_v22 = vpop.f32.mrf.mxu1 }
 0x90e   : > { %v7593_v9 = vadd.f32 %v7592_v46, %v13988_v16 }
 0x90f   : > { %v14061_v54 = vadd.f32 %v7736_v1, %v7688_v34  ;;  %7787 = vmatmul.bf16.gmra.mxu0 %v15044_v26 }
 0x910   : > { %v7642_v18 = vadd.f32 %v7641_v22, %v7593_v9  ;;  %7836 = vmatmul.bf16.gmra.mxu1 %v13295_v10 }
 0x911   : > { %7885 = vmatmul.bf16.gmra.mxu2 %v13411_v51  ;;  %7934 = vmatmul.bf16.gmra.mxu3 %v15204_v21 }
 0x914   : > { %v7690_v17 = vpop.f32.mrf.mxu2  ;;  %v7739_v38 = vpop.f32.mrf.mxu3 }
 0x915   : > { %v7691_v52 = vadd.f32 %v7690_v17, %v7642_v18  ;;  %v7594_v27 = vpop.f32.mrf.mxu0  ;;  %v7643_v44 = vpop.f32.mrf.mxu1 }
 0x916   : > { %v7595_v42 = vadd.f32 %v7594_v27, %v13991_v41  ;;  %v15205_v41 = vld [vmem:[#allocation91_spill] sm:$0xff] }
 0x917   : > { %v14068_v16 = vadd.f32 %v7739_v38, %v7691_v52 }
 0x918   : > { %v7644_v11 = vadd.f32 %v7643_v44, %v7595_v42 }
 0x91c   : > { %v7692_v24 = vpop.f32.mrf.mxu2  ;;  %v7741_v63 = vpop.f32.mrf.mxu3 }
 0x91d   : > { %v7693_v5 = vadd.f32 %v7692_v24, %v7644_v11  ;;  %v7597_v26 = vpop.f32.mrf.mxu0  ;;  %v7646_v56 = vpop.f32.mrf.mxu1 }
 0x91e   : > { %v7598_v10 = vadd.f32 %v7597_v26, %v13998_v30 }
 0x91f   : > { %v14071_v51 = vadd.f32 %v7741_v63, %v7693_v5  ;;  %7792 = vmatmul.bf16.gmra.mxu0 %v15045_v55 }
 0x920   : > { %v7647_v8 = vadd.f32 %v7646_v56, %v7598_v10  ;;  %7841 = vmatmul.bf16.gmra.mxu1 %v13311_v19 }
 0x921   : > { %7890 = vmatmul.bf16.gmra.mxu2 %v13423_v36  ;;  %7939 = vmatmul.bf16.gmra.mxu3 %v15205_v41 }
 0x924   : > { %v7695_v39 = vpop.f32.mrf.mxu2  ;;  %v7744_v12 = vpop.f32.mrf.mxu3 }
 0x925   : > { %v7696_v48 = vadd.f32 %v7695_v39, %v7647_v8  ;;  %v7599_v34 = vpop.f32.mrf.mxu0  ;;  %v7648_v46 = vpop.f32.mrf.mxu1 }
 0x926   : > { %v7600_v1 = vadd.f32 %v7599_v34, %v14001_v7  ;;  %v15206_v7 = vld [vmem:[#allocation92_spill] sm:$0xff] }
 0x927   : > { %v14078_v30 = vadd.f32 %v7744_v12, %v7696_v48 }
 0x928   : > { %v7649_v9 = vadd.f32 %v7648_v46, %v7600_v1 }
 0x92c   : > { %v7697_v22 = vpop.f32.mrf.mxu2  ;;  %v7746_v21 = vpop.f32.mrf.mxu3 }
 0x92d   : > { %v7698_v18 = vadd.f32 %v7697_v22, %v7649_v9  ;;  %v7602_v55 = vpop.f32.mrf.mxu0  ;;  %v7651_v17 = vpop.f32.mrf.mxu1 }
 0x92e   : > { %v7603_v19 = vadd.f32 %v7602_v55, %v14008_v3 }
 0x92f   : > { %v14081_v36 = vadd.f32 %v7746_v21, %v7698_v18  ;;  %7797 = vmatmul.bf16.gmra.mxu0 %v15046_v2 }
 0x930   : > { %v7652_v52 = vadd.f32 %v7651_v17, %v7603_v19  ;;  %7846 = vmatmul.bf16.gmra.mxu1 %v13327_v60 }
 0x931   : > { %7895 = vmatmul.bf16.gmra.mxu2 %v13435_v62  ;;  %7944 = vmatmul.bf16.gmra.mxu3 %v15206_v7 }
 0x934   : > { %v7700_v38 = vpop.f32.mrf.mxu2  ;;  %v7749_v42 = vpop.f32.mrf.mxu3 }
 0x935   : > { %v7701_v27 = vadd.f32 %v7700_v38, %v7652_v52  ;;  %v7604_v44 = vpop.f32.mrf.mxu0  ;;  %v7653_v24 = vpop.f32.mrf.mxu1 }
 0x936   : > { %v7605_v11 = vadd.f32 %v7604_v44, %v14011_v37  ;;  %v15207_v37 = vld [vmem:[#allocation93_spill] sm:$0xff] }
 0x937   : > { %v14088_v3 = vadd.f32 %v7749_v42, %v7701_v27 }
 0x938   : > { %v7654_v5 = vadd.f32 %v7653_v24, %v7605_v11 }
 0x93c   : > { %v7702_v63 = vpop.f32.mrf.mxu2  ;;  %v7751_v10 = vpop.f32.mrf.mxu3 }
 0x93d   : > { %v7703_v26 = vadd.f32 %v7702_v63, %v7654_v5  ;;  %v7607_v2 = vpop.f32.mrf.mxu0  ;;  %v7656_v56 = vpop.f32.mrf.mxu1 }
 0x93e   : > { %v7608_v60 = vadd.f32 %v7607_v2, %v14018_v45 }
 0x93f   : > { %v14091_v62 = vadd.f32 %v7751_v10, %v7703_v26  ;;  %7802 = vmatmul.bf16.gmra.mxu0 %v15047_v61 }
 0x940   : > { %v7657_v8 = vadd.f32 %v7656_v56, %v7608_v60  ;;  %7851 = vmatmul.bf16.gmra.mxu1 %v13343_v20 }
 0x941   : > { %7900 = vmatmul.bf16.gmra.mxu2 %v13447_v59  ;;  %7949 = vmatmul.bf16.gmra.mxu3 %v15207_v37 }
 0x944   : > { %v7705_v41 = vpop.f32.mrf.mxu2  ;;  %v7754_v48 = vpop.f32.mrf.mxu3 }
 0x945   : > { %v7706_v39 = vadd.f32 %v7705_v41, %v7657_v8  ;;  %v7609_v12 = vpop.f32.mrf.mxu0  ;;  %v7658_v1 = vpop.f32.mrf.mxu1 }
 0x946   : > { %v7610_v34 = vadd.f32 %v7609_v12, %v14021_v28  ;;  %v15208_v28 = vld [vmem:[#allocation94_spill] sm:$0xff] }
 0x947   : > { %v14098_v45 = vadd.f32 %v7754_v48, %v7706_v39 }
 0x948   : > { %v7659_v46 = vadd.f32 %v7658_v1, %v7610_v34 }
 0x94c   : > { %v7707_v9 = vpop.f32.mrf.mxu2  ;;  %v7756_v18 = vpop.f32.mrf.mxu3 }
 0x94d   : > { %v7708_v22 = vadd.f32 %v7707_v9, %v7659_v46  ;;  %v7612_v61 = vpop.f32.mrf.mxu0  ;;  %v7661_v21 = vpop.f32.mrf.mxu1 }
 0x94e   : > { %v7613_v20 = vadd.f32 %v7612_v61, %v14028_v33 }
 0x94f   : > { %v14101_v59 = vadd.f32 %v7756_v18, %v7708_v22  ;;  %7807 = vmatmul.bf16.gmra.mxu0 %v15048_v14 }
 0x950   : > { %v7662_v55 = vadd.f32 %v7661_v21, %v7613_v20  ;;  %7856 = vmatmul.bf16.gmra.mxu1 %v13359_v6  ;;  %v15210_v21 = vld [vmem:[#allocation83_spill] sm:$0xff] }
 0x951   : > { %7905 = vmatmul.bf16.gmra.mxu2 %v13459_v40  ;;  %7954 = vmatmul.bf16.gmra.mxu3 %v15208_v28  ;;  %v8052_v28 = vmul.f32 %v15210_v21, %v15210_v21 }
 0x954   : > { %v7710_v19 = vpop.f32.mrf.mxu2  ;;  %v7759_v52 = vpop.f32.mrf.mxu3 }
 0x955   : > { %v7711_v17 = vadd.f32 %v7710_v19, %v7662_v55  ;;  %v7614_v7 = vpop.f32.mrf.mxu0  ;;  %v7663_v27 = vpop.f32.mrf.mxu1  ;;  %v7965_v55 = vadd.f32 %v13886_v32, %v15210_v21 }
 0x956   : > { %v7615_v38 = vadd.f32 %v7614_v7, %v14031_v0  ;;  %v15209_v0 = vld [vmem:[#allocation95_spill] sm:$0xff] }
 0x957   : > { %v14108_v33 = vadd.f32 %v7759_v52, %v7711_v17 }
 0x958   : > { %v7664_v42 = vadd.f32 %v7663_v27, %v7615_v38 }
 0x95c   : > { %v7712_v44 = vpop.f32.mrf.mxu2  ;;  %v7761_v24 = vpop.f32.mrf.mxu3 }
 0x95d   : > { %v7713_v11 = vadd.f32 %v7712_v44, %v7664_v42  ;;  %v7617_v14 = vpop.f32.mrf.mxu0  ;;  %v7666_v5 = vpop.f32.mrf.mxu1  ;;  %v8056_v44 = vmul.f32 %v13889_v43, %v13889_v43 }
 0x95e   : > { %v7618_v6 = vadd.f32 %v7617_v14, %v14038_v25 }
 0x95f   : > { %v14111_v40 = vadd.f32 %v7761_v24, %v7713_v11  ;;  %7812 = vmatmul.bf16.gmra.mxu0 %v15049_v13 }
 0x960   : > { %v7667_v63 = vadd.f32 %v7666_v5, %v7618_v6  ;;  %7861 = vmatmul.bf16.gmra.mxu1 %v13373_v53  ;;  %v15211_v6 = vld [vmem:[#allocation84_spill] sm:$0xff] }
 0x961   : > { %7910 = vmatmul.bf16.gmra.mxu2 %v13473_v4  ;;  %7959 = vmatmul.bf16.gmra.mxu3 %v15209_v0  ;;  %v7969_v5 = vadd.f32 %v13889_v43, %v15211_v6 }
 0x964   : > { %v7715_v26 = vpop.f32.mrf.mxu2  ;;  %v7764_v2 = vpop.f32.mrf.mxu3 }
 0x965   : > { %v7716_v10 = vadd.f32 %v7715_v26, %v7667_v63  ;;  %v7619_v60 = vpop.f32.mrf.mxu0  ;;  %v7668_v8 = vpop.f32.mrf.mxu1  ;;  %v8055_v63 = vmul.f32 %v15211_v6, %v15211_v6 }
 0x966   : > { %v7620_v56 = vadd.f32 %v7619_v60, %v14041_v58  ;;  %v8053_v58 = vmul.f32 %v13886_v32, %v13886_v32 }
 0x967   : > { %v14118_v25 = vadd.f32 %v7764_v2, %v7716_v10  ;;  %v8104_v10 = vadd.f32 %v8056_v44, %v8055_v63 }
 0x968   : > { %v7669_v37 = vadd.f32 %v7668_v8, %v7620_v56  ;;  %v8100_v17 = vadd.f32 %v8053_v58, %v8052_v28  ;;  %v8059_v8 = vmul.f32 %v13896_v57, %v13896_v57 }
 0x96c   : > { %v7717_v41 = vpop.f32.mrf.mxu2  ;;  %v7766_v48 = vpop.f32.mrf.mxu3 }
 0x96d   : > { %v7718_v39 = vadd.f32 %v7717_v41, %v7669_v37  ;;  %v7778_v13 = vpop.f32.mrf.mxu0  ;;  %v7827_v12 = vpop.f32.mrf.mxu1 }
 0x96e   : > { %v7779_v4 = vadd.f32 %v7778_v13, %v14048_v23 }
 0x96f   : > { %v14120_v53 = vadd.f32 %v7766_v48, %v7718_v39  ;;  %v15212_v48 = vld [vmem:[#allocation85_spill] sm:$0xff] }
 0x970   : > { %v7828_v34 = vadd.f32 %v7827_v12, %v7779_v4  ;;  %v8058_v13 = vmul.f32 %v15212_v48, %v15212_v48 }
 0x974   : > { %v7876_v1 = vpop.f32.mrf.mxu2  ;;  %v7925_v9 = vpop.f32.mrf.mxu3 }
 0x975   : > { %v7877_v46 = vadd.f32 %v7876_v1, %v7828_v34  ;;  %v7780_v22 = vpop.f32.mrf.mxu0  ;;  %v7829_v18 = vpop.f32.mrf.mxu1  ;;  %v7973_v34 = vadd.f32 %v13896_v57, %v15212_v48 }
 0x976   : > { %v7781_v20 = vadd.f32 %v7780_v22, %v14051_v29 }
 0x977   : > { %v14125_v61 = vadd.f32 %v7925_v9, %v7877_v46  ;;  %v8108_v9 = vadd.f32 %v8059_v8, %v8058_v13  ;;  %v8065_v8 = vmul.f32 %v13906_v35, %v13906_v35 }
 0x978   : > { %v7830_v52 = vadd.f32 %v7829_v18, %v7781_v20 }
 0x979   : > { %v7966_v23 = vadd.f32 %v7965_v55, %v14125_v61  ;;  %v8054_v19 = vmul.f32 %v14125_v61, %v14125_v61 }
 0x97b   : > { %7967 = vadd.xlane.f32.xlu0 %v7966_v23  ;;  %v8101_v7 = vadd.f32 %v8100_v17, %v8054_v19  ;;  %v15213_v17 = vld [vmem:[#allocation86_spill] sm:$0xff] }
 0x97c   : > { %v7878_v38 = vpop.f32.mrf.mxu2  ;;  %v7927_v42 = vpop.f32.mrf.mxu3 }
 0x97d   : > { %v7879_v27 = vadd.f32 %v7878_v38, %v7830_v52  ;;  %8102 = vadd.xlane.f32.xlu1 %v8101_v7  ;;  %v7783_v29 = vpop.f32.mrf.mxu0  ;;  %v7832_v11 = vpop.f32.mrf.mxu1  ;;  %v7977_v52 = vadd.f32 %v13899_v47, %v15213_v17 }
 0x97e   : > { %v7784_v14 = vadd.f32 %v7783_v29, %v14058_v15 }
 0x97f   : > { %v14137_v24 = vadd.f32 %v7927_v42, %v7879_v27  ;;  %v8062_v27 = vmul.f32 %v13899_v47, %v13899_v47 }
 0x980   : > { %v7833_v2 = vadd.f32 %v7832_v11, %v7784_v14  ;;  %v8061_v14 = vmul.f32 %v15213_v17, %v15213_v17 }
 0x981   : > { %v7970_v0 = vadd.f32 %v7969_v5, %v14137_v24  ;;  %v8057_v26 = vmul.f32 %v14137_v24, %v14137_v24 }
 0x983   : > { %7971 = vadd.xlane.f32.xlu0 %v7970_v0  ;;  %v8105_v60 = vadd.f32 %v8104_v10, %v8057_v26  ;;  %v15214_v26 = vld [vmem:[#allocation87_spill] sm:$0xff] }
 0x984   : > { %v7881_v56 = vpop.f32.mrf.mxu2  ;;  %v7930_v37 = vpop.f32.mrf.mxu3  ;;  %v7981_v10 = vadd.f32 %v13906_v35, %v15214_v26 }
 0x985   : > { %v7882_v15 = vadd.f32 %v7881_v56, %v7833_v2  ;;  %8106 = vadd.xlane.f32.xlu2 %v8105_v60  ;;  %v7785_v41 = vpop.f32.mrf.mxu0  ;;  %v7834_v39 = vpop.f32.mrf.mxu1  ;;  %v8112_v2 = vadd.f32 %v8062_v27, %v8061_v14 }
 0x986   : > { %v7786_v4 = vadd.f32 %v7785_v41, %v14061_v54  ;;  %v8064_v41 = vmul.f32 %v15214_v26, %v15214_v26 }
 0x987   : > { %v14151_v12 = vadd.f32 %v7930_v37, %v7882_v15 }
 0x988   : > { %v7835_v22 = vadd.f32 %v7834_v39, %v7786_v4 }
 0x989   : > { %v7974_v1 = vadd.f32 %v7973_v34, %v14151_v12  ;;  %v8060_v46 = vmul.f32 %v14151_v12, %v14151_v12  ;;  %v8068_v34 = vmul.f32 %v13909_v49, %v13909_v49 }
 0x98b   : > { %7975 = vadd.xlane.f32.xlu1 %v7974_v1  ;;  %v8109_v58 = vadd.f32 %v8108_v9, %v8060_v46 }
 0x98c   : > { %v7883_v18 = vpop.f32.mrf.mxu2  ;;  %v7932_v55 = vpop.f32.mrf.mxu3 }
 0x98d   : > { %v7884_v20 = vadd.f32 %v7883_v18, %v7835_v22  ;;  %8110 = vadd.xlane.f32.xlu0 %v8109_v58  ;;  %v7788_v28 = vpop.f32.mrf.mxu0  ;;  %v7837_v23 = vpop.f32.mrf.mxu1  ;;  %v8116_v22 = vadd.f32 %v8065_v8, %v8064_v41  ;;  %v15215_v58 = vld [vmem:[#allocation88_spill] sm:$0xff] }
 0x98e   : > { %v7789_v54 = vadd.f32 %v7788_v28, %v14068_v16  ;;  %v8067_v18 = vmul.f32 %v15215_v58, %v15215_v58 }
 0x98f   : > { %v14159_v19 = vadd.f32 %v7932_v55, %v7884_v20 }
 0x990   : > { %v7838_v38 = vadd.f32 %v7837_v23, %v7789_v54  ;;  %v8120_v28 = vadd.f32 %v8068_v34, %v8067_v18  ;;  %v15217_v34 = vld [vmem:[#allocation90_spill] sm:$0xff] }
 0x991   : > { %v7978_v7 = vadd.f32 %v7977_v52, %v14159_v19  ;;  %v8063_v16 = vmul.f32 %v14159_v19, %v14159_v19  ;;  %v7993_v18 = vadd.f32 %v13919_v50, %v15217_v34 }
 0x993   : > { %7979 = vadd.xlane.f32.xlu1 %v7978_v7  ;;  %v8113_v56 = vadd.f32 %v8112_v2, %v8063_v16  ;;  %v8071_v7 = vmul.f32 %v13916_v31, %v13916_v31  ;;  %v7985_v16 = vadd.f32 %v13909_v49, %v15215_v58 }
 0x994   : > { %v7886_v42 = vpop.f32.mrf.mxu2  ;;  %v7935_v44 = vpop.f32.mrf.mxu3 }
 0x995   : > { %v7887_v29 = vadd.f32 %v7886_v42, %v7838_v38  ;;  %v7790_v11 = vpop.f32.mrf.mxu0  ;;  %v7839_v5 = vpop.f32.mrf.mxu1 }
 0x996   : > { %v7791_v0 = vadd.f32 %v7790_v11, %v14071_v51 }
 0x997   : > { %v14171_v63 = vadd.f32 %v7935_v44, %v7887_v29  ;;  %v15216_v29 = vld [vmem:[#allocation89_spill] sm:$0xff] }
 0x998   : > { %v7840_v15 = vadd.f32 %v7839_v5, %v7791_v0  ;;  %v8070_v44 = vmul.f32 %v15216_v29, %v15216_v29  ;;  %v7989_v2 = vadd.f32 %v13916_v31, %v15216_v29 }
 0x999   : > { %v7982_v60 = vadd.f32 %v7981_v10, %v14171_v63  ;;  %v8066_v4 = vmul.f32 %v14171_v63, %v14171_v63 }
 0x99a   : > { %v8124_v10 = vadd.f32 %v8071_v7, %v8070_v44 }
 0x99b   : > { %7983 = vadd.xlane.f32.xlu2 %v7982_v60  ;;  %8114 = vadd.xlane.f32.xlu1 %v8113_v56  ;;  %v8117_v20 = vadd.f32 %v8116_v22, %v8066_v4 }
 0x99c   : > { %v7888_v37 = vpop.f32.mrf.mxu2  ;;  %v7937_v13 = vpop.f32.mrf.mxu3 }
 0x99d   : > { %v7889_v39 = vadd.f32 %v7888_v37, %v7840_v15  ;;  %v7793_v51 = vpop.f32.mrf.mxu0  ;;  %v7842_v1 = vpop.f32.mrf.mxu1 }
 0x99e   : > { %v7794_v9 = vadd.f32 %v7793_v51, %v14078_v30 }
 0x99f   : > { %v14185_v46 = vadd.f32 %v7937_v13, %v7889_v39  ;;  %v8074_v39 = vmul.f32 %v13919_v50, %v13919_v50 }
 0x9a0   : > { %v7843_v23 = vadd.f32 %v7842_v1, %v7794_v9  ;;  %v8073_v1 = vmul.f32 %v15217_v34, %v15217_v34 }
 0x9a1   : > { %v8069_v55 = vmul.f32 %v14185_v46, %v14185_v46  ;;  %v7986_v5 = vadd.f32 %v7985_v16, %v14185_v46 }
 0x9a2   : > { %v8128_v22 = vadd.f32 %v8074_v39, %v8073_v1 }
 0x9a3   : > { %8118 = vadd.xlane.f32.xlu2 %v8117_v20  ;;  %v8121_v54 = vadd.f32 %v8120_v28, %v8069_v55 }
 0x9a4   : > { %v7891_v52 = vpop.f32.mrf.mxu2  ;;  %v7940_v27 = vpop.f32.mrf.mxu3 }
 0x9a5   : > { %v7892_v38 = vadd.f32 %v7891_v52, %v7843_v23  ;;  %8122 = vadd.xlane.f32.xlu0 %v8121_v54  ;;  %v7795_v30 = vpop.f32.mrf.mxu0  ;;  %v7844_v42 = vpop.f32.mrf.mxu1  ;;  %v15218_v54 = vld [vmem:[#allocation20_spill] sm:$0xff] }
 0x9a6   : > { %v7796_v14 = vadd.f32 %v7795_v30, %v14081_v36  ;;  %v8077_v52 = vmul.f32 %v15218_v54, %v15218_v54  ;;  %v15219_v30 = vld [vmem:[#allocation96_spill] sm:$0xff] }
 0x9a7   : > { %v14196_v11 = vadd.f32 %v7940_v27, %v7892_v38  ;;  %v7997_v16 = vadd.f32 %v15218_v54, %v15219_v30 }
 0x9a8   : > { %v7845_v60 = vadd.f32 %v7844_v42, %v7796_v14  ;;  %v8076_v42 = vmul.f32 %v15219_v30, %v15219_v30 }
 0x9a9   : > { %v8072_v0 = vmul.f32 %v14196_v11, %v14196_v11  ;;  %v7990_v8 = vadd.f32 %v7989_v2, %v14196_v11 }
 0x9ab   : > { %7987 = vadd.xlane.f32.xlu2 %v7986_v5  ;;  %v8125_v56 = vadd.f32 %v8124_v10, %v8072_v0  ;;  %v8132_v0 = vadd.f32 %v8077_v52, %v8076_v42  ;;  %v15222_v52 = vld [vmem:[#allocation37_spill] sm:$0xff]  ;;  %v15223_v42 = vld [vmem:[#allocation98_spill] sm:$0xff] }
 0x9ac   : > { %v7893_v15 = vpop.f32.mrf.mxu2  ;;  %v7942_v36 = vpop.f32.mrf.mxu3 }
 0x9ad   : > { %v7894_v37 = vadd.f32 %v7893_v15, %v7845_v60  ;;  %8126 = vadd.xlane.f32.xlu1 %v8125_v56  ;;  %7991 = vadd.xlane.f32.xlu0 %v7990_v8  ;;  %v7798_v41 = vpop.f32.mrf.mxu0  ;;  %v7847_v13 = vpop.f32.mrf.mxu1 }
 0x9ae   : > { %v7799_v4 = vadd.f32 %v7798_v41, %v14088_v3 }
 0x9af   : > { %v14209_v51 = vadd.f32 %v7942_v36, %v7894_v37  ;;  %v15220_v36 = vld [vmem:[#allocation28_spill] sm:$0xff] }
 0x9b0   : > { %v7848_v20 = vadd.f32 %v7847_v13, %v7799_v4  ;;  %v15221_v4 = vld [vmem:[#allocation97_spill] sm:$0xff] }
 0x9b1   : > { %v8075_v9 = vmul.f32 %v14209_v51, %v14209_v51  ;;  %v7994_v28 = vadd.f32 %v7993_v18, %v14209_v51  ;;  %v8079_v1 = vmul.f32 %v15221_v4, %v15221_v4  ;;  %v8001_v18 = vadd.f32 %v15220_v36, %v15221_v4 }
 0x9b3   : > { %v8129_v55 = vadd.f32 %v8128_v22, %v8075_v9 }
 0x9b4   : > { %v7896_v23 = vpop.f32.mrf.mxu2  ;;  %v7945_v3 = vpop.f32.mrf.mxu3 }
 0x9b5   : > { %v7897_v7 = vadd.f32 %v7896_v23, %v7848_v20  ;;  %8130 = vadd.xlane.f32.xlu2 %v8129_v55  ;;  %7995 = vadd.xlane.f32.xlu1 %v7994_v28  ;;  %v7800_v38 = vpop.f32.mrf.mxu0  ;;  %v7849_v27 = vpop.f32.mrf.mxu1 }
 0x9b6   : > { %v7801_v14 = vadd.f32 %v7800_v38, %v14091_v62  ;;  %v8080_v62 = vmul.f32 %v15220_v36, %v15220_v36 }
 0x9b7   : > { %v14223_v44 = vadd.f32 %v7945_v3, %v7897_v7  ;;  %v8083_v7 = vmul.f32 %v15222_v52, %v15222_v52 }
 0x9b8   : > { %v7850_v10 = vadd.f32 %v7849_v27, %v7801_v14  ;;  %v8136_v22 = vadd.f32 %v8080_v62, %v8079_v1  ;;  %v8082_v14 = vmul.f32 %v15223_v42, %v15223_v42 }
 0x9b9   : > { %v8078_v5 = vmul.f32 %v14223_v44, %v14223_v44  ;;  %v7998_v2 = vadd.f32 %v7997_v16, %v14223_v44 }
 0x9bb   : > { %v8133_v60 = vadd.f32 %v8132_v0, %v8078_v5 }
 0x9bc   : > { %v7898_v56 = vpop.f32.mrf.mxu2  ;;  %v7947_v15 = vpop.f32.mrf.mxu3 }
 0x9bd   : > { %v7899_v8 = vadd.f32 %v7898_v56, %v7850_v10  ;;  %7999 = vadd.xlane.f32.xlu2 %v7998_v2  ;;  %8134 = vadd.xlane.f32.xlu0 %v8133_v60  ;;  %v7803_v37 = vpop.f32.mrf.mxu0  ;;  %v7852_v41 = vpop.f32.mrf.mxu1  ;;  %v8140_v10 = vadd.f32 %v8083_v7, %v8082_v14  ;;  %v8005_v2 = vadd.f32 %v15222_v52, %v15223_v42  ;;  %v15226_v14 = vld [vmem:[#allocation21_spill] sm:$0xff] }
 0x9be   : > { %v7804_v13 = vadd.f32 %v7803_v37, %v14098_v45 }
 0x9bf   : > { %v14233_v39 = vadd.f32 %v7947_v15, %v7899_v8 }
 0x9c0   : > { %v7853_v20 = vadd.f32 %v7852_v41, %v7804_v13  ;;  %v15224_v13 = vld [vmem:[#allocation38_spill] sm:$0xff] }
 0x9c1   : > { %v8081_v9 = vmul.f32 %v14233_v39, %v14233_v39  ;;  %v8002_v28 = vadd.f32 %v8001_v18, %v14233_v39  ;;  %v15225_v18 = vld [vmem:[#allocation99_spill] sm:$0xff] }
 0x9c3   : > { %v8137_v55 = vadd.f32 %v8136_v22, %v8081_v9 }
 0x9c4   : > { %v7901_v23 = vpop.f32.mrf.mxu2  ;;  %v7950_v45 = vpop.f32.mrf.mxu3 }
 0x9c5   : > { %v7902_v3 = vadd.f32 %v7901_v23, %v7853_v20  ;;  %8138 = vadd.xlane.f32.xlu1 %v8137_v55  ;;  %8003 = vadd.xlane.f32.xlu0 %v8002_v28  ;;  %v7805_v38 = vpop.f32.mrf.mxu0  ;;  %v7854_v27 = vpop.f32.mrf.mxu1  ;;  %v8085_v20 = vmul.f32 %v15225_v18, %v15225_v18  ;;  %v8009_v55 = vadd.f32 %v15224_v13, %v15225_v18 }
 0x9c6   : > { %v7806_v5 = vadd.f32 %v7805_v38, %v14101_v59  ;;  %v8086_v59 = vmul.f32 %v15224_v13, %v15224_v13  ;;  %v12156_v38 = vmov 384.0  }
 0x9c7   : > { %v14247_v16 = vadd.f32 %v7950_v45, %v7902_v3  ;;  %11815 = vrcp.f32 %v12156_v38 }
 0x9c8   : > { %v7855_v60 = vadd.f32 %v7854_v27, %v7806_v5  ;;  %v8144_v23 = vadd.f32 %v8086_v59, %v8085_v20 }
 0x9c9   : > { %v8084_v0 = vmul.f32 %v14247_v16, %v14247_v16  ;;  %v8006_v8 = vadd.f32 %v8005_v2, %v14247_v16 }
 0x9cb   : > { %v8141_v56 = vadd.f32 %v8140_v10, %v8084_v0 }
 0x9cc   : > { %v7903_v15 = vpop.f32.mrf.mxu2  ;;  %v7952_v62 = vpop.f32.mrf.mxu3 }
 0x9cd   : > { %v7904_v37 = vadd.f32 %v7903_v15, %v7855_v60  ;;  %8142 = vadd.xlane.f32.xlu2 %v8141_v56  ;;  %8007 = vadd.xlane.f32.xlu1 %v8006_v8  ;;  %v7808_v41 = vpop.f32.mrf.mxu0  ;;  %v7857_v1 = vpop.f32.mrf.mxu1  ;;  %v15227_v60 = vld [vmem:[#allocation100_spill] sm:$0xff] }
 0x9ce   : > { %v7809_v22 = vadd.f32 %v7808_v41, %v14108_v33  ;;  %v8089_v33 = vmul.f32 %v15226_v14, %v15226_v14  ;;  %v8088_v56 = vmul.f32 %v15227_v60, %v15227_v60  ;;  %v8013_v59 = vadd.f32 %v15226_v14, %v15227_v60 }
 0x9cf   : > { %v14257_v9 = vadd.f32 %v7952_v62, %v7904_v37  ;;  %v11816_v37 = vpop.eup %11815 }
 0x9d0   : > { %v7858_v7 = vadd.f32 %v7857_v1, %v7809_v22  ;;  %v8148_v41 = vadd.f32 %v8089_v33, %v8088_v56  ;;  %v15230_v33 = vld [vmem:[#allocation101_spill] sm:$0xff]  ;;  %vm8034_vm0 = vweird.f32 %v11816_v37 }
 0x9d1   : > { %v8087_v28 = vmul.f32 %v14257_v9, %v14257_v9  ;;  %v8010_v3 = vadd.f32 %v8009_v55, %v14257_v9 }
 0x9d3   : > { %v8145_v45 = vadd.f32 %v8144_v23, %v8087_v28  ;;  %v8030_v28 = vmul.f32 384.0, %v11816_v37 }
 0x9d4   : > { %v7906_v27 = vpop.f32.mrf.mxu2  ;;  %v7955_v0 = vpop.f32.mrf.mxu3 }
 0x9d5   : > { %v7907_v5 = vadd.f32 %v7906_v27, %v7858_v7  ;;  %8011 = vadd.xlane.f32.xlu2 %v8010_v3  ;;  %8146 = vadd.xlane.f32.xlu0 %v8145_v45  ;;  %v7810_v10 = vpop.f32.mrf.mxu0  ;;  %v7859_v2 = vpop.f32.mrf.mxu1  ;;  %v8031_v27 = vsub.f32 1.0, %v8030_v28 }
 0x9d6   : > { %v7811_v15 = vadd.f32 %v7810_v10, %v14111_v40 }
 0x9d7   : > { %v14271_v8 = vadd.f32 %v7955_v0, %v7907_v5  ;;  %v15231_v5 = vld [vmem:[#allocation29_spill] sm:$0xff] }
 0x9d8   : > { %v7860_v1 = vadd.f32 %v7859_v2, %v7811_v15  ;;  %v8017_v0 = vadd.f32 %v15231_v5, %v15230_v33  ;;  %v8032_v15 = vmul.f32 %v11816_v37, %v8031_v27 }
 0x9d9   : > { %15228 = vst [vmem:[#allocation22_spill] sm:$0xff] %v14271_v8  ;;  %v8090_v62 = vmul.f32 %v14271_v8, %v14271_v8  ;;  %v8014_v20 = vadd.f32 %v8013_v59, %v14271_v8 }
 0x9da   : > { %v8033_v28 = vadd.f32 %v11816_v37, %v8032_v15  ;;  %v15235_v15 = vld [vmem:[#allocation40_spill] sm:$0xff] }
 0x9db   : > { %v8149_v22 = vadd.f32 %v8148_v41, %v8090_v62 }
 0x9dc   : > { %v7908_v55 = vpop.f32.mrf.mxu2  ;;  %v7957_v7 = vpop.f32.mrf.mxu3  ;;  %v14293_v27 = vsel %vm8034_vm0, %v11816_v37, %v8033_v28 }
 0x9dd   : > { %v7909_v23 = vadd.f32 %v7908_v55, %v7860_v1  ;;  %8150 = vadd.xlane.f32.xlu1 %v8149_v22  ;;  %8015 = vadd.xlane.f32.xlu0 %v8014_v20  ;;  %v7813_v3 = vpop.f32.mrf.mxu0  ;;  %v7862_v38 = vpop.f32.mrf.mxu1  ;;  %v15233_v20 = vld [vmem:[#allocation102_spill] sm:$0xff] }
 0x9de   : > { %v7814_v45 = vadd.f32 %v7813_v3, %v14118_v25  ;;  %v15234_v25 = vld [vmem:[#allocation39_spill] sm:$0xff] }
 0x9df   : > { %v14279_v40 = vadd.f32 %v7957_v7, %v7909_v23  ;;  %v8021_v55 = vadd.f32 %v15234_v25, %v15233_v20 }
 0x9e0   : > { %v7863_v10 = vadd.f32 %v7862_v38, %v7814_v45  ;;  %v8092_v45 = vmul.f32 %v15231_v5, %v15231_v5 }
 0x9e1   : > { %15229 = vst [vmem:[#allocation30_spill] sm:$0xff] %v14279_v40  ;;  %v8018_v2 = vadd.f32 %v8017_v0, %v14279_v40 }
 0x9e4   : > { %v7911_v56 = vpop.f32.mrf.mxu2  ;;  %v7960_v41 = vpop.f32.mrf.mxu3 }
 0x9e5   : > { %v7912_v62 = vadd.f32 %v7911_v56, %v7863_v10  ;;  %8019 = vadd.xlane.f32.xlu1 %v8018_v2  ;;  %v7815_v59 = vpop.f32.mrf.mxu0  ;;  %v7864_v7 = vpop.f32.mrf.mxu1  ;;  %v8093_v10 = vmul.f32 %v14279_v40, %v14279_v40 }
 0x9e6   : > { %v7816_v22 = vadd.f32 %v7815_v59, %v14120_v53  ;;  %v8091_v53 = vmul.f32 %v15230_v33, %v15230_v33 }
 0x9e7   : > { %v14285_v1 = vadd.f32 %v7960_v41, %v7912_v62  ;;  %v8098_v62 = vmul.f32 %v15235_v15, %v15235_v15 }
 0x9e8   : > { %v7865_v3 = vadd.f32 %v7864_v7, %v7816_v22  ;;  %v8152_v22 = vadd.f32 %v8092_v45, %v8091_v53  ;;  %v8095_v45 = vmul.f32 %v15234_v25, %v15234_v25 }
 0x9e9   : > { %15232 = vst [vmem:[#allocation41_spill] sm:$0xff] %v14285_v1  ;;  %v8022_v23 = vadd.f32 %v8021_v55, %v14285_v1  ;;  %v15237_v55 = vld [vmem:[#allocation103_spill] sm:$0xff] }
 0x9ea   : > { %v8025_v28 = vadd.f32 %v15235_v15, %v15237_v55 }
 0x9eb   : > { %8023 = vadd.xlane.f32.xlu2 %v8022_v23  ;;  %v8097_v23 = vmul.f32 %v15237_v55, %v15237_v55 }
 0x9ec   : > { %v7913_v38 = vpop.f32.mrf.mxu2  ;;  %v7962_v2 = vpop.f32.mrf.mxu3 }
 0x9ed   : > { %v7914_v0 = vadd.f32 %v7913_v38, %v7865_v3  ;;  %v8153_v3 = vadd.f32 %v8152_v22, %v8093_v10 }
 0x9ee   : > { %v7968_v56 = vpop.xlane.xlu0 %7967 }
 0x9ef   : > { %v14301_v41 = vadd.f32 %v7962_v2, %v7914_v0  ;;  %v14304_v59 = vmul.f32 %v14293_v27, %v7968_v56  ;;  %v8160_v56 = vadd.f32 %v8098_v62, %v8097_v23 }
 0x9f0   : > { %v8103_v37 = vpop.xlane.xlu1 %8102 }
 0x9f1   : > { %15236 = vst [vmem:[#allocation42_spill] sm:$0xff] %v14301_v41  ;;  %v8164_v7 = vmul.f32 %v8103_v37, %v14293_v27  ;;  %v8180_v38 = vmul.f32 %v14304_v59, %v14304_v59  ;;  %v8026_v0 = vadd.f32 %v8025_v28, %v14301_v41  ;;  %v8099_v2 = vmul.f32 %v14301_v41, %v14301_v41 }
 0x9f2   : > { %v8094_v37 = vmul.f32 %v15233_v20, %v15233_v20  ;;  %v8096_v28 = vmul.f32 %v14285_v1, %v14285_v1 }
 0x9f3   : > { %8154 = vadd.xlane.f32.xlu2 %v8153_v3  ;;  %v8196_v53 = vsub.f32 %v8164_v7, %v8180_v38  ;;  %8027 = vadd.xlane.f32.xlu0 %v8026_v0  ;;  %v8161_v15 = vadd.f32 %v8160_v56, %v8099_v2 }
 0x9f4   : > { %v8156_v23 = vadd.f32 %v8095_v45, %v8094_v37 }
 0x9f5   : > { %v8260_v10 = vadd.f32 1e-05, %v8196_v53  ;;  %8162 = vadd.xlane.f32.xlu1 %v8161_v15 }
 0x9f6   : > { %v7972_v22 = vpop.xlane.xlu0 %7971  ;;  %v8157_v38 = vadd.f32 %v8156_v23, %v8096_v28 }
 0x9f7   : > { %v14323_v55 = vmul.f32 %v14293_v27, %v7972_v22  ;;  %11817 = vrsqrt.f32 %v8260_v10  ;;  %vm8282_vm2 = vweird.f32 %v8260_v10 }
 0x9f8   : > { %v8107_v62 = vpop.xlane.xlu2 %8106 }
 0x9f9   : > { %v8165_v3 = vmul.f32 %v8107_v62, %v14293_v27  ;;  %v8181_v7 = vmul.f32 %v14323_v55, %v14323_v55  ;;  %v8484_v62 = vld [vmem:[#allocation11] sm:$0x7] }
 0x9fb   : > { %v8197_v0 = vsub.f32 %v8165_v3, %v8181_v7  ;;  %8158 = vadd.xlane.f32.xlu0 %v8157_v38  ;;  %v14334_v7 = vperm.slane %v8484_v62, 0  ;;  %v14336_v38 = vperm.slane %v8484_v62, 1 }
 0x9fd   : > { %v11818_v2 = vpop.eup %11817  ;;  %v8261_v15 = vadd.f32 1e-05, %v8197_v0  ;;  %v8540_v0 = vld [vmem:[#allocation13] sm:$0x7] }
 0x9fe   : > { %v7976_v56 = vpop.xlane.xlu1 %7975  ;;  %v8277_v53 = vmul.f32 %v11818_v2, %v8260_v10  ;;  %vm8283_vm1 = vweird.f32 %v11818_v2  ;;  %v14353_v10 = vperm.slane %v8540_v0, 2 }
 0x9ff   : > { %v14329_v1 = vmul.f32 %v14293_v27, %v7976_v56  ;;  %11819 = vrsqrt.f32 %v8261_v15  ;;  %vm8284_vm3 = vmor %vm8282_vm2, %vm8283_vm1  ;;  %vm8292_vm5 = vweird.f32 %v8261_v15 }
 0xa00   : > { %v8111_v22 = vpop.xlane.xlu0 %8110  ;;  %v8278_v25 = vmul.f32 %v11818_v2, %v8277_v53  ;;  %v14340_v53 = vperm.slane %v8484_v62, 2 }
 0xa01   : > { %v8182_v45 = vmul.f32 %v14329_v1, %v14329_v1  ;;  %v8166_v37 = vmul.f32 %v8111_v22, %v14293_v27  ;;  %v8214_v22 = vsub.f32 %v14125_v61, %v14304_v59 }
 0xa02   : > { %v8279_v20 = vmul.f32 0.5, %v8278_v25  ;;  %v8212_v25 = vsub.f32 %v15210_v21, %v14304_v59 }
 0xa03   : > { %v8198_v28 = vsub.f32 %v8166_v37, %v8182_v45  ;;  %v14349_v45 = vperm.slane %v8540_v0, 0  ;;  %v14351_v37 = vperm.slane %v8540_v0, 1 }
 0xa04   : > { %v8280_v23 = vsub.f32 1.5, %v8279_v20  ;;  %v8213_v20 = vsub.f32 %v13886_v32, %v14304_v59 }
 0xa05   : > { %v11820_v3 = vpop.eup %11819  ;;  %v14338_v56 = vadd.f32 1e-05, %v8198_v28 }
 0xa06   : > { %v7980_v41 = vpop.xlane.xlu1 %7979  ;;  %v8281_v40 = vmul.f32 %v11818_v2, %v8280_v23  ;;  %v8287_v5 = vmul.f32 %v11820_v3, %v8261_v15  ;;  %vm8293_vm4 = vweird.f32 %v11820_v3 }
 0xa07   : > { %11821 = vrsqrt.f32 %v14338_v56  ;;  %v14359_v60 = vmul.f32 %v14293_v27, %v7980_v41  ;;  %v8216_v41 = vsub.f32 %v13889_v43, %v14323_v55  ;;  %vm8294_vm6 = vmor %vm8292_vm5, %vm8293_vm4  ;;  %vm8302_vm8 = vweird.f32 %v14338_v56 }
 0xa08   : > { %v8285_v62 = vsel %vm8284_vm3, %v11818_v2, %v8281_v40  ;;  %v8288_v28 = vmul.f32 %v11820_v3, %v8287_v5 }
 0xa09   : > { %v8436_v23 = vmul.f32 %v8285_v62, %v8212_v25  ;;  %v8437_v33 = vmul.f32 %v8285_v62, %v8213_v20  ;;  %v8438_v21 = vmul.f32 %v8285_v62, %v8214_v22  ;;  %v8217_v62 = vsub.f32 %v14137_v24, %v14323_v55 }
 0xa0a   : > { %v8289_v8 = vmul.f32 0.5, %v8288_v28 }
 0xa0b   : > { %v8492_v32 = vmul.f32 %v14334_v7, %v8436_v23  ;;  %v8493_v61 = vmul.f32 %v14336_v38, %v8437_v33  ;;  %v8494_v59 = vmul.f32 %v14340_v53, %v8438_v21  ;;  %v8183_v23 = vmul.f32 %v14359_v60, %v14359_v60 }
 0xa0c   : > { %v8290_v14 = vsub.f32 1.5, %v8289_v8  ;;  %v8215_v8 = vsub.f32 %v15211_v6, %v14323_v55 }
 0xa0d   : > { %v11822_v40 = vpop.eup %11821  ;;  %v8548_v5 = vadd.f32 %v14349_v45, %v8492_v32  ;;  %v8549_v2 = vadd.f32 %v14351_v37, %v8493_v61  ;;  %v8550_v0 = vadd.f32 %v14353_v10, %v8494_v59 }
 0xa0e   : > { %v7984_v25 = vpop.xlane.xlu2 %7983  ;;  %v8115_v20 = vpop.xlane.xlu1 %8114  ;;  %v8291_v22 = vmul.f32 %v11820_v3, %v8290_v14  ;;  %v8297_v33 = vmul.f32 %v11822_v40, %v14338_v56  ;;  %vm8303_vm7 = vweird.f32 %v11822_v40 }
 0xa0f   : > { %8596 = vst [vmem:[%s14367_s9] sm:$0xff] %v8548_v5  ;;  %v8167_v14 = vmul.f32 %v8115_v20, %v14293_v27  ;;  %v14383_v43 = vmul.f32 %v14293_v27, %v7984_v25  ;;  %vm8304_vm9 = vmor %vm8302_vm8, %vm8303_vm7 }
 0xa10   : > { %8597 = vst [vmem:[%s14367_s9 + $0x8] sm:$0xff] %v8549_v2  ;;  %v8295_v15 = vsel %vm8294_vm6, %v11820_v3, %v8291_v22  ;;  %v8298_v28 = vmul.f32 %v11822_v40, %v8297_v33 }
 0xa11   : > { %8598 = vst [vmem:[%s14367_s9 + $0x10] sm:$0xff] %v8550_v0  ;;  %v8439_v21 = vmul.f32 %v8295_v15, %v8215_v8  ;;  %v8440_v32 = vmul.f32 %v8295_v15, %v8216_v41  ;;  %v8441_v6 = vmul.f32 %v8295_v15, %v8217_v62  ;;  %v8199_v59 = vsub.f32 %v8167_v14, %v8183_v23 }
 0xa12   : > { %v8299_v61 = vmul.f32 0.5, %v8298_v28  ;;  %v8184_v8 = vmul.f32 %v14383_v43, %v14383_v43  ;;  %v8218_v62 = vsub.f32 %v15212_v48, %v14329_v1  ;;  %v8219_v14 = vsub.f32 %v13896_v57, %v14329_v1 }
 0xa13   : > { %v8495_v24 = vmul.f32 %v14334_v7, %v8439_v21  ;;  %v8496_v55 = vmul.f32 %v14336_v38, %v8440_v32  ;;  %v8497_v3 = vmul.f32 %v14340_v53, %v8441_v6  ;;  %v8263_v2 = vadd.f32 1e-05, %v8199_v59 }
 0xa14   : > { %v8300_v5 = vsub.f32 1.5, %v8299_v61  ;;  %v8220_v15 = vsub.f32 %v14151_v12, %v14329_v1 }
 0xa15   : > { %v8551_v0 = vadd.f32 %v14349_v45, %v8495_v24  ;;  %v8552_v20 = vadd.f32 %v14351_v37, %v8496_v55  ;;  %v8553_v22 = vadd.f32 %v14353_v10, %v8497_v3  ;;  %11823 = vrsqrt.f32 %v8263_v2 }
 0xa16   : > { %v8119_v25 = vpop.xlane.xlu2 %8118  ;;  %v8301_v33 = vmul.f32 %v11822_v40, %v8300_v5  ;;  %vm8312_vm11 = vweird.f32 %v8263_v2 }
 0xa17   : > { %v8168_v41 = vmul.f32 %v8119_v25, %v14293_v27  ;;  %8599 = vst [vmem:[%s14367_s9 + $0x18] sm:$0xff] %v8551_v0 }
 0xa18   : > { %v8123_v56 = vpop.xlane.xlu0 %8122  ;;  %8600 = vst [vmem:[%s14367_s9 + $0x20] sm:$0xff] %v8552_v20  ;;  %v8305_v28 = vsel %vm8304_vm9, %v11822_v40, %v8301_v33 }
 0xa19   : > { %v8200_v23 = vsub.f32 %v8168_v41, %v8184_v8  ;;  %8601 = vst [vmem:[%s14367_s9 + $0x28] sm:$0xff] %v8553_v22  ;;  %v8442_v21 = vmul.f32 %v8305_v28, %v8218_v62  ;;  %v8443_v32 = vmul.f32 %v8305_v28, %v8219_v14  ;;  %v8444_v6 = vmul.f32 %v8305_v28, %v8220_v15 }
 0xa1a   : > { %v8169_v25 = vmul.f32 %v8123_v56, %v14293_v27 }
 0xa1b   : > { %v14405_v61 = vadd.f32 1e-05, %v8200_v23  ;;  %v8498_v48 = vmul.f32 %v14334_v7, %v8442_v21  ;;  %v8499_v57 = vmul.f32 %v14336_v38, %v8443_v32  ;;  %v8500_v12 = vmul.f32 %v14340_v53, %v8444_v6  ;;  %v11824_v1 = vpop.eup %11823 }
 0xa1c   : > { %v8307_v55 = vmul.f32 %v11824_v1, %v8263_v2  ;;  %vm8313_vm10 = vweird.f32 %v11824_v1 }
 0xa1d   : > { %11825 = vrsqrt.f32 %v14405_v61  ;;  %v8554_v40 = vadd.f32 %v14349_v45, %v8498_v48  ;;  %v8555_v59 = vadd.f32 %v14351_v37, %v8499_v57  ;;  %v8556_v24 = vadd.f32 %v14353_v10, %v8500_v12  ;;  %vm8314_vm12 = vmor %vm8312_vm11, %vm8313_vm10 }
 0xa1e   : > { %v7988_v3 = vpop.xlane.xlu2 %7987  ;;  %v8308_v0 = vmul.f32 %v11824_v1, %v8307_v55  ;;  %v8221_v57 = vsub.f32 %v15213_v17, %v14359_v60  ;;  %v8222_v12 = vsub.f32 %v13899_v47, %v14359_v60  ;;  %vm8322_vm14 = vweird.f32 %v14405_v61 }
 0xa1f   : > { %v14415_v5 = vmul.f32 %v14293_v27, %v7988_v3  ;;  %8602 = vst [vmem:[%s14367_s9 + $0x30] sm:$0xff] %v8554_v40  ;;  %v8223_v40 = vsub.f32 %v14159_v19, %v14359_v60  ;;  %v8225_v19 = vsub.f32 %v13906_v35, %v14383_v43  ;;  %v8226_v35 = vsub.f32 %v14171_v63, %v14383_v43 }
 0xa20   : > { %v8127_v20 = vpop.xlane.xlu1 %8126  ;;  %v7992_v22 = vpop.xlane.xlu0 %7991  ;;  %8603 = vst [vmem:[%s14367_s9 + $0x38] sm:$0xff] %v8555_v59  ;;  %v8309_v8 = vmul.f32 0.5, %v8308_v0  ;;  %v8224_v0 = vsub.f32 %v15214_v26, %v14383_v43 }
 0xa21   : > { %v8185_v33 = vmul.f32 %v14415_v5, %v14415_v5  ;;  %8604 = vst [vmem:[%s14367_s9 + $0x40] sm:$0xff] %v8556_v24  ;;  %v14424_v41 = vmul.f32 %v14293_v27, %v7992_v22  ;;  %v8170_v23 = vmul.f32 %v8127_v20, %v14293_v27 }
 0xa22   : > { %v8310_v15 = vsub.f32 1.5, %v8309_v8 }
 0xa23   : > { %v11826_v62 = vpop.eup %11825  ;;  %v8201_v14 = vsub.f32 %v8169_v25, %v8185_v33  ;;  %v8186_v21 = vmul.f32 %v14424_v41, %v14424_v41 }
 0xa24   : > { %v8317_v28 = vmul.f32 %v11826_v62, %v14405_v61  ;;  %v8311_v32 = vmul.f32 %v11824_v1, %v8310_v15  ;;  %vm8323_vm13 = vweird.f32 %v11826_v62 }
 0xa25   : > { %v14430_v56 = vadd.f32 1e-05, %v8201_v14  ;;  %v8202_v48 = vsub.f32 %v8170_v23, %v8186_v21  ;;  %vm8324_vm15 = vmor %vm8322_vm14, %vm8323_vm13 }
 0xa26   : > { %v8318_v6 = vmul.f32 %v11826_v62, %v8317_v28  ;;  %v8315_v59 = vsel %vm8314_vm12, %v11824_v1, %v8311_v32 }
 0xa27   : > { %11827 = vrsqrt.f32 %v14430_v56  ;;  %v14439_v55 = vadd.f32 1e-05, %v8202_v48  ;;  %v8445_v20 = vmul.f32 %v8315_v59, %v8221_v57  ;;  %v8446_v17 = vmul.f32 %v8315_v59, %v8222_v12 }
 0xa28   : > { %v8319_v24 = vmul.f32 0.5, %v8318_v6  ;;  %v8131_v3 = vpop.xlane.xlu2 %8130  ;;  %v7996_v2 = vpop.xlane.xlu1 %7995  ;;  %v8447_v22 = vmul.f32 %v8315_v59, %v8223_v40  ;;  %vm8332_vm1 = vweird.f32 %v14430_v56 }
 0xa29   : > { %11829 = vrsqrt.f32 %v14439_v55  ;;  %v14445_v47 = vmul.f32 %v14293_v27, %v7996_v2  ;;  %v8501_v60 = vmul.f32 %v14334_v7, %v8445_v20  ;;  %v8502_v1 = vmul.f32 %v14336_v38, %v8446_v17 }
 0xa2a   : > { %v8320_v25 = vsub.f32 1.5, %v8319_v24  ;;  %v8503_v26 = vmul.f32 %v14340_v53, %v8447_v22  ;;  %v8171_v8 = vmul.f32 %v8131_v3, %v14293_v27  ;;  %vm8342_vm4 = vweird.f32 %v14439_v55 }
 0xa2b   : > { %v8187_v14 = vmul.f32 %v14445_v47, %v14445_v47  ;;  %v8557_v28 = vadd.f32 %v14349_v45, %v8501_v60  ;;  %v8558_v23 = vadd.f32 %v14351_v37, %v8502_v1 }
 0xa2c   : > { %v8321_v33 = vmul.f32 %v11826_v62, %v8320_v25  ;;  %v8559_v21 = vadd.f32 %v14353_v10, %v8503_v26 }
 0xa2d   : > { %v11828_v15 = vpop.eup %11827  ;;  %v8203_v6 = vsub.f32 %v8171_v8, %v8187_v14  ;;  %8605 = vst [vmem:[%s14367_s9 + $0x48] sm:$0xff] %v8557_v28  ;;  %v8228_v8 = vsub.f32 %v13909_v49, %v14415_v5 }
 0xa2e   : > { %v8325_v61 = vsel %vm8324_vm15, %v11826_v62, %v8321_v33  ;;  %v8327_v32 = vmul.f32 %v11828_v15, %v14430_v56  ;;  %8606 = vst [vmem:[%s14367_s9 + $0x50] sm:$0xff] %v8558_v23  ;;  %vm8333_vm0 = vweird.f32 %v11828_v15  ;;  %v8227_v33 = vsub.f32 %v15215_v58, %v14415_v5 }
 0xa2f   : > { %v8448_v48 = vmul.f32 %v8325_v61, %v8224_v0  ;;  %v8449_v57 = vmul.f32 %v8325_v61, %v8225_v19  ;;  %v8450_v12 = vmul.f32 %v8325_v61, %v8226_v35  ;;  %v11830_v40 = vpop.eup %11829  ;;  %v14465_v43 = vadd.f32 1e-05, %v8203_v6  ;;  %8607 = vst [vmem:[%s14367_s9 + $0x58] sm:$0xff] %v8559_v21  ;;  %vm8334_vm2 = vmor %vm8332_vm1, %vm8333_vm0 }
 0xa30   : > { %v8328_v63 = vmul.f32 %v11828_v15, %v8327_v32  ;;  %v8337_v3 = vmul.f32 %v11830_v40, %v14439_v55  ;;  %v8000_v2 = vpop.xlane.xlu2 %7999  ;;  %v8135_v20 = vpop.xlane.xlu0 %8134  ;;  %v8229_v35 = vsub.f32 %v14185_v46, %v14415_v5  ;;  %vm8343_vm3 = vweird.f32 %v11830_v40 }
 0xa31   : > { %v8504_v59 = vmul.f32 %v14334_v7, %v8448_v48  ;;  %v8505_v24 = vmul.f32 %v14336_v38, %v8449_v57  ;;  %v8506_v62 = vmul.f32 %v14340_v53, %v8450_v12  ;;  %11831 = vrsqrt.f32 %v14465_v43  ;;  %vm8344_vm5 = vmor %vm8342_vm4, %vm8343_vm3 }
 0xa32   : > { %v8329_v0 = vmul.f32 0.5, %v8328_v63  ;;  %v8338_v19 = vmul.f32 %v11830_v40, %v8337_v3  ;;  %v14477_v1 = vmul.f32 %v14293_v27, %v8000_v2  ;;  %v8230_v58 = vsub.f32 %v15216_v29, %v14424_v41 }
 0xa33   : > { %v8560_v17 = vadd.f32 %v14349_v45, %v8504_v59  ;;  %v8561_v22 = vadd.f32 %v14351_v37, %v8505_v24  ;;  %v8562_v25 = vadd.f32 %v14353_v10, %v8506_v62  ;;  %v8172_v49 = vmul.f32 %v8135_v20, %v14293_v27 }
 0xa34   : > { %v8330_v60 = vsub.f32 1.5, %v8329_v0  ;;  %v8339_v26 = vmul.f32 0.5, %v8338_v19  ;;  %v8188_v23 = vmul.f32 %v14477_v1, %v14477_v1  ;;  %v8231_v5 = vsub.f32 %v13916_v31, %v14424_v41 }
 0xa35   : > { %8608 = vst [vmem:[%s14367_s9 + $0x60] sm:$0xff] %v8560_v17  ;;  %v8232_v57 = vsub.f32 %v14196_v11, %v14424_v41  ;;  %vm8352_vm7 = vweird.f32 %v14465_v43 }
 0xa36   : > { %8609 = vst [vmem:[%s14367_s9 + $0x68] sm:$0xff] %v8561_v22  ;;  %v8331_v14 = vmul.f32 %v11828_v15, %v8330_v60  ;;  %v8340_v28 = vsub.f32 1.5, %v8339_v26  ;;  %v8204_v12 = vsub.f32 %v8172_v49, %v8188_v23  ;;  %v8233_v49 = vsub.f32 %v15217_v34, %v14445_v47 }
 0xa37   : > { %8610 = vst [vmem:[%s14367_s9 + $0x70] sm:$0xff] %v8562_v25  ;;  %v11832_v21 = vpop.eup %11831 }
 0xa38   : > { %v8335_v61 = vsel %vm8334_vm2, %v11828_v15, %v8331_v14  ;;  %v8139_v56 = vpop.xlane.xlu1 %8138  ;;  %v8341_v46 = vmul.f32 %v11830_v40, %v8340_v28  ;;  %v8347_v15 = vmul.f32 %v11832_v21, %v14465_v43  ;;  %v8004_v2 = vpop.xlane.xlu0 %8003  ;;  %v14506_v20 = vadd.f32 1e-05, %v8204_v12 }
 0xa39   : > { %v8451_v32 = vmul.f32 %v8335_v61, %v8227_v33  ;;  %v8452_v6 = vmul.f32 %v8335_v61, %v8228_v8  ;;  %v8453_v48 = vmul.f32 %v8335_v61, %v8229_v35  ;;  %vm8353_vm6 = vweird.f32 %v11832_v21 }
 0xa3a   : > { %v8345_v59 = vsel %vm8344_vm5, %v11830_v40, %v8341_v46  ;;  %v8348_v31 = vmul.f32 %v11832_v21, %v8347_v15  ;;  %11833 = vrsqrt.f32 %v14506_v20  ;;  %v14514_v19 = vmul.f32 %v14293_v27, %v8004_v2  ;;  %vm8354_vm8 = vmor %vm8352_vm7, %vm8353_vm6 }
 0xa3b   : > { %v8507_v29 = vmul.f32 %v14334_v7, %v8451_v32  ;;  %v8508_v55 = vmul.f32 %v14336_v38, %v8452_v6  ;;  %v8509_v63 = vmul.f32 %v14340_v53, %v8453_v48  ;;  %v8454_v24 = vmul.f32 %v8345_v59, %v8230_v58 }
 0xa3c   : > { %v8455_v62 = vmul.f32 %v8345_v59, %v8231_v5  ;;  %v8456_v3 = vmul.f32 %v8345_v59, %v8232_v57  ;;  %v8349_v25 = vmul.f32 0.5, %v8348_v31  ;;  %v8173_v28 = vmul.f32 %v8139_v56, %v14293_v27 }
 0xa3d   : > { %v8563_v11 = vadd.f32 %v14349_v45, %v8507_v29  ;;  %v8564_v41 = vadd.f32 %v14351_v37, %v8508_v55  ;;  %v8565_v0 = vadd.f32 %v14353_v10, %v8509_v63  ;;  %v8510_v17 = vmul.f32 %v14334_v7, %v8454_v24 }
 0xa3e   : > { %v8511_v22 = vmul.f32 %v14336_v38, %v8455_v62  ;;  %v8512_v40 = vmul.f32 %v14340_v53, %v8456_v3  ;;  %v8350_v8 = vsub.f32 1.5, %v8349_v25  ;;  %v8189_v23 = vmul.f32 %v14514_v19, %v14514_v19 }
 0xa3f   : > { %8611 = vst [vmem:[%s14367_s9 + $0x78] sm:$0xff] %v8563_v11  ;;  %v8566_v60 = vadd.f32 %v14349_v45, %v8510_v17  ;;  %v8234_v32 = vsub.f32 %v13919_v50, %v14445_v47  ;;  %v8235_v56 = vsub.f32 %v14209_v51, %v14445_v47  ;;  %vm8362_vm10 = vweird.f32 %v14506_v20 }
 0xa40   : > { %8612 = vst [vmem:[%s14367_s9 + $0x80] sm:$0xff] %v8564_v41  ;;  %v8567_v26 = vadd.f32 %v14351_v37, %v8511_v22  ;;  %v8568_v33 = vadd.f32 %v14353_v10, %v8512_v40  ;;  %v8143_v14 = vpop.xlane.xlu2 %8142  ;;  %v8008_v35 = vpop.xlane.xlu1 %8007  ;;  %v8351_v61 = vmul.f32 %v11832_v21, %v8350_v8  ;;  %v8205_v6 = vsub.f32 %v8173_v28, %v8189_v23 }
 0xa41   : > { %8613 = vst [vmem:[%s14367_s9 + $0x88] sm:$0xff] %v8565_v0  ;;  %v14527_v58 = vmul.f32 %v14293_v27, %v8008_v35  ;;  %v8174_v43 = vmul.f32 %v8143_v14, %v14293_v27  ;;  %v11834_v5 = vpop.eup %11833  ;;  %v8238_v8 = vsub.f32 %v14223_v44, %v14477_v1 }
 0xa42   : > { %8614 = vst [vmem:[%s14367_s9 + $0x90] sm:$0xff] %v8566_v60  ;;  %v8355_v48 = vsel %vm8354_vm8, %v11832_v21, %v8351_v61  ;;  %v14541_v12 = vadd.f32 1e-05, %v8205_v6  ;;  %v8357_v50 = vmul.f32 %v11834_v5, %v14506_v20  ;;  %vm8363_vm9 = vweird.f32 %v11834_v5 }
 0xa43   : > { %8615 = vst [vmem:[%s14367_s9 + $0x98] sm:$0xff] %v8567_v26  ;;  %v8190_v46 = vmul.f32 %v14527_v58, %v14527_v58  ;;  %v8457_v57 = vmul.f32 %v8355_v48, %v8233_v49  ;;  %v8458_v15 = vmul.f32 %v8355_v48, %v8234_v32  ;;  %v8459_v34 = vmul.f32 %v8355_v48, %v8235_v56  ;;  %vm8364_vm11 = vmor %vm8362_vm10, %vm8363_vm9 }
 0xa44   : > { %8616 = vst [vmem:[%s14367_s9 + $0xa0] sm:$0xff] %v8568_v33  ;;  %11835 = vrsqrt.f32 %v14541_v12  ;;  %v8358_v55 = vmul.f32 %v11834_v5, %v8357_v50  ;;  %v8236_v26 = vsub.f32 %v15219_v30, %v14477_v1  ;;  %v8237_v33 = vsub.f32 %v15218_v54, %v14477_v1 }
 0xa45   : > { %v8206_v51 = vsub.f32 %v8174_v43, %v8190_v46  ;;  %v8513_v47 = vmul.f32 %v14334_v7, %v8457_v57  ;;  %v8514_v29 = vmul.f32 %v14336_v38, %v8458_v15  ;;  %v8515_v21 = vmul.f32 %v14340_v53, %v8459_v34 }
 0xa46   : > { %v8359_v11 = vmul.f32 0.5, %v8358_v55  ;;  %v8239_v43 = vsub.f32 %v15221_v4, %v14514_v19  ;;  %vm8372_vm13 = vweird.f32 %v14541_v12 }
 0xa47   : > { %v14548_v63 = vadd.f32 1e-05, %v8206_v51  ;;  %v8569_v62 = vadd.f32 %v14349_v45, %v8513_v47  ;;  %v8570_v3 = vadd.f32 %v14351_v37, %v8514_v29  ;;  %v8571_v31 = vadd.f32 %v14353_v10, %v8515_v21 }
 0xa48   : > { %v8012_v59 = vpop.xlane.xlu2 %8011  ;;  %v8147_v24 = vpop.xlane.xlu0 %8146  ;;  %v8360_v17 = vsub.f32 1.5, %v8359_v11  ;;  %v8240_v29 = vsub.f32 %v15220_v36, %v14514_v19  ;;  %v8241_v21 = vsub.f32 %v14233_v39, %v14514_v19  ;;  %v8243_v39 = vsub.f32 %v15222_v52, %v14527_v58 }
 0xa49   : > { %v14554_v2 = vmul.f32 %v14293_v27, %v8012_v59  ;;  %11837 = vrsqrt.f32 %v14548_v63  ;;  %8617 = vst [vmem:[%s14367_s9 + $0xa8] sm:$0xff] %v8569_v62  ;;  %v8175_v0 = vmul.f32 %v8147_v24, %v14293_v27  ;;  %vm8382_vm0 = vweird.f32 %v14548_v63 }
 0xa4a   : > { %8618 = vst [vmem:[%s14367_s9 + $0xb0] sm:$0xff] %v8570_v3  ;;  %v11836_v22 = vpop.eup %11835  ;;  %v8361_v25 = vmul.f32 %v11834_v5, %v8360_v17  ;;  %v8244_v19 = vsub.f32 %v14247_v16, %v14527_v58 }
 0xa4b   : > { %v8191_v41 = vmul.f32 %v14554_v2, %v14554_v2  ;;  %8619 = vst [vmem:[%s14367_s9 + $0xb8] sm:$0xff] %v8571_v31  ;;  %v8367_v60 = vmul.f32 %v11836_v22, %v14541_v12  ;;  %vm8373_vm12 = vweird.f32 %v11836_v22  ;;  %v8242_v12 = vsub.f32 %v15223_v42, %v14527_v58 }
 0xa4c   : > { %v8365_v28 = vsel %vm8364_vm11, %v11834_v5, %v8361_v25  ;;  %vm8374_vm14 = vmor %vm8372_vm13, %vm8373_vm12 }
 0xa4d   : > { %v8207_v40 = vsub.f32 %v8175_v0, %v8191_v41  ;;  %v8368_v23 = vmul.f32 %v11836_v22, %v8367_v60  ;;  %v8460_v61 = vmul.f32 %v8365_v28, %v8236_v26  ;;  %v8461_v49 = vmul.f32 %v8365_v28, %v8237_v33 }
 0xa4e   : > { %v8462_v20 = vmul.f32 %v8365_v28, %v8238_v8 }
 0xa4f   : > { %v14571_v14 = vadd.f32 1e-05, %v8207_v40  ;;  %v11838_v35 = vpop.eup %11837  ;;  %v8369_v6 = vmul.f32 0.5, %v8368_v23  ;;  %v8516_v54 = vmul.f32 %v14334_v7, %v8460_v61  ;;  %v8517_v30 = vmul.f32 %v14336_v38, %v8461_v49 }
 0xa50   : > { %v8377_v32 = vmul.f32 %v11838_v35, %v14548_v63  ;;  %v8016_v56 = vpop.xlane.xlu0 %8015  ;;  %v8518_v44 = vmul.f32 %v14340_v53, %v8462_v20  ;;  %v8151_v48 = vpop.xlane.xlu1 %8150  ;;  %vm8383_vm15 = vweird.f32 %v11838_v35 }
 0xa51   : > { %11839 = vrsqrt.f32 %v14571_v14  ;;  %v8370_v46 = vsub.f32 1.5, %v8369_v6  ;;  %v14581_v5 = vmul.f32 %v14293_v27, %v8016_v56  ;;  %v8572_v57 = vadd.f32 %v14349_v45, %v8516_v54  ;;  %vm8384_vm1 = vmor %vm8382_vm0, %vm8383_vm15 }
 0xa52   : > { %v8378_v1 = vmul.f32 %v11838_v35, %v8377_v32  ;;  %v8573_v15 = vadd.f32 %v14351_v37, %v8517_v30  ;;  %v8574_v34 = vadd.f32 %v14353_v10, %v8518_v44  ;;  %v8176_v47 = vmul.f32 %v8151_v48, %v14293_v27 }
 0xa53   : > { %v8371_v51 = vmul.f32 %v11836_v22, %v8370_v46  ;;  %v8192_v4 = vmul.f32 %v14581_v5, %v14581_v5  ;;  %8620 = vst [vmem:[%s14367_s9 + $0xc0] sm:$0xff] %v8572_v57  ;;  %vm8392_vm3 = vweird.f32 %v14571_v14  ;;  %v8245_v44 = vsub.f32 %v15225_v18, %v14554_v2 }
 0xa54   : > { %v8379_v50 = vmul.f32 0.5, %v8378_v1  ;;  %8621 = vst [vmem:[%s14367_s9 + $0xc8] sm:$0xff] %v8573_v15  ;;  %v8246_v1 = vsub.f32 %v15224_v13, %v14554_v2  ;;  %v8247_v48 = vsub.f32 %v14257_v9, %v14554_v2 }
 0xa55   : > { %v8375_v24 = vsel %vm8374_vm14, %v11836_v22, %v8371_v51  ;;  %v8208_v62 = vsub.f32 %v8176_v47, %v8192_v4  ;;  %8622 = vst [vmem:[%s14367_s9 + $0xd0] sm:$0xff] %v8574_v34 }
 0xa56   : > { %v8380_v55 = vsub.f32 1.5, %v8379_v50  ;;  %v8463_v3 = vmul.f32 %v8375_v24, %v8239_v43  ;;  %v8464_v31 = vmul.f32 %v8375_v24, %v8240_v29  ;;  %v8465_v11 = vmul.f32 %v8375_v24, %v8241_v21 }
 0xa57   : > { %v11840_v59 = vpop.eup %11839  ;;  %v14605_v0 = vadd.f32 1e-05, %v8208_v62 }
 0xa58   : > { %v8381_v36 = vmul.f32 %v11838_v35, %v8380_v55  ;;  %v8387_v41 = vmul.f32 %v11840_v59, %v14571_v14  ;;  %v8519_v42 = vmul.f32 %v14334_v7, %v8463_v3  ;;  %v8520_v63 = vmul.f32 %v14336_v38, %v8464_v31  ;;  %v8020_v61 = vpop.xlane.xlu1 %8019 }
 0xa59   : > { %v8521_v17 = vmul.f32 %v14340_v53, %v8465_v11  ;;  %11841 = vrsqrt.f32 %v14605_v0  ;;  %vm8393_vm2 = vweird.f32 %v11840_v59  ;;  %v14626_v54 = vmul.f32 %v14293_v27, %v8020_v61 }
 0xa5a   : > { %v8385_v22 = vsel %vm8384_vm1, %v11838_v35, %v8381_v36  ;;  %v8388_v60 = vmul.f32 %v11840_v59, %v8387_v41  ;;  %v8575_v16 = vadd.f32 %v14349_v45, %v8519_v42  ;;  %v8576_v58 = vadd.f32 %v14351_v37, %v8520_v63  ;;  %vm8394_vm4 = vmor %vm8392_vm3, %vm8393_vm2  ;;  %v15238_v36 = vld [vmem:[#allocation100_spill] sm:$0xff]  ;;  %v15239_v42 = vld [vmem:[#allocation21_spill] sm:$0xff] }
 0xa5b   : > { %v8466_v40 = vmul.f32 %v8385_v22, %v8242_v12  ;;  %v8467_v25 = vmul.f32 %v8385_v22, %v8243_v39  ;;  %v8468_v52 = vmul.f32 %v8385_v22, %v8244_v19  ;;  %v8577_v26 = vadd.f32 %v14353_v10, %v8521_v17  ;;  %v15240_v17 = vld [vmem:[#allocation22_spill] sm:$0xff] }
 0xa5c   : > { %v8389_v28 = vmul.f32 0.5, %v8388_v60  ;;  %8623 = vst [vmem:[%s14367_s9 + $0xd8] sm:$0xff] %v8575_v16  ;;  %v8193_v18 = vmul.f32 %v14626_v54, %v14626_v54  ;;  %v8248_v39 = vsub.f32 %v15238_v36, %v14581_v5  ;;  %vm8402_vm6 = vweird.f32 %v14605_v0 }
 0xa5d   : > { %v8522_v33 = vmul.f32 %v14334_v7, %v8466_v40  ;;  %v8523_v8 = vmul.f32 %v14336_v38, %v8467_v25  ;;  %v8524_v35 = vmul.f32 %v14340_v53, %v8468_v52  ;;  %8624 = vst [vmem:[%s14367_s9 + $0xe0] sm:$0xff] %v8576_v58  ;;  %v8249_v63 = vsub.f32 %v15239_v42, %v14581_v5 }
 0xa5e   : > { %v8024_v23 = vpop.xlane.xlu2 %8023  ;;  %v8390_v56 = vsub.f32 1.5, %v8389_v28  ;;  %8625 = vst [vmem:[%s14367_s9 + $0xe8] sm:$0xff] %v8577_v26  ;;  %v8250_v22 = vsub.f32 %v15240_v17, %v14581_v5 }
 0xa5f   : > { %v8578_v49 = vadd.f32 %v14349_v45, %v8522_v33  ;;  %v8579_v20 = vadd.f32 %v14351_v37, %v8523_v8  ;;  %v8580_v32 = vadd.f32 %v14353_v10, %v8524_v35  ;;  %v11842_v30 = vpop.eup %11841  ;;  %v14659_v41 = vmul.f32 %v14293_v27, %v8024_v23 }
 0xa60   : > { %v8391_v6 = vmul.f32 %v11840_v59, %v8390_v56  ;;  %v8397_v14 = vmul.f32 %v11842_v30, %v14605_v0  ;;  %vm8403_vm5 = vweird.f32 %v11842_v30 }
 0xa61   : > { %8626 = vst [vmem:[%s14367_s9 + $0xf0] sm:$0xff] %v8578_v49  ;;  %vm8404_vm7 = vmor %vm8402_vm6, %vm8403_vm5  ;;  %v8194_v26 = vmul.f32 %v14659_v41, %v14659_v41 }
 0xa62   : > { %8627 = vst [vmem:[%s14367_s9 + $0xf8] sm:$0xff] %v8579_v20  ;;  %v8395_v43 = vsel %vm8394_vm4, %v11840_v59, %v8391_v6  ;;  %v8398_v34 = vmul.f32 %v11842_v30, %v8397_v14 }
 0xa63   : > { %8628 = vst [vmem:[%s14367_s9 + $0x100] sm:$0xff] %v8580_v32  ;;  %v8469_v46 = vmul.f32 %v8395_v43, %v8245_v44  ;;  %v8470_v57 = vmul.f32 %v8395_v43, %v8246_v1  ;;  %v8471_v15 = vmul.f32 %v8395_v43, %v8247_v48 }
 0xa64   : > { %v8399_v4 = vmul.f32 0.5, %v8398_v34  ;;  %v15242_v34 = vld [vmem:[#allocation29_spill] sm:$0xff] }
 0xa65   : > { %v8525_v13 = vmul.f32 %v14334_v7, %v8469_v46  ;;  %v8526_v51 = vmul.f32 %v14336_v38, %v8470_v57  ;;  %v8527_v9 = vmul.f32 %v14340_v53, %v8471_v15  ;;  %v15241_v57 = vld [vmem:[#allocation101_spill] sm:$0xff] }
 0xa66   : > { %v8155_v50 = vpop.xlane.xlu2 %8154  ;;  %v8028_v47 = vpop.xlane.xlu0 %8027  ;;  %v8400_v62 = vsub.f32 1.5, %v8399_v4  ;;  %v8251_v15 = vsub.f32 %v15241_v57, %v14626_v54 }
 0xa67   : > { %v8177_v2 = vmul.f32 %v8155_v50, %v14293_v27  ;;  %v14645_v29 = vmul.f32 %v14293_v27, %v8028_v47  ;;  %v8581_v21 = vadd.f32 %v14349_v45, %v8525_v13  ;;  %v8582_v55 = vadd.f32 %v14351_v37, %v8526_v51 }
 0xa68   : > { %v8583_v59 = vadd.f32 %v14353_v10, %v8527_v9  ;;  %v8163_v12 = vpop.xlane.xlu1 %8162  ;;  %v8401_v19 = vmul.f32 %v11842_v30, %v8400_v62  ;;  %v8252_v50 = vsub.f32 %v15242_v34, %v14626_v54 }
 0xa69   : > { %v8209_v24 = vsub.f32 %v8177_v2, %v8193_v18  ;;  %8629 = vst [vmem:[%s14367_s9 + $0x108] sm:$0xff] %v8581_v21  ;;  %v8179_v31 = vmul.f32 %v8163_v12, %v14293_v27  ;;  %v8195_v11 = vmul.f32 %v14645_v29, %v14645_v29  ;;  %v15243_v18 = vld [vmem:[#allocation30_spill] sm:$0xff] }
 0xa6a   : > { %8630 = vst [vmem:[%s14367_s9 + $0x110] sm:$0xff] %v8582_v55  ;;  %v8405_v25 = vsel %vm8404_vm7, %v11842_v30, %v8401_v19  ;;  %v8253_v13 = vsub.f32 %v15243_v18, %v14626_v54 }
 0xa6b   : > { %v8273_v3 = vadd.f32 1e-05, %v8209_v24  ;;  %8631 = vst [vmem:[%s14367_s9 + $0x118] sm:$0xff] %v8583_v59  ;;  %v8211_v40 = vsub.f32 %v8179_v31, %v8195_v11  ;;  %v8472_v52 = vmul.f32 %v8405_v25, %v8248_v39  ;;  %v8473_v60 = vmul.f32 %v8405_v25, %v8249_v63  ;;  %v15244_v59 = vld [vmem:[#allocation103_spill] sm:$0xff]  ;;  %v15245_v11 = vld [vmem:[#allocation40_spill] sm:$0xff]  ;;  %v15246_v39 = vld [vmem:[#allocation42_spill] sm:$0xff] }
 0xa6c   : > { %v8474_v16 = vmul.f32 %v8405_v25, %v8250_v22  ;;  %v8257_v24 = vsub.f32 %v15244_v59, %v14645_v29  ;;  %v8258_v36 = vsub.f32 %v15245_v11, %v14645_v29  ;;  %v8259_v19 = vsub.f32 %v15246_v39, %v14645_v29 }
 0xa6d   : > { %11843 = vrsqrt.f32 %v8273_v3  ;;  %v8275_v58 = vadd.f32 1e-05, %v8211_v40  ;;  %v8528_v8 = vmul.f32 %v14334_v7, %v8472_v52  ;;  %v8529_v5 = vmul.f32 %v14336_v38, %v8473_v60 }
 0xa6e   : > { %v8159_v0 = vpop.xlane.xlu0 %8158  ;;  %v8530_v35 = vmul.f32 %v14340_v53, %v8474_v16  ;;  %vm8412_vm9 = vweird.f32 %v8273_v3 }
 0xa6f   : > { %v8178_v33 = vmul.f32 %v8159_v0, %v14293_v27  ;;  %11845 = vrsqrt.f32 %v8275_v58  ;;  %v8584_v61 = vadd.f32 %v14349_v45, %v8528_v8  ;;  %v8585_v49 = vadd.f32 %v14351_v37, %v8529_v5  ;;  %v15248_v8 = vld [vmem:[#allocation39_spill] sm:$0xff] }
 0xa70   : > { %v8586_v20 = vadd.f32 %v14353_v10, %v8530_v35  ;;  %vm8432_vm12 = vweird.f32 %v8275_v58  ;;  %v8255_v5 = vsub.f32 %v15248_v8, %v14659_v41  ;;  %v15249_v35 = vld [vmem:[#allocation41_spill] sm:$0xff] }
 0xa71   : > { %v8210_v28 = vsub.f32 %v8178_v33, %v8194_v26  ;;  %8632 = vst [vmem:[%s14367_s9 + $0x120] sm:$0xff] %v8584_v61  ;;  %v15247_v26 = vld [vmem:[#allocation102_spill] sm:$0xff] }
 0xa72   : > { %8633 = vst [vmem:[%s14367_s9 + $0x128] sm:$0xff] %v8585_v49  ;;  %v8254_v33 = vsub.f32 %v15247_v26, %v14659_v41 }
 0xa73   : > { %v11844_v23 = vpop.eup %11843  ;;  %v8274_v56 = vadd.f32 1e-05, %v8210_v28  ;;  %8634 = vst [vmem:[%s14367_s9 + $0x130] sm:$0xff] %v8586_v20  ;;  %v8256_v28 = vsub.f32 %v15249_v35, %v14659_v41 }
 0xa74   : > { %v8407_v32 = vmul.f32 %v11844_v23, %v8273_v3  ;;  %vm8413_vm8 = vweird.f32 %v11844_v23 }
 0xa75   : > { %11847 = vrsqrt.f32 %v8274_v56  ;;  %v11846_v6 = vpop.eup %11845  ;;  %vm8414_vm10 = vmor %vm8412_vm9, %vm8413_vm8  ;;  %vm8422_vm15 = vweird.f32 %v8274_v56 }
 0xa76   : > { %v8408_v27 = vmul.f32 %v11844_v23, %v8407_v32  ;;  %v8427_v44 = vmul.f32 %v11846_v6, %v8275_v58  ;;  %vm8433_vm11 = vweird.f32 %v11846_v6 }
 0xa77   : > { %vm8434_vm13 = vmor %vm8432_vm12, %vm8433_vm11 }
 0xa78   : > { %v8409_v30 = vmul.f32 0.5, %v8408_v27  ;;  %v8428_v48 = vmul.f32 %v11846_v6, %v8427_v44 }
 0xa7a   : > { %v8410_v1 = vsub.f32 1.5, %v8409_v30  ;;  %v8429_v46 = vmul.f32 0.5, %v8428_v48 }
 0xa7b   : > { %v11848_v43 = vpop.eup %11847 }
 0xa7c   : > { %v8411_v14 = vmul.f32 %v11844_v23, %v8410_v1  ;;  %v8417_v51 = vmul.f32 %v11848_v43, %v8274_v56  ;;  %v8430_v2 = vsub.f32 1.5, %v8429_v46  ;;  %vm8423_vm14 = vweird.f32 %v11848_v43 }
 0xa7d   : > { %vm8424_vm0 = vmor %vm8422_vm15, %vm8423_vm14 }
 0xa7e   : > { %v8415_v9 = vsel %vm8414_vm10, %v11844_v23, %v8411_v14  ;;  %v8418_v55 = vmul.f32 %v11848_v43, %v8417_v51  ;;  %v8431_v12 = vmul.f32 %v11846_v6, %v8430_v2 }
 0xa7f   : > { %v8475_v47 = vmul.f32 %v8415_v9, %v8251_v15  ;;  %v8476_v4 = vmul.f32 %v8415_v9, %v8252_v50  ;;  %v8477_v21 = vmul.f32 %v8415_v9, %v8253_v13 }
 0xa80   : > { %v8419_v31 = vmul.f32 0.5, %v8418_v55  ;;  %v8435_v42 = vsel %vm8434_vm13, %v11846_v6, %v8431_v12 }
 0xa81   : > { %v8531_v62 = vmul.f32 %v14334_v7, %v8475_v47  ;;  %v8532_v3 = vmul.f32 %v14336_v38, %v8476_v4  ;;  %v8533_v54 = vmul.f32 %v14340_v53, %v8477_v21  ;;  %v8481_v40 = vmul.f32 %v8435_v42, %v8257_v24 }
 0xa82   : > { %v8482_v25 = vmul.f32 %v8435_v42, %v8258_v36  ;;  %v8483_v52 = vmul.f32 %v8435_v42, %v8259_v19  ;;  %v8420_v60 = vsub.f32 1.5, %v8419_v31 }
 0xa83   : > { %v8587_v63 = vadd.f32 %v14349_v45, %v8531_v62  ;;  %v8588_v17 = vadd.f32 %v14351_v37, %v8532_v3  ;;  %v8589_v22 = vadd.f32 %v14353_v10, %v8533_v54  ;;  %v8537_v16 = vmul.f32 %v14334_v7, %v8481_v40 }
 0xa84   : > { %v8538_v29 = vmul.f32 %v14336_v38, %v8482_v25  ;;  %v8539_v58 = vmul.f32 %v14340_v53, %v8483_v52  ;;  %v8421_v0 = vmul.f32 %v11848_v43, %v8420_v60 }
 0xa85   : > { %8635 = vst [vmem:[%s14367_s9 + $0x138] sm:$0xff] %v8587_v63  ;;  %v8593_v23 = vadd.f32 %v14349_v45, %v8537_v16 }
 0xa86   : > { %8636 = vst [vmem:[%s14367_s9 + $0x140] sm:$0xff] %v8588_v17  ;;  %v8594_v61 = vadd.f32 %v14351_v37, %v8538_v29  ;;  %v8595_v49 = vadd.f32 %v14353_v10, %v8539_v58  ;;  %v8425_v20 = vsel %vm8424_vm0, %v11848_v43, %v8421_v0 }
 0xa87   : > { %8637 = vst [vmem:[%s14367_s9 + $0x148] sm:$0xff] %v8589_v22  ;;  %v8478_v32 = vmul.f32 %v8425_v20, %v8254_v33  ;;  %v8479_v56 = vmul.f32 %v8425_v20, %v8255_v5  ;;  %v8480_v27 = vmul.f32 %v8425_v20, %v8256_v28 }
 0xa88   : > { %8641 = vst [vmem:[%s14367_s9 + $0x168] sm:$0xff] %v8593_v23 }
 0xa89   : > { %8642 = vst [vmem:[%s14367_s9 + $0x170] sm:$0xff] %v8594_v61  ;;  %v8534_v41 = vmul.f32 %v14334_v7, %v8478_v32  ;;  %v8535_v6 = vmul.f32 %v14336_v38, %v8479_v56  ;;  %v8536_v30 = vmul.f32 %v14340_v53, %v8480_v27 }
 0xa8a   : > { %8643 = vst [vmem:[%s14367_s9 + $0x178] sm:$0xff] %v8595_v49 }
 0xa8b   : > { %v8590_v44 = vadd.f32 %v14349_v45, %v8534_v41  ;;  %v8591_v1 = vadd.f32 %v14351_v37, %v8535_v6  ;;  %v8592_v48 = vadd.f32 %v14353_v10, %v8536_v30 }
 0xa8d   : > { %8638 = vst [vmem:[%s14367_s9 + $0x150] sm:$0xff] %v8590_v44 }
 0xa8e   : > { %8639 = vst [vmem:[%s14367_s9 + $0x158] sm:$0xff] %v8591_v1 }
 0xa8f   : > { %8640 = vst [vmem:[%s14367_s9 + $0x160] sm:$0xff] %v8592_v48 }
 0xa90   : > { %12091 = shalt.err (!%p12088_p9)
}
 0xa91   : > { %s12157_s2 = smov 384   ;;  %s12158_s1 = smov 24  }
 0xa92   : > { %11725 = dma.vmem_to_hbm [thread:$0]  (%p12292_p4), %s8659_s29, 6144, %s8661_s10, %s8645_s13, %s12157_s2, %s12157_s2, %s12158_s1  }
 0xa93 PF: > { %s8675_s23 = sand.u32 1, %s12130_s24   ;;  %p15250_p10 = scmp.ge.s32.totalorder %s12142_s27, 2 }
 0xa94   : > { %s8676_s9 = scalar_lea.sflag [#allocation4], %s8675_s23 }
 0xa95   : > { %p11751_p11 = pnand %p15250_p10, %p12296_p6 }
 0xa97   : > { %p11752_p13 = pneg %p11751_p11 }
 0xa99   : > { %12125 = dma.done.wait (%p11752_p13), %s8676_s9, 6144  }
 0xa9a   : > { %12127 = vsyncadd (%p11752_p13), %s8676_s9, 4294961152  ;;  %p23_p0 = scmp.ge.s32.totalorder %s12270_s12, 4   ;;  %s15251_s24 = smov %s12134_s25 }
 0xa9b   : > { %s15252_s25 = smov %s12138_s26  ;;  %s15253_s26 = smov %s12281_s30 }
 0xa9c   : > { %s15254_s27 = smov %s12270_s12  ;;  %25 = sbr.rel (!%p23_p0) target bundleno = 12 (0xc), region = 117 }
 0xaa1   :  { %8682 = vsyncpa [#allocation3], 1 }
 0xaa2   :  { %8684 = vsyncpa [#allocation3 + $0x1], 1 }
 0xaa3   :  { %8685 = vsyncpa [#allocation6], 1 }
 0xaa4   :  { %8686 = vsyncpa [#allocation9], 1 }
 0xaa5   :  { %8687 = vsyncpa [#allocation12], 1 }
 0xaa6   :  { %8688 = vsyncpa [#allocation4], 1 }
 0xaa7   :  { %8690 = vsyncpa [#allocation4 + $0x1], 1 }

</bundles_post_ra>
